<compile_context>
chip_gen: v5e
topology: v5e:2x2
jax: 0.10.0
libtpu: 0.0.40
codegen_flags: <defaults>
</compile_context>

<pallas_src>
import functools

import jax
import jax.numpy as jnp
from jax import lax
from jax.experimental import pallas as pl
from jax.experimental.pallas import tpu as pltpu

_MXU_DTYPE = jnp.bfloat16     # MXU-native operand dtype; accumulation stays float32
_LN_EPS = 1e-6                # timm LayerNorm default


def _vmem_specs(n):
    return [pl.BlockSpec(memory_space=pltpu.MemorySpace.VMEM) for _ in range(n)]


def _layer_norm(x, g, b, eps=_LN_EPS):
    m = jnp.mean(x, axis=-1, keepdims=True)
    v = jnp.mean(jnp.square(x - m), axis=-1, keepdims=True)
    return (x - m) * lax.rsqrt(v + eps) * g + b


def _erf(x):
    # Abramowitz & Stegun 7.1.26 rational approximation (|err| <= 1.5e-7), built
    # only from exp / mul / add / select so it lowers on every Mosaic generation.
    p = 0.3275911
    a1, a2, a3, a4, a5 = (0.254829592, -0.284496736, 1.421413741,
                          -1.453152027, 1.061405429)
    sgn = jnp.where(x < 0.0, -1.0, 1.0)
    z = jnp.abs(x)
    t = 1.0 / (1.0 + p * z)
    poly = ((((a5 * t + a4) * t + a3) * t + a2) * t + a1) * t
    return sgn * (1.0 - poly * jnp.exp(-z * z))


def _gelu_exact(x):
    # matches torch.nn.GELU() (erf form) to ~1e-7
    return 0.5 * x * (1.0 + _erf(x * 0.7071067811865476))


# ---------------------------------------------------------------------------
# Patch embedding kernel: strided Conv1d == patch matmul (+bias +pos_embed)
# ---------------------------------------------------------------------------

def _patch_embed_kernel(p_ref, w_ref, b_ref, pos_ref, o_ref):
    # p_ref: (B, Np, Cin*P);  w_ref: (Cin*P, D) bf16;  b_ref: (1, D);  pos_ref: (Np, D)
    w = w_ref[...]
    bias = b_ref[...].astype(jnp.float32)
    pos = pos_ref[...].astype(jnp.float32)
    for b in range(p_ref.shape[0]):
        y = jnp.dot(p_ref[b].astype(_MXU_DTYPE), w,
                    preferred_element_type=jnp.float32)
        o_ref[b] = (y + bias + pos).astype(o_ref.dtype)


def patch_embed(patches, w, b, pos):
    B, Np, CP = patches.shape
    D = w.shape[-1]
    args = (patches, w, b, pos)
    in_bytes = int(sum(a.size * a.dtype.itemsize for a in args))
    cost = pl.CostEstimate(flops=2 * B * Np * CP * D, transcendentals=0,
                           bytes_accessed=in_bytes + B * Np * D * 4)
    return pl.pallas_call(
        _patch_embed_kernel,
        out_shape=jax.ShapeDtypeStruct((B, Np, D), patches.dtype),
        in_specs=_vmem_specs(len(args)),
        out_specs=pl.BlockSpec(memory_space=pltpu.MemorySpace.VMEM),
        cost_estimate=cost,
    )(*args)


# ---------------------------------------------------------------------------
# Fully fused transformer block kernel (single invocation, grid=()).
#   LN1 -> qkv -> (GPSA|MHSA) -> proj+res -> LN2 -> fc1+GELU -> fc2+res
#   Optionally fuses the final LayerNorm + classifier head (last block only),
#   in which case the output is the lane-dense padded logits (B, 1, NCp).
# ---------------------------------------------------------------------------

def _block_kernel(*refs, num_heads, scale, use_gpsa, fuse_head, eps):
    it = iter(refs)
    x_ref = next(it)
    n1g = next(it); n1b = next(it)
    wq_ref = next(it); wk_ref = next(it); wv_ref = next(it)   # (H, D, hd) bf16
    if use_gpsa:
        gpos_ref = next(it)                                    # (H, N, N) f32
        omg_ref = next(it)                                     # (H, 1, 1) f32
    pw_ref = next(it); pb_ref = next(it)                       # (H, hd, D) bf16, (1, D)
    n2g = next(it); n2b = next(it)
    w1_ref = next(it); b1_ref = next(it)                       # (D, Hmlp) bf16, (1, Hmlp)
    w2_ref = next(it); b2_ref = next(it)                       # (Hmlp, D) bf16, (1, D)
    if fuse_head:
        ng_ref = next(it); nb_ref = next(it)                   # (1, D)
        hw_ref = next(it); hb_ref = next(it)                   # (D, NCp) bf16, (1, NCp)
    o_ref = next(it)

    B, N, D = x_ref.shape
    H = num_heads
    # head-batched contractions: (H,N,K) x (H,K,M) -> (H,N,M)
    dn_bmm = (((2,), (1,)), ((0,), (0,)))
    # head-batched scores:       (H,N,hd) x (H,N,hd) -> (H,N,N)   (q @ k^T)
    dn_score = (((2,), (2,)), ((0,), (0,)))

    wq = wq_ref[...]; wk = wk_ref[...]; wv = wv_ref[...]; pw = pw_ref[...]
    w1 = w1_ref[...]; w2 = w2_ref[...]
    g1 = n1g[...].astype(jnp.float32); be1 = n1b[...].astype(jnp.float32)
    g2 = n2g[...].astype(jnp.float32); be2 = n2b[...].astype(jnp.float32)
    pb = pb_ref[...].astype(jnp.float32)
    b1 = b1_ref[...].astype(jnp.float32); b2 = b2_ref[...].astype(jnp.float32)
    if use_gpsa:
        gpos = gpos_ref[...].astype(jnp.float32)   # sigmoid(gate) * softmax(pos)
        omg = omg_ref[...].astype(jnp.float32)     # 1 - sigmoid(gate), (H,1,1)
    if fuse_head:
        ng = ng_ref[...].astype(jnp.float32); nb = nb_ref[...].astype(jnp.float32)
        hw = hw_ref[...]; hb = hb_ref[...].astype(jnp.float32)

    # Static loop over the (tiny) batch dim inside one kernel invocation: no
    # per-step pipeline overhead and the LLO scheduler interleaves across b.
    for b in range(B):
        x = x_ref[b].astype(jnp.float32)                          # (N, D)

        # ---- attention branch: LN1 + head-batched qkv + attention + proj ----
        xn = _layer_norm(x, g1, be1, eps).astype(_MXU_DTYPE)
        xn_h = jnp.broadcast_to(xn, (H, N, D))                    # head batch dim
        q = lax.dot_general(xn_h, wq, dn_bmm, preferred_element_type=jnp.float32)
        k = lax.dot_general(xn_h, wk, dn_bmm, preferred_element_type=jnp.float32)
        v = lax.dot_general(xn_h, wv, dn_bmm, preferred_element_type=jnp.float32)

        s = lax.dot_general(q.astype(_MXU_DTYPE), k.astype(_MXU_DTYPE),
                            dn_score, preferred_element_type=jnp.float32) * scale
        s = s - jnp.max(s, axis=-1, keepdims=True)
        p = jnp.exp(s)
        p = p / jnp.sum(p, axis=-1, keepdims=True)                # exact softmax
        if use_gpsa:
            attn = omg * p + gpos
            attn = attn / jnp.sum(attn, axis=-1, keepdims=True)   # exact renorm
        else:
            attn = p

        ctx = lax.dot_general(attn.astype(_MXU_DTYPE), v.astype(_MXU_DTYPE),
                              dn_bmm, preferred_element_type=jnp.float32)  # (H,N,hd)
        # output projection: head-batched (H,N,hd)@(H,hd,D), summed over heads
        # (no lane-axis concatenate needed).
        ph = lax.dot_general(ctx.astype(_MXU_DTYPE), pw, dn_bmm,
                             preferred_element_type=jnp.float32)           # (H,N,D)
        x = x + jnp.sum(ph, axis=0) + pb                          # residual add

        # ---- MLP branch: LN2 + fc1 + GELU + fc2 + residual ----
        hn = _layer_norm(x, g2, be2, eps).astype(_MXU_DTYPE)
        h1 = jnp.dot(hn, w1, preferred_element_type=jnp.float32) + b1
        h1 = _gelu_exact(h1)
        h2 = jnp.dot(h1.astype(_MXU_DTYPE), w2,
                     preferred_element_type=jnp.float32) + b2
        x = x + h2

        if fuse_head:
            # final LayerNorm + classifier head on the cls token only,
            # written to a lane-dense (128-padded) logits block.
            cls = _layer_norm(x[0:1, :], ng, nb, eps).astype(_MXU_DTYPE)
            logits = jnp.dot(cls, hw, preferred_element_type=jnp.float32) + hb
            o_ref[b] = logits.astype(o_ref.dtype)                 # (1, NCp)
        else:
            o_ref[b] = x.astype(o_ref.dtype)                      # (N, D)


def fused_block(x, blk, *, gpos=None, omg=None, head=None, num_heads, use_gpsa):
    B, N, D = x.shape
    hd = D // num_heads
    hidden = blk["fc1_b"].shape[-1]
    fuse_head = head is not None

    args = [x, blk["n1_g"], blk["n1_b"], blk["wq"], blk["wk"], blk["wv"]]
    if use_gpsa:
        args += [gpos, omg]
    args += [blk["proj_w"], blk["proj_b"], blk["n2_g"], blk["n2_b"],
             blk["fc1_w"], blk["fc1_b"], blk["fc2_w"], blk["fc2_b"]]
    if fuse_head:
        norm_g, norm_b, head_w, head_b = head
        args += [norm_g, norm_b, head_w, head_b]
        ncp = head_b.shape[-1]
        out_shape = jax.ShapeDtypeStruct((B, 1, ncp), x.dtype)
        out_bytes = B * ncp * 4
    else:
        out_shape = jax.ShapeDtypeStruct((B, N, D), x.dtype)
        out_bytes = B * N * D * 4

    flops = (2 * B * N * D * 3 * D                    # qkv projection
             + 4 * B * num_heads * N * N * hd         # scores + context
             + 2 * B * N * D * D                      # output projection
             + 4 * B * N * D * hidden)                # mlp
    trans = B * num_heads * N * N + B * N * hidden    # exp + gelu
    in_bytes = int(sum(a.size * a.dtype.itemsize for a in args))
    cost = pl.CostEstimate(flops=int(flops), transcendentals=int(trans),
                           bytes_accessed=in_bytes + out_bytes)

    return pl.pallas_call(
        functools.partial(_block_kernel, num_heads=num_heads, scale=hd ** -0.5,
                          use_gpsa=use_gpsa, fuse_head=fuse_head, eps=_LN_EPS),
        out_shape=out_shape,
        in_specs=_vmem_specs(len(args)),
        out_specs=pl.BlockSpec(memory_space=pltpu.MemorySpace.VMEM),
        cost_estimate=cost,
    )(*args)


# ---------------------------------------------------------------------------
# Parameter setup (bf16 weights, head-major q/k/v/proj layouts) and forward glue
# ---------------------------------------------------------------------------

def init_convit_params(key, *, seq_length, patch_size, in_chans, num_classes,
                       embed_dim, depth, num_heads, mlp_ratio,
                       local_up_to_layer, locality_strength):
    D, H = embed_dim, num_heads
    hd = D // H
    Np = seq_length // patch_size
    hidden = int(D * mlp_ratio)
    ncp = ((num_classes + 127) // 128) * 128          # lane-dense padded head
    keys = iter(jax.random.split(key, 8 + 8 * depth))
    nrm = lambda shape: 0.02 * jax.random.normal(next(keys), shape, jnp.float32)
    zeros = lambda shape: jnp.zeros(shape, jnp.float32)
    ones = lambda shape: jnp.ones(shape, jnp.float32)

    def head_major(w):            # (D_in, H*hd) -> (H, D_in, hd) bf16
        d_in = w.shape[0]
        return w.reshape(d_in, H, hd).transpose(1, 0, 2).astype(_MXU_DTYPE)

    head_w = jnp.zeros((D, ncp), jnp.float32).at[:, :num_classes].set(
        nrm((D, num_classes)))

    params = {
        # TODO(synk): to port pretrained torch weights, Conv1d (out,in,k) must be
        # permuted to (in*k, out); every nn.Linear (out,in) must be transposed to
        # (in,out) and then split head-major / reshaped exactly as below.
        "patch_w": nrm((in_chans * patch_size, D)).astype(_MXU_DTYPE),
        "patch_b": zeros((1, D)),
        "pos_embed": nrm((Np, D)),
        "cls_token": nrm((1, 1, D)),
        "norm_g": ones((1, D)),
        "norm_b": zeros((1, D)),
        "head_w": head_w.astype(_MXU_DTYPE),
        "head_b": zeros((1, ncp)),
        "blocks": [],
    }
    for i in range(depth):
        use_gpsa = i < local_up_to_layer
        # GPSA.local_init: v.weight = I ; qkv_bias=False -> no q/k/v biases stored.
        v_nat = jnp.eye(D, dtype=jnp.float32) if use_gpsa else nrm((D, D))
        blk = {
            "n1_g": ones((1, D)), "n1_b": zeros((1, D)),
            "n2_g": ones((1, D)), "n2_b": zeros((1, D)),
            "wq": head_major(nrm((D, D))),
            "wk": head_major(nrm((D, D))),
            "wv": head_major(v_nat),
            "proj_w": nrm((D, D)).reshape(H, hd, D).astype(_MXU_DTYPE),
            "proj_b": zeros((1, D)),
            "fc1_w": nrm((D, hidden)).astype(_MXU_DTYPE), "fc1_b": zeros((1, hidden)),
            "fc2_w": nrm((hidden, D)).astype(_MXU_DTYPE), "fc2_b": zeros((1, D)),
        }
        if use_gpsa:
            blk["pos_w"] = locality_strength * nrm((2, H))   # GPSA.local_init scaling
            blk["pos_b"] = zeros((H,))
            blk["gating"] = ones((H,))
        params["blocks"].append(blk)
    return params


def convit1d_forward(params, x, *, patch_size, num_heads, local_up_to_layer,
                     num_classes):
    # layout: x is (B, in_chans, seq_length)   (PyTorch Conv1d NCL)
    B, Cin, L = x.shape
    P = patch_size
    Np = L // P
    D = params["pos_embed"].shape[-1]

    # PatchEmbed1D: strided conv == non-overlapping patch gather + matmul.
    patches = x.reshape(B, Cin, Np, P).transpose(0, 2, 1, 3).reshape(B, Np, Cin * P)
    h = patch_embed(patches, params["patch_w"], params["patch_b"],
                    params["pos_embed"])                           # (B, Np, D)

    if local_up_to_layer > 0:
        idx = jnp.arange(Np, dtype=jnp.float32)
        rel = idx[:, None] - idx[None, :]
        rel_feat = jnp.stack([rel, jnp.abs(rel)], axis=-1)         # (Np, Np, 2)

    cls = jnp.broadcast_to(params["cls_token"], (B, 1, D))
    depth = len(params["blocks"])
    for u, blk in enumerate(params["blocks"]):
        if u == local_up_to_layer:
            h = jnp.concatenate([cls, h], axis=1)
        use_gpsa = u < local_up_to_layer
        if use_gpsa:
            # Positional attention is batch-independent -> softmax + gating once
            # per block in XLA glue, passed pre-gated to the kernel.
            logits = jnp.einsum("ijc,ch->hij", rel_feat, blk["pos_w"]) \
                + blk["pos_b"][:, None, None]
            pos_soft = jax.nn.softmax(logits, axis=-1)
            g = jax.nn.sigmoid(blk["gating"])
            gpos = (g[:, None, None] * pos_soft).astype(jnp.float32)   # (H, Np, Np)
            omg = (1.0 - g).reshape(num_heads, 1, 1).astype(jnp.float32)
        else:
            gpos = omg = None
        head = None
        if u == depth - 1:
            # fuse final LayerNorm + classifier head into the last block kernel
            head = (params["norm_g"], params["norm_b"],
                    params["head_w"], params["head_b"])
        h = fused_block(h, blk, gpos=gpos, omg=omg, head=head,
                        num_heads=num_heads, use_gpsa=use_gpsa)

    # last block emitted (B, 1, NCp) lane-dense padded logits
    ncp = params["head_b"].shape[-1]
    return h.reshape(B, ncp)[:, :num_classes]


# ---------------------------------------------------------------------------
# Demo
# ---------------------------------------------------------------------------

if __name__ == "__main__":
    seq_length = 128
    patch_size = 16            # -> num_patches = 8
    in_chans = 2
    embed_dim = 32
    depth = 4
    num_heads = 4              # head_dim = 8
    num_classes = 5
    mlp_ratio = 4.0
    local_up_to_layer = 2
    locality_strength = 1.0
    B = 2

    key = jax.random.PRNGKey(0)
    kp, kx = jax.random.split(key)
    params = init_convit_params(
        kp, seq_length=seq_length, patch_size=patch_size, in_chans=in_chans,
        num_classes=num_classes, embed_dim=embed_dim, depth=depth,
        num_heads=num_heads, mlp_ratio=mlp_ratio,
        local_up_to_layer=local_up_to_layer, locality_strength=locality_strength)

    x = jax.random.normal(kx, (B, in_chans, seq_length), jnp.float32)

    fwd = jax.jit(functools.partial(
        convit1d_forward, patch_size=patch_size, num_heads=num_heads,
        local_up_to_layer=local_up_to_layer, num_classes=num_classes))

    out = fwd(params, x)
    jax.block_until_ready(out)
    assert out.shape == (B, num_classes), out.shape
    assert bool(jnp.all(jnp.isfinite(out)))
    print("KERNEL_OK")
</pallas_src>

<mosaic_0001>
module attributes {stable_mosaic.version = 11 : i64} {
  func.func @_block_kernel(%arg0: memref<2x8x32xf32, #tpu.memory_space<vmem>>, %arg1: memref<1x32xf32, #tpu.memory_space<vmem>>, %arg2: memref<1x32xf32, #tpu.memory_space<vmem>>, %arg3: memref<4x32x8xbf16, #tpu.memory_space<vmem>>, %arg4: memref<4x32x8xbf16, #tpu.memory_space<vmem>>, %arg5: memref<4x32x8xbf16, #tpu.memory_space<vmem>>, %arg6: memref<4x8x8xf32, #tpu.memory_space<vmem>>, %arg7: memref<4x1x1xf32, #tpu.memory_space<vmem>>, %arg8: memref<4x8x32xbf16, #tpu.memory_space<vmem>>, %arg9: memref<1x32xf32, #tpu.memory_space<vmem>>, %arg10: memref<1x32xf32, #tpu.memory_space<vmem>>, %arg11: memref<1x32xf32, #tpu.memory_space<vmem>>, %arg12: memref<32x128xbf16, #tpu.memory_space<vmem>>, %arg13: memref<1x128xf32, #tpu.memory_space<vmem>>, %arg14: memref<128x32xbf16, #tpu.memory_space<vmem>>, %arg15: memref<1x32xf32, #tpu.memory_space<vmem>>, %arg16: memref<2x8x32xf32, #tpu.memory_space<vmem>>) attributes {dimension_semantics = [], scalar_prefetch = 0 : i64, scratch_operands = 0 : i64, tpu.core_type = #tpu.core_type<tc>} {
    %c0 = arith.constant 0 : index
    %c0_0 = arith.constant 0 : index
    %c0_1 = arith.constant 0 : index
    %0 = vector.load %arg3[%c0, %c0_0, %c0_1] : memref<4x32x8xbf16, #tpu.memory_space<vmem>>, vector<4x32x8xbf16>
    %c0_2 = arith.constant 0 : index
    %c0_3 = arith.constant 0 : index
    %c0_4 = arith.constant 0 : index
    %1 = vector.load %arg4[%c0_2, %c0_3, %c0_4] : memref<4x32x8xbf16, #tpu.memory_space<vmem>>, vector<4x32x8xbf16>
    %c0_5 = arith.constant 0 : index
    %c0_6 = arith.constant 0 : index
    %c0_7 = arith.constant 0 : index
    %2 = vector.load %arg5[%c0_5, %c0_6, %c0_7] : memref<4x32x8xbf16, #tpu.memory_space<vmem>>, vector<4x32x8xbf16>
    %c0_8 = arith.constant 0 : index
    %c0_9 = arith.constant 0 : index
    %c0_10 = arith.constant 0 : index
    %3 = vector.load %arg8[%c0_8, %c0_9, %c0_10] : memref<4x8x32xbf16, #tpu.memory_space<vmem>>, vector<4x8x32xbf16>
    %c0_11 = arith.constant 0 : index
    %c0_12 = arith.constant 0 : index
    %4 = vector.load %arg12[%c0_11, %c0_12] : memref<32x128xbf16, #tpu.memory_space<vmem>>, vector<32x128xbf16>
    %c0_13 = arith.constant 0 : index
    %c0_14 = arith.constant 0 : index
    %5 = vector.load %arg14[%c0_13, %c0_14] : memref<128x32xbf16, #tpu.memory_space<vmem>>, vector<128x32xbf16>
    %c0_15 = arith.constant 0 : index
    %c0_16 = arith.constant 0 : index
    %6 = vector.load %arg1[%c0_15, %c0_16] : memref<1x32xf32, #tpu.memory_space<vmem>>, vector<1x32xf32>
    %c0_17 = arith.constant 0 : index
    %c0_18 = arith.constant 0 : index
    %7 = vector.load %arg2[%c0_17, %c0_18] : memref<1x32xf32, #tpu.memory_space<vmem>>, vector<1x32xf32>
    %c0_19 = arith.constant 0 : index
    %c0_20 = arith.constant 0 : index
    %8 = vector.load %arg10[%c0_19, %c0_20] : memref<1x32xf32, #tpu.memory_space<vmem>>, vector<1x32xf32>
    %c0_21 = arith.constant 0 : index
    %c0_22 = arith.constant 0 : index
    %9 = vector.load %arg11[%c0_21, %c0_22] : memref<1x32xf32, #tpu.memory_space<vmem>>, vector<1x32xf32>
    %c0_23 = arith.constant 0 : index
    %c0_24 = arith.constant 0 : index
    %10 = vector.load %arg9[%c0_23, %c0_24] : memref<1x32xf32, #tpu.memory_space<vmem>>, vector<1x32xf32>
    %c0_25 = arith.constant 0 : index
    %c0_26 = arith.constant 0 : index
    %11 = vector.load %arg13[%c0_25, %c0_26] : memref<1x128xf32, #tpu.memory_space<vmem>>, vector<1x128xf32>
    %c0_27 = arith.constant 0 : index
    %c0_28 = arith.constant 0 : index
    %12 = vector.load %arg15[%c0_27, %c0_28] : memref<1x32xf32, #tpu.memory_space<vmem>>, vector<1x32xf32>
    %c0_29 = arith.constant 0 : index
    %c0_30 = arith.constant 0 : index
    %c0_31 = arith.constant 0 : index
    %13 = vector.load %arg6[%c0_29, %c0_30, %c0_31] : memref<4x8x8xf32, #tpu.memory_space<vmem>>, vector<4x8x8xf32>
    %c0_32 = arith.constant 0 : index
    %c0_33 = arith.constant 0 : index
    %c0_34 = arith.constant 0 : index
    %14 = vector.load %arg7[%c0_32, %c0_33, %c0_34] : memref<4x1x1xf32, #tpu.memory_space<vmem>>, vector<4x1x1xf32>
    %c0_35 = arith.constant 0 : index
    %c0_36 = arith.constant 0 : index
    %c0_37 = arith.constant 0 : index
    %15 = vector.load %arg0[%c0_35, %c0_36, %c0_37] : memref<2x8x32xf32, #tpu.memory_space<vmem>>, vector<1x8x32xf32>
    %16 = vector.shape_cast %15 : vector<1x8x32xf32> to vector<8x32xf32>
    %cst = arith.constant dense<0.000000e+00> : vector<8xf32>
    %17 = vector.multi_reduction <add>, %16, %cst [1] : vector<8x32xf32> to vector<8xf32>
    %18 = vector.shape_cast %17 : vector<8xf32> to vector<8x1xf32>
    %cst_38 = arith.constant 3.200000e+01 : f32
    %19 = vector.broadcast %cst_38 : f32 to vector<8x1xf32>
    %20 = arith.divf %18, %19 : vector<8x1xf32>
    %21 = vector.broadcast %20 : vector<8x1xf32> to vector<8x32xf32>
    %22 = arith.subf %16, %21 : vector<8x32xf32>
    %23 = arith.mulf %22, %22 : vector<8x32xf32>
    %cst_39 = arith.constant dense<0.000000e+00> : vector<8xf32>
    %24 = vector.multi_reduction <add>, %23, %cst_39 [1] : vector<8x32xf32> to vector<8xf32>
    %25 = vector.shape_cast %24 : vector<8xf32> to vector<8x1xf32>
    %cst_40 = arith.constant 3.200000e+01 : f32
    %26 = vector.broadcast %cst_40 : f32 to vector<8x1xf32>
    %27 = arith.divf %25, %26 : vector<8x1xf32>
    %28 = vector.broadcast %20 : vector<8x1xf32> to vector<8x32xf32>
    %29 = arith.subf %16, %28 : vector<8x32xf32>
    %cst_41 = arith.constant 9.99999997E-7 : f32
    %30 = vector.broadcast %cst_41 : f32 to vector<8x1xf32>
    %31 = arith.addf %27, %30 : vector<8x1xf32>
    %32 = math.rsqrt %31 : vector<8x1xf32>
    %33 = vector.broadcast %32 : vector<8x1xf32> to vector<8x32xf32>
    %34 = arith.mulf %29, %33 : vector<8x32xf32>
    %35 = vector.broadcast %6 : vector<1x32xf32> to vector<8x32xf32>
    %36 = arith.mulf %34, %35 : vector<8x32xf32>
    %37 = vector.broadcast %7 : vector<1x32xf32> to vector<8x32xf32>
    %38 = arith.addf %36, %37 : vector<8x32xf32>
    %39 = arith.truncf %38 : vector<8x32xf32> to vector<8x32xbf16>
    %40 = vector.shape_cast %39 : vector<8x32xbf16> to vector<1x8x32xbf16>
    %41 = vector.broadcast %40 : vector<1x8x32xbf16> to vector<4x8x32xbf16>
    %cst_42 = arith.constant dense<0.000000e+00> : vector<4x8x8xf32>
    %42 = tpu.matmul %41, %0, %cst_42 {dimension_numbers = #tpu.dot_dimension_numbers<[2], [1], [1], [2], [0, 0, 0, 1, 1, 2], [0], [0]>} : vector<4x8x32xbf16>, vector<4x32x8xbf16>, vector<4x8x8xf32> -> vector<4x8x8xf32>
    %cst_43 = arith.constant dense<0.000000e+00> : vector<4x8x8xf32>
    %43 = tpu.matmul %41, %1, %cst_43 {dimension_numbers = #tpu.dot_dimension_numbers<[2], [1], [1], [2], [0, 0, 0, 1, 1, 2], [0], [0]>} : vector<4x8x32xbf16>, vector<4x32x8xbf16>, vector<4x8x8xf32> -> vector<4x8x8xf32>
    %cst_44 = arith.constant dense<0.000000e+00> : vector<4x8x8xf32>
    %44 = tpu.matmul %41, %2, %cst_44 {dimension_numbers = #tpu.dot_dimension_numbers<[2], [1], [1], [2], [0, 0, 0, 1, 1, 2], [0], [0]>} : vector<4x8x32xbf16>, vector<4x32x8xbf16>, vector<4x8x8xf32> -> vector<4x8x8xf32>
    %45 = arith.truncf %42 : vector<4x8x8xf32> to vector<4x8x8xbf16>
    %46 = arith.truncf %43 : vector<4x8x8xf32> to vector<4x8x8xbf16>
    %cst_45 = arith.constant dense<0.000000e+00> : vector<4x8x8xf32>
    %47 = tpu.matmul %45, %46, %cst_45 {dimension_numbers = #tpu.dot_dimension_numbers<[2], [2], [1], [1], [0, 0, 0, 1, 1, 1], [0], [0]>} : vector<4x8x8xbf16>, vector<4x8x8xbf16>, vector<4x8x8xf32> -> vector<4x8x8xf32>
    %cst_46 = arith.constant 0.353553385 : f32
    %48 = vector.broadcast %cst_46 : f32 to vector<4x8x8xf32>
    %49 = arith.mulf %47, %48 : vector<4x8x8xf32>
    %cst_47 = arith.constant dense<0xFF800000> : vector<4x8xf32>
    %50 = vector.multi_reduction <maximumf>, %49, %cst_47 [2] : vector<4x8x8xf32> to vector<4x8xf32>
    %51 = vector.shape_cast %50 : vector<4x8xf32> to vector<4x8x1xf32>
    %52 = vector.broadcast %51 : vector<4x8x1xf32> to vector<4x8x8xf32>
    %53 = arith.subf %49, %52 : vector<4x8x8xf32>
    %54 = math.exp %53 : vector<4x8x8xf32>
    %cst_48 = arith.constant dense<0.000000e+00> : vector<4x8xf32>
    %55 = vector.multi_reduction <add>, %54, %cst_48 [2] : vector<4x8x8xf32> to vector<4x8xf32>
    %56 = vector.shape_cast %55 : vector<4x8xf32> to vector<4x8x1xf32>
    %57 = vector.broadcast %56 : vector<4x8x1xf32> to vector<4x8x8xf32>
    %58 = arith.divf %54, %57 : vector<4x8x8xf32>
    %59 = vector.broadcast %14 : vector<4x1x1xf32> to vector<4x8x8xf32>
    %60 = arith.mulf %59, %58 : vector<4x8x8xf32>
    %61 = arith.addf %60, %13 : vector<4x8x8xf32>
    %cst_49 = arith.constant dense<0.000000e+00> : vector<4x8xf32>
    %62 = vector.multi_reduction <add>, %61, %cst_49 [2] : vector<4x8x8xf32> to vector<4x8xf32>
    %63 = vector.shape_cast %62 : vector<4x8xf32> to vector<4x8x1xf32>
    %64 = vector.broadcast %63 : vector<4x8x1xf32> to vector<4x8x8xf32>
    %65 = arith.divf %61, %64 : vector<4x8x8xf32>
    %66 = arith.truncf %65 : vector<4x8x8xf32> to vector<4x8x8xbf16>
    %67 = arith.truncf %44 : vector<4x8x8xf32> to vector<4x8x8xbf16>
    %cst_50 = arith.constant dense<0.000000e+00> : vector<4x8x8xf32>
    %68 = tpu.matmul %66, %67, %cst_50 {dimension_numbers = #tpu.dot_dimension_numbers<[2], [1], [1], [2], [0, 0, 0, 1, 1, 2], [0], [0]>} : vector<4x8x8xbf16>, vector<4x8x8xbf16>, vector<4x8x8xf32> -> vector<4x8x8xf32>
    %69 = arith.truncf %68 : vector<4x8x8xf32> to vector<4x8x8xbf16>
    %cst_51 = arith.constant dense<0.000000e+00> : vector<4x8x32xf32>
    %70 = tpu.matmul %69, %3, %cst_51 {dimension_numbers = #tpu.dot_dimension_numbers<[2], [1], [1], [2], [0, 0, 0, 1, 1, 2], [0], [0]>} : vector<4x8x8xbf16>, vector<4x8x32xbf16>, vector<4x8x32xf32> -> vector<4x8x32xf32>
    %cst_52 = arith.constant dense<0.000000e+00> : vector<8x32xf32>
    %71 = vector.multi_reduction <add>, %70, %cst_52 [0] : vector<4x8x32xf32> to vector<8x32xf32>
    %72 = arith.addf %16, %71 : vector<8x32xf32>
    %73 = vector.broadcast %10 : vector<1x32xf32> to vector<8x32xf32>
    %74 = arith.addf %72, %73 : vector<8x32xf32>
    %cst_53 = arith.constant dense<0.000000e+00> : vector<8xf32>
    %75 = vector.multi_reduction <add>, %74, %cst_53 [1] : vector<8x32xf32> to vector<8xf32>
    %76 = vector.shape_cast %75 : vector<8xf32> to vector<8x1xf32>
    %cst_54 = arith.constant 3.200000e+01 : f32
    %77 = vector.broadcast %cst_54 : f32 to vector<8x1xf32>
    %78 = arith.divf %76, %77 : vector<8x1xf32>
    %79 = vector.broadcast %78 : vector<8x1xf32> to vector<8x32xf32>
    %80 = arith.subf %74, %79 : vector<8x32xf32>
    %81 = arith.mulf %80, %80 : vector<8x32xf32>
    %cst_55 = arith.constant dense<0.000000e+00> : vector<8xf32>
    %82 = vector.multi_reduction <add>, %81, %cst_55 [1] : vector<8x32xf32> to vector<8xf32>
    %83 = vector.shape_cast %82 : vector<8xf32> to vector<8x1xf32>
    %cst_56 = arith.constant 3.200000e+01 : f32
    %84 = vector.broadcast %cst_56 : f32 to vector<8x1xf32>
    %85 = arith.divf %83, %84 : vector<8x1xf32>
    %86 = vector.broadcast %78 : vector<8x1xf32> to vector<8x32xf32>
    %87 = arith.subf %74, %86 : vector<8x32xf32>
    %cst_57 = arith.constant 9.99999997E-7 : f32
    %88 = vector.broadcast %cst_57 : f32 to vector<8x1xf32>
    %89 = arith.addf %85, %88 : vector<8x1xf32>
    %90 = math.rsqrt %89 : vector<8x1xf32>
    %91 = vector.broadcast %90 : vector<8x1xf32> to vector<8x32xf32>
    %92 = arith.mulf %87, %91 : vector<8x32xf32>
    %93 = vector.broadcast %8 : vector<1x32xf32> to vector<8x32xf32>
    %94 = arith.mulf %92, %93 : vector<8x32xf32>
    %95 = vector.broadcast %9 : vector<1x32xf32> to vector<8x32xf32>
    %96 = arith.addf %94, %95 : vector<8x32xf32>
    %97 = arith.truncf %96 : vector<8x32xf32> to vector<8x32xbf16>
    %cst_58 = arith.constant dense<0.000000e+00> : vector<8x128xf32>
    %98 = tpu.matmul %97, %4, %cst_58 {dimension_numbers = #tpu.dot_dimension_numbers<[1], [0], [0], [1], [0, 0, 1, 1], [], []>} : vector<8x32xbf16>, vector<32x128xbf16>, vector<8x128xf32> -> vector<8x128xf32>
    %99 = vector.broadcast %11 : vector<1x128xf32> to vector<8x128xf32>
    %100 = arith.addf %98, %99 : vector<8x128xf32>
    %cst_59 = arith.constant 5.000000e-01 : f32
    %101 = vector.broadcast %cst_59 : f32 to vector<8x128xf32>
    %102 = arith.mulf %101, %100 : vector<8x128xf32>
    %cst_60 = arith.constant 0.707106769 : f32
    %103 = vector.broadcast %cst_60 : f32 to vector<8x128xf32>
    %104 = arith.mulf %100, %103 : vector<8x128xf32>
    %cst_61 = arith.constant 0.000000e+00 : f32
    %105 = vector.broadcast %cst_61 : f32 to vector<8x128xf32>
    %106 = arith.cmpf olt, %104, %105 : vector<8x128xf32>
    %cst_62 = arith.constant -1.000000e+00 : f32
    %cst_63 = arith.constant 1.000000e+00 : f32
    %107 = vector.broadcast %cst_62 : f32 to vector<8x128xf32>
    %108 = vector.broadcast %cst_63 : f32 to vector<8x128xf32>
    %109 = arith.select %106, %107, %108 : vector<8x128xi1>, vector<8x128xf32>
    %110 = math.absf %104 : vector<8x128xf32>
    %cst_64 = arith.constant 0.327591091 : f32
    %111 = vector.broadcast %cst_64 : f32 to vector<8x128xf32>
    %112 = arith.mulf %111, %110 : vector<8x128xf32>
    %cst_65 = arith.constant 1.000000e+00 : f32
    %113 = vector.broadcast %cst_65 : f32 to vector<8x128xf32>
    %114 = arith.addf %113, %112 : vector<8x128xf32>
    %cst_66 = arith.constant 1.000000e+00 : f32
    %115 = vector.broadcast %cst_66 : f32 to vector<8x128xf32>
    %116 = arith.divf %115, %114 : vector<8x128xf32>
    %cst_67 = arith.constant 1.06140542 : f32
    %117 = vector.broadcast %cst_67 : f32 to vector<8x128xf32>
    %118 = arith.mulf %117, %116 : vector<8x128xf32>
    %cst_68 = arith.constant -1.45315206 : f32
    %119 = vector.broadcast %cst_68 : f32 to vector<8x128xf32>
    %120 = arith.addf %118, %119 : vector<8x128xf32>
    %121 = arith.mulf %120, %116 : vector<8x128xf32>
    %cst_69 = arith.constant 1.42141378 : f32
    %122 = vector.broadcast %cst_69 : f32 to vector<8x128xf32>
    %123 = arith.addf %121, %122 : vector<8x128xf32>
    %124 = arith.mulf %123, %116 : vector<8x128xf32>
    %cst_70 = arith.constant -0.284496725 : f32
    %125 = vector.broadcast %cst_70 : f32 to vector<8x128xf32>
    %126 = arith.addf %124, %125 : vector<8x128xf32>
    %127 = arith.mulf %126, %116 : vector<8x128xf32>
    %cst_71 = arith.constant 0.254829586 : f32
    %128 = vector.broadcast %cst_71 : f32 to vector<8x128xf32>
    %129 = arith.addf %127, %128 : vector<8x128xf32>
    %130 = arith.mulf %129, %116 : vector<8x128xf32>
    %cst_72 = arith.constant 0.000000e+00 : f32
    %131 = vector.broadcast %cst_72 : f32 to vector<8x128xf32>
    %132 = arith.subf %131, %110 : vector<8x128xf32>
    %133 = arith.mulf %132, %110 : vector<8x128xf32>
    %134 = math.exp %133 : vector<8x128xf32>
    %135 = arith.mulf %130, %134 : vector<8x128xf32>
    %cst_73 = arith.constant 1.000000e+00 : f32
    %136 = vector.broadcast %cst_73 : f32 to vector<8x128xf32>
    %137 = arith.subf %136, %135 : vector<8x128xf32>
    %138 = arith.mulf %109, %137 : vector<8x128xf32>
    %cst_74 = arith.constant 1.000000e+00 : f32
    %139 = vector.broadcast %cst_74 : f32 to vector<8x128xf32>
    %140 = arith.addf %139, %138 : vector<8x128xf32>
    %141 = arith.mulf %102, %140 : vector<8x128xf32>
    %142 = arith.truncf %141 : vector<8x128xf32> to vector<8x128xbf16>
    %cst_75 = arith.constant dense<0.000000e+00> : vector<8x32xf32>
    %143 = tpu.matmul %142, %5, %cst_75 {dimension_numbers = #tpu.dot_dimension_numbers<[1], [0], [0], [1], [0, 0, 1, 1], [], []>} : vector<8x128xbf16>, vector<128x32xbf16>, vector<8x32xf32> -> vector<8x32xf32>
    %144 = vector.broadcast %12 : vector<1x32xf32> to vector<8x32xf32>
    %145 = arith.addf %143, %144 : vector<8x32xf32>
    %146 = arith.addf %74, %145 : vector<8x32xf32>
    %c0_76 = arith.constant 0 : index
    %c0_77 = arith.constant 0 : index
    %c0_78 = arith.constant 0 : index
    %147 = vector.load %arg16[%c0_76, %c0_77, %c0_78] : memref<2x8x32xf32, #tpu.memory_space<vmem>>, vector<1x8x32xf32>
    %148 = vector.shape_cast %147 : vector<1x8x32xf32> to vector<8x32xf32>
    %149 = vector.shape_cast %146 : vector<8x32xf32> to vector<1x8x32xf32>
    tpu.vector_store %arg16[%c0_76, %c0_77, %c0_78], %149 {strides = array<i32>} : memref<2x8x32xf32, #tpu.memory_space<vmem>>, vector<1x8x32xf32>,
    %c1 = arith.constant 1 : index
    %c0_79 = arith.constant 0 : index
    %c0_80 = arith.constant 0 : index
    %150 = vector.load %arg0[%c1, %c0_79, %c0_80] : memref<2x8x32xf32, #tpu.memory_space<vmem>>, vector<1x8x32xf32>
    %151 = vector.shape_cast %150 : vector<1x8x32xf32> to vector<8x32xf32>
    %cst_81 = arith.constant dense<0.000000e+00> : vector<8xf32>
    %152 = vector.multi_reduction <add>, %151, %cst_81 [1] : vector<8x32xf32> to vector<8xf32>
    %153 = vector.shape_cast %152 : vector<8xf32> to vector<8x1xf32>
    %cst_82 = arith.constant 3.200000e+01 : f32
    %154 = vector.broadcast %cst_82 : f32 to vector<8x1xf32>
    %155 = arith.divf %153, %154 : vector<8x1xf32>
    %156 = vector.broadcast %155 : vector<8x1xf32> to vector<8x32xf32>
    %157 = arith.subf %151, %156 : vector<8x32xf32>
    %158 = arith.mulf %157, %157 : vector<8x32xf32>
    %cst_83 = arith.constant dense<0.000000e+00> : vector<8xf32>
    %159 = vector.multi_reduction <add>, %158, %cst_83 [1] : vector<8x32xf32> to vector<8xf32>
    %160 = vector.shape_cast %159 : vector<8xf32> to vector<8x1xf32>
    %cst_84 = arith.constant 3.200000e+01 : f32
    %161 = vector.broadcast %cst_84 : f32 to vector<8x1xf32>
    %162 = arith.divf %160, %161 : vector<8x1xf32>
    %163 = vector.broadcast %155 : vector<8x1xf32> to vector<8x32xf32>
    %164 = arith.subf %151, %163 : vector<8x32xf32>
    %cst_85 = arith.constant 9.99999997E-7 : f32
    %165 = vector.broadcast %cst_85 : f32 to vector<8x1xf32>
    %166 = arith.addf %162, %165 : vector<8x1xf32>
    %167 = math.rsqrt %166 : vector<8x1xf32>
    %168 = vector.broadcast %167 : vector<8x1xf32> to vector<8x32xf32>
    %169 = arith.mulf %164, %168 : vector<8x32xf32>
    %170 = vector.broadcast %6 : vector<1x32xf32> to vector<8x32xf32>
    %171 = arith.mulf %169, %170 : vector<8x32xf32>
    %172 = vector.broadcast %7 : vector<1x32xf32> to vector<8x32xf32>
    %173 = arith.addf %171, %172 : vector<8x32xf32>
    %174 = arith.truncf %173 : vector<8x32xf32> to vector<8x32xbf16>
    %175 = vector.shape_cast %174 : vector<8x32xbf16> to vector<1x8x32xbf16>
    %176 = vector.broadcast %175 : vector<1x8x32xbf16> to vector<4x8x32xbf16>
    %cst_86 = arith.constant dense<0.000000e+00> : vector<4x8x8xf32>
    %177 = tpu.matmul %176, %0, %cst_86 {dimension_numbers = #tpu.dot_dimension_numbers<[2], [1], [1], [2], [0, 0, 0, 1, 1, 2], [0], [0]>} : vector<4x8x32xbf16>, vector<4x32x8xbf16>, vector<4x8x8xf32> -> vector<4x8x8xf32>
    %cst_87 = arith.constant dense<0.000000e+00> : vector<4x8x8xf32>
    %178 = tpu.matmul %176, %1, %cst_87 {dimension_numbers = #tpu.dot_dimension_numbers<[2], [1], [1], [2], [0, 0, 0, 1, 1, 2], [0], [0]>} : vector<4x8x32xbf16>, vector<4x32x8xbf16>, vector<4x8x8xf32> -> vector<4x8x8xf32>
    %cst_88 = arith.constant dense<0.000000e+00> : vector<4x8x8xf32>
    %179 = tpu.matmul %176, %2, %cst_88 {dimension_numbers = #tpu.dot_dimension_numbers<[2], [1], [1], [2], [0, 0, 0, 1, 1, 2], [0], [0]>} : vector<4x8x32xbf16>, vector<4x32x8xbf16>, vector<4x8x8xf32> -> vector<4x8x8xf32>
    %180 = arith.truncf %177 : vector<4x8x8xf32> to vector<4x8x8xbf16>
    %181 = arith.truncf %178 : vector<4x8x8xf32> to vector<4x8x8xbf16>
    %cst_89 = arith.constant dense<0.000000e+00> : vector<4x8x8xf32>
    %182 = tpu.matmul %180, %181, %cst_89 {dimension_numbers = #tpu.dot_dimension_numbers<[2], [2], [1], [1], [0, 0, 0, 1, 1, 1], [0], [0]>} : vector<4x8x8xbf16>, vector<4x8x8xbf16>, vector<4x8x8xf32> -> vector<4x8x8xf32>
    %cst_90 = arith.constant 0.353553385 : f32
    %183 = vector.broadcast %cst_90 : f32 to vector<4x8x8xf32>
    %184 = arith.mulf %182, %183 : vector<4x8x8xf32>
    %cst_91 = arith.constant dense<0xFF800000> : vector<4x8xf32>
    %185 = vector.multi_reduction <maximumf>, %184, %cst_91 [2] : vector<4x8x8xf32> to vector<4x8xf32>
    %186 = vector.shape_cast %185 : vector<4x8xf32> to vector<4x8x1xf32>
    %187 = vector.broadcast %186 : vector<4x8x1xf32> to vector<4x8x8xf32>
    %188 = arith.subf %184, %187 : vector<4x8x8xf32>
    %189 = math.exp %188 : vector<4x8x8xf32>
    %cst_92 = arith.constant dense<0.000000e+00> : vector<4x8xf32>
    %190 = vector.multi_reduction <add>, %189, %cst_92 [2] : vector<4x8x8xf32> to vector<4x8xf32>
    %191 = vector.shape_cast %190 : vector<4x8xf32> to vector<4x8x1xf32>
    %192 = vector.broadcast %191 : vector<4x8x1xf32> to vector<4x8x8xf32>
    %193 = arith.divf %189, %192 : vector<4x8x8xf32>
    %194 = vector.broadcast %14 : vector<4x1x1xf32> to vector<4x8x8xf32>
    %195 = arith.mulf %194, %193 : vector<4x8x8xf32>
    %196 = arith.addf %195, %13 : vector<4x8x8xf32>
    %cst_93 = arith.constant dense<0.000000e+00> : vector<4x8xf32>
    %197 = vector.multi_reduction <add>, %196, %cst_93 [2] : vector<4x8x8xf32> to vector<4x8xf32>
    %198 = vector.shape_cast %197 : vector<4x8xf32> to vector<4x8x1xf32>
    %199 = vector.broadcast %198 : vector<4x8x1xf32> to vector<4x8x8xf32>
    %200 = arith.divf %196, %199 : vector<4x8x8xf32>
    %201 = arith.truncf %200 : vector<4x8x8xf32> to vector<4x8x8xbf16>
    %202 = arith.truncf %179 : vector<4x8x8xf32> to vector<4x8x8xbf16>
    %cst_94 = arith.constant dense<0.000000e+00> : vector<4x8x8xf32>
    %203 = tpu.matmul %201, %202, %cst_94 {dimension_numbers = #tpu.dot_dimension_numbers<[2], [1], [1], [2], [0, 0, 0, 1, 1, 2], [0], [0]>} : vector<4x8x8xbf16>, vector<4x8x8xbf16>, vector<4x8x8xf32> -> vector<4x8x8xf32>
    %204 = arith.truncf %203 : vector<4x8x8xf32> to vector<4x8x8xbf16>
    %cst_95 = arith.constant dense<0.000000e+00> : vector<4x8x32xf32>
    %205 = tpu.matmul %204, %3, %cst_95 {dimension_numbers = #tpu.dot_dimension_numbers<[2], [1], [1], [2], [0, 0, 0, 1, 1, 2], [0], [0]>} : vector<4x8x8xbf16>, vector<4x8x32xbf16>, vector<4x8x32xf32> -> vector<4x8x32xf32>
    %cst_96 = arith.constant dense<0.000000e+00> : vector<8x32xf32>
    %206 = vector.multi_reduction <add>, %205, %cst_96 [0] : vector<4x8x32xf32> to vector<8x32xf32>
    %207 = arith.addf %151, %206 : vector<8x32xf32>
    %208 = vector.broadcast %10 : vector<1x32xf32> to vector<8x32xf32>
    %209 = arith.addf %207, %208 : vector<8x32xf32>
    %cst_97 = arith.constant dense<0.000000e+00> : vector<8xf32>
    %210 = vector.multi_reduction <add>, %209, %cst_97 [1] : vector<8x32xf32> to vector<8xf32>
    %211 = vector.shape_cast %210 : vector<8xf32> to vector<8x1xf32>
    %cst_98 = arith.constant 3.200000e+01 : f32
    %212 = vector.broadcast %cst_98 : f32 to vector<8x1xf32>
    %213 = arith.divf %211, %212 : vector<8x1xf32>
    %214 = vector.broadcast %213 : vector<8x1xf32> to vector<8x32xf32>
    %215 = arith.subf %209, %214 : vector<8x32xf32>
    %216 = arith.mulf %215, %215 : vector<8x32xf32>
    %cst_99 = arith.constant dense<0.000000e+00> : vector<8xf32>
    %217 = vector.multi_reduction <add>, %216, %cst_99 [1] : vector<8x32xf32> to vector<8xf32>
    %218 = vector.shape_cast %217 : vector<8xf32> to vector<8x1xf32>
    %cst_100 = arith.constant 3.200000e+01 : f32
    %219 = vector.broadcast %cst_100 : f32 to vector<8x1xf32>
    %220 = arith.divf %218, %219 : vector<8x1xf32>
    %221 = vector.broadcast %213 : vector<8x1xf32> to vector<8x32xf32>
    %222 = arith.subf %209, %221 : vector<8x32xf32>
    %cst_101 = arith.constant 9.99999997E-7 : f32
    %223 = vector.broadcast %cst_101 : f32 to vector<8x1xf32>
    %224 = arith.addf %220, %223 : vector<8x1xf32>
    %225 = math.rsqrt %224 : vector<8x1xf32>
    %226 = vector.broadcast %225 : vector<8x1xf32> to vector<8x32xf32>
    %227 = arith.mulf %222, %226 : vector<8x32xf32>
    %228 = vector.broadcast %8 : vector<1x32xf32> to vector<8x32xf32>
    %229 = arith.mulf %227, %228 : vector<8x32xf32>
    %230 = vector.broadcast %9 : vector<1x32xf32> to vector<8x32xf32>
    %231 = arith.addf %229, %230 : vector<8x32xf32>
    %232 = arith.truncf %231 : vector<8x32xf32> to vector<8x32xbf16>
    %cst_102 = arith.constant dense<0.000000e+00> : vector<8x128xf32>
    %233 = tpu.matmul %232, %4, %cst_102 {dimension_numbers = #tpu.dot_dimension_numbers<[1], [0], [0], [1], [0, 0, 1, 1], [], []>} : vector<8x32xbf16>, vector<32x128xbf16>, vector<8x128xf32> -> vector<8x128xf32>
    %234 = vector.broadcast %11 : vector<1x128xf32> to vector<8x128xf32>
    %235 = arith.addf %233, %234 : vector<8x128xf32>
    %cst_103 = arith.constant 5.000000e-01 : f32
    %236 = vector.broadcast %cst_103 : f32 to vector<8x128xf32>
    %237 = arith.mulf %236, %235 : vector<8x128xf32>
    %cst_104 = arith.constant 0.707106769 : f32
    %238 = vector.broadcast %cst_104 : f32 to vector<8x128xf32>
    %239 = arith.mulf %235, %238 : vector<8x128xf32>
    %cst_105 = arith.constant 0.000000e+00 : f32
    %240 = vector.broadcast %cst_105 : f32 to vector<8x128xf32>
    %241 = arith.cmpf olt, %239, %240 : vector<8x128xf32>
    %cst_106 = arith.constant -1.000000e+00 : f32
    %cst_107 = arith.constant 1.000000e+00 : f32
    %242 = vector.broadcast %cst_106 : f32 to vector<8x128xf32>
    %243 = vector.broadcast %cst_107 : f32 to vector<8x128xf32>
    %244 = arith.select %241, %242, %243 : vector<8x128xi1>, vector<8x128xf32>
    %245 = math.absf %239 : vector<8x128xf32>
    %cst_108 = arith.constant 0.327591091 : f32
    %246 = vector.broadcast %cst_108 : f32 to vector<8x128xf32>
    %247 = arith.mulf %246, %245 : vector<8x128xf32>
    %cst_109 = arith.constant 1.000000e+00 : f32
    %248 = vector.broadcast %cst_109 : f32 to vector<8x128xf32>
    %249 = arith.addf %248, %247 : vector<8x128xf32>
    %cst_110 = arith.constant 1.000000e+00 : f32
    %250 = vector.broadcast %cst_110 : f32 to vector<8x128xf32>
    %251 = arith.divf %250, %249 : vector<8x128xf32>
    %cst_111 = arith.constant 1.06140542 : f32
    %252 = vector.broadcast %cst_111 : f32 to vector<8x128xf32>
    %253 = arith.mulf %252, %251 : vector<8x128xf32>
    %cst_112 = arith.constant -1.45315206 : f32
    %254 = vector.broadcast %cst_112 : f32 to vector<8x128xf32>
    %255 = arith.addf %253, %254 : vector<8x128xf32>
    %256 = arith.mulf %255, %251 : vector<8x128xf32>
    %cst_113 = arith.constant 1.42141378 : f32
    %257 = vector.broadcast %cst_113 : f32 to vector<8x128xf32>
    %258 = arith.addf %256, %257 : vector<8x128xf32>
    %259 = arith.mulf %258, %251 : vector<8x128xf32>
    %cst_114 = arith.constant -0.284496725 : f32
    %260 = vector.broadcast %cst_114 : f32 to vector<8x128xf32>
    %261 = arith.addf %259, %260 : vector<8x128xf32>
    %262 = arith.mulf %261, %251 : vector<8x128xf32>
    %cst_115 = arith.constant 0.254829586 : f32
    %263 = vector.broadcast %cst_115 : f32 to vector<8x128xf32>
    %264 = arith.addf %262, %263 : vector<8x128xf32>
    %265 = arith.mulf %264, %251 : vector<8x128xf32>
    %cst_116 = arith.constant 0.000000e+00 : f32
    %266 = vector.broadcast %cst_116 : f32 to vector<8x128xf32>
    %267 = arith.subf %266, %245 : vector<8x128xf32>
    %268 = arith.mulf %267, %245 : vector<8x128xf32>
    %269 = math.exp %268 : vector<8x128xf32>
    %270 = arith.mulf %265, %269 : vector<8x128xf32>
    %cst_117 = arith.constant 1.000000e+00 : f32
    %271 = vector.broadcast %cst_117 : f32 to vector<8x128xf32>
    %272 = arith.subf %271, %270 : vector<8x128xf32>
    %273 = arith.mulf %244, %272 : vector<8x128xf32>
    %cst_118 = arith.constant 1.000000e+00 : f32
    %274 = vector.broadcast %cst_118 : f32 to vector<8x128xf32>
    %275 = arith.addf %274, %273 : vector<8x128xf32>
    %276 = arith.mulf %237, %275 : vector<8x128xf32>
    %277 = arith.truncf %276 : vector<8x128xf32> to vector<8x128xbf16>
    %cst_119 = arith.constant dense<0.000000e+00> : vector<8x32xf32>
    %278 = tpu.matmul %277, %5, %cst_119 {dimension_numbers = #tpu.dot_dimension_numbers<[1], [0], [0], [1], [0, 0, 1, 1], [], []>} : vector<8x128xbf16>, vector<128x32xbf16>, vector<8x32xf32> -> vector<8x32xf32>
    %279 = vector.broadcast %12 : vector<1x32xf32> to vector<8x32xf32>
    %280 = arith.addf %278, %279 : vector<8x32xf32>
    %281 = arith.addf %209, %280 : vector<8x32xf32>
    %c1_120 = arith.constant 1 : index
    %c0_121 = arith.constant 0 : index
    %c0_122 = arith.constant 0 : index
    %282 = vector.load %arg16[%c1_120, %c0_121, %c0_122] : memref<2x8x32xf32, #tpu.memory_space<vmem>>, vector<1x8x32xf32>
    %283 = vector.shape_cast %282 : vector<1x8x32xf32> to vector<8x32xf32>
    %284 = vector.shape_cast %281 : vector<8x32xf32> to vector<1x8x32xf32>
    tpu.vector_store %arg16[%c1_120, %c0_121, %c0_122], %284 {strides = array<i32>} : memref<2x8x32xf32, #tpu.memory_space<vmem>>, vector<1x8x32xf32>,
    return
  }
}

module attributes {stable_mosaic.version = 11 : i64} {
  func.func @_patch_embed_kernel(%arg0: memref<2x8x32xf32, #tpu.memory_space<vmem>>, %arg1: memref<32x32xbf16, #tpu.memory_space<vmem>>, %arg2: memref<1x32xf32, #tpu.memory_space<vmem>>, %arg3: memref<8x32xf32, #tpu.memory_space<vmem>>, %arg4: memref<2x8x32xf32, #tpu.memory_space<vmem>>) attributes {dimension_semantics = [], scalar_prefetch = 0 : i64, scratch_operands = 0 : i64, tpu.core_type = #tpu.core_type<tc>} {
    %c0 = arith.constant 0 : index
    %c0_0 = arith.constant 0 : index
    %0 = vector.load %arg1[%c0, %c0_0] : memref<32x32xbf16, #tpu.memory_space<vmem>>, vector<32x32xbf16>
    %c0_1 = arith.constant 0 : index
    %c0_2 = arith.constant 0 : index
    %1 = vector.load %arg2[%c0_1, %c0_2] : memref<1x32xf32, #tpu.memory_space<vmem>>, vector<1x32xf32>
    %c0_3 = arith.constant 0 : index
    %c0_4 = arith.constant 0 : index
    %2 = vector.load %arg3[%c0_3, %c0_4] : memref<8x32xf32, #tpu.memory_space<vmem>>, vector<8x32xf32>
    %c0_5 = arith.constant 0 : index
    %c0_6 = arith.constant 0 : index
    %c0_7 = arith.constant 0 : index
    %3 = vector.load %arg0[%c0_5, %c0_6, %c0_7] : memref<2x8x32xf32, #tpu.memory_space<vmem>>, vector<1x8x32xf32>
    %4 = vector.shape_cast %3 : vector<1x8x32xf32> to vector<8x32xf32>
    %5 = arith.truncf %4 : vector<8x32xf32> to vector<8x32xbf16>
    %cst = arith.constant dense<0.000000e+00> : vector<8x32xf32>
    %6 = tpu.matmul %5, %0, %cst {dimension_numbers = #tpu.dot_dimension_numbers<[1], [0], [0], [1], [0, 0, 1, 1], [], []>} : vector<8x32xbf16>, vector<32x32xbf16>, vector<8x32xf32> -> vector<8x32xf32>
    %7 = vector.broadcast %1 : vector<1x32xf32> to vector<8x32xf32>
    %8 = arith.addf %6, %7 : vector<8x32xf32>
    %9 = arith.addf %8, %2 : vector<8x32xf32>
    %c0_8 = arith.constant 0 : index
    %c0_9 = arith.constant 0 : index
    %c0_10 = arith.constant 0 : index
    %10 = vector.load %arg4[%c0_8, %c0_9, %c0_10] : memref<2x8x32xf32, #tpu.memory_space<vmem>>, vector<1x8x32xf32>
    %11 = vector.shape_cast %10 : vector<1x8x32xf32> to vector<8x32xf32>
    %12 = vector.shape_cast %9 : vector<8x32xf32> to vector<1x8x32xf32>
    tpu.vector_store %arg4[%c0_8, %c0_9, %c0_10], %12 {strides = array<i32>} : memref<2x8x32xf32, #tpu.memory_space<vmem>>, vector<1x8x32xf32>,
    %c1 = arith.constant 1 : index
    %c0_11 = arith.constant 0 : index
    %c0_12 = arith.constant 0 : index
    %13 = vector.load %arg0[%c1, %c0_11, %c0_12] : memref<2x8x32xf32, #tpu.memory_space<vmem>>, vector<1x8x32xf32>
    %14 = vector.shape_cast %13 : vector<1x8x32xf32> to vector<8x32xf32>
    %15 = arith.truncf %14 : vector<8x32xf32> to vector<8x32xbf16>
    %cst_13 = arith.constant dense<0.000000e+00> : vector<8x32xf32>
    %16 = tpu.matmul %15, %0, %cst_13 {dimension_numbers = #tpu.dot_dimension_numbers<[1], [0], [0], [1], [0, 0, 1, 1], [], []>} : vector<8x32xbf16>, vector<32x32xbf16>, vector<8x32xf32> -> vector<8x32xf32>
    %17 = vector.broadcast %1 : vector<1x32xf32> to vector<8x32xf32>
    %18 = arith.addf %16, %17 : vector<8x32xf32>
    %19 = arith.addf %18, %2 : vector<8x32xf32>
    %c1_14 = arith.constant 1 : index
    %c0_15 = arith.constant 0 : index
    %c0_16 = arith.constant 0 : index
    %20 = vector.load %arg4[%c1_14, %c0_15, %c0_16] : memref<2x8x32xf32, #tpu.memory_space<vmem>>, vector<1x8x32xf32>
    %21 = vector.shape_cast %20 : vector<1x8x32xf32> to vector<8x32xf32>
    %22 = vector.shape_cast %19 : vector<8x32xf32> to vector<1x8x32xf32>
    tpu.vector_store %arg4[%c1_14, %c0_15, %c0_16], %22 {strides = array<i32>} : memref<2x8x32xf32, #tpu.memory_space<vmem>>, vector<1x8x32xf32>,
    return
  }
}

module attributes {stable_mosaic.version = 11 : i64} {
  func.func @_block_kernel(%arg0: memref<2x9x32xf32, #tpu.memory_space<vmem>>, %arg1: memref<1x32xf32, #tpu.memory_space<vmem>>, %arg2: memref<1x32xf32, #tpu.memory_space<vmem>>, %arg3: memref<4x32x8xbf16, #tpu.memory_space<vmem>>, %arg4: memref<4x32x8xbf16, #tpu.memory_space<vmem>>, %arg5: memref<4x32x8xbf16, #tpu.memory_space<vmem>>, %arg6: memref<4x8x32xbf16, #tpu.memory_space<vmem>>, %arg7: memref<1x32xf32, #tpu.memory_space<vmem>>, %arg8: memref<1x32xf32, #tpu.memory_space<vmem>>, %arg9: memref<1x32xf32, #tpu.memory_space<vmem>>, %arg10: memref<32x128xbf16, #tpu.memory_space<vmem>>, %arg11: memref<1x128xf32, #tpu.memory_space<vmem>>, %arg12: memref<128x32xbf16, #tpu.memory_space<vmem>>, %arg13: memref<1x32xf32, #tpu.memory_space<vmem>>, %arg14: memref<1x32xf32, #tpu.memory_space<vmem>>, %arg15: memref<1x32xf32, #tpu.memory_space<vmem>>, %arg16: memref<32x128xbf16, #tpu.memory_space<vmem>>, %arg17: memref<1x128xf32, #tpu.memory_space<vmem>>, %arg18: memref<2x1x128xf32, #tpu.memory_space<vmem>>) attributes {dimension_semantics = [], scalar_prefetch = 0 : i64, scratch_operands = 0 : i64, tpu.core_type = #tpu.core_type<tc>} {
    %c0 = arith.constant 0 : index
    %c0_0 = arith.constant 0 : index
    %c0_1 = arith.constant 0 : index
    %0 = vector.load %arg3[%c0, %c0_0, %c0_1] : memref<4x32x8xbf16, #tpu.memory_space<vmem>>, vector<4x32x8xbf16>
    %c0_2 = arith.constant 0 : index
    %c0_3 = arith.constant 0 : index
    %c0_4 = arith.constant 0 : index
    %1 = vector.load %arg4[%c0_2, %c0_3, %c0_4] : memref<4x32x8xbf16, #tpu.memory_space<vmem>>, vector<4x32x8xbf16>
    %c0_5 = arith.constant 0 : index
    %c0_6 = arith.constant 0 : index
    %c0_7 = arith.constant 0 : index
    %2 = vector.load %arg5[%c0_5, %c0_6, %c0_7] : memref<4x32x8xbf16, #tpu.memory_space<vmem>>, vector<4x32x8xbf16>
    %c0_8 = arith.constant 0 : index
    %c0_9 = arith.constant 0 : index
    %c0_10 = arith.constant 0 : index
    %3 = vector.load %arg6[%c0_8, %c0_9, %c0_10] : memref<4x8x32xbf16, #tpu.memory_space<vmem>>, vector<4x8x32xbf16>
    %c0_11 = arith.constant 0 : index
    %c0_12 = arith.constant 0 : index
    %4 = vector.load %arg10[%c0_11, %c0_12] : memref<32x128xbf16, #tpu.memory_space<vmem>>, vector<32x128xbf16>
    %c0_13 = arith.constant 0 : index
    %c0_14 = arith.constant 0 : index
    %5 = vector.load %arg12[%c0_13, %c0_14] : memref<128x32xbf16, #tpu.memory_space<vmem>>, vector<128x32xbf16>
    %c0_15 = arith.constant 0 : index
    %c0_16 = arith.constant 0 : index
    %6 = vector.load %arg1[%c0_15, %c0_16] : memref<1x32xf32, #tpu.memory_space<vmem>>, vector<1x32xf32>
    %c0_17 = arith.constant 0 : index
    %c0_18 = arith.constant 0 : index
    %7 = vector.load %arg2[%c0_17, %c0_18] : memref<1x32xf32, #tpu.memory_space<vmem>>, vector<1x32xf32>
    %c0_19 = arith.constant 0 : index
    %c0_20 = arith.constant 0 : index
    %8 = vector.load %arg8[%c0_19, %c0_20] : memref<1x32xf32, #tpu.memory_space<vmem>>, vector<1x32xf32>
    %c0_21 = arith.constant 0 : index
    %c0_22 = arith.constant 0 : index
    %9 = vector.load %arg9[%c0_21, %c0_22] : memref<1x32xf32, #tpu.memory_space<vmem>>, vector<1x32xf32>
    %c0_23 = arith.constant 0 : index
    %c0_24 = arith.constant 0 : index
    %10 = vector.load %arg7[%c0_23, %c0_24] : memref<1x32xf32, #tpu.memory_space<vmem>>, vector<1x32xf32>
    %c0_25 = arith.constant 0 : index
    %c0_26 = arith.constant 0 : index
    %11 = vector.load %arg11[%c0_25, %c0_26] : memref<1x128xf32, #tpu.memory_space<vmem>>, vector<1x128xf32>
    %c0_27 = arith.constant 0 : index
    %c0_28 = arith.constant 0 : index
    %12 = vector.load %arg13[%c0_27, %c0_28] : memref<1x32xf32, #tpu.memory_space<vmem>>, vector<1x32xf32>
    %c0_29 = arith.constant 0 : index
    %c0_30 = arith.constant 0 : index
    %13 = vector.load %arg14[%c0_29, %c0_30] : memref<1x32xf32, #tpu.memory_space<vmem>>, vector<1x32xf32>
    %c0_31 = arith.constant 0 : index
    %c0_32 = arith.constant 0 : index
    %14 = vector.load %arg15[%c0_31, %c0_32] : memref<1x32xf32, #tpu.memory_space<vmem>>, vector<1x32xf32>
    %c0_33 = arith.constant 0 : index
    %c0_34 = arith.constant 0 : index
    %15 = vector.load %arg16[%c0_33, %c0_34] : memref<32x128xbf16, #tpu.memory_space<vmem>>, vector<32x128xbf16>
    %c0_35 = arith.constant 0 : index
    %c0_36 = arith.constant 0 : index
    %16 = vector.load %arg17[%c0_35, %c0_36] : memref<1x128xf32, #tpu.memory_space<vmem>>, vector<1x128xf32>
    %c0_37 = arith.constant 0 : index
    %c0_38 = arith.constant 0 : index
    %c0_39 = arith.constant 0 : index
    %17 = vector.load %arg0[%c0_37, %c0_38, %c0_39] : memref<2x9x32xf32, #tpu.memory_space<vmem>>, vector<1x9x32xf32>
    %18 = vector.shape_cast %17 : vector<1x9x32xf32> to vector<9x32xf32>
    %cst = arith.constant dense<0.000000e+00> : vector<9xf32>
    %19 = vector.multi_reduction <add>, %18, %cst [1] : vector<9x32xf32> to vector<9xf32>
    %20 = vector.shape_cast %19 : vector<9xf32> to vector<9x1xf32>
    %cst_40 = arith.constant 3.200000e+01 : f32
    %21 = vector.broadcast %cst_40 : f32 to vector<9x1xf32>
    %22 = arith.divf %20, %21 : vector<9x1xf32>
    %23 = vector.broadcast %22 : vector<9x1xf32> to vector<9x32xf32>
    %24 = arith.subf %18, %23 : vector<9x32xf32>
    %25 = arith.mulf %24, %24 : vector<9x32xf32>
    %cst_41 = arith.constant dense<0.000000e+00> : vector<9xf32>
    %26 = vector.multi_reduction <add>, %25, %cst_41 [1] : vector<9x32xf32> to vector<9xf32>
    %27 = vector.shape_cast %26 : vector<9xf32> to vector<9x1xf32>
    %cst_42 = arith.constant 3.200000e+01 : f32
    %28 = vector.broadcast %cst_42 : f32 to vector<9x1xf32>
    %29 = arith.divf %27, %28 : vector<9x1xf32>
    %30 = vector.broadcast %22 : vector<9x1xf32> to vector<9x32xf32>
    %31 = arith.subf %18, %30 : vector<9x32xf32>
    %cst_43 = arith.constant 9.99999997E-7 : f32
    %32 = vector.broadcast %cst_43 : f32 to vector<9x1xf32>
    %33 = arith.addf %29, %32 : vector<9x1xf32>
    %34 = math.rsqrt %33 : vector<9x1xf32>
    %35 = vector.broadcast %34 : vector<9x1xf32> to vector<9x32xf32>
    %36 = arith.mulf %31, %35 : vector<9x32xf32>
    %37 = vector.broadcast %6 : vector<1x32xf32> to vector<9x32xf32>
    %38 = arith.mulf %36, %37 : vector<9x32xf32>
    %39 = vector.broadcast %7 : vector<1x32xf32> to vector<9x32xf32>
    %40 = arith.addf %38, %39 : vector<9x32xf32>
    %41 = arith.truncf %40 : vector<9x32xf32> to vector<9x32xbf16>
    %42 = vector.shape_cast %41 : vector<9x32xbf16> to vector<1x9x32xbf16>
    %43 = vector.broadcast %42 : vector<1x9x32xbf16> to vector<4x9x32xbf16>
    %cst_44 = arith.constant dense<0.000000e+00> : vector<4x9x8xf32>
    %44 = tpu.matmul %43, %0, %cst_44 {dimension_numbers = #tpu.dot_dimension_numbers<[2], [1], [1], [2], [0, 0, 0, 1, 1, 2], [0], [0]>} : vector<4x9x32xbf16>, vector<4x32x8xbf16>, vector<4x9x8xf32> -> vector<4x9x8xf32>
    %cst_45 = arith.constant dense<0.000000e+00> : vector<4x9x8xf32>
    %45 = tpu.matmul %43, %1, %cst_45 {dimension_numbers = #tpu.dot_dimension_numbers<[2], [1], [1], [2], [0, 0, 0, 1, 1, 2], [0], [0]>} : vector<4x9x32xbf16>, vector<4x32x8xbf16>, vector<4x9x8xf32> -> vector<4x9x8xf32>
    %cst_46 = arith.constant dense<0.000000e+00> : vector<4x9x8xf32>
    %46 = tpu.matmul %43, %2, %cst_46 {dimension_numbers = #tpu.dot_dimension_numbers<[2], [1], [1], [2], [0, 0, 0, 1, 1, 2], [0], [0]>} : vector<4x9x32xbf16>, vector<4x32x8xbf16>, vector<4x9x8xf32> -> vector<4x9x8xf32>
    %47 = arith.truncf %44 : vector<4x9x8xf32> to vector<4x9x8xbf16>
    %48 = arith.truncf %45 : vector<4x9x8xf32> to vector<4x9x8xbf16>
    %cst_47 = arith.constant dense<0.000000e+00> : vector<4x9x9xf32>
    %49 = tpu.matmul %47, %48, %cst_47 {dimension_numbers = #tpu.dot_dimension_numbers<[2], [2], [1], [1], [0, 0, 0, 1, 1, 1], [0], [0]>} : vector<4x9x8xbf16>, vector<4x9x8xbf16>, vector<4x9x9xf32> -> vector<4x9x9xf32>
    %cst_48 = arith.constant 0.353553385 : f32
    %50 = vector.broadcast %cst_48 : f32 to vector<4x9x9xf32>
    %51 = arith.mulf %49, %50 : vector<4x9x9xf32>
    %cst_49 = arith.constant dense<0xFF800000> : vector<4x9xf32>
    %52 = vector.multi_reduction <maximumf>, %51, %cst_49 [2] : vector<4x9x9xf32> to vector<4x9xf32>
    %53 = vector.shape_cast %52 : vector<4x9xf32> to vector<4x9x1xf32>
    %54 = vector.broadcast %53 : vector<4x9x1xf32> to vector<4x9x9xf32>
    %55 = arith.subf %51, %54 : vector<4x9x9xf32>
    %56 = math.exp %55 : vector<4x9x9xf32>
    %cst_50 = arith.constant dense<0.000000e+00> : vector<4x9xf32>
    %57 = vector.multi_reduction <add>, %56, %cst_50 [2] : vector<4x9x9xf32> to vector<4x9xf32>
    %58 = vector.shape_cast %57 : vector<4x9xf32> to vector<4x9x1xf32>
    %59 = vector.broadcast %58 : vector<4x9x1xf32> to vector<4x9x9xf32>
    %60 = arith.divf %56, %59 : vector<4x9x9xf32>
    %61 = arith.truncf %60 : vector<4x9x9xf32> to vector<4x9x9xbf16>
    %62 = arith.truncf %46 : vector<4x9x8xf32> to vector<4x9x8xbf16>
    %cst_51 = arith.constant dense<0.000000e+00> : vector<4x9x8xf32>
    %63 = tpu.matmul %61, %62, %cst_51 {dimension_numbers = #tpu.dot_dimension_numbers<[2], [1], [1], [2], [0, 0, 0, 1, 1, 2], [0], [0]>} : vector<4x9x9xbf16>, vector<4x9x8xbf16>, vector<4x9x8xf32> -> vector<4x9x8xf32>
    %64 = arith.truncf %63 : vector<4x9x8xf32> to vector<4x9x8xbf16>
    %cst_52 = arith.constant dense<0.000000e+00> : vector<4x9x32xf32>
    %65 = tpu.matmul %64, %3, %cst_52 {dimension_numbers = #tpu.dot_dimension_numbers<[2], [1], [1], [2], [0, 0, 0, 1, 1, 2], [0], [0]>} : vector<4x9x8xbf16>, vector<4x8x32xbf16>, vector<4x9x32xf32> -> vector<4x9x32xf32>
    %cst_53 = arith.constant dense<0.000000e+00> : vector<9x32xf32>
    %66 = vector.multi_reduction <add>, %65, %cst_53 [0] : vector<4x9x32xf32> to vector<9x32xf32>
    %67 = arith.addf %18, %66 : vector<9x32xf32>
    %68 = vector.broadcast %10 : vector<1x32xf32> to vector<9x32xf32>
    %69 = arith.addf %67, %68 : vector<9x32xf32>
    %cst_54 = arith.constant dense<0.000000e+00> : vector<9xf32>
    %70 = vector.multi_reduction <add>, %69, %cst_54 [1] : vector<9x32xf32> to vector<9xf32>
    %71 = vector.shape_cast %70 : vector<9xf32> to vector<9x1xf32>
    %cst_55 = arith.constant 3.200000e+01 : f32
    %72 = vector.broadcast %cst_55 : f32 to vector<9x1xf32>
    %73 = arith.divf %71, %72 : vector<9x1xf32>
    %74 = vector.broadcast %73 : vector<9x1xf32> to vector<9x32xf32>
    %75 = arith.subf %69, %74 : vector<9x32xf32>
    %76 = arith.mulf %75, %75 : vector<9x32xf32>
    %cst_56 = arith.constant dense<0.000000e+00> : vector<9xf32>
    %77 = vector.multi_reduction <add>, %76, %cst_56 [1] : vector<9x32xf32> to vector<9xf32>
    %78 = vector.shape_cast %77 : vector<9xf32> to vector<9x1xf32>
    %cst_57 = arith.constant 3.200000e+01 : f32
    %79 = vector.broadcast %cst_57 : f32 to vector<9x1xf32>
    %80 = arith.divf %78, %79 : vector<9x1xf32>
    %81 = vector.broadcast %73 : vector<9x1xf32> to vector<9x32xf32>
    %82 = arith.subf %69, %81 : vector<9x32xf32>
    %cst_58 = arith.constant 9.99999997E-7 : f32
    %83 = vector.broadcast %cst_58 : f32 to vector<9x1xf32>
    %84 = arith.addf %80, %83 : vector<9x1xf32>
    %85 = math.rsqrt %84 : vector<9x1xf32>
    %86 = vector.broadcast %85 : vector<9x1xf32> to vector<9x32xf32>
    %87 = arith.mulf %82, %86 : vector<9x32xf32>
    %88 = vector.broadcast %8 : vector<1x32xf32> to vector<9x32xf32>
    %89 = arith.mulf %87, %88 : vector<9x32xf32>
    %90 = vector.broadcast %9 : vector<1x32xf32> to vector<9x32xf32>
    %91 = arith.addf %89, %90 : vector<9x32xf32>
    %92 = arith.truncf %91 : vector<9x32xf32> to vector<9x32xbf16>
    %cst_59 = arith.constant dense<0.000000e+00> : vector<9x128xf32>
    %93 = tpu.matmul %92, %4, %cst_59 {dimension_numbers = #tpu.dot_dimension_numbers<[1], [0], [0], [1], [0, 0, 1, 1], [], []>} : vector<9x32xbf16>, vector<32x128xbf16>, vector<9x128xf32> -> vector<9x128xf32>
    %94 = vector.broadcast %11 : vector<1x128xf32> to vector<9x128xf32>
    %95 = arith.addf %93, %94 : vector<9x128xf32>
    %cst_60 = arith.constant 5.000000e-01 : f32
    %96 = vector.broadcast %cst_60 : f32 to vector<9x128xf32>
    %97 = arith.mulf %96, %95 : vector<9x128xf32>
    %cst_61 = arith.constant 0.707106769 : f32
    %98 = vector.broadcast %cst_61 : f32 to vector<9x128xf32>
    %99 = arith.mulf %95, %98 : vector<9x128xf32>
    %cst_62 = arith.constant 0.000000e+00 : f32
    %100 = vector.broadcast %cst_62 : f32 to vector<9x128xf32>
    %101 = arith.cmpf olt, %99, %100 : vector<9x128xf32>
    %cst_63 = arith.constant -1.000000e+00 : f32
    %cst_64 = arith.constant 1.000000e+00 : f32
    %102 = vector.broadcast %cst_63 : f32 to vector<9x128xf32>
    %103 = vector.broadcast %cst_64 : f32 to vector<9x128xf32>
    %104 = arith.select %101, %102, %103 : vector<9x128xi1>, vector<9x128xf32>
    %105 = math.absf %99 : vector<9x128xf32>
    %cst_65 = arith.constant 0.327591091 : f32
    %106 = vector.broadcast %cst_65 : f32 to vector<9x128xf32>
    %107 = arith.mulf %106, %105 : vector<9x128xf32>
    %cst_66 = arith.constant 1.000000e+00 : f32
    %108 = vector.broadcast %cst_66 : f32 to vector<9x128xf32>
    %109 = arith.addf %108, %107 : vector<9x128xf32>
    %cst_67 = arith.constant 1.000000e+00 : f32
    %110 = vector.broadcast %cst_67 : f32 to vector<9x128xf32>
    %111 = arith.divf %110, %109 : vector<9x128xf32>
    %cst_68 = arith.constant 1.06140542 : f32
    %112 = vector.broadcast %cst_68 : f32 to vector<9x128xf32>
    %113 = arith.mulf %112, %111 : vector<9x128xf32>
    %cst_69 = arith.constant -1.45315206 : f32
    %114 = vector.broadcast %cst_69 : f32 to vector<9x128xf32>
    %115 = arith.addf %113, %114 : vector<9x128xf32>
    %116 = arith.mulf %115, %111 : vector<9x128xf32>
    %cst_70 = arith.constant 1.42141378 : f32
    %117 = vector.broadcast %cst_70 : f32 to vector<9x128xf32>
    %118 = arith.addf %116, %117 : vector<9x128xf32>
    %119 = arith.mulf %118, %111 : vector<9x128xf32>
    %cst_71 = arith.constant -0.284496725 : f32
    %120 = vector.broadcast %cst_71 : f32 to vector<9x128xf32>
    %121 = arith.addf %119, %120 : vector<9x128xf32>
    %122 = arith.mulf %121, %111 : vector<9x128xf32>
    %cst_72 = arith.constant 0.254829586 : f32
    %123 = vector.broadcast %cst_72 : f32 to vector<9x128xf32>
    %124 = arith.addf %122, %123 : vector<9x128xf32>
    %125 = arith.mulf %124, %111 : vector<9x128xf32>
    %cst_73 = arith.constant 0.000000e+00 : f32
    %126 = vector.broadcast %cst_73 : f32 to vector<9x128xf32>
    %127 = arith.subf %126, %105 : vector<9x128xf32>
    %128 = arith.mulf %127, %105 : vector<9x128xf32>
    %129 = math.exp %128 : vector<9x128xf32>
    %130 = arith.mulf %125, %129 : vector<9x128xf32>
    %cst_74 = arith.constant 1.000000e+00 : f32
    %131 = vector.broadcast %cst_74 : f32 to vector<9x128xf32>
    %132 = arith.subf %131, %130 : vector<9x128xf32>
    %133 = arith.mulf %104, %132 : vector<9x128xf32>
    %cst_75 = arith.constant 1.000000e+00 : f32
    %134 = vector.broadcast %cst_75 : f32 to vector<9x128xf32>
    %135 = arith.addf %134, %133 : vector<9x128xf32>
    %136 = arith.mulf %97, %135 : vector<9x128xf32>
    %137 = arith.truncf %136 : vector<9x128xf32> to vector<9x128xbf16>
    %cst_76 = arith.constant dense<0.000000e+00> : vector<9x32xf32>
    %138 = tpu.matmul %137, %5, %cst_76 {dimension_numbers = #tpu.dot_dimension_numbers<[1], [0], [0], [1], [0, 0, 1, 1], [], []>} : vector<9x128xbf16>, vector<128x32xbf16>, vector<9x32xf32> -> vector<9x32xf32>
    %139 = vector.broadcast %12 : vector<1x32xf32> to vector<9x32xf32>
    %140 = arith.addf %138, %139 : vector<9x32xf32>
    %141 = arith.addf %69, %140 : vector<9x32xf32>
    %142 = vector.extract_strided_slice %141 {offsets = [0, 0], sizes = [1, 32], strides = [1, 1]} : vector<9x32xf32> to vector<1x32xf32>
    %cst_77 = arith.constant dense<0.000000e+00> : vector<1xf32>
    %143 = vector.multi_reduction <add>, %142, %cst_77 [1] : vector<1x32xf32> to vector<1xf32>
    %144 = vector.shape_cast %143 : vector<1xf32> to vector<1x1xf32>
    %cst_78 = arith.constant 3.200000e+01 : f32
    %145 = vector.broadcast %cst_78 : f32 to vector<1x1xf32>
    %146 = arith.divf %144, %145 : vector<1x1xf32>
    %147 = vector.broadcast %146 : vector<1x1xf32> to vector<1x32xf32>
    %148 = arith.subf %142, %147 : vector<1x32xf32>
    %149 = arith.mulf %148, %148 : vector<1x32xf32>
    %cst_79 = arith.constant dense<0.000000e+00> : vector<1xf32>
    %150 = vector.multi_reduction <add>, %149, %cst_79 [1] : vector<1x32xf32> to vector<1xf32>
    %151 = vector.shape_cast %150 : vector<1xf32> to vector<1x1xf32>
    %cst_80 = arith.constant 3.200000e+01 : f32
    %152 = vector.broadcast %cst_80 : f32 to vector<1x1xf32>
    %153 = arith.divf %151, %152 : vector<1x1xf32>
    %154 = vector.broadcast %146 : vector<1x1xf32> to vector<1x32xf32>
    %155 = arith.subf %142, %154 : vector<1x32xf32>
    %cst_81 = arith.constant 9.99999997E-7 : f32
    %156 = vector.broadcast %cst_81 : f32 to vector<1x1xf32>
    %157 = arith.addf %153, %156 : vector<1x1xf32>
    %158 = math.rsqrt %157 : vector<1x1xf32>
    %159 = vector.broadcast %158 : vector<1x1xf32> to vector<1x32xf32>
    %160 = arith.mulf %155, %159 : vector<1x32xf32>
    %161 = arith.mulf %160, %13 : vector<1x32xf32>
    %162 = arith.addf %161, %14 : vector<1x32xf32>
    %163 = arith.truncf %162 : vector<1x32xf32> to vector<1x32xbf16>
    %cst_82 = arith.constant dense<0.000000e+00> : vector<1x128xf32>
    %164 = tpu.matmul %163, %15, %cst_82 {dimension_numbers = #tpu.dot_dimension_numbers<[1], [0], [0], [1], [0, 0, 1, 1], [], []>} : vector<1x32xbf16>, vector<32x128xbf16>, vector<1x128xf32> -> vector<1x128xf32>
    %165 = arith.addf %164, %16 : vector<1x128xf32>
    %c0_83 = arith.constant 0 : index
    %c0_84 = arith.constant 0 : index
    %c0_85 = arith.constant 0 : index
    %166 = vector.load %arg18[%c0_83, %c0_84, %c0_85] : memref<2x1x128xf32, #tpu.memory_space<vmem>>, vector<1x1x128xf32>
    %167 = vector.shape_cast %166 : vector<1x1x128xf32> to vector<1x128xf32>
    %168 = vector.shape_cast %165 : vector<1x128xf32> to vector<1x1x128xf32>
    tpu.vector_store %arg18[%c0_83, %c0_84, %c0_85], %168 {strides = array<i32>} : memref<2x1x128xf32, #tpu.memory_space<vmem>>, vector<1x1x128xf32>,
    %c1 = arith.constant 1 : index
    %c0_86 = arith.constant 0 : index
    %c0_87 = arith.constant 0 : index
    %169 = vector.load %arg0[%c1, %c0_86, %c0_87] : memref<2x9x32xf32, #tpu.memory_space<vmem>>, vector<1x9x32xf32>
    %170 = vector.shape_cast %169 : vector<1x9x32xf32> to vector<9x32xf32>
    %cst_88 = arith.constant dense<0.000000e+00> : vector<9xf32>
    %171 = vector.multi_reduction <add>, %170, %cst_88 [1] : vector<9x32xf32> to vector<9xf32>
    %172 = vector.shape_cast %171 : vector<9xf32> to vector<9x1xf32>
    %cst_89 = arith.constant 3.200000e+01 : f32
    %173 = vector.broadcast %cst_89 : f32 to vector<9x1xf32>
    %174 = arith.divf %172, %173 : vector<9x1xf32>
    %175 = vector.broadcast %174 : vector<9x1xf32> to vector<9x32xf32>
    %176 = arith.subf %170, %175 : vector<9x32xf32>
    %177 = arith.mulf %176, %176 : vector<9x32xf32>
    %cst_90 = arith.constant dense<0.000000e+00> : vector<9xf32>
    %178 = vector.multi_reduction <add>, %177, %cst_90 [1] : vector<9x32xf32> to vector<9xf32>
    %179 = vector.shape_cast %178 : vector<9xf32> to vector<9x1xf32>
    %cst_91 = arith.constant 3.200000e+01 : f32
    %180 = vector.broadcast %cst_91 : f32 to vector<9x1xf32>
    %181 = arith.divf %179, %180 : vector<9x1xf32>
    %182 = vector.broadcast %174 : vector<9x1xf32> to vector<9x32xf32>
    %183 = arith.subf %170, %182 : vector<9x32xf32>
    %cst_92 = arith.constant 9.99999997E-7 : f32
    %184 = vector.broadcast %cst_92 : f32 to vector<9x1xf32>
    %185 = arith.addf %181, %184 : vector<9x1xf32>
    %186 = math.rsqrt %185 : vector<9x1xf32>
    %187 = vector.broadcast %186 : vector<9x1xf32> to vector<9x32xf32>
    %188 = arith.mulf %183, %187 : vector<9x32xf32>
    %189 = vector.broadcast %6 : vector<1x32xf32> to vector<9x32xf32>
    %190 = arith.mulf %188, %189 : vector<9x32xf32>
    %191 = vector.broadcast %7 : vector<1x32xf32> to vector<9x32xf32>
    %192 = arith.addf %190, %191 : vector<9x32xf32>
    %193 = arith.truncf %192 : vector<9x32xf32> to vector<9x32xbf16>
    %194 = vector.shape_cast %193 : vector<9x32xbf16> to vector<1x9x32xbf16>
    %195 = vector.broadcast %194 : vector<1x9x32xbf16> to vector<4x9x32xbf16>
    %cst_93 = arith.constant dense<0.000000e+00> : vector<4x9x8xf32>
    %196 = tpu.matmul %195, %0, %cst_93 {dimension_numbers = #tpu.dot_dimension_numbers<[2], [1], [1], [2], [0, 0, 0, 1, 1, 2], [0], [0]>} : vector<4x9x32xbf16>, vector<4x32x8xbf16>, vector<4x9x8xf32> -> vector<4x9x8xf32>
    %cst_94 = arith.constant dense<0.000000e+00> : vector<4x9x8xf32>
    %197 = tpu.matmul %195, %1, %cst_94 {dimension_numbers = #tpu.dot_dimension_numbers<[2], [1], [1], [2], [0, 0, 0, 1, 1, 2], [0], [0]>} : vector<4x9x32xbf16>, vector<4x32x8xbf16>, vector<4x9x8xf32> -> vector<4x9x8xf32>
    %cst_95 = arith.constant dense<0.000000e+00> : vector<4x9x8xf32>
    %198 = tpu.matmul %195, %2, %cst_95 {dimension_numbers = #tpu.dot_dimension_numbers<[2], [1], [1], [2], [0, 0, 0, 1, 1, 2], [0], [0]>} : vector<4x9x32xbf16>, vector<4x32x8xbf16>, vector<4x9x8xf32> -> vector<4x9x8xf32>
    %199 = arith.truncf %196 : vector<4x9x8xf32> to vector<4x9x8xbf16>
    %200 = arith.truncf %197 : vector<4x9x8xf32> to vector<4x9x8xbf16>
    %cst_96 = arith.constant dense<0.000000e+00> : vector<4x9x9xf32>
    %201 = tpu.matmul %199, %200, %cst_96 {dimension_numbers = #tpu.dot_dimension_numbers<[2], [2], [1], [1], [0, 0, 0, 1, 1, 1], [0], [0]>} : vector<4x9x8xbf16>, vector<4x9x8xbf16>, vector<4x9x9xf32> -> vector<4x9x9xf32>
    %cst_97 = arith.constant 0.353553385 : f32
    %202 = vector.broadcast %cst_97 : f32 to vector<4x9x9xf32>
    %203 = arith.mulf %201, %202 : vector<4x9x9xf32>
    %cst_98 = arith.constant dense<0xFF800000> : vector<4x9xf32>
    %204 = vector.multi_reduction <maximumf>, %203, %cst_98 [2] : vector<4x9x9xf32> to vector<4x9xf32>
    %205 = vector.shape_cast %204 : vector<4x9xf32> to vector<4x9x1xf32>
    %206 = vector.broadcast %205 : vector<4x9x1xf32> to vector<4x9x9xf32>
    %207 = arith.subf %203, %206 : vector<4x9x9xf32>
    %208 = math.exp %207 : vector<4x9x9xf32>
    %cst_99 = arith.constant dense<0.000000e+00> : vector<4x9xf32>
    %209 = vector.multi_reduction <add>, %208, %cst_99 [2] : vector<4x9x9xf32> to vector<4x9xf32>
    %210 = vector.shape_cast %209 : vector<4x9xf32> to vector<4x9x1xf32>
    %211 = vector.broadcast %210 : vector<4x9x1xf32> to vector<4x9x9xf32>
    %212 = arith.divf %208, %211 : vector<4x9x9xf32>
    %213 = arith.truncf %212 : vector<4x9x9xf32> to vector<4x9x9xbf16>
    %214 = arith.truncf %198 : vector<4x9x8xf32> to vector<4x9x8xbf16>
    %cst_100 = arith.constant dense<0.000000e+00> : vector<4x9x8xf32>
    %215 = tpu.matmul %213, %214, %cst_100 {dimension_numbers = #tpu.dot_dimension_numbers<[2], [1], [1], [2], [0, 0, 0, 1, 1, 2], [0], [0]>} : vector<4x9x9xbf16>, vector<4x9x8xbf16>, vector<4x9x8xf32> -> vector<4x9x8xf32>
    %216 = arith.truncf %215 : vector<4x9x8xf32> to vector<4x9x8xbf16>
    %cst_101 = arith.constant dense<0.000000e+00> : vector<4x9x32xf32>
    %217 = tpu.matmul %216, %3, %cst_101 {dimension_numbers = #tpu.dot_dimension_numbers<[2], [1], [1], [2], [0, 0, 0, 1, 1, 2], [0], [0]>} : vector<4x9x8xbf16>, vector<4x8x32xbf16>, vector<4x9x32xf32> -> vector<4x9x32xf32>
    %cst_102 = arith.constant dense<0.000000e+00> : vector<9x32xf32>
    %218 = vector.multi_reduction <add>, %217, %cst_102 [0] : vector<4x9x32xf32> to vector<9x32xf32>
    %219 = arith.addf %170, %218 : vector<9x32xf32>
    %220 = vector.broadcast %10 : vector<1x32xf32> to vector<9x32xf32>
    %221 = arith.addf %219, %220 : vector<9x32xf32>
    %cst_103 = arith.constant dense<0.000000e+00> : vector<9xf32>
    %222 = vector.multi_reduction <add>, %221, %cst_103 [1] : vector<9x32xf32> to vector<9xf32>
    %223 = vector.shape_cast %222 : vector<9xf32> to vector<9x1xf32>
    %cst_104 = arith.constant 3.200000e+01 : f32
    %224 = vector.broadcast %cst_104 : f32 to vector<9x1xf32>
    %225 = arith.divf %223, %224 : vector<9x1xf32>
    %226 = vector.broadcast %225 : vector<9x1xf32> to vector<9x32xf32>
    %227 = arith.subf %221, %226 : vector<9x32xf32>
    %228 = arith.mulf %227, %227 : vector<9x32xf32>
    %cst_105 = arith.constant dense<0.000000e+00> : vector<9xf32>
    %229 = vector.multi_reduction <add>, %228, %cst_105 [1] : vector<9x32xf32> to vector<9xf32>
    %230 = vector.shape_cast %229 : vector<9xf32> to vector<9x1xf32>
    %cst_106 = arith.constant 3.200000e+01 : f32
    %231 = vector.broadcast %cst_106 : f32 to vector<9x1xf32>
    %232 = arith.divf %230, %231 : vector<9x1xf32>
    %233 = vector.broadcast %225 : vector<9x1xf32> to vector<9x32xf32>
    %234 = arith.subf %221, %233 : vector<9x32xf32>
    %cst_107 = arith.constant 9.99999997E-7 : f32
    %235 = vector.broadcast %cst_107 : f32 to vector<9x1xf32>
    %236 = arith.addf %232, %235 : vector<9x1xf32>
    %237 = math.rsqrt %236 : vector<9x1xf32>
    %238 = vector.broadcast %237 : vector<9x1xf32> to vector<9x32xf32>
    %239 = arith.mulf %234, %238 : vector<9x32xf32>
    %240 = vector.broadcast %8 : vector<1x32xf32> to vector<9x32xf32>
    %241 = arith.mulf %239, %240 : vector<9x32xf32>
    %242 = vector.broadcast %9 : vector<1x32xf32> to vector<9x32xf32>
    %243 = arith.addf %241, %242 : vector<9x32xf32>
    %244 = arith.truncf %243 : vector<9x32xf32> to vector<9x32xbf16>
    %cst_108 = arith.constant dense<0.000000e+00> : vector<9x128xf32>
    %245 = tpu.matmul %244, %4, %cst_108 {dimension_numbers = #tpu.dot_dimension_numbers<[1], [0], [0], [1], [0, 0, 1, 1], [], []>} : vector<9x32xbf16>, vector<32x128xbf16>, vector<9x128xf32> -> vector<9x128xf32>
    %246 = vector.broadcast %11 : vector<1x128xf32> to vector<9x128xf32>
    %247 = arith.addf %245, %246 : vector<9x128xf32>
    %cst_109 = arith.constant 5.000000e-01 : f32
    %248 = vector.broadcast %cst_109 : f32 to vector<9x128xf32>
    %249 = arith.mulf %248, %247 : vector<9x128xf32>
    %cst_110 = arith.constant 0.707106769 : f32
    %250 = vector.broadcast %cst_110 : f32 to vector<9x128xf32>
    %251 = arith.mulf %247, %250 : vector<9x128xf32>
    %cst_111 = arith.constant 0.000000e+00 : f32
    %252 = vector.broadcast %cst_111 : f32 to vector<9x128xf32>
    %253 = arith.cmpf olt, %251, %252 : vector<9x128xf32>
    %cst_112 = arith.constant -1.000000e+00 : f32
    %cst_113 = arith.constant 1.000000e+00 : f32
    %254 = vector.broadcast %cst_112 : f32 to vector<9x128xf32>
    %255 = vector.broadcast %cst_113 : f32 to vector<9x128xf32>
    %256 = arith.select %253, %254, %255 : vector<9x128xi1>, vector<9x128xf32>
    %257 = math.absf %251 : vector<9x128xf32>
    %cst_114 = arith.constant 0.327591091 : f32
    %258 = vector.broadcast %cst_114 : f32 to vector<9x128xf32>
    %259 = arith.mulf %258, %257 : vector<9x128xf32>
    %cst_115 = arith.constant 1.000000e+00 : f32
    %260 = vector.broadcast %cst_115 : f32 to vector<9x128xf32>
    %261 = arith.addf %260, %259 : vector<9x128xf32>
    %cst_116 = arith.constant 1.000000e+00 : f32
    %262 = vector.broadcast %cst_116 : f32 to vector<9x128xf32>
    %263 = arith.divf %262, %261 : vector<9x128xf32>
    %cst_117 = arith.constant 1.06140542 : f32
    %264 = vector.broadcast %cst_117 : f32 to vector<9x128xf32>
    %265 = arith.mulf %264, %263 : vector<9x128xf32>
    %cst_118 = arith.constant -1.45315206 : f32
    %266 = vector.broadcast %cst_118 : f32 to vector<9x128xf32>
    %267 = arith.addf %265, %266 : vector<9x128xf32>
    %268 = arith.mulf %267, %263 : vector<9x128xf32>
    %cst_119 = arith.constant 1.42141378 : f32
    %269 = vector.broadcast %cst_119 : f32 to vector<9x128xf32>
    %270 = arith.addf %268, %269 : vector<9x128xf32>
    %271 = arith.mulf %270, %263 : vector<9x128xf32>
    %cst_120 = arith.constant -0.284496725 : f32
    %272 = vector.broadcast %cst_120 : f32 to vector<9x128xf32>
    %273 = arith.addf %271, %272 : vector<9x128xf32>
    %274 = arith.mulf %273, %263 : vector<9x128xf32>
    %cst_121 = arith.constant 0.254829586 : f32
    %275 = vector.broadcast %cst_121 : f32 to vector<9x128xf32>
    %276 = arith.addf %274, %275 : vector<9x128xf32>
    %277 = arith.mulf %276, %263 : vector<9x128xf32>
    %cst_122 = arith.constant 0.000000e+00 : f32
    %278 = vector.broadcast %cst_122 : f32 to vector<9x128xf32>
    %279 = arith.subf %278, %257 : vector<9x128xf32>
    %280 = arith.mulf %279, %257 : vector<9x128xf32>
    %281 = math.exp %280 : vector<9x128xf32>
    %282 = arith.mulf %277, %281 : vector<9x128xf32>
    %cst_123 = arith.constant 1.000000e+00 : f32
    %283 = vector.broadcast %cst_123 : f32 to vector<9x128xf32>
    %284 = arith.subf %283, %282 : vector<9x128xf32>
    %285 = arith.mulf %256, %284 : vector<9x128xf32>
    %cst_124 = arith.constant 1.000000e+00 : f32
    %286 = vector.broadcast %cst_124 : f32 to vector<9x128xf32>
    %287 = arith.addf %286, %285 : vector<9x128xf32>
    %288 = arith.mulf %249, %287 : vector<9x128xf32>
    %289 = arith.truncf %288 : vector<9x128xf32> to vector<9x128xbf16>
    %cst_125 = arith.constant dense<0.000000e+00> : vector<9x32xf32>
    %290 = tpu.matmul %289, %5, %cst_125 {dimension_numbers = #tpu.dot_dimension_numbers<[1], [0], [0], [1], [0, 0, 1, 1], [], []>} : vector<9x128xbf16>, vector<128x32xbf16>, vector<9x32xf32> -> vector<9x32xf32>
    %291 = vector.broadcast %12 : vector<1x32xf32> to vector<9x32xf32>
    %292 = arith.addf %290, %291 : vector<9x32xf32>
    %293 = arith.addf %221, %292 : vector<9x32xf32>
    %294 = vector.extract_strided_slice %293 {offsets = [0, 0], sizes = [1, 32], strides = [1, 1]} : vector<9x32xf32> to vector<1x32xf32>
    %cst_126 = arith.constant dense<0.000000e+00> : vector<1xf32>
    %295 = vector.multi_reduction <add>, %294, %cst_126 [1] : vector<1x32xf32> to vector<1xf32>
    %296 = vector.shape_cast %295 : vector<1xf32> to vector<1x1xf32>
    %cst_127 = arith.constant 3.200000e+01 : f32
    %297 = vector.broadcast %cst_127 : f32 to vector<1x1xf32>
    %298 = arith.divf %296, %297 : vector<1x1xf32>
    %299 = vector.broadcast %298 : vector<1x1xf32> to vector<1x32xf32>
    %300 = arith.subf %294, %299 : vector<1x32xf32>
    %301 = arith.mulf %300, %300 : vector<1x32xf32>
    %cst_128 = arith.constant dense<0.000000e+00> : vector<1xf32>
    %302 = vector.multi_reduction <add>, %301, %cst_128 [1] : vector<1x32xf32> to vector<1xf32>
    %303 = vector.shape_cast %302 : vector<1xf32> to vector<1x1xf32>
    %cst_129 = arith.constant 3.200000e+01 : f32
    %304 = vector.broadcast %cst_129 : f32 to vector<1x1xf32>
    %305 = arith.divf %303, %304 : vector<1x1xf32>
    %306 = vector.broadcast %298 : vector<1x1xf32> to vector<1x32xf32>
    %307 = arith.subf %294, %306 : vector<1x32xf32>
    %cst_130 = arith.constant 9.99999997E-7 : f32
    %308 = vector.broadcast %cst_130 : f32 to vector<1x1xf32>
    %309 = arith.addf %305, %308 : vector<1x1xf32>
    %310 = math.rsqrt %309 : vector<1x1xf32>
    %311 = vector.broadcast %310 : vector<1x1xf32> to vector<1x32xf32>
    %312 = arith.mulf %307, %311 : vector<1x32xf32>
    %313 = arith.mulf %312, %13 : vector<1x32xf32>
    %314 = arith.addf %313, %14 : vector<1x32xf32>
    %315 = arith.truncf %314 : vector<1x32xf32> to vector<1x32xbf16>
    %cst_131 = arith.constant dense<0.000000e+00> : vector<1x128xf32>
    %316 = tpu.matmul %315, %15, %cst_131 {dimension_numbers = #tpu.dot_dimension_numbers<[1], [0], [0], [1], [0, 0, 1, 1], [], []>} : vector<1x32xbf16>, vector<32x128xbf16>, vector<1x128xf32> -> vector<1x128xf32>
    %317 = arith.addf %316, %16 : vector<1x128xf32>
    %c1_132 = arith.constant 1 : index
    %c0_133 = arith.constant 0 : index
    %c0_134 = arith.constant 0 : index
    %318 = vector.load %arg18[%c1_132, %c0_133, %c0_134] : memref<2x1x128xf32, #tpu.memory_space<vmem>>, vector<1x1x128xf32>
    %319 = vector.shape_cast %318 : vector<1x1x128xf32> to vector<1x128xf32>
    %320 = vector.shape_cast %317 : vector<1x128xf32> to vector<1x1x128xf32>
    tpu.vector_store %arg18[%c1_132, %c0_133, %c0_134], %320 {strides = array<i32>} : memref<2x1x128xf32, #tpu.memory_space<vmem>>, vector<1x1x128xf32>,
    return
  }
}

module attributes {stable_mosaic.version = 11 : i64} {
  func.func @_block_kernel(%arg0: memref<2x9x32xf32, #tpu.memory_space<vmem>>, %arg1: memref<1x32xf32, #tpu.memory_space<vmem>>, %arg2: memref<1x32xf32, #tpu.memory_space<vmem>>, %arg3: memref<4x32x8xbf16, #tpu.memory_space<vmem>>, %arg4: memref<4x32x8xbf16, #tpu.memory_space<vmem>>, %arg5: memref<4x32x8xbf16, #tpu.memory_space<vmem>>, %arg6: memref<4x8x32xbf16, #tpu.memory_space<vmem>>, %arg7: memref<1x32xf32, #tpu.memory_space<vmem>>, %arg8: memref<1x32xf32, #tpu.memory_space<vmem>>, %arg9: memref<1x32xf32, #tpu.memory_space<vmem>>, %arg10: memref<32x128xbf16, #tpu.memory_space<vmem>>, %arg11: memref<1x128xf32, #tpu.memory_space<vmem>>, %arg12: memref<128x32xbf16, #tpu.memory_space<vmem>>, %arg13: memref<1x32xf32, #tpu.memory_space<vmem>>, %arg14: memref<2x9x32xf32, #tpu.memory_space<vmem>>) attributes {dimension_semantics = [], scalar_prefetch = 0 : i64, scratch_operands = 0 : i64, tpu.core_type = #tpu.core_type<tc>} {
    %c0 = arith.constant 0 : index
    %c0_0 = arith.constant 0 : index
    %c0_1 = arith.constant 0 : index
    %0 = vector.load %arg3[%c0, %c0_0, %c0_1] : memref<4x32x8xbf16, #tpu.memory_space<vmem>>, vector<4x32x8xbf16>
    %c0_2 = arith.constant 0 : index
    %c0_3 = arith.constant 0 : index
    %c0_4 = arith.constant 0 : index
    %1 = vector.load %arg4[%c0_2, %c0_3, %c0_4] : memref<4x32x8xbf16, #tpu.memory_space<vmem>>, vector<4x32x8xbf16>
    %c0_5 = arith.constant 0 : index
    %c0_6 = arith.constant 0 : index
    %c0_7 = arith.constant 0 : index
    %2 = vector.load %arg5[%c0_5, %c0_6, %c0_7] : memref<4x32x8xbf16, #tpu.memory_space<vmem>>, vector<4x32x8xbf16>
    %c0_8 = arith.constant 0 : index
    %c0_9 = arith.constant 0 : index
    %c0_10 = arith.constant 0 : index
    %3 = vector.load %arg6[%c0_8, %c0_9, %c0_10] : memref<4x8x32xbf16, #tpu.memory_space<vmem>>, vector<4x8x32xbf16>
    %c0_11 = arith.constant 0 : index
    %c0_12 = arith.constant 0 : index
    %4 = vector.load %arg10[%c0_11, %c0_12] : memref<32x128xbf16, #tpu.memory_space<vmem>>, vector<32x128xbf16>
    %c0_13 = arith.constant 0 : index
    %c0_14 = arith.constant 0 : index
    %5 = vector.load %arg12[%c0_13, %c0_14] : memref<128x32xbf16, #tpu.memory_space<vmem>>, vector<128x32xbf16>
    %c0_15 = arith.constant 0 : index
    %c0_16 = arith.constant 0 : index
    %6 = vector.load %arg1[%c0_15, %c0_16] : memref<1x32xf32, #tpu.memory_space<vmem>>, vector<1x32xf32>
    %c0_17 = arith.constant 0 : index
    %c0_18 = arith.constant 0 : index
    %7 = vector.load %arg2[%c0_17, %c0_18] : memref<1x32xf32, #tpu.memory_space<vmem>>, vector<1x32xf32>
    %c0_19 = arith.constant 0 : index
    %c0_20 = arith.constant 0 : index
    %8 = vector.load %arg8[%c0_19, %c0_20] : memref<1x32xf32, #tpu.memory_space<vmem>>, vector<1x32xf32>
    %c0_21 = arith.constant 0 : index
    %c0_22 = arith.constant 0 : index
    %9 = vector.load %arg9[%c0_21, %c0_22] : memref<1x32xf32, #tpu.memory_space<vmem>>, vector<1x32xf32>
    %c0_23 = arith.constant 0 : index
    %c0_24 = arith.constant 0 : index
    %10 = vector.load %arg7[%c0_23, %c0_24] : memref<1x32xf32, #tpu.memory_space<vmem>>, vector<1x32xf32>
    %c0_25 = arith.constant 0 : index
    %c0_26 = arith.constant 0 : index
    %11 = vector.load %arg11[%c0_25, %c0_26] : memref<1x128xf32, #tpu.memory_space<vmem>>, vector<1x128xf32>
    %c0_27 = arith.constant 0 : index
    %c0_28 = arith.constant 0 : index
    %12 = vector.load %arg13[%c0_27, %c0_28] : memref<1x32xf32, #tpu.memory_space<vmem>>, vector<1x32xf32>
    %c0_29 = arith.constant 0 : index
    %c0_30 = arith.constant 0 : index
    %c0_31 = arith.constant 0 : index
    %13 = vector.load %arg0[%c0_29, %c0_30, %c0_31] : memref<2x9x32xf32, #tpu.memory_space<vmem>>, vector<1x9x32xf32>
    %14 = vector.shape_cast %13 : vector<1x9x32xf32> to vector<9x32xf32>
    %cst = arith.constant dense<0.000000e+00> : vector<9xf32>
    %15 = vector.multi_reduction <add>, %14, %cst [1] : vector<9x32xf32> to vector<9xf32>
    %16 = vector.shape_cast %15 : vector<9xf32> to vector<9x1xf32>
    %cst_32 = arith.constant 3.200000e+01 : f32
    %17 = vector.broadcast %cst_32 : f32 to vector<9x1xf32>
    %18 = arith.divf %16, %17 : vector<9x1xf32>
    %19 = vector.broadcast %18 : vector<9x1xf32> to vector<9x32xf32>
    %20 = arith.subf %14, %19 : vector<9x32xf32>
    %21 = arith.mulf %20, %20 : vector<9x32xf32>
    %cst_33 = arith.constant dense<0.000000e+00> : vector<9xf32>
    %22 = vector.multi_reduction <add>, %21, %cst_33 [1] : vector<9x32xf32> to vector<9xf32>
    %23 = vector.shape_cast %22 : vector<9xf32> to vector<9x1xf32>
    %cst_34 = arith.constant 3.200000e+01 : f32
    %24 = vector.broadcast %cst_34 : f32 to vector<9x1xf32>
    %25 = arith.divf %23, %24 : vector<9x1xf32>
    %26 = vector.broadcast %18 : vector<9x1xf32> to vector<9x32xf32>
    %27 = arith.subf %14, %26 : vector<9x32xf32>
    %cst_35 = arith.constant 9.99999997E-7 : f32
    %28 = vector.broadcast %cst_35 : f32 to vector<9x1xf32>
    %29 = arith.addf %25, %28 : vector<9x1xf32>
    %30 = math.rsqrt %29 : vector<9x1xf32>
    %31 = vector.broadcast %30 : vector<9x1xf32> to vector<9x32xf32>
    %32 = arith.mulf %27, %31 : vector<9x32xf32>
    %33 = vector.broadcast %6 : vector<1x32xf32> to vector<9x32xf32>
    %34 = arith.mulf %32, %33 : vector<9x32xf32>
    %35 = vector.broadcast %7 : vector<1x32xf32> to vector<9x32xf32>
    %36 = arith.addf %34, %35 : vector<9x32xf32>
    %37 = arith.truncf %36 : vector<9x32xf32> to vector<9x32xbf16>
    %38 = vector.shape_cast %37 : vector<9x32xbf16> to vector<1x9x32xbf16>
    %39 = vector.broadcast %38 : vector<1x9x32xbf16> to vector<4x9x32xbf16>
    %cst_36 = arith.constant dense<0.000000e+00> : vector<4x9x8xf32>
    %40 = tpu.matmul %39, %0, %cst_36 {dimension_numbers = #tpu.dot_dimension_numbers<[2], [1], [1], [2], [0, 0, 0, 1, 1, 2], [0], [0]>} : vector<4x9x32xbf16>, vector<4x32x8xbf16>, vector<4x9x8xf32> -> vector<4x9x8xf32>
    %cst_37 = arith.constant dense<0.000000e+00> : vector<4x9x8xf32>
    %41 = tpu.matmul %39, %1, %cst_37 {dimension_numbers = #tpu.dot_dimension_numbers<[2], [1], [1], [2], [0, 0, 0, 1, 1, 2], [0], [0]>} : vector<4x9x32xbf16>, vector<4x32x8xbf16>, vector<4x9x8xf32> -> vector<4x9x8xf32>
    %cst_38 = arith.constant dense<0.000000e+00> : vector<4x9x8xf32>
    %42 = tpu.matmul %39, %2, %cst_38 {dimension_numbers = #tpu.dot_dimension_numbers<[2], [1], [1], [2], [0, 0, 0, 1, 1, 2], [0], [0]>} : vector<4x9x32xbf16>, vector<4x32x8xbf16>, vector<4x9x8xf32> -> vector<4x9x8xf32>
    %43 = arith.truncf %40 : vector<4x9x8xf32> to vector<4x9x8xbf16>
    %44 = arith.truncf %41 : vector<4x9x8xf32> to vector<4x9x8xbf16>
    %cst_39 = arith.constant dense<0.000000e+00> : vector<4x9x9xf32>
    %45 = tpu.matmul %43, %44, %cst_39 {dimension_numbers = #tpu.dot_dimension_numbers<[2], [2], [1], [1], [0, 0, 0, 1, 1, 1], [0], [0]>} : vector<4x9x8xbf16>, vector<4x9x8xbf16>, vector<4x9x9xf32> -> vector<4x9x9xf32>
    %cst_40 = arith.constant 0.353553385 : f32
    %46 = vector.broadcast %cst_40 : f32 to vector<4x9x9xf32>
    %47 = arith.mulf %45, %46 : vector<4x9x9xf32>
    %cst_41 = arith.constant dense<0xFF800000> : vector<4x9xf32>
    %48 = vector.multi_reduction <maximumf>, %47, %cst_41 [2] : vector<4x9x9xf32> to vector<4x9xf32>
    %49 = vector.shape_cast %48 : vector<4x9xf32> to vector<4x9x1xf32>
    %50 = vector.broadcast %49 : vector<4x9x1xf32> to vector<4x9x9xf32>
    %51 = arith.subf %47, %50 : vector<4x9x9xf32>
    %52 = math.exp %51 : vector<4x9x9xf32>
    %cst_42 = arith.constant dense<0.000000e+00> : vector<4x9xf32>
    %53 = vector.multi_reduction <add>, %52, %cst_42 [2] : vector<4x9x9xf32> to vector<4x9xf32>
    %54 = vector.shape_cast %53 : vector<4x9xf32> to vector<4x9x1xf32>
    %55 = vector.broadcast %54 : vector<4x9x1xf32> to vector<4x9x9xf32>
    %56 = arith.divf %52, %55 : vector<4x9x9xf32>
    %57 = arith.truncf %56 : vector<4x9x9xf32> to vector<4x9x9xbf16>
    %58 = arith.truncf %42 : vector<4x9x8xf32> to vector<4x9x8xbf16>
    %cst_43 = arith.constant dense<0.000000e+00> : vector<4x9x8xf32>
    %59 = tpu.matmul %57, %58, %cst_43 {dimension_numbers = #tpu.dot_dimension_numbers<[2], [1], [1], [2], [0, 0, 0, 1, 1, 2], [0], [0]>} : vector<4x9x9xbf16>, vector<4x9x8xbf16>, vector<4x9x8xf32> -> vector<4x9x8xf32>
    %60 = arith.truncf %59 : vector<4x9x8xf32> to vector<4x9x8xbf16>
    %cst_44 = arith.constant dense<0.000000e+00> : vector<4x9x32xf32>
    %61 = tpu.matmul %60, %3, %cst_44 {dimension_numbers = #tpu.dot_dimension_numbers<[2], [1], [1], [2], [0, 0, 0, 1, 1, 2], [0], [0]>} : vector<4x9x8xbf16>, vector<4x8x32xbf16>, vector<4x9x32xf32> -> vector<4x9x32xf32>
    %cst_45 = arith.constant dense<0.000000e+00> : vector<9x32xf32>
    %62 = vector.multi_reduction <add>, %61, %cst_45 [0] : vector<4x9x32xf32> to vector<9x32xf32>
    %63 = arith.addf %14, %62 : vector<9x32xf32>
    %64 = vector.broadcast %10 : vector<1x32xf32> to vector<9x32xf32>
    %65 = arith.addf %63, %64 : vector<9x32xf32>
    %cst_46 = arith.constant dense<0.000000e+00> : vector<9xf32>
    %66 = vector.multi_reduction <add>, %65, %cst_46 [1] : vector<9x32xf32> to vector<9xf32>
    %67 = vector.shape_cast %66 : vector<9xf32> to vector<9x1xf32>
    %cst_47 = arith.constant 3.200000e+01 : f32
    %68 = vector.broadcast %cst_47 : f32 to vector<9x1xf32>
    %69 = arith.divf %67, %68 : vector<9x1xf32>
    %70 = vector.broadcast %69 : vector<9x1xf32> to vector<9x32xf32>
    %71 = arith.subf %65, %70 : vector<9x32xf32>
    %72 = arith.mulf %71, %71 : vector<9x32xf32>
    %cst_48 = arith.constant dense<0.000000e+00> : vector<9xf32>
    %73 = vector.multi_reduction <add>, %72, %cst_48 [1] : vector<9x32xf32> to vector<9xf32>
    %74 = vector.shape_cast %73 : vector<9xf32> to vector<9x1xf32>
    %cst_49 = arith.constant 3.200000e+01 : f32
    %75 = vector.broadcast %cst_49 : f32 to vector<9x1xf32>
    %76 = arith.divf %74, %75 : vector<9x1xf32>
    %77 = vector.broadcast %69 : vector<9x1xf32> to vector<9x32xf32>
    %78 = arith.subf %65, %77 : vector<9x32xf32>
    %cst_50 = arith.constant 9.99999997E-7 : f32
    %79 = vector.broadcast %cst_50 : f32 to vector<9x1xf32>
    %80 = arith.addf %76, %79 : vector<9x1xf32>
    %81 = math.rsqrt %80 : vector<9x1xf32>
    %82 = vector.broadcast %81 : vector<9x1xf32> to vector<9x32xf32>
    %83 = arith.mulf %78, %82 : vector<9x32xf32>
    %84 = vector.broadcast %8 : vector<1x32xf32> to vector<9x32xf32>
    %85 = arith.mulf %83, %84 : vector<9x32xf32>
    %86 = vector.broadcast %9 : vector<1x32xf32> to vector<9x32xf32>
    %87 = arith.addf %85, %86 : vector<9x32xf32>
    %88 = arith.truncf %87 : vector<9x32xf32> to vector<9x32xbf16>
    %cst_51 = arith.constant dense<0.000000e+00> : vector<9x128xf32>
    %89 = tpu.matmul %88, %4, %cst_51 {dimension_numbers = #tpu.dot_dimension_numbers<[1], [0], [0], [1], [0, 0, 1, 1], [], []>} : vector<9x32xbf16>, vector<32x128xbf16>, vector<9x128xf32> -> vector<9x128xf32>
    %90 = vector.broadcast %11 : vector<1x128xf32> to vector<9x128xf32>
    %91 = arith.addf %89, %90 : vector<9x128xf32>
    %cst_52 = arith.constant 5.000000e-01 : f32
    %92 = vector.broadcast %cst_52 : f32 to vector<9x128xf32>
    %93 = arith.mulf %92, %91 : vector<9x128xf32>
    %cst_53 = arith.constant 0.707106769 : f32
    %94 = vector.broadcast %cst_53 : f32 to vector<9x128xf32>
    %95 = arith.mulf %91, %94 : vector<9x128xf32>
    %cst_54 = arith.constant 0.000000e+00 : f32
    %96 = vector.broadcast %cst_54 : f32 to vector<9x128xf32>
    %97 = arith.cmpf olt, %95, %96 : vector<9x128xf32>
    %cst_55 = arith.constant -1.000000e+00 : f32
    %cst_56 = arith.constant 1.000000e+00 : f32
    %98 = vector.broadcast %cst_55 : f32 to vector<9x128xf32>
    %99 = vector.broadcast %cst_56 : f32 to vector<9x128xf32>
    %100 = arith.select %97, %98, %99 : vector<9x128xi1>, vector<9x128xf32>
    %101 = math.absf %95 : vector<9x128xf32>
    %cst_57 = arith.constant 0.327591091 : f32
    %102 = vector.broadcast %cst_57 : f32 to vector<9x128xf32>
    %103 = arith.mulf %102, %101 : vector<9x128xf32>
    %cst_58 = arith.constant 1.000000e+00 : f32
    %104 = vector.broadcast %cst_58 : f32 to vector<9x128xf32>
    %105 = arith.addf %104, %103 : vector<9x128xf32>
    %cst_59 = arith.constant 1.000000e+00 : f32
    %106 = vector.broadcast %cst_59 : f32 to vector<9x128xf32>
    %107 = arith.divf %106, %105 : vector<9x128xf32>
    %cst_60 = arith.constant 1.06140542 : f32
    %108 = vector.broadcast %cst_60 : f32 to vector<9x128xf32>
    %109 = arith.mulf %108, %107 : vector<9x128xf32>
    %cst_61 = arith.constant -1.45315206 : f32
    %110 = vector.broadcast %cst_61 : f32 to vector<9x128xf32>
    %111 = arith.addf %109, %110 : vector<9x128xf32>
    %112 = arith.mulf %111, %107 : vector<9x128xf32>
    %cst_62 = arith.constant 1.42141378 : f32
    %113 = vector.broadcast %cst_62 : f32 to vector<9x128xf32>
    %114 = arith.addf %112, %113 : vector<9x128xf32>
    %115 = arith.mulf %114, %107 : vector<9x128xf32>
    %cst_63 = arith.constant -0.284496725 : f32
    %116 = vector.broadcast %cst_63 : f32 to vector<9x128xf32>
    %117 = arith.addf %115, %116 : vector<9x128xf32>
    %118 = arith.mulf %117, %107 : vector<9x128xf32>
    %cst_64 = arith.constant 0.254829586 : f32
    %119 = vector.broadcast %cst_64 : f32 to vector<9x128xf32>
    %120 = arith.addf %118, %119 : vector<9x128xf32>
    %121 = arith.mulf %120, %107 : vector<9x128xf32>
    %cst_65 = arith.constant 0.000000e+00 : f32
    %122 = vector.broadcast %cst_65 : f32 to vector<9x128xf32>
    %123 = arith.subf %122, %101 : vector<9x128xf32>
    %124 = arith.mulf %123, %101 : vector<9x128xf32>
    %125 = math.exp %124 : vector<9x128xf32>
    %126 = arith.mulf %121, %125 : vector<9x128xf32>
    %cst_66 = arith.constant 1.000000e+00 : f32
    %127 = vector.broadcast %cst_66 : f32 to vector<9x128xf32>
    %128 = arith.subf %127, %126 : vector<9x128xf32>
    %129 = arith.mulf %100, %128 : vector<9x128xf32>
    %cst_67 = arith.constant 1.000000e+00 : f32
    %130 = vector.broadcast %cst_67 : f32 to vector<9x128xf32>
    %131 = arith.addf %130, %129 : vector<9x128xf32>
    %132 = arith.mulf %93, %131 : vector<9x128xf32>
    %133 = arith.truncf %132 : vector<9x128xf32> to vector<9x128xbf16>
    %cst_68 = arith.constant dense<0.000000e+00> : vector<9x32xf32>
    %134 = tpu.matmul %133, %5, %cst_68 {dimension_numbers = #tpu.dot_dimension_numbers<[1], [0], [0], [1], [0, 0, 1, 1], [], []>} : vector<9x128xbf16>, vector<128x32xbf16>, vector<9x32xf32> -> vector<9x32xf32>
    %135 = vector.broadcast %12 : vector<1x32xf32> to vector<9x32xf32>
    %136 = arith.addf %134, %135 : vector<9x32xf32>
    %137 = arith.addf %65, %136 : vector<9x32xf32>
    %c0_69 = arith.constant 0 : index
    %c0_70 = arith.constant 0 : index
    %c0_71 = arith.constant 0 : index
    %138 = vector.load %arg14[%c0_69, %c0_70, %c0_71] : memref<2x9x32xf32, #tpu.memory_space<vmem>>, vector<1x9x32xf32>
    %139 = vector.shape_cast %138 : vector<1x9x32xf32> to vector<9x32xf32>
    %140 = vector.shape_cast %137 : vector<9x32xf32> to vector<1x9x32xf32>
    tpu.vector_store %arg14[%c0_69, %c0_70, %c0_71], %140 {strides = array<i32>} : memref<2x9x32xf32, #tpu.memory_space<vmem>>, vector<1x9x32xf32>,
    %c1 = arith.constant 1 : index
    %c0_72 = arith.constant 0 : index
    %c0_73 = arith.constant 0 : index
    %141 = vector.load %arg0[%c1, %c0_72, %c0_73] : memref<2x9x32xf32, #tpu.memory_space<vmem>>, vector<1x9x32xf32>
    %142 = vector.shape_cast %141 : vector<1x9x32xf32> to vector<9x32xf32>
    %cst_74 = arith.constant dense<0.000000e+00> : vector<9xf32>
    %143 = vector.multi_reduction <add>, %142, %cst_74 [1] : vector<9x32xf32> to vector<9xf32>
    %144 = vector.shape_cast %143 : vector<9xf32> to vector<9x1xf32>
    %cst_75 = arith.constant 3.200000e+01 : f32
    %145 = vector.broadcast %cst_75 : f32 to vector<9x1xf32>
    %146 = arith.divf %144, %145 : vector<9x1xf32>
    %147 = vector.broadcast %146 : vector<9x1xf32> to vector<9x32xf32>
    %148 = arith.subf %142, %147 : vector<9x32xf32>
    %149 = arith.mulf %148, %148 : vector<9x32xf32>
    %cst_76 = arith.constant dense<0.000000e+00> : vector<9xf32>
    %150 = vector.multi_reduction <add>, %149, %cst_76 [1] : vector<9x32xf32> to vector<9xf32>
    %151 = vector.shape_cast %150 : vector<9xf32> to vector<9x1xf32>
    %cst_77 = arith.constant 3.200000e+01 : f32
    %152 = vector.broadcast %cst_77 : f32 to vector<9x1xf32>
    %153 = arith.divf %151, %152 : vector<9x1xf32>
    %154 = vector.broadcast %146 : vector<9x1xf32> to vector<9x32xf32>
    %155 = arith.subf %142, %154 : vector<9x32xf32>
    %cst_78 = arith.constant 9.99999997E-7 : f32
    %156 = vector.broadcast %cst_78 : f32 to vector<9x1xf32>
    %157 = arith.addf %153, %156 : vector<9x1xf32>
    %158 = math.rsqrt %157 : vector<9x1xf32>
    %159 = vector.broadcast %158 : vector<9x1xf32> to vector<9x32xf32>
    %160 = arith.mulf %155, %159 : vector<9x32xf32>
    %161 = vector.broadcast %6 : vector<1x32xf32> to vector<9x32xf32>
    %162 = arith.mulf %160, %161 : vector<9x32xf32>
    %163 = vector.broadcast %7 : vector<1x32xf32> to vector<9x32xf32>
    %164 = arith.addf %162, %163 : vector<9x32xf32>
    %165 = arith.truncf %164 : vector<9x32xf32> to vector<9x32xbf16>
    %166 = vector.shape_cast %165 : vector<9x32xbf16> to vector<1x9x32xbf16>
    %167 = vector.broadcast %166 : vector<1x9x32xbf16> to vector<4x9x32xbf16>
    %cst_79 = arith.constant dense<0.000000e+00> : vector<4x9x8xf32>
    %168 = tpu.matmul %167, %0, %cst_79 {dimension_numbers = #tpu.dot_dimension_numbers<[2], [1], [1], [2], [0, 0, 0, 1, 1, 2], [0], [0]>} : vector<4x9x32xbf16>, vector<4x32x8xbf16>, vector<4x9x8xf32> -> vector<4x9x8xf32>
    %cst_80 = arith.constant dense<0.000000e+00> : vector<4x9x8xf32>
    %169 = tpu.matmul %167, %1, %cst_80 {dimension_numbers = #tpu.dot_dimension_numbers<[2], [1], [1], [2], [0, 0, 0, 1, 1, 2], [0], [0]>} : vector<4x9x32xbf16>, vector<4x32x8xbf16>, vector<4x9x8xf32> -> vector<4x9x8xf32>
    %cst_81 = arith.constant dense<0.000000e+00> : vector<4x9x8xf32>
    %170 = tpu.matmul %167, %2, %cst_81 {dimension_numbers = #tpu.dot_dimension_numbers<[2], [1], [1], [2], [0, 0, 0, 1, 1, 2], [0], [0]>} : vector<4x9x32xbf16>, vector<4x32x8xbf16>, vector<4x9x8xf32> -> vector<4x9x8xf32>
    %171 = arith.truncf %168 : vector<4x9x8xf32> to vector<4x9x8xbf16>
    %172 = arith.truncf %169 : vector<4x9x8xf32> to vector<4x9x8xbf16>
    %cst_82 = arith.constant dense<0.000000e+00> : vector<4x9x9xf32>
    %173 = tpu.matmul %171, %172, %cst_82 {dimension_numbers = #tpu.dot_dimension_numbers<[2], [2], [1], [1], [0, 0, 0, 1, 1, 1], [0], [0]>} : vector<4x9x8xbf16>, vector<4x9x8xbf16>, vector<4x9x9xf32> -> vector<4x9x9xf32>
    %cst_83 = arith.constant 0.353553385 : f32
    %174 = vector.broadcast %cst_83 : f32 to vector<4x9x9xf32>
    %175 = arith.mulf %173, %174 : vector<4x9x9xf32>
    %cst_84 = arith.constant dense<0xFF800000> : vector<4x9xf32>
    %176 = vector.multi_reduction <maximumf>, %175, %cst_84 [2] : vector<4x9x9xf32> to vector<4x9xf32>
    %177 = vector.shape_cast %176 : vector<4x9xf32> to vector<4x9x1xf32>
    %178 = vector.broadcast %177 : vector<4x9x1xf32> to vector<4x9x9xf32>
    %179 = arith.subf %175, %178 : vector<4x9x9xf32>
    %180 = math.exp %179 : vector<4x9x9xf32>
    %cst_85 = arith.constant dense<0.000000e+00> : vector<4x9xf32>
    %181 = vector.multi_reduction <add>, %180, %cst_85 [2] : vector<4x9x9xf32> to vector<4x9xf32>
    %182 = vector.shape_cast %181 : vector<4x9xf32> to vector<4x9x1xf32>
    %183 = vector.broadcast %182 : vector<4x9x1xf32> to vector<4x9x9xf32>
    %184 = arith.divf %180, %183 : vector<4x9x9xf32>
    %185 = arith.truncf %184 : vector<4x9x9xf32> to vector<4x9x9xbf16>
    %186 = arith.truncf %170 : vector<4x9x8xf32> to vector<4x9x8xbf16>
    %cst_86 = arith.constant dense<0.000000e+00> : vector<4x9x8xf32>
    %187 = tpu.matmul %185, %186, %cst_86 {dimension_numbers = #tpu.dot_dimension_numbers<[2], [1], [1], [2], [0, 0, 0, 1, 1, 2], [0], [0]>} : vector<4x9x9xbf16>, vector<4x9x8xbf16>, vector<4x9x8xf32> -> vector<4x9x8xf32>
    %188 = arith.truncf %187 : vector<4x9x8xf32> to vector<4x9x8xbf16>
    %cst_87 = arith.constant dense<0.000000e+00> : vector<4x9x32xf32>
    %189 = tpu.matmul %188, %3, %cst_87 {dimension_numbers = #tpu.dot_dimension_numbers<[2], [1], [1], [2], [0, 0, 0, 1, 1, 2], [0], [0]>} : vector<4x9x8xbf16>, vector<4x8x32xbf16>, vector<4x9x32xf32> -> vector<4x9x32xf32>
    %cst_88 = arith.constant dense<0.000000e+00> : vector<9x32xf32>
    %190 = vector.multi_reduction <add>, %189, %cst_88 [0] : vector<4x9x32xf32> to vector<9x32xf32>
    %191 = arith.addf %142, %190 : vector<9x32xf32>
    %192 = vector.broadcast %10 : vector<1x32xf32> to vector<9x32xf32>
    %193 = arith.addf %191, %192 : vector<9x32xf32>
    %cst_89 = arith.constant dense<0.000000e+00> : vector<9xf32>
    %194 = vector.multi_reduction <add>, %193, %cst_89 [1] : vector<9x32xf32> to vector<9xf32>
    %195 = vector.shape_cast %194 : vector<9xf32> to vector<9x1xf32>
    %cst_90 = arith.constant 3.200000e+01 : f32
    %196 = vector.broadcast %cst_90 : f32 to vector<9x1xf32>
    %197 = arith.divf %195, %196 : vector<9x1xf32>
    %198 = vector.broadcast %197 : vector<9x1xf32> to vector<9x32xf32>
    %199 = arith.subf %193, %198 : vector<9x32xf32>
    %200 = arith.mulf %199, %199 : vector<9x32xf32>
    %cst_91 = arith.constant dense<0.000000e+00> : vector<9xf32>
    %201 = vector.multi_reduction <add>, %200, %cst_91 [1] : vector<9x32xf32> to vector<9xf32>
    %202 = vector.shape_cast %201 : vector<9xf32> to vector<9x1xf32>
    %cst_92 = arith.constant 3.200000e+01 : f32
    %203 = vector.broadcast %cst_92 : f32 to vector<9x1xf32>
    %204 = arith.divf %202, %203 : vector<9x1xf32>
    %205 = vector.broadcast %197 : vector<9x1xf32> to vector<9x32xf32>
    %206 = arith.subf %193, %205 : vector<9x32xf32>
    %cst_93 = arith.constant 9.99999997E-7 : f32
    %207 = vector.broadcast %cst_93 : f32 to vector<9x1xf32>
    %208 = arith.addf %204, %207 : vector<9x1xf32>
    %209 = math.rsqrt %208 : vector<9x1xf32>
    %210 = vector.broadcast %209 : vector<9x1xf32> to vector<9x32xf32>
    %211 = arith.mulf %206, %210 : vector<9x32xf32>
    %212 = vector.broadcast %8 : vector<1x32xf32> to vector<9x32xf32>
    %213 = arith.mulf %211, %212 : vector<9x32xf32>
    %214 = vector.broadcast %9 : vector<1x32xf32> to vector<9x32xf32>
    %215 = arith.addf %213, %214 : vector<9x32xf32>
    %216 = arith.truncf %215 : vector<9x32xf32> to vector<9x32xbf16>
    %cst_94 = arith.constant dense<0.000000e+00> : vector<9x128xf32>
    %217 = tpu.matmul %216, %4, %cst_94 {dimension_numbers = #tpu.dot_dimension_numbers<[1], [0], [0], [1], [0, 0, 1, 1], [], []>} : vector<9x32xbf16>, vector<32x128xbf16>, vector<9x128xf32> -> vector<9x128xf32>
    %218 = vector.broadcast %11 : vector<1x128xf32> to vector<9x128xf32>
    %219 = arith.addf %217, %218 : vector<9x128xf32>
    %cst_95 = arith.constant 5.000000e-01 : f32
    %220 = vector.broadcast %cst_95 : f32 to vector<9x128xf32>
    %221 = arith.mulf %220, %219 : vector<9x128xf32>
    %cst_96 = arith.constant 0.707106769 : f32
    %222 = vector.broadcast %cst_96 : f32 to vector<9x128xf32>
    %223 = arith.mulf %219, %222 : vector<9x128xf32>
    %cst_97 = arith.constant 0.000000e+00 : f32
    %224 = vector.broadcast %cst_97 : f32 to vector<9x128xf32>
    %225 = arith.cmpf olt, %223, %224 : vector<9x128xf32>
    %cst_98 = arith.constant -1.000000e+00 : f32
    %cst_99 = arith.constant 1.000000e+00 : f32
    %226 = vector.broadcast %cst_98 : f32 to vector<9x128xf32>
    %227 = vector.broadcast %cst_99 : f32 to vector<9x128xf32>
    %228 = arith.select %225, %226, %227 : vector<9x128xi1>, vector<9x128xf32>
    %229 = math.absf %223 : vector<9x128xf32>
    %cst_100 = arith.constant 0.327591091 : f32
    %230 = vector.broadcast %cst_100 : f32 to vector<9x128xf32>
    %231 = arith.mulf %230, %229 : vector<9x128xf32>
    %cst_101 = arith.constant 1.000000e+00 : f32
    %232 = vector.broadcast %cst_101 : f32 to vector<9x128xf32>
    %233 = arith.addf %232, %231 : vector<9x128xf32>
    %cst_102 = arith.constant 1.000000e+00 : f32
    %234 = vector.broadcast %cst_102 : f32 to vector<9x128xf32>
    %235 = arith.divf %234, %233 : vector<9x128xf32>
    %cst_103 = arith.constant 1.06140542 : f32
    %236 = vector.broadcast %cst_103 : f32 to vector<9x128xf32>
    %237 = arith.mulf %236, %235 : vector<9x128xf32>
    %cst_104 = arith.constant -1.45315206 : f32
    %238 = vector.broadcast %cst_104 : f32 to vector<9x128xf32>
    %239 = arith.addf %237, %238 : vector<9x128xf32>
    %240 = arith.mulf %239, %235 : vector<9x128xf32>
    %cst_105 = arith.constant 1.42141378 : f32
    %241 = vector.broadcast %cst_105 : f32 to vector<9x128xf32>
    %242 = arith.addf %240, %241 : vector<9x128xf32>
    %243 = arith.mulf %242, %235 : vector<9x128xf32>
    %cst_106 = arith.constant -0.284496725 : f32
    %244 = vector.broadcast %cst_106 : f32 to vector<9x128xf32>
    %245 = arith.addf %243, %244 : vector<9x128xf32>
    %246 = arith.mulf %245, %235 : vector<9x128xf32>
    %cst_107 = arith.constant 0.254829586 : f32
    %247 = vector.broadcast %cst_107 : f32 to vector<9x128xf32>
    %248 = arith.addf %246, %247 : vector<9x128xf32>
    %249 = arith.mulf %248, %235 : vector<9x128xf32>
    %cst_108 = arith.constant 0.000000e+00 : f32
    %250 = vector.broadcast %cst_108 : f32 to vector<9x128xf32>
    %251 = arith.subf %250, %229 : vector<9x128xf32>
    %252 = arith.mulf %251, %229 : vector<9x128xf32>
    %253 = math.exp %252 : vector<9x128xf32>
    %254 = arith.mulf %249, %253 : vector<9x128xf32>
    %cst_109 = arith.constant 1.000000e+00 : f32
    %255 = vector.broadcast %cst_109 : f32 to vector<9x128xf32>
    %256 = arith.subf %255, %254 : vector<9x128xf32>
    %257 = arith.mulf %228, %256 : vector<9x128xf32>
    %cst_110 = arith.constant 1.000000e+00 : f32
    %258 = vector.broadcast %cst_110 : f32 to vector<9x128xf32>
    %259 = arith.addf %258, %257 : vector<9x128xf32>
    %260 = arith.mulf %221, %259 : vector<9x128xf32>
    %261 = arith.truncf %260 : vector<9x128xf32> to vector<9x128xbf16>
    %cst_111 = arith.constant dense<0.000000e+00> : vector<9x32xf32>
    %262 = tpu.matmul %261, %5, %cst_111 {dimension_numbers = #tpu.dot_dimension_numbers<[1], [0], [0], [1], [0, 0, 1, 1], [], []>} : vector<9x128xbf16>, vector<128x32xbf16>, vector<9x32xf32> -> vector<9x32xf32>
    %263 = vector.broadcast %12 : vector<1x32xf32> to vector<9x32xf32>
    %264 = arith.addf %262, %263 : vector<9x32xf32>
    %265 = arith.addf %193, %264 : vector<9x32xf32>
    %c1_112 = arith.constant 1 : index
    %c0_113 = arith.constant 0 : index
    %c0_114 = arith.constant 0 : index
    %266 = vector.load %arg14[%c1_112, %c0_113, %c0_114] : memref<2x9x32xf32, #tpu.memory_space<vmem>>, vector<1x9x32xf32>
    %267 = vector.shape_cast %266 : vector<1x9x32xf32> to vector<9x32xf32>
    %268 = vector.shape_cast %265 : vector<9x32xf32> to vector<1x9x32xf32>
    tpu.vector_store %arg14[%c1_112, %c0_113, %c0_114], %268 {strides = array<i32>} : memref<2x9x32xf32, #tpu.memory_space<vmem>>, vector<1x9x32xf32>,
    return
  }
}

</mosaic_0001>

<bundles_post_ra>
// kernel: convit1d_forward.5
= control target key start
LH: loop header
LB: loop body
LE: loop exit
PB: predicated region body
PF: predicated region fallthrough
CT: control target
= control target key end

     0   :  { %vm41_vm0 = vcmask 261120   ;;  %s150_s1 = inlined_call_operand.vmem [shape: bf16[32,32], index: 1, kind: input, shape index: {}]   ;;  %s151_s0 = inlined_call_operand.vmem [shape: f32[2,8,32], index: 0, kind: input, shape index: {}]   ;;  %s152_s2 = inlined_call_operand.vmem [shape: f32[1,32], index: 2, kind: input, shape index: {}]   ;;  %s153_s3 = inlined_call_operand.vmem [shape: f32[8,32], index: 3, kind: input, shape index: {}]   ;;  %s154_s4 = inlined_call_operand.vmem [shape: f32[2,8,32], index: 4, kind: output, shape index: {}]  }
   0x1   :  { %v99_v0 = vld [vmem:[%s150_s1 + $0x8] sm:$0xff]  ;;  %v98_v1 = vld [vmem:[%s150_s1] sm:$0xff] }
   0x2   :  { %51 = vmatpush.bf16.msra.mxu0 %v99_v0  ;;  %72 = vmatpush.bf16.msra.mxu1 %v99_v0  ;;  %v24_v2 = vld [vmem:[%s151_s0] sm:$0xff]  ;;  %v95_v3 = vld [vmem:[%s151_s0 + $0x8] sm:$0xff] }
   0x3   :  { %v25_v4 = vpack.c.bf16 %v24_v2, %v24_v2  ;;  %v62_v5 = vpack.c.bf16 %v95_v3, %v95_v3  ;;  %v100_v6 = vld [vmem:[%s152_s2] ss:$0 sm:$0xff] }
   0x4   :  { %v23_v7 = vld [vmem:[%s153_s3] sm:$0xff] }
   0x6   :  { %52 = vmatpush.bf16.msra.mxu0 %v98_v1  ;;  %73 = vmatpush.bf16.msra.mxu1 %v98_v1 }
   0x9   :  { %94 = vmatmul.msk.bf16.vlgmr.msra.gmra.mxu0 %vm41_vm0, %v25_v4  ;;  %96 = vmatmul.msk.bf16.vlgmr.msra.gmra.mxu1 %vm41_vm0, %v62_v5 }
  0x86   :  { %v54_v8 = vpop.f32.mrf.mxu0  ;;  %v75_v9 = vpop.f32.mrf.mxu1 }
  0x87   :  { %v55_v10 = vadd.f32 %v100_v6, %v54_v8  ;;  %v76_v11 = vadd.f32 %v100_v6, %v75_v9 }
  0x89   :  { %v58_v12 = vadd.f32 %v55_v10, %v23_v7  ;;  %v79_v13 = vadd.f32 %v76_v11, %v23_v7 }
  0x8b   :  { %59 = vst.msk [vmem:[%s154_s4] sm:$0xff] %vm41_vm0, %v58_v12 }
  0x8c   :  { %97 = vst.msk [vmem:[%s154_s4 + $0x8] sm:$0xff] %vm41_vm0, %v79_v13 }
  0x8e   :  { %v56_v14 = vpop.f32.mrf.mxu0  ;;  %v77_v15 = vpop.f32.mrf.mxu1 }

// kernel: convit1d_forward.6
= control target key start
LH: loop header
LB: loop body
LE: loop exit
PB: predicated region body
PF: predicated region fallthrough
CT: control target
= control target key end

     0   :  { %vm142_vm0 = vcmask 261120   ;;  %v2142_v2 = vmov 32.0   ;;  %vm492_vm5 = vcmask 64512   ;;  %vm784_vm6 = vcmask 1043456   ;;  %s2847_s0 = inlined_call_operand.vmem [shape: f32[2,8,32], index: 0, kind: input, shape index: {}]   ;;  %s2848_s1 = inlined_call_operand.vmem [shape: f32[1,32], index: 1, kind: input, shape index: {}]   ;;  %s2849_s2 = inlined_call_operand.vmem [shape: f32[1,32], index: 2, kind: input, shape index: {}]   ;;  %s2850_s3 = inlined_call_operand.vmem [shape: bf16[4,32,8], index: 3, kind: input, shape index: {}]   ;;  %s2851_s4 = inlined_call_operand.vmem [shape: bf16[4,32,8], index: 4, kind: input, shape index: {}]   ;;  %s2852_s5 = inlined_call_operand.vmem [shape: bf16[4,32,8], index: 5, kind: input, shape index: {}]   ;;  %s2853_s7 = inlined_call_operand.vmem [shape: f32[4,1,1], index: 7, kind: input, shape index: {}]   ;;  %s2854_s6 = inlined_call_operand.vmem [shape: f32[4,8,8], index: 6, kind: input, shape index: {}]   ;;  %s2855_s8 = inlined_call_operand.vmem [shape: bf16[4,8,32], index: 8, kind: input, shape index: {}]   ;;  %s2856_s9 = inlined_call_operand.vmem [shape: f32[1,32], index: 9, kind: input, shape index: {}]   ;;  %s2857_s10 = inlined_call_operand.vmem [shape: f32[1,32], index: 10, kind: input, shape index: {}]   ;;  %s2858_s11 = inlined_call_operand.vmem [shape: f32[1,32], index: 11, kind: input, shape index: {}]   ;;  %s2859_s13 = inlined_call_operand.vmem [shape: f32[1,128], index: 13, kind: input, shape index: {}]   ;;  %s2860_s12 = inlined_call_operand.vmem [shape: bf16[32,128], index: 12, kind: input, shape index: {}]   ;;  %s2861_s14 = inlined_call_operand.vmem [shape: bf16[128,32], index: 14, kind: input, shape index: {}]   ;;  %s2862_s15 = inlined_call_operand.vmem [shape: f32[1,32], index: 15, kind: input, shape index: {}]   ;;  %s2863_s16 = inlined_call_operand.vmem [shape: f32[2,8,32], index: 16, kind: output, shape index: {}]  }
   0x1   :  { %2865 = sst [smem:[#allocation2_spill]] %s2847_s0  ;;  %2071 = vrcp.f32 %v2142_v2  ;;  %v2245_v14 = vld [vmem:[%s2850_s3 + $0x8] sm:$0xff]  ;;  %v2255_v16 = vld [vmem:[%s2850_s3 + $0x38] sm:$0xff]  ;;  %v2269_v18 = vld [vmem:[%s2850_s3] sm:$0xff] }
   0x2   :  { %s2866_s23 = sld [smem:[#allocation2_spill]]  ;;  %v2250_v15 = vld [vmem:[%s2850_s3 + $0x28] sm:$0xff]  ;;  %202 = vmatpush.bf16.msra.mxu1 %v2245_v14  ;;  %277 = vmatpush.bf16.msra.mxu3 %v2255_v16  ;;  %v2274_v19 = vld [vmem:[%s2850_s3 + $0x20] sm:$0xff]  ;;  %v2279_v20 = vld [vmem:[%s2850_s3 + $0x30] sm:$0xff] }
   0x3   :  { %v2260_v17 = vld [vmem:[%s2851_s4 + $0x8] sm:$0xff]  ;;  %252 = vmatpush.bf16.msra.mxu2 %v2250_v15  ;;  %v2284_v21 = vld [vmem:[%s2851_s4] sm:$0xff]  ;;  %v2293_v23 = vld [vmem:[%s2850_s3 + $0x18] sm:$0xff] }
   0x4   :  { %302 = vmatpush.bf16.msra.mxu0 %v2260_v17  ;;  %v2033_v24 = vld [vmem:[%s2851_s4 + $0x28] sm:$0xff]  ;;  %v2301_v25 = vld [vmem:[%s2851_s4 + $0x38] sm:$0xff]  ;;  %v2313_v28 = vld [vmem:[%s2850_s3 + $0x10] sm:$0xff] }
   0x5   :  { %v2307_v27 = vld [vmem:[%s2852_s5 + $0x8] sm:$0xff]  ;;  %v2032_v29 = vld [vmem:[%s2851_s4 + $0x20] sm:$0xff]  ;;  %v2323_v31 = vld [vmem:[%s2851_s4 + $0x30] sm:$0xff] }
   0x6   :  { %203 = vmatpush.bf16.msra.mxu1 %v2269_v18  ;;  %278 = vmatpush.bf16.msra.mxu3 %v2279_v20  ;;  %v2328_v32 = vld [vmem:[%s2852_s5] sm:$0xff]  ;;  %v2348_v46 = vld [vmem:[%s2851_s4 + $0x18] sm:$0xff]  ;;  %v2041_v47 = vld [vmem:[%s2852_s5 + $0x28] sm:$0xff] }
   0x7   :  { %v2072_v3 = vpop.eup %2071  ;;  %253 = vmatpush.bf16.msra.mxu2 %v2274_v19  ;;  %v2336_v39 = vld [vmem:[%s2848_s1] ss:$0 sm:$0xff]  ;;  %v2356_v48 = vld [vmem:[%s2852_s5 + $0x38] sm:$0xff]  ;;  %v2366_v49 = vld [vmem:[%s2851_s4 + $0x10] sm:$0xff] }
   0x8   :  { %v2233_v0 = vld [vmem:[%s2866_s23] sm:$0xff]  ;;  %v147_v4 = vmul.f32 32.0, %v2072_v3  ;;  %vm151_vm1 = vweird.f32 %v2072_v3  ;;  %303 = vmatpush.bf16.msra.mxu0 %v2284_v21  ;;  %v2375_v51 = vld [vmem:[%s2852_s5 + $0x30] sm:$0xff]  ;;  %v2382_v52 = vld [vmem:[%s2852_s5 + $0x18] sm:$0xff] }
   0x9   :  { %v143_v1 = vsel %vm142_vm0, %v2233_v0, 0.0  ;;  %v2341_v41 = vld [vmem:[%s2849_s2] ss:$0 sm:$0xff]  ;;  %v2392_v53 = vld [vmem:[%s2852_s5 + $0x10] sm:$0xff] }
   0xa   :  { %144 = vadd.xlane.f32.xlu0 %v143_v1  ;;  %v148_v5 = vsub.f32 1.0, %v147_v4  ;;  %227 = vmatpush.bf16.msrb.mxu1 %v2293_v23  ;;  %v2040_v50 = vld [vmem:[%s2852_s5 + $0x20] sm:$0xff] }
   0xb   :  { %352 = vmatpush.bf16.msrb.mxu2 %v2033_v24  ;;  %377 = vmatpush.bf16.msrb.mxu3 %v2301_v25 }
   0xc   :  { %v149_v6 = vmul.f32 %v2072_v3, %v148_v5  ;;  %402 = vmatpush.bf16.msrb.mxu0 %v2307_v27 }
   0xe   :  { %v150_v7 = vadd.f32 %v2072_v3, %v149_v6  ;;  %228 = vmatpush.bf16.msrb.mxu1 %v2313_v28 }
   0xf   :  { %353 = vmatpush.bf16.msrb.mxu2 %v2032_v29  ;;  %378 = vmatpush.bf16.msrb.mxu3 %v2323_v31 }
  0x10   :  { %v2237_v8 = vsel %vm151_vm1, %v2072_v3, %v150_v7  ;;  %403 = vmatpush.bf16.msrb.mxu0 %v2328_v32 }
  0x7d   :  { %v145_v9 = vpop.xlane.xlu0 %144 }
  0x7e   :  { %v153_v10 = vmul.f32 %v2237_v8, %v145_v9 }
  0x80   :  { %v154_v11 = vsub.f32 %v2233_v0, %v153_v10 }
  0x82   :  { %v155_v12 = vmul.f32 %v154_v11, %v154_v11 }
  0x84   :  { %v156_v13 = vsel %vm142_vm0, %v155_v12, 0.0 }
  0x85   :  { %157 = vadd.xlane.f32.xlu0 %v156_v13 }
  0xf8   :  { %v158_v22 = vpop.xlane.xlu0 %157 }
  0xf9   :  { %v159_v26 = vmul.f32 %v158_v22, %v2237_v8 }
  0xfb   :  { %v160_v30 = vadd.f32 1e-06, %v159_v26 }
  0xfd   :  { %2073 = vrsqrt.f32 %v160_v30  ;;  %vm167_vm3 = vweird.f32 %v160_v30 }
 0x103   :  { %v2074_v33 = vpop.eup %2073 }
 0x104   :  { %v162_v34 = vmul.f32 %v2074_v33, %v160_v30  ;;  %vm168_vm2 = vweird.f32 %v2074_v33 }
 0x105   :  { %vm169_vm4 = vmor %vm167_vm3, %vm168_vm2 }
 0x106   :  { %v163_v35 = vmul.f32 %v2074_v33, %v162_v34 }
 0x108   :  { %v164_v36 = vmul.f32 0.5, %v163_v35 }
 0x10a   :  { %v165_v37 = vsub.f32 1.5, %v164_v36 }
 0x10c   :  { %v166_v38 = vmul.f32 %v2074_v33, %v165_v37 }
 0x10e   :  { %v170_v40 = vsel %vm169_vm4, %v2074_v33, %v166_v38 }
 0x10f   :  { %v171_v42 = vmul.f32 %v170_v40, %v154_v11 }
 0x111   :  { %v175_v43 = vmul.f32 %v2336_v39, %v171_v42 }
 0x113   :  { %v179_v44 = vadd.f32 %v2341_v41, %v175_v43 }
 0x115   :  { %v180_v45 = vpack.c.bf16 %v179_v44, %v179_v44 }
 0x117   :  { %1840 = vmatmul.msk.bf16.vlgmr.msra.gmra.mxu1 %vm142_vm0, %v180_v45  ;;  %1858 = vmatmul.msk.bf16.vlgmr.msra.gmra.mxu2 %vm142_vm0, %v180_v45 }
 0x118   :  { %1867 = vmatmul.msk.bf16.vlgmr.msra.gmra.mxu3 %vm142_vm0, %v180_v45  ;;  %1876 = vmatmul.msk.bf16.vlgmr.msra.gmra.mxu0 %vm142_vm0, %v180_v45 }
 0x119   :  { %327 = vmatpush.bf16.msra.mxu1 %v2348_v46  ;;  %452 = vmatpush.bf16.msra.mxu2 %v2041_v47 }
 0x11a   :  { %477 = vmatpush.bf16.msra.mxu3 %v2356_v48 }
 0x11d   :  { %328 = vmatpush.bf16.msra.mxu1 %v2366_v49  ;;  %453 = vmatpush.bf16.msra.mxu2 %v2040_v50 }
 0x11e   :  { %478 = vmatpush.bf16.msra.mxu3 %v2375_v51 }
 0x127   :  { %1849 = vmatmul.msk.bf16.vlgmr.msrb.gmra.mxu1 %vm142_vm0, %v180_v45  ;;  %1894 = vmatmul.msk.bf16.vlgmr.msrb.gmra.mxu2 %vm142_vm0, %v180_v45 }
 0x128   :  { %1903 = vmatmul.msk.bf16.vlgmr.msrb.gmra.mxu3 %vm142_vm0, %v180_v45  ;;  %1912 = vmatmul.msk.bf16.vlgmr.msrb.gmra.mxu0 %vm142_vm0, %v180_v45 }
 0x129   :  { %427 = vmatpush.bf16.msrb.mxu1 %v2382_v52 }
 0x12d   :  { %428 = vmatpush.bf16.msrb.mxu1 %v2392_v53 }
 0x137   :  { %1885 = vmatmul.msk.bf16.vlgmr.msra.gmra.mxu1 %vm142_vm0, %v180_v45  ;;  %1930 = vmatmul.msk.bf16.vlgmr.msra.gmra.mxu2 %vm142_vm0, %v180_v45 }
 0x138   :  { %1939 = vmatmul.msk.bf16.vlgmr.msra.gmra.mxu3 %vm142_vm0, %v180_v45 }
 0x147   :  { %1921 = vmatmul.msk.bf16.vlgmr.msrb.gmra.mxu1 %vm142_vm0, %v180_v45 }
 0x194   :  { %v205_v54 = vpop.f32.mrf.mxu1 }
 0x195   :  { %v305_v55 = vpop.f32.mrf.mxu0  ;;  %v484_v62 = vpack.c.bf16 %v205_v54, %v205_v54 }
 0x196   :  { %v488_v56 = vpack.c.bf16 %v305_v55, %v305_v55 }
 0x198   :  { %v497_v57 = vsel %vm492_vm5, %v488_v56, 0 }
 0x199   :  { %506 = vmatpush.bf16.xpose.msra.mxu0 %v497_v57 }
 0x19a   :  { %v255_v58 = vpop.f32.mrf.mxu2 }
 0x19b   :  { %v280_v59 = vpop.f32.mrf.mxu3  ;;  %v486_v26 = vpack.c.bf16 %v255_v58, %v255_v58 }
 0x19c   :  { %v207_v60 = vpop.f32.mrf.mxu1  ;;  %v487_v30 = vpack.c.bf16 %v280_v59, %v280_v59 }
 0x19d   :  { %v307_v61 = vpop.f32.mrf.mxu0 }
 0x1a0   :  { %1940 = vmatmul.msk.bf16.vlgmr.msra.gmra.mxu0 %vm492_vm5, %v484_v62 }
 0x1a2   :  { %v257_v63 = vpop.f32.mrf.mxu2 }
 0x1a3   :  { %v282_v1 = vpop.f32.mrf.mxu3 }
 0x1a4   :  { %v230_v2 = vpop.f32.mrf.mxu1 }
 0x1a5   :  { %v405_v3 = vpop.f32.mrf.mxu0  ;;  %v485_v43 = vpack.c.bf16 %v230_v2, %v230_v2 }
 0x1a6   :  { %v777_v4 = vpack.c.bf16 %v405_v3, %v405_v3 }
 0x1a8   :  { %v786_v5 = vsel %vm784_vm6, %v777_v4, 0 }
 0x1a9   :  { %795 = vmatpush.bf16.msrb.mxu0 %v786_v5 }
 0x1aa   :  { %v355_v6 = vpop.f32.mrf.mxu2 }
 0x1ab   :  { %v490_v7 = vpack.c.bf16 %v355_v6, %v355_v6  ;;  %v380_v9 = vpop.f32.mrf.mxu3 }
 0x1ac   :  { %v491_v10 = vpack.c.bf16 %v380_v9, %v380_v9  ;;  %v232_v11 = vpop.f32.mrf.mxu1 }
 0x1ad   :  { %v535_v12 = vsel %vm492_vm5, %v490_v7, 0  ;;  %v407_v13 = vpop.f32.mrf.mxu0 }
 0x1ae   :  { %v554_v22 = vsel %vm492_vm5, %v491_v10, 0  ;;  %544 = vmatpush.bf16.xpose.msrb.mxu2 %v535_v12 }
 0x1af   :  { %563 = vmatpush.bf16.xpose.msrb.mxu3 %v554_v22 }
 0x1b2   :  { %v357_v24 = vpop.f32.mrf.mxu2 }
 0x1b3   :  { %v382_v29 = vpop.f32.mrf.mxu3 }
 0x1b4   :  { %v330_v33 = vpop.f32.mrf.mxu1  ;;  %v2143_v29 = vmov 0  }
 0x1b5   :  { %v489_v34 = vpack.c.bf16 %v330_v33, %v330_v33  ;;  %1942 = vmatmul.msk.bf16.vlgmr.msrb.gmra.mxu2 %vm492_vm5, %v486_v26  ;;  %2059 = vset.pattern.permute.xlu0 %v2143_v29 }
 0x1b6   :  { %1943 = vmatmul.msk.bf16.vlgmr.msrb.gmra.mxu3 %vm492_vm5, %v487_v30  ;;  %2057 = vset.pattern.permute.xlu1 %v2143_v29 }
 0x1b7   :  { %v516_v35 = vsel %vm492_vm5, %v489_v34, 0  ;;  %2058 = vset.pattern.permute.xlu2 %v2143_v29 }
 0x1b8   :  { %525 = vmatpush.bf16.xpose.msra.mxu1 %v516_v35 }
 0x1ba   :  { %v455_v36 = vpop.f32.mrf.mxu2 }
 0x1bb   :  { %v779_v37 = vpack.c.bf16 %v455_v36, %v455_v36  ;;  %v480_v38 = vpop.f32.mrf.mxu3 }
 0x1bc   :  { %v780_v40 = vpack.c.bf16 %v480_v38, %v480_v38  ;;  %v332_v42 = vpop.f32.mrf.mxu1 }
 0x1bd   :  { %v824_v44 = vsel %vm784_vm6, %v779_v37, 0 }
 0x1be   :  { %v843_v45 = vsel %vm784_vm6, %v780_v40, 0  ;;  %833 = vmatpush.bf16.msra.mxu2 %v824_v44 }
 0x1bf   :  { %852 = vmatpush.bf16.msra.mxu3 %v843_v45  ;;  %1941 = vmatmul.msk.bf16.vlgmr.msra.gmra.mxu1 %vm492_vm5, %v485_v43  ;;  %v2064_v45 = vld [vmem:[%s2853_s7 + $0x3] ss:$0 sm:$0xff] }
 0x1c2   :  { %v457_v47 = vpop.f32.mrf.mxu2 }
 0x1c3   :  { %v482_v50 = vpop.f32.mrf.mxu3 }
 0x1c4   :  { %v430_v54 = vpop.f32.mrf.mxu1 }
 0x1c5   :  { %v778_v55 = vpack.c.bf16 %v430_v54, %v430_v54 }
 0x1c7   :  { %v805_v56 = vsel %vm784_vm6, %v778_v55, 0 }
 0x1c8   :  { %814 = vmatpush.bf16.msrb.mxu1 %v805_v56  ;;  %v2065_v56 = vld [vmem:[%s2853_s7 + $0x1] ss:$0 sm:$0xff] }
 0x1cc   :  { %v432_v57 = vpop.f32.mrf.mxu1 }
 0x1cd   :  { %v2062_v57 = vld [vmem:[%s2853_s7] ss:$0 sm:$0xff] }
 0x21d   :  { %v508_v58 = vpop.f32.mrf.mxu0 }
 0x21e   :  { %v569_v59 = vmul.f32 0.35355338, %v508_v58  ;;  %v2063_v58 = vld [vmem:[%s2853_s7 + $0x2] ss:$0 sm:$0xff] }
 0x220   :  { %v573_v60 = vsel %vm492_vm5, %v569_v59, -inf }
 0x221   :  { %574 = vmax.xlane.f32.xlu2 %v573_v60 }
 0x225   :  { %v510_v61 = vpop.f32.mrf.mxu0 }
 0x238   :  { %v546_v62 = vpop.f32.mrf.mxu2 }
 0x239   :  { %v571_v63 = vmul.f32 0.35355338, %v546_v62  ;;  %v565_v1 = vpop.f32.mrf.mxu3 }
 0x23a   :  { %v572_v5 = vmul.f32 0.35355338, %v565_v1 }
 0x23b   :  { %v579_v2 = vsel %vm492_vm5, %v571_v63, -inf }
 0x23c   :  { %580 = vmax.xlane.f32.xlu1 %v579_v2  ;;  %v527_v3 = vpop.f32.mrf.mxu1  ;;  %v582_v10 = vsel %vm492_vm5, %v572_v5, -inf }
 0x23d   :  { %v570_v4 = vmul.f32 0.35355338, %v527_v3 }
 0x23f   :  { %v576_v6 = vsel %vm492_vm5, %v570_v4, -inf }
 0x240   :  { %v548_v7 = vpop.f32.mrf.mxu2  ;;  %577 = vmax.xlane.f32.xlu2 %v576_v6 }
 0x241   :  { %v567_v9 = vpop.f32.mrf.mxu3 }
 0x244   :  { %583 = vmax.xlane.f32.xlu1 %v582_v10  ;;  %v529_v11 = vpop.f32.mrf.mxu1 }
 0x294   :  { %v575_v12 = vpop.xlane.xlu2 %574 }
 0x295   :  { %v585_v13 = vsub.f32 %v569_v59, %v575_v12 }
 0x297   :  { %v589_v22 = vmul.f32 1.442695, %v585_v13 }
 0x299   :  { %2075 = vpow2.f32 %v589_v22 }
 0x29f   :  { %v2415_v24 = vpop.eup %2075 }
 0x2a0   :  { %v597_v26 = vsel %vm492_vm5, %v2415_v24, 0.0 }
 0x2a1   :  { %598 = vadd.xlane.f32.xlu2 %v597_v26 }
 0x2af   :  { %v581_v30 = vpop.xlane.xlu1 %580 }
 0x2b0   :  { %v587_v33 = vsub.f32 %v571_v63, %v581_v30 }
 0x2b2   :  { %v593_v34 = vmul.f32 1.442695, %v587_v33 }
 0x2b3   :  { %v578_v35 = vpop.xlane.xlu2 %577 }
 0x2b4   :  { %2077 = vpow2.f32 %v593_v34  ;;  %v586_v36 = vsub.f32 %v570_v4, %v578_v35 }
 0x2b6   :  { %v591_v37 = vmul.f32 1.442695, %v586_v36 }
 0x2b7   :  { %v584_v38 = vpop.xlane.xlu1 %583 }
 0x2b8   :  { %v588_v40 = vsub.f32 %v572_v5, %v584_v38  ;;  %2079 = vpow2.f32 %v591_v37 }
 0x2b9   :  { %690 = vperm.xlu2 %2058, %v2064_v45  }
 0x2ba   :  { %v2419_v42 = vpop.eup %2077  ;;  %v595_v43 = vmul.f32 1.442695, %v588_v40 }
 0x2bb   :  { %v603_v44 = vsel %vm492_vm5, %v2419_v42, 0.0 }
 0x2bc   :  { %2081 = vpow2.f32 %v595_v43  ;;  %604 = vadd.xlane.f32.xlu0 %v603_v44 }
 0x2be   :  { %v2426_v47 = vpop.eup %2079 }
 0x2bf   :  { %v600_v55 = vsel %vm492_vm5, %v2426_v47, 0.0 }
 0x2c1   :  { %682 = vperm.xlu2 %2058, %v2065_v56  }
 0x2c2   :  { %v2428_v50 = vpop.eup %2081 }
 0x2c3   :  { %v606_v54 = vsel %vm492_vm5, %v2428_v50, 0.0 }
 0x2c4   :  { %607 = vadd.xlane.f32.xlu1 %v606_v54  ;;  %601 = vadd.xlane.f32.xlu0 %v600_v55 }
 0x2d8   :  { %678 = vperm.xlu0 %2059, %v2062_v57  }
 0x2dd   :  { %686 = vperm.xlu1 %2057, %v2063_v58  }
 0x314   :  { %v599_v59 = vpop.xlane.xlu2 %598 }
 0x315   :  { %2083 = vrcp.f32 %v599_v59  ;;  %v620_v10 = vand.u32 2147483648, %v599_v59  ;;  %vm614_vm8 = vweird.f32 %v599_v59  ;;  %v618_v13 = vand.u32 2147483647, %v599_v59 }
 0x317   :  { %v621_v33 = vor.u32 1.1754944e-38, %v620_v10  ;;  %vm619_vm11 = vcmp.eq.f32.partialorder %v618_v13, 8.507059e+37 }
 0x31b   :  { %v2084_v60 = vpop.eup %2083 }
 0x31c   :  { %v610_v62 = vmul.f32 %v2084_v60, %v599_v59  ;;  %vm615_vm7 = vweird.f32 %v2084_v60  ;;  %v2454_v59 = vpop.permute.xlu2 %690 }
 0x31d   :  { %vm616_vm9 = vmor %vm614_vm8, %vm615_vm7 }
 0x31e   :  { %v611_v63 = vsub.f32 1.0, %v610_v62 }
 0x320   :  { %v612_v5 = vmul.f32 %v2084_v60, %v611_v63 }
 0x322   :  { %v613_v7 = vadd.f32 %v2084_v60, %v612_v5 }
 0x324   :  { %v617_v30 = vsel %vm616_vm9, %v2084_v60, %v613_v7 }
 0x325   :  { %v622_v40 = vsel %vm619_vm11, %v621_v33, %v617_v30  ;;  %v135_v33 = vld [vmem:[%s2854_s6 + $0x10] sm:$0xff] }
 0x326   :  { %v623_v5 = vmul.f32 %v2415_v24, %v622_v40  ;;  %v2507_v40 = vld [vmem:[%s2854_s6 + $0x8] sm:$0xff] }
 0x32f   :  { %v605_v61 = vpop.xlane.xlu0 %604 }
 0x330   :  { %2085 = vrcp.f32 %v605_v61  ;;  %vm644_vm13 = vweird.f32 %v605_v61  ;;  %v650_v44 = vand.u32 2147483648, %v605_v61  ;;  %v648_v56 = vand.u32 2147483647, %v605_v61 }
 0x332   :  { %vm649_vm8 = vcmp.eq.f32.partialorder %v648_v56, 8.507059e+37 }
 0x336   :  { %v2443_v1 = vpop.eup %2085 }
 0x337   :  { %v608_v2 = vpop.xlane.xlu1 %607  ;;  %v2445_v3 = vpop.xlane.xlu0 %601  ;;  %v640_v4 = vmul.f32 %v2443_v1, %v605_v61  ;;  %vm645_vm12 = vweird.f32 %v2443_v1  ;;  %v651_v61 = vor.u32 1.1754944e-38, %v650_v44 }
 0x338   :  { %2087 = vrcp.f32 %v608_v2  ;;  %v665_v34 = vand.u32 2147483648, %v608_v2  ;;  %v663_v37 = vand.u32 2147483647, %v608_v2  ;;  %vm659_vm14 = vweird.f32 %v608_v2  ;;  %vm2456_vm3 = vmor %vm644_vm13, %vm645_vm12 }
 0x339   :  { %2089 = vrcp.f32 %v2445_v3  ;;  %v641_v6 = vsub.f32 1.0, %v640_v4  ;;  %v635_v57 = vand.u32 2147483648, %v2445_v3  ;;  %vm629_vm4 = vweird.f32 %v2445_v3 }
 0x33a   :  { %v666_v54 = vor.u32 1.1754944e-38, %v665_v34  ;;  %vm664_vm2 = vcmp.eq.f32.partialorder %v663_v37, 8.507059e+37  ;;  %v633_v63 = vand.u32 2147483647, %v2445_v3 }
 0x33b   :  { %v642_v22 = vmul.f32 %v2443_v1, %v641_v6 }
 0x33c   :  { %vm634_vm9 = vcmp.eq.f32.partialorder %v633_v63, 8.507059e+37 }
 0x33d   :  { %v643_v43 = vadd.f32 %v2443_v1, %v642_v22 }
 0x33e   :  { %v2088_v9 = vpop.eup %2087 }
 0x33f   :  { %v2090_v11 = vpop.eup %2089  ;;  %v655_v12 = vmul.f32 %v2088_v9, %v608_v2  ;;  %vm660_vm10 = vweird.f32 %v2088_v9  ;;  %v647_v2 = vsel %vm2456_vm3, %v2443_v1, %v643_v43  ;;  %v2478_v1 = vld [vmem:[%s2854_s6 + $0x18] sm:$0xff] }
 0x340   :  { %v625_v26 = vmul.f32 %v2090_v11, %v2445_v3  ;;  %vm661_vm15 = vmor %vm659_vm14, %vm660_vm10  ;;  %vm630_vm1 = vweird.f32 %v2090_v11  ;;  %v636_v3 = vor.u32 1.1754944e-38, %v635_v57  ;;  %v652_v10 = vsel %vm649_vm8, %v651_v61, %v647_v2 }
 0x341   :  { %v656_v29 = vsub.f32 1.0, %v655_v12  ;;  %vm631_vm7 = vmor %vm629_vm4, %vm630_vm1  ;;  %v653_v22 = vmul.f32 %v2419_v42, %v652_v10 }
 0x342   :  { %v626_v35 = vsub.f32 1.0, %v625_v26 }
 0x343   :  { %v657_v36 = vmul.f32 %v2088_v9, %v656_v29 }
 0x344   :  { %v627_v38 = vmul.f32 %v2090_v11, %v626_v35 }
 0x345   :  { %v658_v45 = vadd.f32 %v2088_v9, %v657_v36  ;;  %v2497_v36 = vpop.permute.xlu2 %682 }
 0x346   :  { %v628_v55 = vadd.f32 %v2090_v11, %v627_v38 }
 0x347   :  { %v662_v58 = vsel %vm661_vm15, %v2088_v9, %v658_v45  ;;  %v2473_v9 = vld [vmem:[%s2854_s6] sm:$0xff] }
 0x348   :  { %v667_v62 = vsel %vm664_vm2, %v666_v54, %v662_v58  ;;  %v632_v7 = vsel %vm631_vm7, %v2090_v11, %v628_v55 }
 0x349   :  { %v668_v4 = vmul.f32 %v2428_v50, %v667_v62  ;;  %v637_v12 = vsel %vm634_vm9, %v636_v3, %v632_v7 }
 0x34a   :  { %v2468_v6 = vpop.permute.xlu0 %678  ;;  %v638_v34 = vmul.f32 %v2426_v47, %v637_v12 }
 0x34b   :  { %v696_v50 = vmul.f32 %v2454_v59, %v668_v4  ;;  %v693_v24 = vmul.f32 %v2468_v6, %v623_v5 }
 0x34c   :  { %v694_v37 = vmul.f32 %v2497_v36, %v638_v34 }
 0x34d   :  { %v697_v11 = vadd.f32 %v693_v24, %v2473_v9  ;;  %v2484_v13 = vadd.f32 %v696_v50, %v2478_v1 }
 0x34e   :  { %v2510_v47 = vadd.f32 %v694_v37, %v2507_v40 }
 0x34f   :  { %v2487_v26 = vpop.permute.xlu1 %686  ;;  %v701_v29 = vsel %vm492_vm5, %v697_v11, 0.0  ;;  %v710_v30 = vsel %vm492_vm5, %v2484_v13, 0.0 }
 0x350   :  { %v695_v35 = vmul.f32 %v2487_v26, %v653_v22  ;;  %702 = vadd.xlane.f32.xlu0 %v701_v29  ;;  %711 = vadd.xlane.f32.xlu2 %v710_v30  ;;  %v704_v43 = vsel %vm492_vm5, %v2510_v47, 0.0 }
 0x352   :  { %v2499_v42 = vadd.f32 %v695_v35, %v135_v33 }
 0x354   :  { %v707_v38 = vsel %vm492_vm5, %v2499_v42, 0.0 }
 0x355   :  { %708 = vadd.xlane.f32.xlu1 %v707_v38 }
 0x35d   :  { %705 = vadd.xlane.f32.xlu1 %v704_v43 }
 0x3c3   :  { %v703_v44 = vpop.xlane.xlu0 %702  ;;  %v712_v45 = vpop.xlane.xlu2 %711 }
 0x3c4   :  { %2091 = vrcp.f32 %v703_v44  ;;  %v722_v62 = vand.u32 2147483647, %v703_v44  ;;  %v724_v63 = vand.u32 2147483648, %v703_v44  ;;  %v767_v61 = vand.u32 2147483647, %v712_v45 }
 0x3c5   :  { %2093 = vrcp.f32 %v712_v45  ;;  %v769_v7 = vand.u32 2147483648, %v712_v45  ;;  %vm718_vm11 = vweird.f32 %v703_v44  ;;  %vm763_vm14 = vweird.f32 %v712_v45 }
 0x3c6   :  { %vm723_vm13 = vcmp.eq.f32.partialorder %v722_v62, 8.507059e+37  ;;  %v725_v12 = vor.u32 1.1754944e-38, %v724_v63  ;;  %vm768_vm1 = vcmp.eq.f32.partialorder %v767_v61, 8.507059e+37 }
 0x3c7   :  { %v770_v33 = vor.u32 1.1754944e-38, %v769_v7 }
 0x3c8   :  { %v709_v54 = vpop.xlane.xlu1 %708 }
 0x3c9   :  { %2095 = vrcp.f32 %v709_v54  ;;  %v752_v34 = vand.u32 2147483647, %v709_v54  ;;  %v754_v35 = vand.u32 2147483648, %v709_v54  ;;  %vm748_vm4 = vweird.f32 %v709_v54 }
 0x3ca   :  { %v2092_v55 = vpop.eup %2091 }
 0x3cb   :  { %v2094_v56 = vpop.eup %2093  ;;  %v714_v57 = vmul.f32 %v2092_v55, %v703_v44  ;;  %vm719_vm10 = vweird.f32 %v2092_v55  ;;  %v755_v62 = vor.u32 1.1754944e-38, %v754_v35  ;;  %vm753_vm8 = vcmp.eq.f32.partialorder %v752_v34, 8.507059e+37  ;;  %v103_v35 = vld [vmem:[%s2855_s8 + $0x4] sm:$0xf] }
 0x3cc   :  { %v759_v58 = vmul.f32 %v2094_v56, %v712_v45  ;;  %vm764_vm12 = vweird.f32 %v2094_v56  ;;  %vm720_vm15 = vmor %vm718_vm11, %vm719_vm10 }
 0x3cd   :  { %v715_v60 = vsub.f32 1.0, %v714_v57  ;;  %vm765_vm2 = vmor %vm763_vm14, %vm764_vm12 }
 0x3ce   :  { %v760_v2 = vsub.f32 1.0, %v759_v58 }
 0x3cf   :  { %v2096_v4 = vpop.eup %2095  ;;  %v716_v5 = vmul.f32 %v2092_v55, %v715_v60 }
 0x3d0   :  { %v761_v3 = vmul.f32 %v2094_v56, %v760_v2  ;;  %v744_v50 = vmul.f32 %v2096_v4, %v709_v54  ;;  %v706_v24 = vpop.xlane.xlu1 %705  ;;  %vm749_vm3 = vweird.f32 %v2096_v4 }
 0x3d1   :  { %v717_v10 = vadd.f32 %v2092_v55, %v716_v5  ;;  %2097 = vrcp.f32 %v706_v24  ;;  %vm750_vm7 = vmor %vm748_vm4, %vm749_vm3  ;;  %v737_v54 = vand.u32 2147483647, %v706_v24  ;;  %vm733_vm10 = vweird.f32 %v706_v24 }
 0x3d2   :  { %v762_v22 = vadd.f32 %v2094_v56, %v761_v3  ;;  %v745_v29 = vsub.f32 1.0, %v744_v50 }
 0x3d3   :  { %v721_v30 = vsel %vm720_vm15, %v2092_v55, %v717_v10  ;;  %vm738_vm12 = vcmp.eq.f32.partialorder %v737_v54, 8.507059e+37 }
 0x3d4   :  { %v726_v37 = vsel %vm723_vm13, %v725_v12, %v721_v30  ;;  %v766_v38 = vsel %vm765_vm2, %v2094_v56, %v762_v22  ;;  %v746_v43 = vmul.f32 %v2096_v4, %v745_v29  ;;  %v102_v29 = vld [vmem:[%s2855_s8] sm:$0xf] }
 0x3d5   :  { %v727_v44 = vmul.f32 %v726_v37, %v697_v11  ;;  %v771_v57 = vsel %vm768_vm1, %v770_v33, %v766_v38  ;;  %v739_v11 = vand.u32 2147483648, %v706_v24  ;;  %v2525_v30 = vsel %vm784_vm6, %v102_v29, 0 }
 0x3d6   :  { %v772_v58 = vmul.f32 %v771_v57, %v2484_v13  ;;  %v747_v45 = vadd.f32 %v2096_v4, %v746_v43  ;;  %875 = vmatpush.bf16.msra.mxu0 %v2525_v30  ;;  %v2548_v37 = vsel %vm784_vm6, %v103_v35, 0 }
 0x3d7   :  { %v2098_v60 = vpop.eup %2097  ;;  %v773_v63 = vpack.c.bf16 %v727_v44, %v727_v44  ;;  %894 = vmatpush.bf16.msra.mxu1 %v2548_v37 }
 0x3d8   :  { %v751_v2 = vsel %vm750_vm7, %v2096_v4, %v747_v45  ;;  %v729_v55 = vmul.f32 %v2098_v60, %v706_v24  ;;  %v776_v61 = vpack.c.bf16 %v772_v58, %v772_v58  ;;  %vm734_vm9 = vweird.f32 %v2098_v60  ;;  %v105_v24 = vld [vmem:[%s2855_s8 + $0xc] sm:$0xf] }
 0x3d9   :  { %v756_v5 = vsel %vm753_vm8, %v755_v62, %v751_v2  ;;  %1944 = vmatmul.msk.bf16.vlgmr.msrb.gmra.mxu0 %vm492_vm5, %v773_v63  ;;  %vm735_vm11 = vmor %vm733_vm10, %vm734_vm9  ;;  %v740_v4 = vor.u32 1.1754944e-38, %v739_v11  ;;  %v2532_v33 = vsel %vm784_vm6, %v105_v24, 0 }
 0x3da   :  { %v757_v56 = vmul.f32 %v756_v5, %v2499_v42  ;;  %v730_v7 = vsub.f32 1.0, %v729_v55  ;;  %1947 = vmatmul.msk.bf16.vlgmr.msra.gmra.mxu3 %vm492_vm5, %v776_v61 }
 0x3db   :  { %932 = vmatpush.bf16.msrb.mxu3 %v2532_v33 }
 0x3dc   :  { %v731_v13 = vmul.f32 %v2098_v60, %v730_v7  ;;  %v775_v3 = vpack.c.bf16 %v757_v56, %v757_v56 }
 0x3de   :  { %v732_v50 = vadd.f32 %v2098_v60, %v731_v13  ;;  %1946 = vmatmul.msk.bf16.vlgmr.msra.gmra.mxu2 %vm492_vm5, %v775_v3 }
 0x3df   :  { %1168 = vmatpush.bf16.msra.mxu3 %v2293_v23 }
 0x3e0   :  { %v736_v10 = vsel %vm735_vm11, %v2098_v60, %v732_v50 }
 0x3e1   :  { %v741_v12 = vsel %vm738_vm12, %v740_v4, %v736_v10 }
 0x3e2   :  { %v742_v22 = vmul.f32 %v741_v12, %v2510_v47  ;;  %v104_v47 = vld [vmem:[%s2855_s8 + $0x8] sm:$0xf] }
 0x3e3   :  { %v2539_v34 = vsel %vm784_vm6, %v104_v47, 0  ;;  %1169 = vmatpush.bf16.msra.mxu3 %v2313_v28 }
 0x3e4   :  { %v774_v42 = vpack.c.bf16 %v742_v22, %v742_v22  ;;  %913 = vmatpush.bf16.msrb.mxu2 %v2539_v34  ;;  %v2579_v22 = vld [vmem:[%s2866_s23 + $0x8] sm:$0xff] }
 0x3e6   :  { %1945 = vmatmul.msk.bf16.vlgmr.msrb.gmra.mxu1 %vm492_vm5, %v774_v42  ;;  %v1121_v42 = vsel %vm142_vm0, %v2579_v22, 0.0 }
 0x3e8   :  { %1155 = vmatpush.bf16.msra.mxu2 %v2245_v14 }
 0x3ec   :  { %1156 = vmatpush.bf16.msra.mxu2 %v2269_v18 }
 0x456   :  { %v797_v38 = vpop.f32.mrf.mxu0 }
 0x457   :  { %v858_v43 = vpack.c.bf16 %v797_v38, %v797_v38 }
 0x459   :  { %1948 = vmatmul.msk.bf16.vlgmr.msra.gmra.mxu0 %vm492_vm5, %v858_v43 }
 0x45d   :  { %v854_v23 = vpop.f32.mrf.mxu3 }
 0x45e   :  { %v861_v44 = vpack.c.bf16 %v854_v23, %v854_v23  ;;  %v799_v14 = vpop.f32.mrf.mxu0 }
 0x460   :  { %1951 = vmatmul.msk.bf16.vlgmr.msrb.gmra.mxu3 %vm492_vm5, %v861_v44 }
 0x461   :  { %v835_v57 = vpop.f32.mrf.mxu2  ;;  %1207 = vmatpush.bf16.msrb.mxu3 %v2260_v17 }
 0x462   :  { %v860_v58 = vpack.c.bf16 %v835_v57, %v835_v57  ;;  %v2592_v57 = vld [vmem:[%s2860_s12 + $0x8] sm:$0xff] }
 0x463   :  { %v816_v45 = vpop.f32.mrf.mxu1  ;;  %1005 = vmatpush.bf16.msrb.mxu0 %v2592_v57 }
 0x464   :  { %v859_v60 = vpack.c.bf16 %v816_v45, %v816_v45  ;;  %1950 = vmatmul.msk.bf16.vlgmr.msrb.gmra.mxu2 %vm492_vm5, %v860_v58  ;;  %v2598_v58 = vld [vmem:[%s2860_s12] sm:$0xff] }
 0x465   :  { %v856_v28 = vpop.f32.mrf.mxu3  ;;  %1194 = vmatpush.bf16.msrb.mxu2 %v2255_v16  ;;  %1208 = vmatpush.bf16.msrb.mxu3 %v2284_v21 }
 0x466   :  { %1949 = vmatmul.msk.bf16.vlgmr.msra.gmra.mxu1 %vm492_vm5, %v859_v60 }
 0x467   :  { %1006 = vmatpush.bf16.msrb.mxu0 %v2598_v58 }
 0x469   :  { %v837_v18 = vpop.f32.mrf.mxu2  ;;  %1195 = vmatpush.bf16.msrb.mxu2 %v2279_v20  ;;  %v2568_v20 = vld [vmem:[%s2856_s9] ss:$0 sm:$0xff] }
 0x46b   :  { %v818_v62 = vpop.f32.mrf.mxu1  ;;  %1181 = vmatpush.bf16.msra.mxu0 %v2250_v15 }
 0x46f   :  { %1182 = vmatpush.bf16.msra.mxu0 %v2274_v19  ;;  %v2608_v19 = vld [vmem:[%s2857_s10] ss:$0 sm:$0xff] }
 0x4d6   :  { %v877_v63 = vpop.f32.mrf.mxu0 }
 0x4d7   :  { %v938_v5 = vsel %vm142_vm0, %v877_v63, 0.0 }
 0x4de   :  { %v879_v2 = vpop.f32.mrf.mxu0 }
 0x4e3   :  { %v934_v55 = vpop.f32.mrf.mxu3  ;;  %v896_v17 = vpop.f32.mrf.mxu1 }
 0x4e4   :  { %v939_v61 = vsel %vm142_vm0, %v896_v17, 0.0  ;;  %v943_v21 = vsel %vm142_vm0, %v934_v55, 0.0 }
 0x4e5   :  { %v940_v56 = vadd.f32 %v939_v61, %v938_v5 }
 0x4e7   :  { %v915_v7 = vpop.f32.mrf.mxu2 }
 0x4e8   :  { %v941_v16 = vsel %vm142_vm0, %v915_v7, 0.0 }
 0x4e9   :  { %v942_v11 = vadd.f32 %v941_v16, %v940_v56 }
 0x4eb   :  { %v944_v13 = vadd.f32 %v943_v21, %v942_v11  ;;  %v936_v54 = vpop.f32.mrf.mxu3  ;;  %v898_v3 = vpop.f32.mrf.mxu1 }
 0x4ed   :  { %v945_v50 = vadd.f32 %v944_v13, %v2233_v0  ;;  %v2613_v13 = vld [vmem:[%s2858_s11] ss:$0 sm:$0xff] }
 0x4ef   :  { %v917_v4 = vpop.f32.mrf.mxu2  ;;  %v2572_v10 = vadd.f32 %v2568_v20, %v945_v50 }
 0x4f1   :  { %v950_v12 = vsel %vm142_vm0, %v2572_v10, 0.0 }
 0x4f2   :  { %951 = vadd.xlane.f32.xlu2 %v950_v12 }
 0x4fa   :  { %1122 = vadd.xlane.f32.xlu2 %v1121_v42 }
 0x565   :  { %v952_v29 = vpop.xlane.xlu2 %951 }
 0x566   :  { %v953_v0 = vmul.f32 %v952_v29, %v2237_v8 }
 0x568   :  { %v954_v24 = vsub.f32 %v2572_v10, %v953_v0 }
 0x56a   :  { %v955_v47 = vmul.f32 %v954_v24, %v954_v24 }
 0x56c   :  { %v956_v35 = vsel %vm142_vm0, %v955_v47, 0.0 }
 0x56d   :  { %957 = vadd.xlane.f32.xlu1 %v956_v35  ;;  %v1123_v38 = vpop.xlane.xlu2 %1122 }
 0x56e   :  { %v1124_v43 = vmul.f32 %v1123_v38, %v2237_v8  ;;  %v2691_v38 = vld [vmem:[%s2861_s14 + $0x18] sm:$0xff] }
 0x570   :  { %v1125_v23 = vsub.f32 %v2579_v22, %v1124_v43 }
 0x572   :  { %v1126_v44 = vmul.f32 %v1125_v23, %v1125_v23 }
 0x574   :  { %v1127_v14 = vsel %vm142_vm0, %v1126_v44, 0.0  ;;  %v2697_v44 = vld [vmem:[%s2861_s14 + $0x10] sm:$0xff] }
 0x575   :  { %1128 = vadd.xlane.f32.xlu1 %v1127_v14 }
 0x5e0   :  { %v958_v45 = vpop.xlane.xlu1 %957 }
 0x5e1   :  { %v959_v60 = vmul.f32 %v958_v45, %v2237_v8 }
 0x5e3   :  { %v960_v28 = vadd.f32 1e-06, %v959_v60 }
 0x5e5   :  { %2099 = vrsqrt.f32 %v960_v28  ;;  %vm967_vm14 = vweird.f32 %v960_v28 }
 0x5e8   :  { %v1129_v18 = vpop.xlane.xlu1 %1128 }
 0x5e9   :  { %v1130_v62 = vmul.f32 %v1129_v18, %v2237_v8 }
 0x5eb   :  { %v2100_v63 = vpop.eup %2099  ;;  %v1131_v2 = vadd.f32 1e-06, %v1130_v62 }
 0x5ec   :  { %v962_v55 = vmul.f32 %v2100_v63, %v960_v28  ;;  %vm968_vm13 = vweird.f32 %v2100_v63  ;;  %v2705_v28 = vld [vmem:[%s2861_s14 + $0x8] sm:$0xff] }
 0x5ed   :  { %2101 = vrsqrt.f32 %v1131_v2  ;;  %vm969_vm15 = vmor %vm967_vm14, %vm968_vm13  ;;  %vm1138_vm1 = vweird.f32 %v1131_v2 }
 0x5ee   :  { %v963_v17 = vmul.f32 %v2100_v63, %v962_v55 }
 0x5f0   :  { %v964_v61 = vmul.f32 0.5, %v963_v17 }
 0x5f2   :  { %v965_v5 = vsub.f32 1.5, %v964_v61  ;;  %v2711_v61 = vld [vmem:[%s2861_s14] sm:$0xff] }
 0x5f3   :  { %v2102_v56 = vpop.eup %2101 }
 0x5f4   :  { %v966_v15 = vmul.f32 %v2100_v63, %v965_v5  ;;  %v1133_v7 = vmul.f32 %v2102_v56, %v1131_v2  ;;  %vm1139_vm2 = vweird.f32 %v2102_v56 }
 0x5f5   :  { %vm1140_vm3 = vmor %vm1138_vm1, %vm1139_vm2 }
 0x5f6   :  { %v970_v16 = vsel %vm969_vm15, %v2100_v63, %v966_v15  ;;  %v1134_v11 = vmul.f32 %v2102_v56, %v1133_v7 }
 0x5f7   :  { %v971_v21 = vmul.f32 %v970_v16, %v954_v24  ;;  %v2137_v16 = vld [vmem:[%s2851_s4 + $0x28] sm:$0xff] }
 0x5f8   :  { %v1135_v54 = vmul.f32 0.5, %v1134_v11 }
 0x5f9   :  { %v975_v3 = vmul.f32 %v2608_v19, %v971_v21 }
 0x5fa   :  { %v1136_v50 = vsub.f32 1.5, %v1135_v54 }
 0x5fb   :  { %v979_v4 = vadd.f32 %v2613_v13, %v975_v3 }
 0x5fc   :  { %v1137_v12 = vmul.f32 %v2102_v56, %v1136_v50 }
 0x5fd   :  { %v980_v42 = vpack.c.bf16 %v979_v4, %v979_v4 }
 0x5fe   :  { %v1141_v29 = vsel %vm1140_vm3, %v2102_v56, %v1137_v12  ;;  %v2138_v12 = vld [vmem:[%s2851_s4 + $0x20] sm:$0xff] }
 0x5ff   :  { %v1142_v0 = vmul.f32 %v1141_v29, %v1125_v23  ;;  %1960 = vmatmul.msk.bf16.vlgmr.msrb.gmra.mxu0 %vm142_vm0, %v980_v42 }
 0x600   :  { %1220 = vmatpush.bf16.msrb.mxu0 %v2348_v46  ;;  %v2678_v46 = vld [vmem:[%s2861_s14 + $0x28] sm:$0xff] }
 0x601   :  { %v1143_v24 = vmul.f32 %v2336_v39, %v1142_v0 }
 0x603   :  { %v1144_v47 = vadd.f32 %v2341_v41, %v1143_v24 }
 0x604   :  { %1221 = vmatpush.bf16.msrb.mxu0 %v2366_v49 }
 0x605   :  { %v2622_v35 = vpack.c.bf16 %v1144_v47, %v1144_v47 }
 0x607   :  { %1994 = vmatmul.msk.bf16.vlgmr.msra.gmra.mxu2 %vm142_vm0, %v2622_v35  ;;  %1995 = vmatmul.msk.bf16.vlgmr.msra.gmra.mxu3 %vm142_vm0, %v2622_v35 }
 0x608   :  { %1246 = vmatpush.bf16.msra.mxu2 %v2301_v25  ;;  %1259 = vmatpush.bf16.msra.mxu3 %v2307_v27  ;;  %v2655_v25 = vld [vmem:[%s2861_s14 + $0x38] sm:$0xff]  ;;  %v2660_v27 = vld [vmem:[%s2859_s13] ss:$0 sm:$0xff] }
 0x609   :  { %1104 = vmatpush.bf16.msrb.mxu1 %v2655_v25 }
 0x60c   :  { %1247 = vmatpush.bf16.msra.mxu2 %v2323_v31  ;;  %1260 = vmatpush.bf16.msra.mxu3 %v2328_v32  ;;  %v2666_v31 = vld [vmem:[%s2861_s14 + $0x30] sm:$0xff] }
 0x60d   :  { %1105 = vmatpush.bf16.msrb.mxu1 %v2666_v31 }
 0x60f   :  { %1996 = vmatmul.msk.bf16.vlgmr.msra.gmra.mxu0 %vm142_vm0, %v2622_v35 }
 0x610   :  { %1272 = vmatpush.bf16.msra.mxu0 %v2382_v52 }
 0x611   :  { %1106 = vmatpush.bf16.msrb.mxu1 %v2678_v46 }
 0x614   :  { %1273 = vmatpush.bf16.msra.mxu0 %v2392_v53 }
 0x617   :  { %1997 = vmatmul.msk.bf16.vlgmr.msrb.gmra.mxu2 %vm142_vm0, %v2622_v35  ;;  %1998 = vmatmul.msk.bf16.vlgmr.msrb.gmra.mxu3 %vm142_vm0, %v2622_v35 }
 0x618   :  { %1298 = vmatpush.bf16.msrb.mxu2 %v2356_v48 }
 0x61c   :  { %1299 = vmatpush.bf16.msrb.mxu2 %v2375_v51  ;;  %v2685_v51 = vld [vmem:[%s2861_s14 + $0x20] sm:$0xff] }
 0x61d   :  { %1107 = vmatpush.bf16.msrb.mxu1 %v2685_v51 }
 0x61f   :  { %1999 = vmatmul.msk.bf16.vlgmr.msrb.gmra.mxu0 %vm142_vm0, %v2622_v35 }
 0x621   :  { %1108 = vmatpush.bf16.msrb.mxu1 %v2691_v38 }
 0x625   :  { %1109 = vmatpush.bf16.msrb.mxu1 %v2697_v44 }
 0x627   :  { %2001 = vmatmul.msk.bf16.vlgmr.msra.gmra.mxu2 %vm142_vm0, %v2622_v35  ;;  %2002 = vmatmul.msk.bf16.vlgmr.msra.gmra.mxu3 %vm142_vm0, %v2622_v35 }
 0x629   :  { %1110 = vmatpush.bf16.msrb.mxu1 %v2705_v28 }
 0x62d   :  { %1111 = vmatpush.bf16.msrb.mxu1 %v2711_v61 }
 0x62f   :  { %2003 = vmatmul.msk.bf16.vlgmr.msra.gmra.mxu0 %vm142_vm0, %v2622_v35 }
 0x631   :  { %1233 = vmatpush.bf16.msra.mxu1 %v2137_v16 }
 0x635   :  { %1234 = vmatpush.bf16.msra.mxu1 %v2138_v12 }
 0x637   :  { %2005 = vmatmul.msk.bf16.vlgmr.msrb.gmra.mxu2 %vm142_vm0, %v2622_v35 }
 0x67c   :  { %v1008_v32 = vpop.f32.mrf.mxu0 }
 0x67d   :  { %v2669_v39 = vadd.f32 %v2660_v27, %v1008_v32 }
 0x67f   :  { %v2673_v41 = vmul.f32 0.70710677, %v2669_v39 }
 0x681   :  { %v1016_v48 = vand.u32 2147483647, %v2673_v41  ;;  %vm1014_vm10 = vcmp.lt.f32.partialorder %v2673_v41, 0.0 }
 0x683   :  { %v1017_v49 = vmul.f32 0.3275911, %v1016_v48  ;;  %v1043_v21 = vsub.f32 0.0, %v1016_v48 }
 0x684   :  { %v1010_v52 = vpop.f32.mrf.mxu0 }
 0x685   :  { %v1018_v53 = vadd.f32 1.0, %v1017_v49  ;;  %v1044_v42 = vmul.f32 %v1043_v21, %v1016_v48 }
 0x687   :  { %2103 = vrcp.f32 %v1018_v53  ;;  %v1030_v62 = vand.u32 2147483648, %v1018_v53  ;;  %v1028_v2 = vand.u32 2147483647, %v1018_v53  ;;  %vm1024_vm7 = vweird.f32 %v1018_v53 }
 0x688   :  { %v1045_v52 = vmul.f32 1.442695, %v1044_v42 }
 0x689   :  { %v1031_v15 = vor.u32 1.1754944e-38, %v1030_v62  ;;  %vm1029_vm9 = vcmp.eq.f32.partialorder %v1028_v2, 8.507059e+37 }
 0x68a   :  { %v1158_v43 = vpop.f32.mrf.mxu2  ;;  %v1171_v23 = vpop.f32.mrf.mxu3  ;;  %2105 = vpow2.f32 %v1045_v52 }
 0x68c   :  { %v2699_v14 = vpop.f32.mrf.mxu0 }
 0x68d   :  { %v2104_v45 = vpop.eup %2103 }
 0x68e   :  { %v1020_v60 = vmul.f32 %v2104_v45, %v1018_v53  ;;  %vm1025_vm4 = vweird.f32 %v2104_v45 }
 0x68f   :  { %vm1026_vm8 = vmor %vm1024_vm7, %vm1025_vm4 }
 0x690   :  { %v1021_v18 = vsub.f32 1.0, %v1020_v60 }
 0x692   :  { %v1022_v63 = vmul.f32 %v2104_v45, %v1021_v18  ;;  %v1160_v55 = vpop.f32.mrf.mxu2  ;;  %v1173_v17 = vpop.f32.mrf.mxu3 }
 0x693   :  { %v1306_v55 = vpack.c.bf16 %v1171_v23, %v1171_v23 }
 0x694   :  { %v1023_v5 = vadd.f32 %v2104_v45, %v1022_v63  ;;  %v1186_v56 = vpop.f32.mrf.mxu0  ;;  %v1305_v63 = vpack.c.bf16 %v1158_v43, %v1158_v43  ;;  %v2144_v43 = vmov 1.0  }
 0x695   :  { %v2106_v56 = vpop.eup %2105  ;;  %v1015_v12 = vsel %vm1014_vm10, -1.0, %v2144_v43 }
 0x696   :  { %v1027_v7 = vsel %vm1026_vm8, %v2104_v45, %v1023_v5 }
 0x697   :  { %v1032_v11 = vsel %vm1029_vm9, %v1031_v15, %v1027_v7 }
 0x698   :  { %v1034_v54 = vmul.f32 1.0614054, %v1032_v11 }
 0x69a   :  { %v1035_v3 = vadd.f32 -1.4531521, %v1034_v54  ;;  %v1197_v50 = vpop.f32.mrf.mxu2  ;;  %v1210_v4 = vpop.f32.mrf.mxu3 }
 0x69b   :  { %v1309_v29 = vpack.c.bf16 %v1210_v4, %v1210_v4  ;;  %v1308_v52 = vpack.c.bf16 %v1197_v50, %v1197_v50 }
 0x69c   :  { %v1036_v0 = vmul.f32 %v1035_v3, %v1032_v11  ;;  %v1223_v24 = vpop.f32.mrf.mxu0 }
 0x69d   :  { %v1317_v47 = vsel %vm492_vm5, %v1309_v29, 0  ;;  %v1310_v32 = vpack.c.bf16 %v1223_v24, %v1223_v24 }
 0x69e   :  { %v1037_v49 = vadd.f32 1.4214138, %v1036_v0  ;;  %1326 = vmatpush.bf16.xpose.msrb.mxu3 %v1317_v47 }
 0x69f   :  { %v1336_v53 = vsel %vm492_vm5, %v1310_v32, 0 }
 0x6a0   :  { %v1038_v45 = vmul.f32 %v1037_v49, %v1032_v11  ;;  %1345 = vmatpush.bf16.xpose.msrb.mxu0 %v1336_v53 }
 0x6a2   :  { %v1039_v60 = vadd.f32 -0.28449672, %v1038_v45  ;;  %v1199_v18 = vpop.f32.mrf.mxu2  ;;  %v1212_v62 = vpop.f32.mrf.mxu3 }
 0x6a4   :  { %v1040_v2 = vmul.f32 %v1039_v60, %v1032_v11  ;;  %v1225_v48 = vpop.f32.mrf.mxu0  ;;  %v2139_v60 = vld [vmem:[%s2852_s5 + $0x28] sm:$0xff] }
 0x6a5   :  { %2006 = vmatmul.msk.bf16.vlgmr.msrb.gmra.mxu3 %vm492_vm5, %v1305_v63 }
 0x6a6   :  { %v1041_v17 = vadd.f32 0.2548296, %v1040_v2 }
 0x6a7   :  { %2007 = vmatmul.msk.bf16.vlgmr.msrb.gmra.mxu0 %vm492_vm5, %v1306_v55 }
 0x6a8   :  { %v1042_v5 = vmul.f32 %v1041_v17, %v1032_v11  ;;  %v1012_v11 = vmul.f32 0.5, %v2669_v39 }
 0x6aa   :  { %v1047_v15 = vmul.f32 %v2106_v56, %v1042_v5  ;;  %v1249_v7 = vpop.f32.mrf.mxu2  ;;  %v1262_v16 = vpop.f32.mrf.mxu3 }
 0x6ab   :  { %v1312_v21 = vpack.c.bf16 %v1249_v7, %v1249_v7  ;;  %v1573_v54 = vpack.c.bf16 %v1262_v16, %v1262_v16 }
 0x6ac   :  { %v1048_v3 = vsub.f32 1.0, %v1047_v15  ;;  %v1275_v4 = vpop.f32.mrf.mxu0 }
 0x6ad   :  { %v1374_v23 = vsel %vm492_vm5, %v1312_v21, 0  ;;  %v1581_v42 = vsel %vm784_vm6, %v1573_v54, 0  ;;  %v1574_v29 = vpack.c.bf16 %v1275_v4, %v1275_v4 }
 0x6ae   :  { %v1049_v0 = vmul.f32 %v1048_v3, %v1015_v12  ;;  %1383 = vmatpush.bf16.xpose.msra.mxu2 %v1374_v23  ;;  %1590 = vmatpush.bf16.msra.mxu3 %v1581_v42 }
 0x6af   :  { %v1600_v41 = vsel %vm784_vm6, %v1574_v29, 0 }
 0x6b0   :  { %v1050_v24 = vadd.f32 1.0, %v1049_v0  ;;  %1609 = vmatpush.bf16.msra.mxu0 %v1600_v41 }
 0x6b2   :  { %1667 = vmatpush.bf16.msrb.mxu3 %v2525_v30  ;;  %v1051_v47 = vmul.f32 %v1050_v24, %v1012_v11  ;;  %v1251_v32 = vpop.f32.mrf.mxu2  ;;  %v1264_v49 = vpop.f32.mrf.mxu3 }
 0x6b4   :  { %1683 = vmatpush.bf16.msrb.mxu0 %v2548_v37  ;;  %v1052_v53 = vpack.c.bf16 %v1051_v47, %v1051_v47  ;;  %v1277_v45 = vpop.f32.mrf.mxu0  ;;  %v2140_v37 = vld [vmem:[%s2852_s5 + $0x20] sm:$0xff] }
 0x6b5   :  { %2009 = vmatmul.msk.bf16.vlgmr.msra.gmra.mxu2 %vm492_vm5, %v1308_v52 }
 0x6b6   :  { %1112 = vmatmul.bf16.vlgmr.msrb.gmra.mxu1 %v1052_v53 }
 0x6b7   :  { %1285 = vmatpush.bf16.msrb.mxu1 %v2139_v60 }
 0x6ba   :  { %v1301_v30 = vpop.f32.mrf.mxu2 }
 0x6bb   :  { %v1576_v39 = vpack.c.bf16 %v1301_v30, %v1301_v30  ;;  %1286 = vmatpush.bf16.msrb.mxu1 %v2140_v37 }
 0x6bd   :  { %v1638_v18 = vsel %vm784_vm6, %v1576_v39, 0 }
 0x6be   :  { %1647 = vmatpush.bf16.msrb.mxu2 %v1638_v18 }
 0x6c2   :  { %1715 = vmatpush.bf16.msra.mxu2 %v2532_v33  ;;  %v1303_v50 = vpop.f32.mrf.mxu2  ;;  %v2750_v33 = vld [vmem:[%s2862_s15] ss:$0 sm:$0xff] }
 0x6c6   :  { %2000 = vmatmul.msk.bf16.vlgmr.msra.gmra.mxu1 %vm142_vm0, %v2622_v35 }
 0x6d6   :  { %2004 = vmatmul.msk.bf16.vlgmr.msrb.gmra.mxu1 %vm142_vm0, %v2622_v35 }
 0x724   :  { %v1347_v62 = vpop.f32.mrf.mxu0 }
 0x725   :  { %v1390_v63 = vmul.f32 0.35355338, %v1347_v62 }
 0x727   :  { %v1396_v2 = vsel %vm492_vm5, %v1390_v63, -inf }
 0x728   :  { %1397 = vmax.xlane.f32.xlu1 %v1396_v2  ;;  %v1328_v48 = vpop.f32.mrf.mxu3 }
 0x729   :  { %v1389_v55 = vmul.f32 0.35355338, %v1328_v48 }
 0x72b   :  { %v1393_v17 = vsel %vm492_vm5, %v1389_v55, -inf }
 0x72c   :  { %v1349_v5 = vpop.f32.mrf.mxu0  ;;  %1394 = vmax.xlane.f32.xlu2 %v1393_v17 }
 0x730   :  { %v1330_v56 = vpop.f32.mrf.mxu3 }
 0x733   :  { %v1113_v15 = vpop.f32.mrf.mxu1 }
 0x734   :  { %v1114_v35 = vadd.f32 %v2750_v33, %v1113_v15 }
 0x736   :  { %v1117_v7 = vadd.f32 %v1114_v35, %v2572_v10  ;;  %v1307_v10 = vpack.c.bf16 %v2699_v14, %v2699_v14 }
 0x738   :  { %1118 = vst.msk [vmem:[%s2863_s16] sm:$0xff] %vm142_vm0, %v1117_v7  ;;  %v1385_v16 = vpop.f32.mrf.mxu2 }
 0x739   :  { %v1392_v21 = vmul.f32 0.35355338, %v1385_v16 }
 0x73b   :  { %v1115_v54 = vpop.f32.mrf.mxu1  ;;  %v1402_v3 = vsel %vm492_vm5, %v1392_v21, -inf }
 0x73c   :  { %1403 = vmax.xlane.f32.xlu0 %v1402_v3 }
 0x740   :  { %v1387_v4 = vpop.f32.mrf.mxu2 }
 0x743   :  { %v1236_v12 = vpop.f32.mrf.mxu1 }
 0x744   :  { %v1311_v23 = vpack.c.bf16 %v1236_v12, %v1236_v12 }
 0x746   :  { %v1355_v42 = vsel %vm492_vm5, %v1311_v23, 0 }
 0x747   :  { %1364 = vmatpush.bf16.xpose.msra.mxu1 %v1355_v42 }
 0x74b   :  { %v1238_v29 = vpop.f32.mrf.mxu1 }
 0x74e   :  { %2008 = vmatmul.msk.bf16.vlgmr.msra.gmra.mxu1 %vm492_vm5, %v1307_v10 }
 0x753   :  { %v1288_v0 = vpop.f32.mrf.mxu1 }
 0x754   :  { %v1575_v41 = vpack.c.bf16 %v1288_v0, %v1288_v0 }
 0x756   :  { %v1619_v11 = vsel %vm784_vm6, %v1575_v41, 0 }
 0x757   :  { %1628 = vmatpush.bf16.msrb.mxu1 %v1619_v11 }
 0x75b   :  { %1699 = vmatpush.bf16.msra.mxu1 %v2539_v34  ;;  %v1290_v24 = vpop.f32.mrf.mxu1 }
 0x79b   :  { %v1398_v37 = vpop.xlane.xlu1 %1397 }
 0x79c   :  { %v1406_v18 = vsub.f32 %v1390_v63, %v1398_v37 }
 0x79e   :  { %v1411_v34 = vmul.f32 1.442695, %v1406_v18 }
 0x79f   :  { %v1395_v47 = vpop.xlane.xlu2 %1394 }
 0x7a0   :  { %v1405_v32 = vsub.f32 %v1389_v55, %v1395_v47 }
 0x7a2   :  { %v1409_v49 = vmul.f32 1.442695, %v1405_v32 }
 0x7a4   :  { %2107 = vpow2.f32 %v1409_v49 }
 0x7aa   :  { %v2108_v52 = vpop.eup %2107 }
 0x7ab   :  { %v1417_v53 = vsel %vm492_vm5, %v2108_v52, 0.0 }
 0x7ac   :  { %1418 = vadd.xlane.f32.xlu0 %v1417_v53 }
 0x7af   :  { %v1404_v45 = vpop.xlane.xlu0 %1403 }
 0x7b0   :  { %v1408_v14 = vsub.f32 %v1392_v21, %v1404_v45 }
 0x7b2   :  { %v1415_v60 = vmul.f32 1.442695, %v1408_v14 }
 0x7b4   :  { %2109 = vpow2.f32 %v1415_v60 }
 0x7b5   :  { %2111 = vpow2.f32 %v1411_v34 }
 0x7ba   :  { %v2110_v30 = vpop.eup %2109 }
 0x7bb   :  { %v1426_v39 = vsel %vm492_vm5, %v2110_v30, 0.0  ;;  %v2768_v48 = vpop.eup %2111 }
 0x7bc   :  { %1427 = vadd.xlane.f32.xlu1 %v1426_v39  ;;  %v1420_v17 = vsel %vm492_vm5, %v2768_v48, 0.0 }
 0x7cb   :  { %v1366_v50 = vpop.f32.mrf.mxu1 }
 0x7cc   :  { %v1391_v62 = vmul.f32 0.35355338, %v1366_v50 }
 0x7ce   :  { %v1399_v2 = vsel %vm492_vm5, %v1391_v62, -inf }
 0x7cf   :  { %1400 = vmax.xlane.f32.xlu2 %v1399_v2 }
 0x7d3   :  { %v1368_v55 = vpop.f32.mrf.mxu1 }
 0x7d7   :  { %1421 = vadd.xlane.f32.xlu2 %v1420_v17 }
 0x81f   :  { %v1419_v5 = vpop.xlane.xlu0 %1418 }
 0x820   :  { %2113 = vrcp.f32 %v1419_v5  ;;  %v1440_v7 = vand.u32 2147483648, %v1419_v5  ;;  %v1438_v16 = vand.u32 2147483647, %v1419_v5  ;;  %vm1434_vm11 = vweird.f32 %v1419_v5 }
 0x822   :  { %v1441_v54 = vor.u32 1.1754944e-38, %v1440_v7  ;;  %vm1439_vm13 = vcmp.eq.f32.partialorder %v1438_v16, 8.507059e+37 }
 0x826   :  { %v2114_v56 = vpop.eup %2113 }
 0x827   :  { %v1430_v15 = vmul.f32 %v2114_v56, %v1419_v5  ;;  %vm1435_vm6 = vweird.f32 %v2114_v56 }
 0x828   :  { %vm1436_vm12 = vmor %vm1434_vm11, %vm1435_vm6 }
 0x829   :  { %v1431_v35 = vsub.f32 1.0, %v1430_v15 }
 0x82b   :  { %v1432_v63 = vmul.f32 %v2114_v56, %v1431_v35 }
 0x82d   :  { %v1433_v21 = vadd.f32 %v2114_v56, %v1432_v63 }
 0x82f   :  { %v1428_v3 = vpop.xlane.xlu1 %1427  ;;  %v1437_v4 = vsel %vm1436_vm12, %v2114_v56, %v1433_v21 }
 0x830   :  { %2115 = vrcp.f32 %v1428_v3  ;;  %v1442_v12 = vsel %vm1439_vm13, %v1441_v54, %v1437_v4  ;;  %v1485_v24 = vand.u32 2147483648, %v1428_v3  ;;  %v1483_v32 = vand.u32 2147483647, %v1428_v3 }
 0x831   :  { %v1443_v23 = vmul.f32 %v2108_v52, %v1442_v12  ;;  %vm1479_vm15 = vweird.f32 %v1428_v3 }
 0x832   :  { %v1486_v52 = vor.u32 1.1754944e-38, %v1485_v24  ;;  %vm1484_vm2 = vcmp.eq.f32.partialorder %v1483_v32, 8.507059e+37 }
 0x833   :  { %v1489_v42 = vmul.f32 %v1443_v23, %v2468_v6 }
 0x835   :  { %v2774_v10 = vadd.f32 %v1489_v42, %v2473_v9 }
 0x836   :  { %v2116_v29 = vpop.eup %2115 }
 0x837   :  { %v1475_v0 = vmul.f32 %v2116_v29, %v1428_v3  ;;  %v1497_v41 = vsel %vm492_vm5, %v2774_v10, 0.0  ;;  %vm1480_vm14 = vweird.f32 %v2116_v29 }
 0x838   :  { %1498 = vadd.xlane.f32.xlu1 %v1497_v41  ;;  %vm1481_vm1 = vmor %vm1479_vm15, %vm1480_vm14 }
 0x839   :  { %v1476_v11 = vsub.f32 1.0, %v1475_v0 }
 0x83b   :  { %v1477_v47 = vmul.f32 %v2116_v29, %v1476_v11 }
 0x83d   :  { %v1478_v49 = vadd.f32 %v2116_v29, %v1477_v47 }
 0x83f   :  { %v1482_v6 = vsel %vm1481_vm1, %v2116_v29, %v1478_v49 }
 0x840   :  { %v1487_v53 = vsel %vm1484_vm2, %v1486_v52, %v1482_v6 }
 0x841   :  { %v1488_v45 = vmul.f32 %v2110_v30, %v1487_v53 }
 0x842   :  { %v1401_v9 = vpop.xlane.xlu2 %1400 }
 0x843   :  { %v1407_v14 = vsub.f32 %v1391_v62, %v1401_v9  ;;  %v1492_v60 = vmul.f32 %v1488_v45, %v2454_v59 }
 0x845   :  { %v1413_v39 = vmul.f32 1.442695, %v1407_v14  ;;  %v2780_v37 = vadd.f32 %v1492_v60, %v2478_v1 }
 0x847   :  { %2117 = vpow2.f32 %v1413_v39  ;;  %v1506_v18 = vsel %vm492_vm5, %v2780_v37, 0.0 }
 0x848   :  { %1507 = vadd.xlane.f32.xlu2 %v1506_v18 }
 0x84a   :  { %v1422_v34 = vpop.xlane.xlu2 %1421 }
 0x84b   :  { %2119 = vrcp.f32 %v1422_v34  ;;  %v1455_v55 = vand.u32 2147483648, %v1422_v34  ;;  %v1453_v1 = vand.u32 2147483647, %v1422_v34  ;;  %vm1449_vm4 = vweird.f32 %v1422_v34 }
 0x84d   :  { %v2784_v50 = vpop.eup %2117  ;;  %v1456_v56 = vor.u32 1.1754944e-38, %v1455_v55  ;;  %vm1454_vm8 = vcmp.eq.f32.partialorder %v1453_v1, 8.507059e+37 }
 0x84e   :  { %v1423_v30 = vsel %vm492_vm5, %v2784_v50, 0.0 }
 0x84f   :  { %1424 = vadd.xlane.f32.xlu0 %v1423_v30 }
 0x851   :  { %v2120_v62 = vpop.eup %2119 }
 0x852   :  { %v1445_v2 = vmul.f32 %v2120_v62, %v1422_v34  ;;  %vm1450_vm3 = vweird.f32 %v2120_v62 }
 0x853   :  { %vm1451_vm7 = vmor %vm1449_vm4, %vm1450_vm3 }
 0x854   :  { %v1446_v59 = vsub.f32 1.0, %v1445_v2 }
 0x856   :  { %v1447_v17 = vmul.f32 %v2120_v62, %v1446_v59 }
 0x858   :  { %v1448_v5 = vadd.f32 %v2120_v62, %v1447_v17 }
 0x85a   :  { %v1452_v15 = vsel %vm1451_vm7, %v2120_v62, %v1448_v5 }
 0x85b   :  { %v1457_v35 = vsel %vm1454_vm8, %v1456_v56, %v1452_v15 }
 0x85c   :  { %v1458_v63 = vmul.f32 %v2768_v48, %v1457_v35 }
 0x85e   :  { %v1490_v7 = vmul.f32 %v1458_v63, %v2497_v36 }
 0x860   :  { %v2791_v16 = vadd.f32 %v1490_v7, %v2507_v40 }
 0x862   :  { %v1500_v21 = vsel %vm492_vm5, %v2791_v16, 0.0 }
 0x863   :  { %1501 = vadd.xlane.f32.xlu0 %v1500_v21 }
 0x8ab   :  { %v1499_v54 = vpop.xlane.xlu1 %1498 }
 0x8ac   :  { %2121 = vrcp.f32 %v1499_v54  ;;  %v1520_v23 = vand.u32 2147483648, %v1499_v54  ;;  %v1518_v29 = vand.u32 2147483647, %v1499_v54  ;;  %vm1514_vm10 = vweird.f32 %v1499_v54 }
 0x8ae   :  { %v1521_v36 = vor.u32 1.1754944e-38, %v1520_v23  ;;  %vm1519_vm11 = vcmp.eq.f32.partialorder %v1518_v29, 8.507059e+37 }
 0x8b2   :  { %v2122_v3 = vpop.eup %2121 }
 0x8b3   :  { %v1510_v4 = vmul.f32 %v2122_v3, %v1499_v54  ;;  %vm1515_vm9 = vweird.f32 %v2122_v3 }
 0x8b4   :  { %vm1516_vm6 = vmor %vm1514_vm10, %vm1515_vm9 }
 0x8b5   :  { %v1511_v12 = vsub.f32 1.0, %v1510_v4 }
 0x8b7   :  { %v1512_v42 = vmul.f32 %v2122_v3, %v1511_v12 }
 0x8b9   :  { %v1513_v0 = vadd.f32 %v2122_v3, %v1512_v42 }
 0x8bb   :  { %v1508_v48 = vpop.xlane.xlu2 %1507  ;;  %v1517_v40 = vsel %vm1516_vm6, %v2122_v3, %v1513_v0 }
 0x8bc   :  { %2123 = vrcp.f32 %v1508_v48  ;;  %v1522_v41 = vsel %vm1519_vm11, %v1521_v36, %v1517_v40  ;;  %v1565_v6 = vand.u32 2147483648, %v1508_v48  ;;  %v1563_v45 = vand.u32 2147483647, %v1508_v48 }
 0x8bd   :  { %v1523_v11 = vmul.f32 %v1522_v41, %v2774_v10  ;;  %vm1559_vm13 = vweird.f32 %v1508_v48 }
 0x8be   :  { %v1566_v10 = vor.u32 1.1754944e-38, %v1565_v6  ;;  %vm1564_vm15 = vcmp.eq.f32.partialorder %v1563_v45, 8.507059e+37 }
 0x8bf   :  { %v1569_v24 = vpack.c.bf16 %v1523_v11, %v1523_v11 }
 0x8c1   :  { %2010 = vmatmul.msk.bf16.vlgmr.msra.gmra.mxu3 %vm492_vm5, %v1569_v24 }
 0x8c2   :  { %v2124_v47 = vpop.eup %2123  ;;  %v1425_v32 = vpop.xlane.xlu0 %1424  ;;  %1764 = vmatpush.bf16.msra.mxu3 %v2592_v57 }
 0x8c3   :  { %v1555_v49 = vmul.f32 %v2124_v47, %v1508_v48  ;;  %2125 = vrcp.f32 %v1425_v32  ;;  %vm1560_vm12 = vweird.f32 %v2124_v47  ;;  %v1470_v57 = vand.u32 2147483648, %v1425_v32 }
 0x8c4   :  { %vm1561_vm14 = vmor %vm1559_vm13, %vm1560_vm12  ;;  %v1468_v2 = vand.u32 2147483647, %v1425_v32  ;;  %vm1464_vm2 = vweird.f32 %v1425_v32 }
 0x8c5   :  { %v1556_v52 = vsub.f32 1.0, %v1555_v49 }
 0x8c6   :  { %1765 = vmatpush.bf16.msra.mxu3 %v2598_v58  ;;  %v1471_v58 = vor.u32 1.1754944e-38, %v1470_v57  ;;  %vm1469_vm4 = vcmp.eq.f32.partialorder %v1468_v2, 8.507059e+37 }
 0x8c7   :  { %v1557_v53 = vmul.f32 %v2124_v47, %v1556_v52 }
 0x8c9   :  { %v2126_v9 = vpop.eup %2125  ;;  %v1558_v14 = vadd.f32 %v2124_v47, %v1557_v53 }
 0x8ca   :  { %v1460_v60 = vmul.f32 %v2126_v9, %v1425_v32  ;;  %vm1465_vm1 = vweird.f32 %v2126_v9 }
 0x8cb   :  { %v1562_v39 = vsel %vm1561_vm14, %v2124_v47, %v1558_v14  ;;  %vm1466_vm3 = vmor %vm1464_vm2, %vm1465_vm1 }
 0x8cc   :  { %v1567_v18 = vsel %vm1564_vm15, %v1566_v10, %v1562_v39  ;;  %v1461_v34 = vsub.f32 1.0, %v1460_v60 }
 0x8cd   :  { %v1568_v30 = vmul.f32 %v1567_v18, %v2780_v37  ;;  %v2141_v37 = vld [vmem:[%s2854_s6 + $0x10] sm:$0xff] }
 0x8ce   :  { %v1462_v62 = vmul.f32 %v2126_v9, %v1461_v34 }
 0x8cf   :  { %v1572_v59 = vpack.c.bf16 %v1568_v30, %v1568_v30 }
 0x8d0   :  { %v1463_v55 = vadd.f32 %v2126_v9, %v1462_v62 }
 0x8d1   :  { %2013 = vmatmul.msk.bf16.vlgmr.msrb.gmra.mxu2 %vm492_vm5, %v1572_v59 }
 0x8d2   :  { %v1467_v17 = vsel %vm1466_vm3, %v2126_v9, %v1463_v55 }
 0x8d3   :  { %v1472_v1 = vsel %vm1469_vm4, %v1471_v58, %v1467_v17 }
 0x8d4   :  { %v1473_v5 = vmul.f32 %v2784_v50, %v1472_v1 }
 0x8d6   :  { %v1502_v56 = vpop.xlane.xlu0 %1501  ;;  %v1491_v15 = vmul.f32 %v1473_v5, %v2487_v26 }
 0x8d7   :  { %2127 = vrcp.f32 %v1502_v56  ;;  %v1535_v3 = vand.u32 2147483648, %v1502_v56  ;;  %v1533_v12 = vand.u32 2147483647, %v1502_v56  ;;  %vm1529_vm8 = vweird.f32 %v1502_v56 }
 0x8d8   :  { %v1495_v35 = vadd.f32 %v2141_v37, %v1491_v15 }
 0x8d9   :  { %v1536_v26 = vor.u32 1.1754944e-38, %v1535_v3  ;;  %vm1534_vm10 = vcmp.eq.f32.partialorder %v1533_v12, 8.507059e+37 }
 0x8da   :  { %v1503_v63 = vsel %vm492_vm5, %v1495_v35, 0.0 }
 0x8db   :  { %1504 = vadd.xlane.f32.xlu1 %v1503_v63 }
 0x8dd   :  { %v2128_v7 = vpop.eup %2127 }
 0x8de   :  { %v1525_v21 = vmul.f32 %v2128_v7, %v1502_v56  ;;  %vm1530_vm7 = vweird.f32 %v2128_v7 }
 0x8df   :  { %vm1531_vm9 = vmor %vm1529_vm8, %vm1530_vm7 }
 0x8e0   :  { %v1526_v54 = vsub.f32 1.0, %v1525_v21 }
 0x8e2   :  { %v1527_v4 = vmul.f32 %v2128_v7, %v1526_v54 }
 0x8e4   :  { %v1528_v50 = vadd.f32 %v2128_v7, %v1527_v4 }
 0x8e6   :  { %v1532_v23 = vsel %vm1531_vm9, %v2128_v7, %v1528_v50 }
 0x8e7   :  { %v1537_v42 = vsel %vm1534_vm10, %v1536_v26, %v1532_v23 }
 0x8e8   :  { %v1538_v29 = vmul.f32 %v1537_v42, %v2791_v16 }
 0x8ea   :  { %v1570_v0 = vpack.c.bf16 %v1538_v29, %v1538_v29 }
 0x8ec   :  { %2011 = vmatmul.msk.bf16.vlgmr.msra.gmra.mxu0 %vm492_vm5, %v1570_v0 }
 0x8ed   :  { %1812 = vmatpush.bf16.msra.mxu0 %v2655_v25 }
 0x8f1   :  { %1813 = vmatpush.bf16.msra.mxu0 %v2666_v31 }
 0x8f5   :  { %1814 = vmatpush.bf16.msra.mxu0 %v2678_v46 }
 0x8f9   :  { %1815 = vmatpush.bf16.msra.mxu0 %v2685_v51 }
 0x8fd   :  { %1816 = vmatpush.bf16.msra.mxu0 %v2691_v38 }
 0x901   :  { %1817 = vmatpush.bf16.msra.mxu0 %v2697_v44 }
 0x905   :  { %1818 = vmatpush.bf16.msra.mxu0 %v2705_v28 }
 0x909   :  { %1819 = vmatpush.bf16.msra.mxu0 %v2711_v61 }
 0x944   :  { %v1592_v16 = vpop.f32.mrf.mxu3 }
 0x945   :  { %v1653_v36 = vpack.c.bf16 %v1592_v16, %v1592_v16 }
 0x947   :  { %2014 = vmatmul.msk.bf16.vlgmr.msrb.gmra.mxu3 %vm492_vm5, %v1653_v36 }
 0x94c   :  { %v1594_v48 = vpop.f32.mrf.mxu3 }
 0x94e   :  { %v1505_v25 = vpop.xlane.xlu1 %1504 }
 0x94f   :  { %2129 = vrcp.f32 %v1505_v25  ;;  %v1550_v38 = vand.u32 2147483648, %v1505_v25  ;;  %v1548_v28 = vand.u32 2147483647, %v1505_v25  ;;  %vm1544_vm11 = vweird.f32 %v1505_v25 }
 0x951   :  { %v1551_v24 = vor.u32 1.1754944e-38, %v1550_v38  ;;  %vm1549_vm13 = vcmp.eq.f32.partialorder %v1548_v28, 8.507059e+37 }
 0x954   :  { %v1649_v31 = vpop.f32.mrf.mxu2 }
 0x955   :  { %v2130_v40 = vpop.eup %2129  ;;  %v1656_v46 = vpack.c.bf16 %v1649_v31, %v1649_v31 }
 0x956   :  { %v1540_v41 = vmul.f32 %v2130_v40, %v1505_v25  ;;  %vm1545_vm6 = vweird.f32 %v2130_v40 }
 0x957   :  { %2017 = vmatmul.msk.bf16.vlgmr.msra.gmra.mxu2 %vm492_vm5, %v1656_v46  ;;  %vm1546_vm12 = vmor %vm1544_vm11, %vm1545_vm6 }
 0x958   :  { %v1541_v51 = vsub.f32 1.0, %v1540_v41 }
 0x95a   :  { %v1542_v44 = vmul.f32 %v2130_v40, %v1541_v51 }
 0x95c   :  { %v1543_v11 = vadd.f32 %v2130_v40, %v1542_v44  ;;  %v1651_v61 = vpop.f32.mrf.mxu2 }
 0x95e   :  { %v1547_v47 = vsel %vm1546_vm12, %v2130_v40, %v1543_v11 }
 0x95f   :  { %v1552_v32 = vsel %vm1549_vm13, %v1551_v24, %v1547_v47 }
 0x960   :  { %v1553_v49 = vmul.f32 %v1552_v32, %v1495_v35 }
 0x962   :  { %v1571_v52 = vpack.c.bf16 %v1553_v49, %v1553_v49 }
 0x964   :  { %2012 = vmatmul.msk.bf16.vlgmr.msrb.gmra.mxu1 %vm492_vm5, %v1571_v52 }
 0x969   :  { %v1611_v6 = vpop.f32.mrf.mxu0 }
 0x96a   :  { %v1654_v53 = vpack.c.bf16 %v1611_v6, %v1611_v6 }
 0x96c   :  { %2015 = vmatmul.msk.bf16.vlgmr.msrb.gmra.mxu0 %vm492_vm5, %v1654_v53 }
 0x971   :  { %v1613_v45 = vpop.f32.mrf.mxu0 }
 0x9ca   :  { %v1669_v9 = vpop.f32.mrf.mxu3 }
 0x9cb   :  { %v1721_v57 = vsel %vm142_vm0, %v1669_v9, 0.0 }
 0x9d2   :  { %v1671_v14 = vpop.f32.mrf.mxu3 }
 0x9da   :  { %v1717_v10 = vpop.f32.mrf.mxu2 }
 0x9db   :  { %v1726_v1 = vsel %vm142_vm0, %v1717_v10, 0.0 }
 0x9e1   :  { %v1630_v60 = vpop.f32.mrf.mxu1 }
 0x9e2   :  { %v1655_v39 = vpack.c.bf16 %v1630_v60, %v1630_v60  ;;  %v1719_v18 = vpop.f32.mrf.mxu2 }
 0x9e4   :  { %2016 = vmatmul.msk.bf16.vlgmr.msra.gmra.mxu1 %vm492_vm5, %v1655_v39 }
 0x9e9   :  { %v1632_v34 = vpop.f32.mrf.mxu1  ;;  %v1685_v30 = vpop.f32.mrf.mxu0 }
 0x9ea   :  { %v1722_v62 = vsel %vm142_vm0, %v1685_v30, 0.0 }
 0x9eb   :  { %v1723_v2 = vadd.f32 %v1722_v62, %v1721_v57 }
 0x9f1   :  { %v1687_v59 = vpop.f32.mrf.mxu0 }
 0xa61   :  { %v1701_v55 = vpop.f32.mrf.mxu1 }
 0xa62   :  { %v1724_v58 = vsel %vm142_vm0, %v1701_v55, 0.0 }
 0xa63   :  { %v1725_v17 = vadd.f32 %v1724_v58, %v1723_v2 }
 0xa65   :  { %v1727_v5 = vadd.f32 %v1726_v1, %v1725_v17 }
 0xa67   :  { %v1728_v56 = vadd.f32 %v2579_v22, %v1727_v5 }
 0xa69   :  { %v1703_v15 = vpop.f32.mrf.mxu1  ;;  %v2828_v37 = vadd.f32 %v2568_v20, %v1728_v56 }
 0xa6b   :  { %v1730_v35 = vsel %vm142_vm0, %v2828_v37, 0.0 }
 0xa6c   :  { %1731 = vadd.xlane.f32.xlu2 %v1730_v35 }
 0xadf   :  { %v1732_v63 = vpop.xlane.xlu2 %1731 }
 0xae0   :  { %v1733_v7 = vmul.f32 %v1732_v63, %v2237_v8 }
 0xae2   :  { %v1734_v21 = vsub.f32 %v2828_v37, %v1733_v7 }
 0xae4   :  { %v1735_v54 = vmul.f32 %v1734_v21, %v1734_v21 }
 0xae6   :  { %v1736_v3 = vsel %vm142_vm0, %v1735_v54, 0.0 }
 0xae7   :  { %1737 = vadd.xlane.f32.xlu0 %v1736_v3 }
 0xb5a   :  { %v1738_v4 = vpop.xlane.xlu0 %1737 }
 0xb5b   :  { %v1739_v22 = vmul.f32 %v1738_v4, %v2237_v8 }
 0xb5d   :  { %v1740_v12 = vadd.f32 1e-06, %v1739_v22 }
 0xb5f   :  { %2131 = vrsqrt.f32 %v1740_v12  ;;  %vm1747_vm14 = vweird.f32 %v1740_v12 }
 0xb65   :  { %v2132_v20 = vpop.eup %2131 }
 0xb66   :  { %v1742_v50 = vmul.f32 %v2132_v20, %v1740_v12  ;;  %vm1748_vm5 = vweird.f32 %v2132_v20 }
 0xb67   :  { %vm1749_vm15 = vmor %vm1747_vm14, %vm1748_vm5 }
 0xb68   :  { %v1743_v26 = vmul.f32 %v2132_v20, %v1742_v50 }
 0xb6a   :  { %v1744_v23 = vmul.f32 0.5, %v1743_v26 }
 0xb6c   :  { %v1745_v42 = vsub.f32 1.5, %v1744_v23 }
 0xb6e   :  { %v1746_v29 = vmul.f32 %v2132_v20, %v1745_v42 }
 0xb70   :  { %v1750_v0 = vsel %vm1749_vm15, %v2132_v20, %v1746_v29 }
 0xb71   :  { %v1751_v16 = vmul.f32 %v1750_v0, %v1734_v21 }
 0xb73   :  { %v1752_v36 = vmul.f32 %v2608_v19, %v1751_v16 }
 0xb75   :  { %v1753_v48 = vadd.f32 %v2613_v13, %v1752_v36 }
 0xb77   :  { %v1754_v25 = vpack.c.bf16 %v1753_v48, %v1753_v48 }
 0xb79   :  { %2018 = vmatmul.msk.bf16.vlgmr.msra.gmra.mxu3 %vm142_vm0, %v1754_v25 }
 0xbfc   :  { %v1767_v8 = vpop.f32.mrf.mxu3 }
 0xbfd   :  { %v1768_v31 = vadd.f32 %v2660_v27, %v1767_v8 }
 0xbff   :  { %v1772_v40 = vmul.f32 0.70710677, %v1768_v31  ;;  %v1771_v55 = vmul.f32 0.5, %v1768_v31 }
 0xc01   :  { %v1775_v46 = vand.u32 2147483647, %v1772_v40  ;;  %vm1773_vm7 = vcmp.lt.f32.partialorder %v1772_v40, 0.0 }
 0xc02   :  { %v1774_v2 = vsel %vm1773_vm7, -1.0, %v2144_v43 }
 0xc03   :  { %v1776_v41 = vmul.f32 0.3275911, %v1775_v46  ;;  %v1802_v49 = vsub.f32 0.0, %v1775_v46 }
 0xc04   :  { %v1769_v51 = vpop.f32.mrf.mxu3 }
 0xc05   :  { %v1777_v38 = vadd.f32 1.0, %v1776_v41  ;;  %v1803_v53 = vmul.f32 %v1802_v49, %v1775_v46 }
 0xc07   :  { %2133 = vrcp.f32 %v1777_v38  ;;  %v1789_v61 = vand.u32 2147483648, %v1777_v38  ;;  %v1787_v19 = vand.u32 2147483647, %v1777_v38  ;;  %vm1783_vm2 = vweird.f32 %v1777_v38 }
 0xc08   :  { %v1804_v14 = vmul.f32 1.442695, %v1803_v53 }
 0xc09   :  { %v1790_v47 = vor.u32 1.1754944e-38, %v1789_v61  ;;  %vm1788_vm4 = vcmp.eq.f32.partialorder %v1787_v19, 8.507059e+37 }
 0xc0a   :  { %2135 = vpow2.f32 %v1804_v14 }
 0xc0d   :  { %v2134_v44 = vpop.eup %2133 }
 0xc0e   :  { %v1779_v28 = vmul.f32 %v2134_v44, %v1777_v38  ;;  %vm1784_vm1 = vweird.f32 %v2134_v44 }
 0xc0f   :  { %vm1785_vm3 = vmor %vm1783_vm2, %vm1784_vm1 }
 0xc10   :  { %v1780_v11 = vsub.f32 1.0, %v1779_v28  ;;  %v2136_v30 = vpop.eup %2135 }
 0xc12   :  { %v1781_v24 = vmul.f32 %v2134_v44, %v1780_v11 }
 0xc14   :  { %v1782_v13 = vadd.f32 %v2134_v44, %v1781_v24 }
 0xc16   :  { %v1786_v32 = vsel %vm1785_vm3, %v2134_v44, %v1782_v13 }
 0xc17   :  { %v1791_v27 = vsel %vm1788_vm4, %v1790_v47, %v1786_v32 }
 0xc18   :  { %v1793_v52 = vmul.f32 1.0614054, %v1791_v27 }
 0xc1a   :  { %v1794_v6 = vadd.f32 -1.4531521, %v1793_v52 }
 0xc1c   :  { %v1795_v45 = vmul.f32 %v1794_v6, %v1791_v27 }
 0xc1e   :  { %v1796_v9 = vadd.f32 1.4214138, %v1795_v45 }
 0xc20   :  { %v1797_v10 = vmul.f32 %v1796_v9, %v1791_v27 }
 0xc22   :  { %v1798_v60 = vadd.f32 -0.28449672, %v1797_v10 }
 0xc24   :  { %v1799_v39 = vmul.f32 %v1798_v60, %v1791_v27 }
 0xc26   :  { %v1800_v18 = vadd.f32 0.2548296, %v1799_v39 }
 0xc28   :  { %v1801_v34 = vmul.f32 %v1800_v18, %v1791_v27 }
 0xc2a   :  { %v1806_v57 = vmul.f32 %v2136_v30, %v1801_v34 }
 0xc2c   :  { %v1807_v62 = vsub.f32 1.0, %v1806_v57 }
 0xc2e   :  { %v1808_v59 = vmul.f32 %v1807_v62, %v1774_v2 }
 0xc30   :  { %v1809_v58 = vadd.f32 1.0, %v1808_v59 }
 0xc32   :  { %v1810_v17 = vmul.f32 %v1809_v58, %v1771_v55 }
 0xc34   :  { %v1811_v1 = vpack.c.bf16 %v1810_v17, %v1810_v17 }
 0xc36   :  { %1820 = vmatmul.bf16.vlgmr.msra.gmra.mxu0 %v1811_v1 }
 0xcb3   :  { %v1821_v5 = vpop.f32.mrf.mxu0 }
 0xcb4   :  { %v1822_v56 = vadd.f32 %v2750_v33, %v1821_v5 }
 0xcb6   :  { %v1825_v15 = vadd.f32 %v1822_v56, %v2828_v37 }
 0xcb8   :  { %2019 = vst.msk [vmem:[%s2863_s16 + $0x8] sm:$0xff] %vm142_vm0, %v1825_v15 }
 0xcbb   :  { %v1823_v35 = vpop.f32.mrf.mxu0 }

// kernel: convit1d_forward.9
= control target key start
LH: loop header
LB: loop body
LE: loop exit
PB: predicated region body
PF: predicated region fallthrough
CT: control target
= control target key end

     0   :  { %s3783_s0 = inlined_call_operand.vmem [shape: f32[2,9,32], index: 0, kind: input, shape index: {}]   ;;  %s3784_s1 = inlined_call_operand.vmem [shape: f32[1,32], index: 1, kind: input, shape index: {}]   ;;  %s3785_s2 = inlined_call_operand.vmem [shape: f32[1,32], index: 2, kind: input, shape index: {}]   ;;  %s3786_s3 = inlined_call_operand.vmem [shape: bf16[4,32,8], index: 3, kind: input, shape index: {}]   ;;  %s3787_s4 = inlined_call_operand.vmem [shape: bf16[4,32,8], index: 4, kind: input, shape index: {}]   ;;  %s3788_s5 = inlined_call_operand.vmem [shape: bf16[4,32,8], index: 5, kind: input, shape index: {}]   ;;  %s3789_s6 = inlined_call_operand.vmem [shape: bf16[4,8,32], index: 6, kind: input, shape index: {}]   ;;  %s3790_s7 = inlined_call_operand.vmem [shape: f32[1,32], index: 7, kind: input, shape index: {}]   ;;  %s3791_s8 = inlined_call_operand.vmem [shape: f32[1,32], index: 8, kind: input, shape index: {}]   ;;  %s3792_s9 = inlined_call_operand.vmem [shape: f32[1,32], index: 9, kind: input, shape index: {}]   ;;  %s3793_s10 = inlined_call_operand.vmem [shape: bf16[32,128], index: 10, kind: input, shape index: {}]   ;;  %s3794_s11 = inlined_call_operand.vmem [shape: f32[1,128], index: 11, kind: input, shape index: {}]   ;;  %s3795_s12 = inlined_call_operand.vmem [shape: bf16[128,32], index: 12, kind: input, shape index: {}]   ;;  %s3796_s13 = inlined_call_operand.vmem [shape: f32[1,32], index: 13, kind: input, shape index: {}]   ;;  %s3797_s14 = inlined_call_operand.vmem [shape: f32[1,32], index: 14, kind: input, shape index: {}]   ;;  %s3798_s15 = inlined_call_operand.vmem [shape: f32[1,32], index: 15, kind: input, shape index: {}]   ;;  %s3799_s16 = inlined_call_operand.vmem [shape: bf16[32,128], index: 16, kind: input, shape index: {}]   ;;  %s3800_s17 = inlined_call_operand.vmem [shape: f32[1,128], index: 17, kind: input, shape index: {}]   ;;  %s3801_s18 = inlined_call_operand.hbm [shape: f32[2,1,128], index: 18, kind: output, shape index: {}]  }
   0x1   :  { %3805 = sst [smem:[#allocation5_spill]] %s3783_s0 }
   0x2   :  { %3806 = sst [smem:[#allocation6_spill]] %s3784_s1 }
   0x3   :  { %3807 = sst [smem:[#allocation7_spill]] %s3785_s2 }
   0x4   :  { %s3808_s29 = sld [smem:[#allocation5_spill]]  ;;  %vm149_vm0 = vcmask 261120  }
   0xa   :  { %v147_v0 = vld [vmem:[%s3808_s29] sm:$0xff] }
   0xb   :  { %v150_v1 = vsel %vm149_vm0, %v147_v0, 0.0 }
   0xc   :  { %151 = vadd.xlane.f32.xlu0 %v150_v1 }
   0xd   :  { %23 = vsyncpa [#allocation3], 0  ;;  %v148_v2 = vld [vmem:[%s3808_s29 + $0x8] sm:$0x1]  ;;  %vm153_vm1 = vcmask 253952   ;;  %v2885_v4 = vmov 32.0  }
   0xe   :  { %v154_v3 = vsel %vm153_vm1, %v148_v2, 0.0  ;;  %2713 = vrcp.f32 %v2885_v4  ;;  %v3012_v23 = vld [vmem:[%s3786_s3 + $0x8] sm:$0xff]  ;;  %v2667_v24 = vld [vmem:[%s3786_s3 + $0x18] sm:$0xff]  ;;  %v3027_v28 = vld [vmem:[%s3786_s3] sm:$0xff]  ;;  %s3809_s23 = sld [smem:[#allocation6_spill]]  ;;  %vm560_vm9 = vcmask 64512  }
   0xf   :  { %v2669_v25 = vld [vmem:[%s3786_s3 + $0x28] sm:$0xff]  ;;  %v2675_v27 = vld [vmem:[%s3787_s4 + $0x18] sm:$0xff]  ;;  %240 = vmatpush.bf16.msra.mxu0 %v3012_v23  ;;  %266 = vmatpush.bf16.msra.mxu3 %v2667_v24  ;;  %v2666_v29 = vld [vmem:[%s3786_s3 + $0x10] sm:$0xff]  ;;  %s3810_s26 = sld [smem:[#allocation7_spill]]  ;;  %vm902_vm10 = vcmask 1043456   ;;  %vm903_vm11 = vcmask 1044480  }
  0x10   :  { %292 = vmatpush.bf16.msra.mxu2 %v2669_v25  ;;  %370 = vmatpush.bf16.msra.mxu1 %v2675_v27  ;;  %v2668_v30 = vld [vmem:[%s3786_s3 + $0x20] sm:$0xff]  ;;  %v2674_v31 = vld [vmem:[%s3787_s4 + $0x10] sm:$0xff]  ;;  %v3043_v37 = vld [vmem:[%s3786_s3 + $0x38] sm:$0xff]  ;;  %vm679_vm12 = vcmask 72704   ;;  %vm683_vm13 = vcmask 65536   ;;  %s2888_s25 = smov [#allocation2]  }
  0x11   :  { %v2673_v38 = vld [vmem:[%s3787_s4 + $0x8] sm:$0xff]  ;;  %v2683_v40 = vld [vmem:[%s3788_s5 + $0x18] sm:$0xff]  ;;  %v3058_v42 = vld [vmem:[%s3786_s3 + $0x30] sm:$0xff]  ;;  %s2454_s30 = sshll.u32 %s3801_s18, 4  ;;  %s2890_s0 = smov 1   ;;  %s2455_s30 = int_to_ptr.hbm [resolvable:$true] %s2454_s30 }
  0x12   :  { %v2677_v39 = vld [vmem:[%s3787_s4 + $0x28] sm:$0xff]  ;;  %v2672_v43 = vld [vmem:[%s3787_s4] sm:$0xff]  ;;  %v2682_v45 = vld [vmem:[%s3788_s5 + $0x10] sm:$0xff] }
  0x13   :  { %241 = vmatpush.bf16.msra.mxu0 %v3027_v28  ;;  %267 = vmatpush.bf16.msra.mxu3 %v2666_v29  ;;  %v2676_v44 = vld [vmem:[%s3787_s4 + $0x20] sm:$0xff] }
  0x14   :  { %155 = vadd.xlane.f32.xlu0 %v154_v3  ;;  %v2714_v5 = vpop.eup %2713  ;;  %293 = vmatpush.bf16.msra.mxu2 %v2668_v30  ;;  %v2706_v54 = vld [vmem:[%s3809_s23] ss:$0 sm:$0xff] }
  0x15   :  { %v158_v6 = vmul.f32 32.0, %v2714_v5  ;;  %vm162_vm2 = vweird.f32 %v2714_v5  ;;  %371 = vmatpush.bf16.msra.mxu1 %v2674_v31  ;;  %v2707_v58 = vld [vmem:[%s3810_s26] ss:$0 sm:$0xff] }
  0x17   :  { %v159_v7 = vsub.f32 1.0, %v158_v6  ;;  %318 = vmatpush.bf16.msrb.mxu3 %v3043_v37  ;;  %344 = vmatpush.bf16.msrb.mxu0 %v2673_v38  ;;  %v2679_v6 = vld [vmem:[%s3787_s4 + $0x38] sm:$0xff] }
  0x18   :  { %396 = vmatpush.bf16.msrb.mxu2 %v2677_v39 }
  0x19   :  { %v160_v8 = vmul.f32 %v2714_v5, %v159_v7  ;;  %474 = vmatpush.bf16.msrb.mxu1 %v2683_v40  ;;  %v2681_v7 = vld [vmem:[%s3788_s5 + $0x8] sm:$0xff] }
  0x1b   :  { %v161_v9 = vadd.f32 %v2714_v5, %v160_v8  ;;  %319 = vmatpush.bf16.msrb.mxu3 %v3058_v42  ;;  %345 = vmatpush.bf16.msrb.mxu0 %v2672_v43  ;;  %v2685_v8 = vld [vmem:[%s3788_s5 + $0x28] sm:$0xff] }
  0x1c   :  { %397 = vmatpush.bf16.msrb.mxu2 %v2676_v44 }
  0x1d   :  { %v2994_v10 = vsel %vm162_vm2, %v2714_v5, %v161_v9  ;;  %475 = vmatpush.bf16.msrb.mxu1 %v2682_v45  ;;  %v2678_v9 = vld [vmem:[%s3787_s4 + $0x30] sm:$0xff] }
  0x7f   :  { %v152_v11 = vpop.xlane.xlu0 %151 }
  0x80   :  { %v164_v12 = vmul.f32 %v2994_v10, %v152_v11  ;;  %v2680_v11 = vld [vmem:[%s3788_s5] sm:$0xff] }
  0x82   :  { %v2997_v13 = vsub.f32 %v147_v0, %v164_v12  ;;  %v2684_v12 = vld [vmem:[%s3788_s5 + $0x20] sm:$0xff] }
  0x84   :  { %v168_v14 = vmul.f32 %v2997_v13, %v2997_v13 }
  0x86   :  { %v170_v15 = vsel %vm149_vm0, %v168_v14, 0.0  ;;  %v2686_v14 = vld [vmem:[%s3788_s5 + $0x30] sm:$0xff] }
  0x87   :  { %171 = vadd.xlane.f32.xlu1 %v170_v15  ;;  %v156_v16 = vpop.xlane.xlu0 %155 }
  0x88   :  { %v165_v17 = vmul.f32 %v2994_v10, %v156_v16 }
  0x8a   :  { %v3003_v18 = vsub.f32 %v148_v2, %v165_v17 }
  0x8c   :  { %v169_v19 = vmul.f32 %v3003_v18, %v3003_v18 }
  0x8e   :  { %v173_v20 = vsel %vm153_vm1, %v169_v19, 0.0 }
  0x8f   :  { %174 = vadd.xlane.f32.xlu1 %v173_v20 }
  0xfa   :  { %v172_v21 = vpop.xlane.xlu1 %171 }
  0xfb   :  { %v176_v22 = vmul.f32 %v172_v21, %v2994_v10 }
  0xfd   :  { %v178_v26 = vadd.f32 1e-06, %v176_v22 }
  0xff   :  { %2715 = vrsqrt.f32 %v178_v26  ;;  %vm186_vm4 = vweird.f32 %v178_v26 }
 0x102   :  { %v175_v32 = vpop.xlane.xlu1 %174 }
 0x103   :  { %v177_v33 = vmul.f32 %v175_v32, %v2994_v10 }
 0x105   :  { %v2716_v34 = vpop.eup %2715  ;;  %v179_v35 = vadd.f32 1e-06, %v177_v33 }
 0x106   :  { %v181_v36 = vmul.f32 %v2716_v34, %v178_v26  ;;  %vm187_vm3 = vweird.f32 %v2716_v34 }
 0x107   :  { %2717 = vrsqrt.f32 %v179_v35  ;;  %vm188_vm5 = vmor %vm186_vm4, %vm187_vm3  ;;  %vm196_vm7 = vweird.f32 %v179_v35 }
 0x108   :  { %v182_v41 = vmul.f32 %v2716_v34, %v181_v36 }
 0x10a   :  { %v183_v46 = vmul.f32 0.5, %v182_v41 }
 0x10c   :  { %v184_v47 = vsub.f32 1.5, %v183_v46 }
 0x10d   :  { %v2718_v48 = vpop.eup %2717 }
 0x10e   :  { %v185_v49 = vmul.f32 %v2716_v34, %v184_v47  ;;  %v191_v50 = vmul.f32 %v2718_v48, %v179_v35  ;;  %vm197_vm6 = vweird.f32 %v2718_v48 }
 0x10f   :  { %vm198_vm8 = vmor %vm196_vm7, %vm197_vm6 }
 0x110   :  { %v189_v51 = vsel %vm188_vm5, %v2716_v34, %v185_v49  ;;  %v192_v52 = vmul.f32 %v2718_v48, %v191_v50 }
 0x111   :  { %v200_v53 = vmul.f32 %v189_v51, %v2997_v13  ;;  %v2687_v13 = vld [vmem:[%s3788_s5 + $0x38] sm:$0xff] }
 0x112   :  { %v193_v55 = vmul.f32 0.5, %v192_v52 }
 0x113   :  { %v205_v57 = vmul.f32 %v2706_v54, %v200_v53 }
 0x114   :  { %v194_v56 = vsub.f32 1.5, %v193_v55 }
 0x115   :  { %v210_v61 = vadd.f32 %v2707_v58, %v205_v57 }
 0x116   :  { %v195_v59 = vmul.f32 %v2718_v48, %v194_v56 }
 0x117   :  { %v212_v0 = vpack.c.bf16 %v210_v61, %v210_v61 }
 0x118   :  { %v199_v60 = vsel %vm198_vm8, %v2718_v48, %v195_v59  ;;  %v2886_v48 = vmov 65535  }
 0x119   :  { %v201_v62 = vmul.f32 %v199_v60, %v3003_v18  ;;  %v216_v3 = vunpack.c.l.b16 %v212_v0  ;;  %v904_v49 = vsel %vm902_vm10, 4294967295, %v2886_v48 }
 0x11a   :  { %v3121_v56 = vsel %vm903_vm11, %v904_v49, 0 }
 0x11b   :  { %v206_v63 = vmul.f32 %v2706_v54, %v201_v62 }
 0x11d   :  { %v211_v1 = vadd.f32 %v2707_v58, %v206_v63 }
 0x11f   :  { %v213_v2 = vpack.c.bf16 %v211_v1, %v211_v1 }
 0x121   :  { %v217_v4 = vunpack.c.l.b16 %v213_v2 }
 0x123   :  { %v218_v5 = vpack.c.b16 %v217_v4, %v216_v3 }
 0x125   :  { %2474 = vmatmul.msk.bf16.vlgmr.msra.gmra.mxu0 %vm149_vm0, %v218_v5  ;;  %2483 = vmatmul.msk.bf16.vlgmr.msra.gmra.mxu3 %vm149_vm0, %v218_v5 }
 0x126   :  { %2492 = vmatmul.msk.bf16.vlgmr.msra.gmra.mxu2 %vm149_vm0, %v218_v5  ;;  %2519 = vmatmul.msk.bf16.vlgmr.msra.gmra.mxu1 %vm149_vm0, %v218_v5 }
 0x127   :  { %422 = vmatpush.bf16.msra.mxu3 %v2679_v6  ;;  %448 = vmatpush.bf16.msra.mxu0 %v2681_v7 }
 0x128   :  { %500 = vmatpush.bf16.msra.mxu2 %v2685_v8 }
 0x12b   :  { %423 = vmatpush.bf16.msra.mxu3 %v2678_v9  ;;  %449 = vmatpush.bf16.msra.mxu0 %v2680_v11 }
 0x12c   :  { %501 = vmatpush.bf16.msra.mxu2 %v2684_v12 }
 0x135   :  { %2501 = vmatmul.msk.bf16.vlgmr.msrb.gmra.mxu3 %vm149_vm0, %v218_v5  ;;  %2510 = vmatmul.msk.bf16.vlgmr.msrb.gmra.mxu0 %vm149_vm0, %v218_v5 }
 0x136   :  { %2528 = vmatmul.msk.bf16.vlgmr.msrb.gmra.mxu2 %vm149_vm0, %v218_v5  ;;  %2555 = vmatmul.msk.bf16.vlgmr.msrb.gmra.mxu1 %vm149_vm0, %v218_v5 }
 0x137   :  { %526 = vmatpush.bf16.msrb.mxu3 %v2687_v13 }
 0x13b   :  { %527 = vmatpush.bf16.msrb.mxu3 %v2686_v14 }
 0x145   :  { %2537 = vmatmul.msk.bf16.vlgmr.msra.gmra.mxu3 %vm149_vm0, %v218_v5  ;;  %2546 = vmatmul.msk.bf16.vlgmr.msra.gmra.mxu0 %vm149_vm0, %v218_v5 }
 0x146   :  { %2564 = vmatmul.msk.bf16.vlgmr.msra.gmra.mxu2 %vm149_vm0, %v218_v5 }
 0x155   :  { %2573 = vmatmul.msk.bf16.vlgmr.msrb.gmra.mxu3 %vm149_vm0, %v218_v5 }
 0x1a2   :  { %v243_v15 = vpop.f32.mrf.mxu0 }
 0x1a3   :  { %v373_v16 = vpop.f32.mrf.mxu1  ;;  %v534_v60 = vpack.c.bf16 %v243_v15, %v243_v15 }
 0x1a4   :  { %v544_v19 = vpack.c.bf16 %v373_v16, %v373_v16 }
 0x1a5   :  { %v552_v5 = vunpack.c.l.b16 %v534_v60 }
 0x1a6   :  { %v588_v24 = vunpack.c.l.b16 %v544_v19 }
 0x1a8   :  { %v269_v17 = vpop.f32.mrf.mxu3 }
 0x1a9   :  { %v3114_v18 = vpop.f32.mrf.mxu2  ;;  %v536_v31 = vpack.c.bf16 %v269_v17, %v269_v17 }
 0x1aa   :  { %v245_v20 = vpop.f32.mrf.mxu0  ;;  %v538_v9 = vpack.c.bf16 %v3114_v18, %v3114_v18 }
 0x1ab   :  { %v375_v21 = vpop.f32.mrf.mxu1  ;;  %v583_v36 = vunpack.c.l.b16 %v536_v31  ;;  %v535_v54 = vpack.c.bf16 %v245_v20, %v245_v20 }
 0x1ac   :  { %v545_v22 = vpack.c.bf16 %v375_v21, %v375_v21  ;;  %v613_v19 = vunpack.c.l.b16 %v538_v9 }
 0x1ad   :  { %v553_v2 = vunpack.c.l.b16 %v535_v54 }
 0x1ae   :  { %v589_v25 = vunpack.c.l.b16 %v545_v22 }
 0x1af   :  { %v554_v8 = vpack.c.b16 %v553_v2, %v552_v5 }
 0x1b0   :  { %v590_v26 = vpack.c.b16 %v589_v25, %v588_v24  ;;  %v271_v27 = vpop.f32.mrf.mxu3 }
 0x1b1   :  { %v537_v29 = vpack.c.bf16 %v271_v27, %v271_v27  ;;  %v297_v30 = vpop.f32.mrf.mxu2 }
 0x1b2   :  { %v347_v32 = vpop.f32.mrf.mxu0  ;;  %v595_v33 = vsel %vm560_vm9, %v590_v26, 0  ;;  %v539_v6 = vpack.c.bf16 %v297_v30, %v297_v30 }
 0x1b3   :  { %v477_v34 = vpop.f32.mrf.mxu1  ;;  %604 = vmatpush.bf16.xpose.msra.mxu1 %v595_v33  ;;  %v584_v35 = vunpack.c.l.b16 %v537_v29  ;;  %v542_v40 = vpack.c.bf16 %v347_v32, %v347_v32 }
 0x1b4   :  { %v883_v43 = vpack.c.bf16 %v477_v34, %v477_v34  ;;  %v614_v15 = vunpack.c.l.b16 %v539_v6 }
 0x1b5   :  { %v585_v38 = vpack.c.b16 %v584_v35, %v583_v36  ;;  %v557_v50 = vunpack.c.l.b16 %v542_v40 }
 0x1b6   :  { %v930_v52 = vunpack.c.l.b16 %v883_v43  ;;  %v615_v22 = vpack.c.b16 %v614_v15, %v613_v19 }
 0x1b8   :  { %v3117_v39 = vpop.f32.mrf.mxu3 }
 0x1b9   :  { %v399_v41 = vpop.f32.mrf.mxu2 }
 0x1ba   :  { %2575 = vmatmul.msk.bf16.vlgmr.msra.gmra.mxu1 %vm560_vm9, %v585_v38  ;;  %v349_v44 = vpop.f32.mrf.mxu0  ;;  %v546_v57 = vpack.c.bf16 %v399_v41, %v399_v41  ;;  %v540_v41 = vpack.c.bf16 %v3117_v39, %v3117_v39 }
 0x1bb   :  { %v543_v45 = vpack.c.bf16 %v349_v44, %v349_v44  ;;  %v479_v46 = vpop.f32.mrf.mxu1 }
 0x1bc   :  { %v884_v47 = vpack.c.bf16 %v479_v46, %v479_v46  ;;  %v618_v3 = vunpack.c.l.b16 %v546_v57 }
 0x1bd   :  { %v558_v51 = vunpack.c.l.b16 %v543_v45 }
 0x1be   :  { %v931_v53 = vunpack.c.l.b16 %v884_v47  ;;  %v643_v47 = vunpack.c.l.b16 %v540_v41 }
 0x1bf   :  { %v559_v55 = vpack.c.b16 %v558_v51, %v557_v50 }
 0x1c0   :  { %v932_v58 = vpack.c.b16 %v931_v53, %v930_v52  ;;  %v323_v59 = vpop.f32.mrf.mxu3 }
 0x1c1   :  { %v401_v61 = vpop.f32.mrf.mxu2  ;;  %v565_v62 = vsel %vm560_vm9, %v559_v55, 0  ;;  %v541_v36 = vpack.c.bf16 %v323_v59, %v323_v59 }
 0x1c2   :  { %v937_v63 = vand.u32 %v932_v58, %v3121_v56  ;;  %v547_v0 = vpack.c.bf16 %v401_v61, %v401_v61  ;;  %v451_v1 = vpop.f32.mrf.mxu0  ;;  %574 = vmatpush.bf16.xpose.msrb.mxu0 %v565_v62 }
 0x1c3   :  { %v881_v13 = vpack.c.bf16 %v451_v1, %v451_v1  ;;  %v644_v46 = vunpack.c.l.b16 %v541_v36 }
 0x1c4   :  { %v619_v4 = vunpack.c.l.b16 %v547_v0  ;;  %946 = vmatpush.bf16.msrb.mxu1 %v937_v63 }
 0x1c5   :  { %v896_v20 = vunpack.c.l.b16 %v881_v13  ;;  %v645_v48 = vpack.c.b16 %v644_v46, %v643_v47 }
 0x1c6   :  { %v620_v7 = vpack.c.b16 %v619_v4, %v618_v3 }
 0x1c8   :  { %v425_v11 = vpop.f32.mrf.mxu3  ;;  %v625_v12 = vsel %vm560_vm9, %v620_v7, 0 }
 0x1c9   :  { %v503_v14 = vpop.f32.mrf.mxu2  ;;  %634 = vmatpush.bf16.xpose.msrb.mxu2 %v625_v12  ;;  %2574 = vmatmul.msk.bf16.vlgmr.msrb.gmra.mxu0 %vm560_vm9, %v554_v8  ;;  %v548_v24 = vpack.c.bf16 %v425_v11, %v425_v11 }
 0x1ca   :  { %v453_v16 = vpop.f32.mrf.mxu0  ;;  %v885_v26 = vpack.c.bf16 %v503_v14, %v503_v14 }
 0x1cb   :  { %v882_v17 = vpack.c.bf16 %v453_v16, %v453_v16  ;;  %v648_v32 = vunpack.c.l.b16 %v548_v24 }
 0x1cc   :  { %v960_v34 = vunpack.c.l.b16 %v885_v26 }
 0x1cd   :  { %v897_v21 = vunpack.c.l.b16 %v882_v17 }
 0x1cf   :  { %v898_v25 = vpack.c.b16 %v897_v21, %v896_v20 }
 0x1d0   :  { %2576 = vmatmul.msk.bf16.vlgmr.msrb.gmra.mxu2 %vm560_vm9, %v615_v22  ;;  %v427_v18 = vpop.f32.mrf.mxu3 }
 0x1d1   :  { %v907_v27 = vand.u32 %v3121_v56, %v898_v25  ;;  %v549_v29 = vpack.c.bf16 %v427_v18, %v427_v18  ;;  %v505_v30 = vpop.f32.mrf.mxu2 }
 0x1d2   :  { %v886_v31 = vpack.c.bf16 %v505_v30, %v505_v30 }
 0x1d3   :  { %v649_v33 = vunpack.c.l.b16 %v549_v29  ;;  %916 = vmatpush.bf16.msra.mxu0 %v907_v27 }
 0x1d4   :  { %v961_v35 = vunpack.c.l.b16 %v886_v31 }
 0x1d5   :  { %v650_v38 = vpack.c.b16 %v649_v33, %v648_v32 }
 0x1d6   :  { %v962_v40 = vpack.c.b16 %v961_v35, %v960_v34 }
 0x1d7   :  { %v655_v43 = vsel %vm560_vm9, %v650_v38, 0 }
 0x1d8   :  { %v967_v44 = vand.u32 %v962_v40, %v3121_v56  ;;  %v529_v45 = vpop.f32.mrf.mxu3  ;;  %664 = vmatpush.bf16.xpose.msra.mxu3 %v655_v43 }
 0x1d9   :  { %v887_v49 = vpack.c.bf16 %v529_v45, %v529_v45 }
 0x1da   :  { %976 = vmatpush.bf16.msra.mxu2 %v967_v44 }
 0x1db   :  { %v990_v52 = vunpack.c.l.b16 %v887_v49 }
 0x1df   :  { %2577 = vmatmul.msk.bf16.vlgmr.msra.gmra.mxu3 %vm560_vm9, %v645_v48 }
 0x1e0   :  { %v531_v50 = vpop.f32.mrf.mxu3 }
 0x1e1   :  { %v888_v51 = vpack.c.bf16 %v531_v50, %v531_v50 }
 0x1e3   :  { %v991_v53 = vunpack.c.l.b16 %v888_v51 }
 0x1e5   :  { %v992_v54 = vpack.c.b16 %v991_v53, %v990_v52 }
 0x1e7   :  { %v997_v39 = vand.u32 %v992_v54, %v3121_v56 }
 0x1e9   :  { %1006 = vmatpush.bf16.msrb.mxu3 %v997_v39 }
 0x237   :  { %v606_v62 = vpop.f32.mrf.mxu1 }
 0x238   :  { %v673_v15 = vmul.f32 0.35355338, %v606_v62 }
 0x23a   :  { %v687_v16 = vsel %vm679_vm12, %v673_v15, -inf }
 0x23f   :  { %v608_v6 = vpop.f32.mrf.mxu1 }
 0x240   :  { %v674_v8 = vmul.f32 0.35355338, %v608_v6 }
 0x242   :  { %v690_v14 = vsel %vm683_vm13, %v674_v8, -inf }
 0x246   :  { %v576_v60 = vpop.f32.mrf.mxu0 }
 0x247   :  { %v671_v0 = vmul.f32 0.35355338, %v576_v60 }
 0x249   :  { %v680_v5 = vsel %vm679_vm12, %v671_v0, -inf }
 0x24e   :  { %v578_v4 = vpop.f32.mrf.mxu0 }
 0x24f   :  { %v672_v7 = vmul.f32 0.35355338, %v578_v4 }
 0x251   :  { %v684_v13 = vsel %vm683_vm13, %v672_v7, -inf }
 0x253   :  { %v636_v55 = vpop.f32.mrf.mxu2 }
 0x254   :  { %v675_v57 = vmul.f32 0.35355338, %v636_v55 }
 0x256   :  { %v693_v58 = vsel %vm679_vm12, %v675_v57, -inf }
 0x257   :  { %694 = vmax.xlane.f32.xlu2 %v693_v58 }
 0x25b   :  { %v638_v59 = vpop.f32.mrf.mxu2 }
 0x25c   :  { %v676_v61 = vmul.f32 0.35355338, %v638_v59 }
 0x25e   :  { %v696_v63 = vsel %vm683_vm13, %v676_v61, -inf }
 0x25f   :  { %697 = vmax.xlane.f32.xlu2 %v696_v63 }
 0x262   :  { %v666_v1 = vpop.f32.mrf.mxu3 }
 0x263   :  { %v677_v2 = vmul.f32 0.35355338, %v666_v1 }
 0x265   :  { %v699_v3 = vsel %vm679_vm12, %v677_v2, -inf }
 0x266   :  { %700 = vmax.xlane.f32.xlu0 %v699_v3 }
 0x267   :  { %681 = vmax.xlane.f32.xlu2 %v680_v5 }
 0x26a   :  { %v668_v9 = vpop.f32.mrf.mxu3 }
 0x26b   :  { %v678_v11 = vmul.f32 0.35355338, %v668_v9 }
 0x26d   :  { %v702_v12 = vsel %vm683_vm13, %v678_v11, -inf }
 0x26e   :  { %703 = vmax.xlane.f32.xlu1 %v702_v12  ;;  %685 = vmax.xlane.f32.xlu0 %v684_v13 }
 0x26f   :  { %691 = vmax.xlane.f32.xlu2 %v690_v14 }
 0x276   :  { %688 = vmax.xlane.f32.xlu1 %v687_v16 }
 0x2ca   :  { %v695_v17 = vpop.xlane.xlu2 %694 }
 0x2cb   :  { %v709_v19 = vsub.f32 %v675_v57, %v695_v17 }
 0x2cd   :  { %v721_v20 = vmul.f32 1.442695, %v709_v19 }
 0x2cf   :  { %2719 = vpow2.f32 %v721_v20 }
 0x2d2   :  { %v698_v21 = vpop.xlane.xlu2 %697 }
 0x2d3   :  { %v710_v22 = vsub.f32 %v676_v61, %v698_v21 }
 0x2d5   :  { %v3145_v24 = vpop.eup %2719  ;;  %v723_v25 = vmul.f32 1.442695, %v710_v22 }
 0x2d6   :  { %v741_v26 = vsel %vm679_vm12, %v3145_v24, 0.0 }
 0x2d7   :  { %2721 = vpow2.f32 %v723_v25  ;;  %742 = vadd.xlane.f32.xlu0 %v741_v26 }
 0x2d9   :  { %v701_v18 = vpop.xlane.xlu0 %700 }
 0x2da   :  { %v711_v27 = vsub.f32 %v677_v2, %v701_v18  ;;  %v682_v29 = vpop.xlane.xlu2 %681 }
 0x2db   :  { %v705_v30 = vsub.f32 %v671_v0, %v682_v29 }
 0x2dc   :  { %v725_v31 = vmul.f32 1.442695, %v711_v27 }
 0x2dd   :  { %v3149_v32 = vpop.eup %2721  ;;  %v713_v33 = vmul.f32 1.442695, %v705_v30 }
 0x2de   :  { %2723 = vpow2.f32 %v725_v31  ;;  %v744_v34 = vsel %vm683_vm13, %v3149_v32, 0.0 }
 0x2df   :  { %2725 = vpow2.f32 %v713_v33  ;;  %745 = vadd.xlane.f32.xlu1 %v744_v34 }
 0x2e1   :  { %v704_v35 = vpop.xlane.xlu1 %703  ;;  %v686_v36 = vpop.xlane.xlu0 %685 }
 0x2e2   :  { %v712_v38 = vsub.f32 %v678_v11, %v704_v35  ;;  %v692_v40 = vpop.xlane.xlu2 %691  ;;  %v706_v41 = vsub.f32 %v672_v7, %v686_v36 }
 0x2e3   :  { %v708_v43 = vsub.f32 %v674_v8, %v692_v40 }
 0x2e4   :  { %v3153_v44 = vpop.eup %2723  ;;  %v727_v45 = vmul.f32 1.442695, %v712_v38  ;;  %v715_v46 = vmul.f32 1.442695, %v706_v41 }
 0x2e5   :  { %v3155_v47 = vpop.eup %2725  ;;  %v719_v48 = vmul.f32 1.442695, %v708_v43  ;;  %v747_v49 = vsel %vm679_vm12, %v3153_v44, 0.0 }
 0x2e6   :  { %2727 = vpow2.f32 %v727_v45  ;;  %748 = vadd.xlane.f32.xlu2 %v747_v49  ;;  %v729_v50 = vsel %vm679_vm12, %v3155_v47, 0.0 }
 0x2e7   :  { %2729 = vpow2.f32 %v719_v48  ;;  %730 = vadd.xlane.f32.xlu1 %v729_v50 }
 0x2e8   :  { %2731 = vpow2.f32 %v715_v46 }
 0x2e9   :  { %v689_v51 = vpop.xlane.xlu1 %688 }
 0x2ea   :  { %v707_v52 = vsub.f32 %v673_v15, %v689_v51 }
 0x2ec   :  { %v3161_v53 = vpop.eup %2727  ;;  %v717_v54 = vmul.f32 1.442695, %v707_v52 }
 0x2ed   :  { %v3163_v39 = vpop.eup %2729  ;;  %v750_v55 = vsel %vm683_vm13, %v3161_v53, 0.0 }
 0x2ee   :  { %v3167_v57 = vpop.eup %2731  ;;  %2733 = vpow2.f32 %v717_v54  ;;  %v738_v58 = vsel %vm683_vm13, %v3163_v39, 0.0  ;;  %751 = vadd.xlane.f32.xlu0 %v750_v55 }
 0x2ef   :  { %739 = vadd.xlane.f32.xlu1 %v738_v58  ;;  %v732_v59 = vsel %vm683_vm13, %v3167_v57, 0.0 }
 0x2f0   :  { %733 = vadd.xlane.f32.xlu2 %v732_v59 }
 0x2f4   :  { %v3173_v60 = vpop.eup %2733 }
 0x2f5   :  { %v735_v61 = vsel %vm679_vm12, %v3173_v60, 0.0 }
 0x2f6   :  { %736 = vadd.xlane.f32.xlu0 %v735_v61 }
 0x34a   :  { %v743_v62 = vpop.xlane.xlu0 %742 }
 0x34b   :  { %2735 = vrcp.f32 %v743_v62  ;;  %v824_v6 = vand.u32 2147483648, %v743_v62  ;;  %vm818_vm15 = vweird.f32 %v743_v62  ;;  %v822_v8 = vand.u32 2147483647, %v743_v62 }
 0x34d   :  { %v825_v14 = vor.u32 1.1754944e-38, %v824_v6  ;;  %vm823_vm3 = vcmp.eq.f32.partialorder %v822_v8, 8.507059e+37 }
 0x351   :  { %v2736_v63 = vpop.eup %2735 }
 0x352   :  { %v814_v0 = vmul.f32 %v2736_v63, %v743_v62  ;;  %v746_v1 = vpop.xlane.xlu1 %745  ;;  %vm819_vm14 = vweird.f32 %v2736_v63 }
 0x353   :  { %2737 = vrcp.f32 %v746_v1  ;;  %vm820_vm2 = vmor %vm818_vm15, %vm819_vm14  ;;  %v837_v15 = vand.u32 2147483647, %v746_v1  ;;  %v839_v16 = vand.u32 2147483648, %v746_v1  ;;  %vm833_vm5 = vweird.f32 %v746_v1 }
 0x354   :  { %v815_v2 = vsub.f32 1.0, %v814_v0 }
 0x355   :  { %vm838_vm7 = vcmp.eq.f32.partialorder %v837_v15, 8.507059e+37  ;;  %v840_v25 = vor.u32 1.1754944e-38, %v839_v16 }
 0x356   :  { %v816_v3 = vmul.f32 %v2736_v63, %v815_v2 }
 0x358   :  { %v817_v4 = vadd.f32 %v2736_v63, %v816_v3 }
 0x359   :  { %v2738_v5 = vpop.eup %2737  ;;  %v749_v7 = vpop.xlane.xlu2 %748 }
 0x35a   :  { %v829_v9 = vmul.f32 %v2738_v5, %v746_v1  ;;  %v3177_v11 = vpop.xlane.xlu1 %730  ;;  %2739 = vrcp.f32 %v749_v7  ;;  %v821_v12 = vsel %vm820_vm2, %v2736_v63, %v817_v4  ;;  %vm834_vm4 = vweird.f32 %v2738_v5 }
 0x35b   :  { %2741 = vrcp.f32 %v3177_v11  ;;  %v826_v19 = vsel %vm823_vm3, %v825_v14, %v821_v12  ;;  %vm835_vm6 = vmor %vm833_vm5, %vm834_vm4  ;;  %v762_v34 = vand.u32 2147483647, %v3177_v11  ;;  %v852_v41 = vand.u32 2147483647, %v749_v7 }
 0x35c   :  { %v830_v13 = vsub.f32 1.0, %v829_v9  ;;  %v827_v27 = vmul.f32 %v3145_v24, %v826_v19  ;;  %v764_v24 = vand.u32 2147483648, %v3177_v11  ;;  %v854_v45 = vand.u32 2147483648, %v749_v7 }
 0x35d   :  { %vm758_vm11 = vweird.f32 %v3177_v11  ;;  %vm848_vm14 = vweird.f32 %v749_v7  ;;  %vm3201_vm2 = vcmp.eq.f32.partialorder %v762_v34, 8.507059e+37  ;;  %vm853_vm4 = vcmp.eq.f32.partialorder %v852_v41, 8.507059e+37 }
 0x35e   :  { %v831_v17 = vmul.f32 %v2738_v5, %v830_v13  ;;  %v877_v46 = vpack.c.bf16 %v827_v27, %v827_v27  ;;  %v765_v54 = vor.u32 1.1754944e-38, %v764_v24  ;;  %v855_v61 = vor.u32 1.1754944e-38, %v854_v45 }
 0x360   :  { %v2740_v20 = vpop.eup %2739  ;;  %v832_v21 = vadd.f32 %v2738_v5, %v831_v17  ;;  %v955_v63 = vunpack.c.l.b16 %v877_v46 }
 0x361   :  { %v3180_v22 = vpop.eup %2741  ;;  %v844_v26 = vmul.f32 %v2740_v20, %v749_v7  ;;  %v3182_v18 = vpop.xlane.xlu0 %751  ;;  %vm849_vm8 = vweird.f32 %v2740_v20 }
 0x362   :  { %v836_v29 = vsel %vm835_vm6, %v2738_v5, %v832_v21  ;;  %v754_v30 = vmul.f32 %v3180_v22, %v3177_v11  ;;  %v3187_v31 = vpop.xlane.xlu1 %739  ;;  %2743 = vrcp.f32 %v3182_v18  ;;  %vm759_vm15 = vweird.f32 %v3180_v22  ;;  %vm3205_vm3 = vmor %vm848_vm14, %vm849_vm8 }
 0x363   :  { %v841_v33 = vsel %vm838_vm7, %v840_v25, %v836_v29  ;;  %v845_v35 = vsub.f32 1.0, %v844_v26  ;;  %2745 = vrcp.f32 %v3187_v31  ;;  %v3192_v36 = vpop.xlane.xlu2 %733  ;;  %vm803_vm5 = vweird.f32 %v3187_v31  ;;  %vm3224_vm6 = vmor %vm758_vm11, %vm759_vm15 }
 0x364   :  { %v842_v38 = vmul.f32 %v3149_v32, %v841_v33  ;;  %v755_v40 = vsub.f32 1.0, %v754_v30  ;;  %2747 = vrcp.f32 %v3192_v36  ;;  %v777_v1 = vand.u32 2147483647, %v3192_v36 }
 0x365   :  { %v846_v43 = vmul.f32 %v2740_v20, %v845_v35  ;;  %v779_v6 = vand.u32 2147483648, %v3192_v36  ;;  %v869_v8 = vand.u32 2147483648, %v3182_v18  ;;  %v867_v11 = vand.u32 2147483647, %v3182_v18 }
 0x366   :  { %v756_v48 = vmul.f32 %v3180_v22, %v755_v40  ;;  %v878_v49 = vpack.c.bf16 %v842_v38, %v842_v38  ;;  %vm863_vm11 = vweird.f32 %v3182_v18  ;;  %v807_v29 = vand.u32 2147483647, %v3187_v31 }
 0x367   :  { %v847_v50 = vadd.f32 %v2740_v20, %v846_v43  ;;  %v870_v26 = vor.u32 1.1754944e-38, %v869_v8  ;;  %v809_v30 = vand.u32 2147483648, %v3187_v31  ;;  %v780_v24 = vor.u32 1.1754944e-38, %v779_v6 }
 0x368   :  { %v2744_v51 = vpop.eup %2743  ;;  %v757_v32 = vadd.f32 %v3180_v22, %v756_v48  ;;  %v956_v4 = vunpack.c.l.b16 %v878_v49 }
 0x369   :  { %v3209_v58 = vpop.eup %2745  ;;  %v851_v59 = vsel %vm3205_vm3, %v2740_v20, %v847_v50  ;;  %v859_v62 = vmul.f32 %v2744_v51, %v3182_v18  ;;  %v3218_v2 = vpop.xlane.xlu0 %736  ;;  %vm864_vm7 = vweird.f32 %v2744_v51  ;;  %vm868_vm3 = vcmp.eq.f32.partialorder %v867_v11, 8.507059e+37  ;;  %v110_v11 = vld [vmem:[%s3789_s6 + $0x4] sm:$0xf] }
 0x36a   :  { %v799_v0 = vmul.f32 %v3209_v58, %v3187_v31  ;;  %v2748_v3 = vpop.eup %2747  ;;  %v761_v9 = vsel %vm3224_vm6, %v3180_v22, %v757_v32  ;;  %v856_v12 = vsel %vm853_vm4, %v855_v61, %v851_v59  ;;  %2749 = vrcp.f32 %v3218_v2  ;;  %vm865_vm15 = vmor %vm863_vm11, %vm864_vm7 }
 0x36b   :  { %v860_v7 = vsub.f32 1.0, %v859_v62  ;;  %v769_v14 = vmul.f32 %v2748_v3, %v3192_v36  ;;  %vm804_vm8 = vweird.f32 %v3209_v58  ;;  %v766_v19 = vsel %vm3201_vm2, %v765_v54, %v761_v9 }
 0x36c   :  { %v800_v13 = vsub.f32 1.0, %v799_v0  ;;  %v857_v20 = vmul.f32 %v3153_v44, %v856_v12  ;;  %vm774_vm14 = vweird.f32 %v2748_v3  ;;  %v957_v27 = vpack.c.b16 %v956_v4, %v955_v63  ;;  %vm3250_vm2 = vmor %vm803_vm5, %vm804_vm8 }
 0x36d   :  { %v861_v15 = vmul.f32 %v2744_v51, %v860_v7  ;;  %v770_v17 = vsub.f32 1.0, %v769_v14  ;;  %v767_v18 = vmul.f32 %v3155_v47, %v766_v19  ;;  %vm773_vm4 = vweird.f32 %v3192_v36  ;;  %v112_v14 = vld [vmem:[%s3789_s6 + $0xc] sm:$0xf] }
 0x36e   :  { %v801_v16 = vmul.f32 %v3209_v58, %v800_v13  ;;  %2580 = vmatmul.msk.bf16.vlgmr.msra.gmra.mxu2 %vm679_vm12, %v957_v27  ;;  %v879_v40 = vpack.c.bf16 %v857_v20, %v857_v20  ;;  %vm775_vm6 = vmor %vm773_vm4, %vm774_vm14  ;;  %vm778_vm5 = vcmp.eq.f32.partialorder %v777_v1, 8.507059e+37  ;;  %v810_v45 = vor.u32 1.1754944e-38, %v809_v30 }
 0x36f   :  { %v862_v21 = vadd.f32 %v2744_v51, %v861_v15  ;;  %v771_v25 = vmul.f32 %v2748_v3, %v770_v17  ;;  %v873_v48 = vpack.c.bf16 %v767_v18, %v767_v18  ;;  %vm808_vm7 = vcmp.eq.f32.partialorder %v807_v29, 8.507059e+37 }
 0x370   :  { %v802_v22 = vadd.f32 %v3209_v58, %v801_v16  ;;  %v2750_v38 = vpop.eup %2749  ;;  %vm788_vm11 = vweird.f32 %v3218_v2  ;;  %v3289_v15 = vsel %vm902_vm10, %v112_v14, 0  ;;  %v3297_v16 = vsel %vm902_vm10, %v110_v11, 0 }
 0x371   :  { %v866_v33 = vsel %vm865_vm15, %v2744_v51, %v862_v21  ;;  %v772_v34 = vadd.f32 %v2748_v3, %v771_v25  ;;  %v784_v43 = vmul.f32 %v2750_v38, %v3218_v2  ;;  %v985_v51 = vunpack.c.l.b16 %v879_v40  ;;  %1114 = vmatpush.bf16.msra.mxu3 %v3289_v15  ;;  %1064 = vmatpush.bf16.msra.mxu1 %v3297_v16 }
 0x372   :  { %v871_v35 = vsel %vm868_vm3, %v870_v26, %v866_v33  ;;  %v806_v31 = vsel %vm3250_vm2, %v3209_v58, %v802_v22  ;;  %vm789_vm8 = vweird.f32 %v2750_v38  ;;  %v792_v58 = vand.u32 2147483647, %v3218_v2 }
 0x373   :  { %v872_v47 = vmul.f32 %v3161_v53, %v871_v35  ;;  %v776_v41 = vsel %vm775_vm6, %v2748_v3, %v772_v34  ;;  %v785_v50 = vsub.f32 1.0, %v784_v43  ;;  %v811_v32 = vsel %vm808_vm7, %v810_v45, %v806_v31  ;;  %vm790_vm14 = vmor %vm788_vm11, %vm789_vm8 }
 0x374   :  { %v781_v36 = vsel %vm778_vm5, %v780_v24, %v776_v41  ;;  %v794_v53 = vand.u32 2147483648, %v3218_v2  ;;  %v891_v61 = vunpack.c.l.b16 %v873_v48  ;;  %v812_v62 = vmul.f32 %v3163_v39, %v811_v32  ;;  %v111_v39 = vld [vmem:[%s3789_s6 + $0x8] sm:$0xf] }
 0x375   :  { %v880_v46 = vpack.c.bf16 %v872_v47, %v872_v47  ;;  %v782_v49 = vmul.f32 %v3167_v57, %v781_v36  ;;  %v786_v55 = vmul.f32 %v2750_v38, %v785_v50  ;;  %vm793_vm15 = vcmp.eq.f32.partialorder %v792_v58, 8.507059e+37 }
 0x376   :  { %v795_v57 = vor.u32 1.1754944e-38, %v794_v53  ;;  %v876_v5 = vpack.c.bf16 %v812_v62, %v812_v62  ;;  %v3275_v12 = vsel %vm902_vm10, %v111_v39, 0 }
 0x377   :  { %v986_v52 = vunpack.c.l.b16 %v880_v46  ;;  %v874_v54 = vpack.c.bf16 %v782_v49, %v782_v49  ;;  %v787_v0 = vadd.f32 %v2750_v38, %v786_v55  ;;  %1089 = vmatpush.bf16.msrb.mxu2 %v3275_v12 }
 0x378   :  { %v926_v7 = vunpack.c.l.b16 %v876_v5 }
 0x379   :  { %v987_v59 = vpack.c.b16 %v986_v52, %v985_v51  ;;  %v892_v63 = vunpack.c.l.b16 %v874_v54  ;;  %v791_v1 = vsel %vm790_vm14, %v2750_v38, %v787_v0 }
 0x37a   :  { %v796_v4 = vsel %vm793_vm15, %v795_v57, %v791_v1 }
 0x37b   :  { %2581 = vmatmul.msk.bf16.vlgmr.msrb.gmra.mxu3 %vm679_vm12, %v987_v59  ;;  %v893_v3 = vpack.c.b16 %v892_v63, %v891_v61  ;;  %v797_v6 = vmul.f32 %v3173_v60, %v796_v4  ;;  %v109_v60 = vld [vmem:[%s3789_s6] sm:$0xf]  ;;  %s2452_s6 = sshll.u32 %s2888_s25, 4  ;;  %s2453_s6 = int_to_ptr.vmem [resolvable:$true] %s2452_s6 }
 0x37c   :  { %v3282_v13 = vsel %vm902_vm10, %v109_v60, 0  ;;  %1496 = vmatpush.bf16.msrb.mxu3 %v3012_v23  ;;  %v2815_v63 = vld [vmem:[%s3808_s29] sm:$0xff]  ;;  %v2816_v60 = vld [vmem:[%s3808_s29 + $0x8] sm:$0x1] }
 0x37d   :  { %2578 = vmatmul.msk.bf16.vlgmr.msra.gmra.mxu0 %vm679_vm12, %v893_v3  ;;  %v875_v2 = vpack.c.bf16 %v797_v6, %v797_v6 }
 0x37e   :  { %1039 = vmatpush.bf16.msrb.mxu0 %v3282_v13 }
 0x37f   :  { %v925_v8 = vunpack.c.l.b16 %v875_v2 }
 0x380   :  { %1497 = vmatpush.bf16.msrb.mxu3 %v3027_v28 }
 0x381   :  { %v927_v9 = vpack.c.b16 %v926_v7, %v925_v8 }
 0x383   :  { %2579 = vmatmul.msk.bf16.vlgmr.msrb.gmra.mxu1 %vm679_vm12, %v927_v9 }
 0x3f1   :  { %v978_v17 = vpop.f32.mrf.mxu2 }
 0x3f2   :  { %v1017_v20 = vpack.c.bf16 %v978_v17, %v978_v17 }
 0x3f4   :  { %v1073_v26 = vunpack.c.l.b16 %v1017_v20 }
 0x3f9   :  { %v980_v21 = vpop.f32.mrf.mxu2 }
 0x3fa   :  { %v918_v19 = vpop.f32.mrf.mxu0  ;;  %v1018_v22 = vpack.c.bf16 %v980_v21, %v980_v21 }
 0x3fb   :  { %v1013_v29 = vpack.c.bf16 %v918_v19, %v918_v19 }
 0x3fc   :  { %v1074_v27 = vunpack.c.l.b16 %v1018_v22 }
 0x3fd   :  { %v1023_v34 = vunpack.c.l.b16 %v1013_v29 }
 0x3fe   :  { %v1008_v25 = vpop.f32.mrf.mxu3  ;;  %v1075_v23 = vpack.c.b16 %v1074_v27, %v1073_v26 }
 0x3ff   :  { %v1019_v44 = vpack.c.bf16 %v1008_v25, %v1008_v25 }
 0x400   :  { %v948_v33 = vpop.f32.mrf.mxu1  ;;  %2584 = vmatmul.msk.bf16.vlgmr.msrb.gmra.mxu2 %vm560_vm9, %v1075_v23 }
 0x401   :  { %v1098_v24 = vunpack.c.l.b16 %v1019_v44  ;;  %v1015_v31 = vpack.c.bf16 %v948_v33, %v948_v33 }
 0x402   :  { %v920_v30 = vpop.f32.mrf.mxu0 }
 0x403   :  { %v1014_v18 = vpack.c.bf16 %v920_v30, %v920_v30  ;;  %v1048_v36 = vunpack.c.l.b16 %v1015_v31 }
 0x405   :  { %v1024_v35 = vunpack.c.l.b16 %v1014_v18 }
 0x406   :  { %v1010_v38 = vpop.f32.mrf.mxu3 }
 0x407   :  { %v1020_v28 = vpack.c.bf16 %v1010_v38, %v1010_v38  ;;  %v1025_v40 = vpack.c.b16 %v1024_v35, %v1023_v34  ;;  %v2689_v34 = vld [vmem:[%s3793_s10 + $0x8] sm:$0xff]  ;;  %v2688_v35 = vld [vmem:[%s3793_s10] sm:$0xff]  ;;  %v2637_v38 = vld [vmem:[%s3808_s29 + $0x18] sm:$0x1] }
 0x408   :  { %v950_v43 = vpop.f32.mrf.mxu1  ;;  %1221 = vmatpush.bf16.msra.mxu0 %v2689_v34 }
 0x409   :  { %v1099_v47 = vunpack.c.l.b16 %v1020_v28  ;;  %2582 = vmatmul.msk.bf16.vlgmr.msrb.gmra.mxu0 %vm560_vm9, %v1025_v40  ;;  %v1016_v45 = vpack.c.bf16 %v950_v43, %v950_v43  ;;  %v2636_v28 = vld [vmem:[%s3808_s29 + $0x10] sm:$0xff] }
 0x40b   :  { %v1100_v41 = vpack.c.b16 %v1099_v47, %v1098_v24  ;;  %v1049_v46 = vunpack.c.l.b16 %v1016_v45  ;;  %v1435_v24 = vsel %vm153_vm1, %v2637_v38, 0.0  ;;  %v1432_v47 = vsel %vm149_vm0, %v2636_v28, 0.0 }
 0x40c   :  { %1222 = vmatpush.bf16.msra.mxu0 %v2688_v35 }
 0x40d   :  { %2585 = vmatmul.msk.bf16.vlgmr.msra.gmra.mxu3 %vm560_vm9, %v1100_v41  ;;  %v1050_v48 = vpack.c.b16 %v1049_v46, %v1048_v36  ;;  %v2817_v41 = vld [vmem:[%s3786_s3 + $0x18] sm:$0xff] }
 0x40e   :  { %1538 = vmatpush.bf16.msra.mxu3 %v3043_v37 }
 0x40f   :  { %2583 = vmatmul.msk.bf16.vlgmr.msra.gmra.mxu1 %vm560_vm9, %v1050_v48  ;;  %v2818_v48 = vld [vmem:[%s3786_s3 + $0x10] sm:$0xff] }
 0x410   :  { %1510 = vmatpush.bf16.msrb.mxu0 %v2817_v41 }
 0x412   :  { %1539 = vmatpush.bf16.msra.mxu3 %v3058_v42  ;;  %v2708_v42 = vld [vmem:[%s3790_s7] ss:$0 sm:$0xff] }
 0x414   :  { %1511 = vmatpush.bf16.msrb.mxu0 %v2818_v48 }
 0x483   :  { %v1091_v50 = vpop.f32.mrf.mxu2 }
 0x484   :  { %v1124_v55 = vsel %vm149_vm0, %v1091_v50, 0.0 }
 0x486   :  { %v1041_v49 = vpop.f32.mrf.mxu0 }
 0x487   :  { %v1121_v52 = vsel %vm149_vm0, %v1041_v49, 0.0 }
 0x48b   :  { %v1093_v62 = vpop.f32.mrf.mxu2 }
 0x48c   :  { %v1066_v51 = vpop.f32.mrf.mxu1  ;;  %v1131_v2 = vsel %vm153_vm1, %v1093_v62, 0.0  ;;  %v2710_v62 = vld [vmem:[%s3792_s9] ss:$0 sm:$0xff] }
 0x48d   :  { %v1122_v53 = vsel %vm149_vm0, %v1066_v51, 0.0 }
 0x48e   :  { %v1123_v54 = vadd.f32 %v1122_v53, %v1121_v52  ;;  %v1043_v37 = vpop.f32.mrf.mxu0 }
 0x48f   :  { %v1128_v3 = vsel %vm153_vm1, %v1043_v37, 0.0 }
 0x490   :  { %v1116_v32 = vpop.f32.mrf.mxu3  ;;  %v1125_v59 = vadd.f32 %v1124_v55, %v1123_v54 }
 0x491   :  { %v1126_v58 = vsel %vm149_vm0, %v1116_v32, 0.0 }
 0x492   :  { %v1127_v61 = vadd.f32 %v1126_v58, %v1125_v59  ;;  %v2709_v59 = vld [vmem:[%s3791_s8] ss:$0 sm:$0xff] }
 0x494   :  { %v1135_v0 = vadd.f32 %v2815_v63, %v1127_v61  ;;  %v1068_v57 = vpop.f32.mrf.mxu1 }
 0x495   :  { %v1129_v4 = vsel %vm153_vm1, %v1068_v57, 0.0 }
 0x496   :  { %v1130_v5 = vadd.f32 %v1129_v4, %v1128_v3  ;;  %v3319_v6 = vadd.f32 %v2708_v42, %v1135_v0 }
 0x498   :  { %v1118_v1 = vpop.f32.mrf.mxu3  ;;  %v1132_v8 = vadd.f32 %v1131_v2, %v1130_v5  ;;  %v1142_v9 = vsel %vm149_vm0, %v3319_v6, 0.0  ;;  %v2819_v5 = vld [vmem:[%s3787_s4 + $0x8] sm:$0xff]  ;;  %v2820_v2 = vld [vmem:[%s3787_s4] sm:$0xff] }
 0x499   :  { %v1133_v7 = vsel %vm153_vm1, %v1118_v1, 0.0  ;;  %1143 = vadd.xlane.f32.xlu2 %v1142_v9 }
 0x49a   :  { %v1134_v39 = vadd.f32 %v1133_v7, %v1132_v8 }
 0x49c   :  { %v1136_v14 = vadd.f32 %v2816_v60, %v1134_v39 }
 0x49e   :  { %v1141_v11 = vadd.f32 %v2708_v42, %v1136_v14 }
 0x4a0   :  { %v1145_v17 = vsel %vm153_vm1, %v1141_v11, 0.0 }
 0x4a1   :  { %1146 = vadd.xlane.f32.xlu0 %v1145_v17 }
 0x4a9   :  { %1433 = vadd.xlane.f32.xlu0 %v1432_v47 }
 0x50c   :  { %v1144_v19 = vpop.xlane.xlu2 %1143 }
 0x50d   :  { %v1148_v20 = vmul.f32 %v1144_v19, %v2994_v10 }
 0x50f   :  { %v1150_v21 = vsub.f32 %v3319_v6, %v1148_v20 }
 0x511   :  { %v1152_v22 = vmul.f32 %v1150_v21, %v1150_v21 }
 0x513   :  { %v1154_v25 = vsel %vm149_vm0, %v1152_v22, 0.0 }
 0x514   :  { %1155 = vadd.xlane.f32.xlu1 %v1154_v25  ;;  %v1147_v26 = vpop.xlane.xlu0 %1146 }
 0x515   :  { %v1149_v27 = vmul.f32 %v1147_v26, %v2994_v10 }
 0x517   :  { %v1151_v23 = vsub.f32 %v1141_v11, %v1149_v27 }
 0x519   :  { %v1153_v29 = vmul.f32 %v1151_v23, %v1151_v23 }
 0x51b   :  { %v1157_v30 = vsel %vm153_vm1, %v1153_v29, 0.0 }
 0x51c   :  { %1158 = vadd.xlane.f32.xlu2 %v1157_v30  ;;  %1436 = vadd.xlane.f32.xlu1 %v1435_v24  ;;  %v1434_v8 = vpop.xlane.xlu0 %1433 }
 0x51d   :  { %v1438_v39 = vmul.f32 %v1434_v8, %v2994_v10 }
 0x51f   :  { %v3373_v14 = vsub.f32 %v2636_v28, %v1438_v39 }
 0x521   :  { %v1442_v17 = vmul.f32 %v3373_v14, %v3373_v14 }
 0x523   :  { %v1444_v20 = vsel %vm149_vm0, %v1442_v17, 0.0 }
 0x524   :  { %1445 = vadd.xlane.f32.xlu0 %v1444_v20 }
 0x587   :  { %v1156_v33 = vpop.xlane.xlu1 %1155 }
 0x588   :  { %v1160_v18 = vmul.f32 %v1156_v33, %v2994_v10 }
 0x58a   :  { %v1162_v44 = vadd.f32 1e-06, %v1160_v18 }
 0x58c   :  { %2751 = vrsqrt.f32 %v1162_v44  ;;  %vm1170_vm3 = vweird.f32 %v1162_v44 }
 0x58f   :  { %v1159_v40 = vpop.xlane.xlu2 %1158  ;;  %v1437_v7 = vpop.xlane.xlu1 %1436 }
 0x590   :  { %v1161_v31 = vmul.f32 %v1159_v40, %v2994_v10  ;;  %v1439_v9 = vmul.f32 %v1437_v7, %v2994_v10 }
 0x592   :  { %v2752_v43 = vpop.eup %2751  ;;  %v1163_v45 = vadd.f32 1e-06, %v1161_v31  ;;  %v3371_v60 = vsub.f32 %v2637_v38, %v1439_v9  ;;  %v2695_v38 = vld [vmem:[%s3795_s12 + $0x28] sm:$0xff]  ;;  %v2694_v31 = vld [vmem:[%s3795_s12 + $0x20] sm:$0xff] }
 0x593   :  { %v1165_v36 = vmul.f32 %v2752_v43, %v1162_v44  ;;  %vm1171_vm10 = vweird.f32 %v2752_v43  ;;  %v2696_v44 = vld [vmem:[%s3795_s12 + $0x30] sm:$0xff] }
 0x594   :  { %2753 = vrsqrt.f32 %v1163_v45  ;;  %vm1172_vm2 = vmor %vm1170_vm3, %vm1171_vm10  ;;  %vm1180_vm6 = vweird.f32 %v1163_v45  ;;  %v1443_v11 = vmul.f32 %v3371_v60, %v3371_v60 }
 0x595   :  { %v1166_v46 = vmul.f32 %v2752_v43, %v1165_v36 }
 0x596   :  { %v1447_v19 = vsel %vm153_vm1, %v1443_v11, 0.0  ;;  %v2821_v11 = vld [vmem:[%s3787_s4 + $0x18] sm:$0xff] }
 0x597   :  { %v1167_v49 = vmul.f32 0.5, %v1166_v46  ;;  %1448 = vadd.xlane.f32.xlu1 %v1447_v19  ;;  %v2693_v46 = vld [vmem:[%s3795_s12 + $0x18] sm:$0xff] }
 0x599   :  { %v1168_v50 = vsub.f32 1.5, %v1167_v49 }
 0x59a   :  { %v2754_v51 = vpop.eup %2753 }
 0x59b   :  { %v1169_v32 = vmul.f32 %v2752_v43, %v1168_v50  ;;  %v1175_v52 = vmul.f32 %v2754_v51, %v1163_v45  ;;  %vm1181_vm4 = vweird.f32 %v2754_v51 }
 0x59c   :  { %vm1182_vm5 = vmor %vm1180_vm6, %vm1181_vm4 }
 0x59d   :  { %v1176_v53 = vmul.f32 %v2754_v51, %v1175_v52  ;;  %v1173_v54 = vsel %vm1172_vm2, %v2752_v43, %v1169_v32  ;;  %v2692_v32 = vld [vmem:[%s3795_s12 + $0x10] sm:$0xff] }
 0x59e   :  { %v1184_v37 = vmul.f32 %v1173_v54, %v1150_v21  ;;  %v2711_v21 = vld [vmem:[%s3794_s11] ss:$0 sm:$0xff] }
 0x59f   :  { %v1177_v55 = vmul.f32 0.5, %v1176_v53 }
 0x5a0   :  { %v1189_v63 = vmul.f32 %v2709_v59, %v1184_v37 }
 0x5a1   :  { %v1178_v58 = vsub.f32 1.5, %v1177_v55 }
 0x5a2   :  { %v1194_v1 = vadd.f32 %v2710_v62, %v1189_v63 }
 0x5a3   :  { %v1179_v61 = vmul.f32 %v2754_v51, %v1178_v58 }
 0x5a5   :  { %v1183_v42 = vsel %vm1182_vm5, %v2754_v51, %v1179_v61  ;;  %v2691_v61 = vld [vmem:[%s3795_s12 + $0x8] sm:$0xff] }
 0x5a6   :  { %v1185_v0 = vmul.f32 %v1183_v42, %v1151_v23  ;;  %v2697_v23 = vld [vmem:[%s3795_s12 + $0x38] sm:$0xff] }
 0x5a7   :  { %1361 = vmatpush.bf16.msrb.mxu1 %v2697_v23 }
 0x5a8   :  { %v1190_v57 = vmul.f32 %v2709_v59, %v1185_v0 }
 0x5aa   :  { %v1195_v3 = vadd.f32 %v2710_v62, %v1190_v57 }
 0x5ab   :  { %1362 = vmatpush.bf16.msrb.mxu1 %v2696_v44 }
 0x5ac   :  { %v1196_v4 = vpack.c.bf16 %v1195_v3, %v1194_v1  ;;  %v2690_v1 = vld [vmem:[%s3795_s12] sm:$0xff] }
 0x5ae   :  { %2594 = vmatmul.msk.bf16.vlgmr.msra.gmra.mxu0 %vm149_vm0, %v1196_v4 }
 0x5af   :  { %1552 = vmatpush.bf16.msra.mxu0 %v2819_v5  ;;  %1363 = vmatpush.bf16.msrb.mxu1 %v2695_v38 }
 0x5b3   :  { %1553 = vmatpush.bf16.msra.mxu0 %v2820_v2  ;;  %1364 = vmatpush.bf16.msrb.mxu1 %v2694_v31 }
 0x5b7   :  { %1365 = vmatpush.bf16.msrb.mxu1 %v2693_v46 }
 0x5bb   :  { %1366 = vmatpush.bf16.msrb.mxu1 %v2692_v32 }
 0x5bf   :  { %1367 = vmatpush.bf16.msrb.mxu1 %v2691_v61 }
 0x5c3   :  { %1368 = vmatpush.bf16.msrb.mxu1 %v2690_v1 }
 0x5c7   :  { %1566 = vmatpush.bf16.msra.mxu1 %v2821_v11 }
 0x62b   :  { %v1224_v22 = vpop.f32.mrf.mxu0 }
 0x62c   :  { %v3384_v25 = vadd.f32 %v2711_v21, %v1224_v22 }
 0x62e   :  { %v3387_v26 = vmul.f32 0.70710677, %v3384_v25  ;;  %v1229_v32 = vmul.f32 0.5, %v3384_v25 }
 0x630   :  { %v1237_v27 = vand.u32 2147483647, %v3387_v26  ;;  %vm1233_vm4 = vcmp.lt.f32.partialorder %v3387_v26, 0.0 }
 0x632   :  { %v1239_v29 = vmul.f32 0.3275911, %v1237_v27  ;;  %v1291_v55 = vsub.f32 0.0, %v1237_v27 }
 0x633   :  { %v1226_v30 = vpop.f32.mrf.mxu0 }
 0x634   :  { %v1241_v33 = vadd.f32 1.0, %v1239_v29  ;;  %v3393_v18 = vadd.f32 %v2711_v21, %v1226_v30  ;;  %v1293_v0 = vmul.f32 %v1291_v55, %v1237_v27  ;;  %v2822_v27 = vld [vmem:[%s3787_s4 + $0x10] sm:$0xff] }
 0x635   :  { %1567 = vmatpush.bf16.msra.mxu1 %v2822_v27  ;;  %v2826_v27 = vld [vmem:[%s3810_s26] ss:$0 sm:$0xff] }
 0x636   :  { %2755 = vrcp.f32 %v1241_v33  ;;  %v3399_v34 = vmul.f32 0.70710677, %v3393_v18  ;;  %v1254_v43 = vand.u32 2147483648, %v1241_v33  ;;  %v1252_v36 = vand.u32 2147483647, %v1241_v33 }
 0x637   :  { %vm1248_vm8 = vweird.f32 %v1241_v33  ;;  %v1295_v7 = vmul.f32 1.442695, %v1293_v0  ;;  %v1230_v26 = vmul.f32 0.5, %v3393_v18 }
 0x638   :  { %v1238_v35 = vand.u32 2147483647, %v3399_v34  ;;  %v1255_v49 = vor.u32 1.1754944e-38, %v1254_v43  ;;  %vm1253_vm14 = vcmp.eq.f32.partialorder %v1252_v36, 8.507059e+37  ;;  %v2887_v43 = vmov 1.0  }
 0x639   :  { %vm1234_vm6 = vcmp.lt.f32.partialorder %v3399_v34, 0.0  ;;  %v2824_v34 = vld [vmem:[%s3788_s5 + $0x10] sm:$0xff] }
 0x63a   :  { %v1240_v28 = vmul.f32 0.3275911, %v1238_v35  ;;  %v1292_v9 = vsub.f32 0.0, %v1238_v35 }
 0x63c   :  { %v2756_v40 = vpop.eup %2755  ;;  %v1242_v47 = vadd.f32 1.0, %v1240_v28  ;;  %v1294_v21 = vmul.f32 %v1292_v9, %v1238_v35 }
 0x63d   :  { %v1244_v24 = vmul.f32 %v2756_v40, %v1241_v33  ;;  %vm1249_vm7 = vweird.f32 %v2756_v40 }
 0x63e   :  { %2757 = vrcp.f32 %v1242_v47  ;;  %vm1250_vm11 = vmor %vm1248_vm8, %vm1249_vm7  ;;  %v1269_v37 = vand.u32 2147483648, %v1242_v47  ;;  %v1267_v62 = vand.u32 2147483647, %v1242_v47  ;;  %vm1263_vm10 = vweird.f32 %v1242_v47 }
 0x63f   :  { %v1245_v41 = vsub.f32 1.0, %v1244_v24  ;;  %2759 = vpow2.f32 %v1295_v7  ;;  %v1297_v33 = vmul.f32 1.442695, %v1294_v21 }
 0x640   :  { %v1270_v4 = vor.u32 1.1754944e-38, %v1269_v37  ;;  %vm1268_vm2 = vcmp.eq.f32.partialorder %v1267_v62, 8.507059e+37  ;;  %v1446_v37 = vpop.xlane.xlu0 %1445 }
 0x641   :  { %v1246_v45 = vmul.f32 %v2756_v40, %v1245_v41  ;;  %2761 = vpow2.f32 %v1297_v33  ;;  %v1450_v18 = vmul.f32 %v1446_v37, %v2994_v10 }
 0x643   :  { %v1247_v48 = vadd.f32 %v2756_v40, %v1246_v45  ;;  %v1235_v45 = vsel %vm1233_vm4, -1.0, %v2887_v43 }
 0x644   :  { %v2758_v50 = vpop.eup %2757 }
 0x645   :  { %v1251_v51 = vsel %vm1250_vm11, %v2756_v40, %v1247_v48  ;;  %v1259_v53 = vmul.f32 %v2758_v50, %v1242_v47  ;;  %vm1264_vm15 = vweird.f32 %v2758_v50  ;;  %v2760_v38 = vpop.eup %2759 }
 0x646   :  { %v1256_v52 = vsel %vm1253_vm14, %v1255_v49, %v1251_v51  ;;  %vm1265_vm3 = vmor %vm1263_vm10, %vm1264_vm15  ;;  %v1236_v49 = vsel %vm1234_vm6, -1.0, %v2887_v43 }
 0x647   :  { %v1273_v54 = vmul.f32 1.0614054, %v1256_v52  ;;  %v1260_v58 = vsub.f32 1.0, %v1259_v53  ;;  %v2762_v41 = vpop.eup %2761 }
 0x649   :  { %v1275_v59 = vadd.f32 -1.4531521, %v1273_v54  ;;  %v1261_v42 = vmul.f32 %v2758_v50, %v1260_v58  ;;  %v2823_v58 = vld [vmem:[%s3788_s5 + $0x18] sm:$0xff] }
 0x64b   :  { %v1277_v63 = vmul.f32 %v1275_v59, %v1256_v52  ;;  %v1262_v57 = vadd.f32 %v2758_v50, %v1261_v42  ;;  %v1449_v59 = vpop.xlane.xlu1 %1448  ;;  %v1452_v42 = vadd.f32 1e-06, %v1450_v18 }
 0x64c   :  { %v1451_v25 = vmul.f32 %v1449_v59, %v2994_v10 }
 0x64d   :  { %v1279_v3 = vadd.f32 1.4214138, %v1277_v63  ;;  %v1266_v5 = vsel %vm1265_vm3, %v2758_v50, %v1262_v57  ;;  %vm1460_vm8 = vweird.f32 %v1452_v42 }
 0x64e   :  { %v1271_v8 = vsel %vm1268_vm2, %v1270_v4, %v1266_v5  ;;  %v1453_v61 = vadd.f32 1e-06, %v1451_v25 }
 0x64f   :  { %v1281_v2 = vmul.f32 %v1279_v3, %v1256_v52  ;;  %v1274_v39 = vmul.f32 1.0614054, %v1271_v8 }
 0x650   :  { %2763 = vrsqrt.f32 %v1453_v61  ;;  %vm1470_vm5 = vweird.f32 %v1453_v61 }
 0x651   :  { %v1283_v17 = vadd.f32 -0.28449672, %v1281_v2  ;;  %v1276_v19 = vadd.f32 -1.4531521, %v1274_v39  ;;  %2765 = vrsqrt.f32 %v1452_v42 }
 0x653   :  { %v1285_v20 = vmul.f32 %v1283_v17, %v1256_v52  ;;  %v1278_v22 = vmul.f32 %v1276_v19, %v1271_v8 }
 0x655   :  { %v1287_v23 = vadd.f32 0.2548296, %v1285_v20  ;;  %v1280_v29 = vadd.f32 1.4214138, %v1278_v22  ;;  %v2825_v20 = vld [vmem:[%s3809_s23] ss:$0 sm:$0xff] }
 0x656   :  { %v2764_v62 = vpop.eup %2763 }
 0x657   :  { %v1289_v30 = vmul.f32 %v1287_v23, %v1256_v52  ;;  %v1282_v44 = vmul.f32 %v1280_v29, %v1271_v8  ;;  %v2766_v63 = vpop.eup %2765  ;;  %v1465_v0 = vmul.f32 %v2764_v62, %v1453_v61  ;;  %vm1471_vm7 = vweird.f32 %v2764_v62 }
 0x658   :  { %v1455_v57 = vmul.f32 %v2766_v63, %v1452_v42  ;;  %vm1461_vm11 = vweird.f32 %v2766_v63  ;;  %vm1472_vm14 = vmor %vm1470_vm5, %vm1471_vm7 }
 0x659   :  { %v1299_v28 = vmul.f32 %v2760_v38, %v1289_v30  ;;  %v1284_v40 = vadd.f32 -0.28449672, %v1282_v44  ;;  %v1466_v1 = vmul.f32 %v2764_v62, %v1465_v0  ;;  %vm1462_vm15 = vmor %vm1460_vm8, %vm1461_vm11 }
 0x65a   :  { %v1456_v3 = vmul.f32 %v2766_v63, %v1455_v57 }
 0x65b   :  { %v1286_v24 = vmul.f32 %v1284_v40, %v1271_v8  ;;  %v1301_v47 = vsub.f32 1.0, %v1299_v28  ;;  %v1467_v4 = vmul.f32 0.5, %v1466_v1  ;;  %v2828_v28 = vld [vmem:[%s3788_s5 + $0x8] sm:$0xff]  ;;  %v2829_v40 = vld [vmem:[%s3787_s4 + $0x30] sm:$0xff] }
 0x65c   :  { %v1457_v5 = vmul.f32 0.5, %v1456_v3 }
 0x65d   :  { %v1288_v35 = vadd.f32 0.2548296, %v1286_v24  ;;  %v1303_v36 = vmul.f32 %v1301_v47, %v1235_v45  ;;  %v1468_v2 = vsub.f32 1.5, %v1467_v4  ;;  %v2830_v24 = vld [vmem:[%s3788_s5] sm:$0xff]  ;;  %v2831_v47 = vld [vmem:[%s3788_s5 + $0x38] sm:$0xff] }
 0x65e   :  { %v1458_v7 = vsub.f32 1.5, %v1457_v5 }
 0x65f   :  { %v1290_v31 = vmul.f32 %v1288_v35, %v1271_v8  ;;  %v1305_v50 = vadd.f32 1.0, %v1303_v36  ;;  %v1469_v8 = vmul.f32 %v2764_v62, %v1468_v2  ;;  %v2832_v35 = vld [vmem:[%s3788_s5 + $0x30] sm:$0xff] }
 0x660   :  { %v1459_v9 = vmul.f32 %v2766_v63, %v1458_v7 }
 0x661   :  { %v1300_v46 = vmul.f32 %v2762_v41, %v1290_v31  ;;  %v1307_v53 = vmul.f32 %v1305_v50, %v1229_v32  ;;  %v1473_v39 = vsel %vm1472_vm14, %v2764_v62, %v1469_v8  ;;  %v2712_v31 = vld [vmem:[%s3796_s13] ss:$0 sm:$0xff] }
 0x662   :  { %v1475_v11 = vmul.f32 %v1473_v39, %v3371_v60  ;;  %v1463_v17 = vsel %vm1462_vm15, %v2766_v63, %v1459_v9 }
 0x663   :  { %v1302_v48 = vsub.f32 1.0, %v1300_v46  ;;  %v1474_v19 = vmul.f32 %v1463_v17, %v3373_v14  ;;  %v2827_v14 = vld [vmem:[%s3787_s4 + $0x38] sm:$0xff] }
 0x664   :  { %v1477_v21 = vmul.f32 %v2825_v20, %v1475_v11 }
 0x665   :  { %v1304_v51 = vmul.f32 %v1302_v48, %v1236_v49  ;;  %v1476_v22 = vmul.f32 %v2825_v20, %v1474_v19 }
 0x666   :  { %v1479_v23 = vadd.f32 %v2826_v27, %v1477_v21 }
 0x667   :  { %v1306_v52 = vadd.f32 1.0, %v1304_v51  ;;  %v1478_v29 = vadd.f32 %v2826_v27, %v1476_v22 }
 0x668   :  { %v1481_v30 = vpack.c.bf16 %v1479_v23, %v1479_v23 }
 0x669   :  { %v1308_v54 = vmul.f32 %v1306_v52, %v1230_v26  ;;  %v1480_v33 = vpack.c.bf16 %v1478_v29, %v1478_v29 }
 0x66a   :  { %v1485_v44 = vunpack.c.l.b16 %v1481_v30 }
 0x66b   :  { %v1309_v55 = vpack.c.bf16 %v1308_v54, %v1307_v53  ;;  %v1484_v38 = vunpack.c.l.b16 %v1480_v33 }
 0x66d   :  { %1369 = vmatmul.bf16.vlgmr.msrb.gmra.mxu1 %v1309_v55  ;;  %v3448_v60 = vpack.c.b16 %v1485_v44, %v1484_v38 }
 0x66e   :  { %1622 = vmatpush.bf16.msrb.mxu1 %v2823_v58 }
 0x66f   :  { %2638 = vmatmul.msk.bf16.vlgmr.msrb.gmra.mxu3 %vm149_vm0, %v3448_v60  ;;  %2639 = vmatmul.msk.bf16.vlgmr.msrb.gmra.mxu0 %vm149_vm0, %v3448_v60 }
 0x670   :  { %1594 = vmatpush.bf16.msrb.mxu3 %v2827_v14  ;;  %1608 = vmatpush.bf16.msrb.mxu0 %v2828_v28 }
 0x672   :  { %1623 = vmatpush.bf16.msrb.mxu1 %v2824_v34 }
 0x674   :  { %1595 = vmatpush.bf16.msrb.mxu3 %v2829_v40  ;;  %1609 = vmatpush.bf16.msrb.mxu0 %v2830_v24 }
 0x67d   :  { %2643 = vmatmul.msk.bf16.vlgmr.msra.gmra.mxu1 %vm149_vm0, %v3448_v60 }
 0x67f   :  { %2641 = vmatmul.msk.bf16.vlgmr.msra.gmra.mxu3 %vm149_vm0, %v3448_v60  ;;  %2642 = vmatmul.msk.bf16.vlgmr.msra.gmra.mxu0 %vm149_vm0, %v3448_v60 }
 0x680   :  { %1650 = vmatpush.bf16.msra.mxu3 %v2831_v47 }
 0x684   :  { %1651 = vmatpush.bf16.msra.mxu3 %v2832_v35 }
 0x68d   :  { %2647 = vmatmul.msk.bf16.vlgmr.msrb.gmra.mxu1 %vm149_vm0, %v3448_v60 }
 0x68f   :  { %2645 = vmatmul.msk.bf16.vlgmr.msrb.gmra.mxu3 %vm149_vm0, %v3448_v60  ;;  %2646 = vmatmul.msk.bf16.vlgmr.msrb.gmra.mxu0 %vm149_vm0, %v3448_v60 }
 0x69f   :  { %2649 = vmatmul.msk.bf16.vlgmr.msra.gmra.mxu3 %vm149_vm0, %v3448_v60 }
 0x6ea   :  { %v1370_v41 = vpop.f32.mrf.mxu1 }
 0x6eb   :  { %v1371_v45 = vadd.f32 %v2712_v31, %v1370_v41 }
 0x6ec   :  { %v1513_v51 = vpop.f32.mrf.mxu0 }
 0x6ed   :  { %v1374_v36 = vadd.f32 %v1371_v45, %v3319_v6  ;;  %v1660_v26 = vpack.c.bf16 %v1513_v51, %v1513_v51  ;;  %v3512_v51 = vld [vmem:[%s3799_s16] sm:$0xff] }
 0x6ef   :  { %v1375_v46 = vsel %vm153_vm1, %v1374_v36, 0.0  ;;  %v1706_v54 = vunpack.c.l.b16 %v1660_v26 }
 0x6f0   :  { %1376 = vadd.xlane.f32.xlu2 %v1375_v46 }
 0x6f2   :  { %v1372_v48 = vpop.f32.mrf.mxu1  ;;  %v1499_v49 = vpop.f32.mrf.mxu3 }
 0x6f3   :  { %v1658_v4 = vpack.c.bf16 %v1499_v49, %v1499_v49  ;;  %v3505_v48 = vld [vmem:[%s3799_s16 + $0x8] sm:$0xff] }
 0x6f4   :  { %v1515_v53 = vpop.f32.mrf.mxu0  ;;  %1421 = vmatpush.bf16.msra.mxu2 %v3505_v48 }
 0x6f5   :  { %v1661_v55 = vpack.c.bf16 %v1515_v53, %v1515_v53  ;;  %v1676_v17 = vunpack.c.l.b16 %v1658_v4  ;;  %v2834_v4 = vld [vmem:[%s3786_s3 + $0x20] sm:$0xff] }
 0x6f7   :  { %v1707_v58 = vunpack.c.l.b16 %v1661_v55 }
 0x6f8   :  { %1422 = vmatpush.bf16.msra.mxu2 %v3512_v51 }
 0x6f9   :  { %v1708_v34 = vpack.c.b16 %v1707_v58, %v1706_v54 }
 0x6fa   :  { %v1501_v50 = vpop.f32.mrf.mxu3  ;;  %v1569_v44 = vpop.f32.mrf.mxu1 }
 0x6fb   :  { %v1659_v5 = vpack.c.bf16 %v1501_v50, %v1501_v50  ;;  %v1668_v38 = vpack.c.bf16 %v1569_v44, %v1569_v44 }
 0x6fc   :  { %v1555_v37 = vpop.f32.mrf.mxu0 }
 0x6fd   :  { %v1666_v18 = vpack.c.bf16 %v1555_v37, %v1555_v37  ;;  %v1677_v19 = vunpack.c.l.b16 %v1659_v5  ;;  %v1711_v28 = vunpack.c.l.b16 %v1668_v38  ;;  %v2835_v38 = vld [vmem:[%s3787_s4 + $0x28] sm:$0xff] }
 0x6ff   :  { %v1681_v63 = vunpack.c.l.b16 %v1666_v18  ;;  %v1678_v22 = vpack.c.b16 %v1677_v19, %v1676_v17  ;;  %v2833_v18 = vld [vmem:[%s3786_s3 + $0x28] sm:$0xff] }
 0x700   :  { %1524 = vmatpush.bf16.msrb.mxu2 %v2833_v18 }
 0x702   :  { %v1541_v32 = vpop.f32.mrf.mxu3  ;;  %v1571_v14 = vpop.f32.mrf.mxu1 }
 0x703   :  { %v1664_v57 = vpack.c.bf16 %v1541_v32, %v1541_v32  ;;  %v1669_v40 = vpack.c.bf16 %v1571_v14, %v1571_v14  ;;  %v2836_v14 = vld [vmem:[%s3787_s4 + $0x20] sm:$0xff] }
 0x704   :  { %v1557_v62 = vpop.f32.mrf.mxu0  ;;  %1525 = vmatpush.bf16.msrb.mxu2 %v2834_v4 }
 0x705   :  { %v1667_v0 = vpack.c.bf16 %v1557_v62, %v1557_v62  ;;  %v1766_v9 = vunpack.c.l.b16 %v1664_v57  ;;  %v1712_v24 = vunpack.c.l.b16 %v1669_v40  ;;  %v146_v40 = vld [vmem:[%s3800_s17] sm:$0x1] }
 0x707   :  { %v1682_v2 = vunpack.c.l.b16 %v1667_v0  ;;  %v1713_v47 = vpack.c.b16 %v1712_v24, %v1711_v28  ;;  %v2838_v28 = vld [vmem:[%s3788_s5 + $0x20] sm:$0xff] }
 0x709   :  { %v1683_v8 = vpack.c.b16 %v1682_v2, %v1681_v63  ;;  %v1718_v35 = vsel %vm560_vm9, %v1713_v47, 0 }
 0x70a   :  { %v1543_v52 = vpop.f32.mrf.mxu3  ;;  %v1625_v41 = vpop.f32.mrf.mxu1  ;;  %1727 = vmatpush.bf16.xpose.msra.mxu1 %v1718_v35 }
 0x70b   :  { %v1665_v1 = vpack.c.bf16 %v1543_v52, %v1543_v52  ;;  %v1688_v20 = vsel %vm560_vm9, %v1683_v8, 0  ;;  %v2004_v46 = vpack.c.bf16 %v1625_v41, %v1625_v41 }
 0x70c   :  { %1697 = vmatpush.bf16.xpose.msra.mxu0 %v1688_v20  ;;  %v1611_v31 = vpop.f32.mrf.mxu0 }
 0x70d   :  { %v1767_v39 = vunpack.c.l.b16 %v1665_v1  ;;  %v2047_v26 = vunpack.c.l.b16 %v2004_v46 }
 0x70f   :  { %v1768_v21 = vpack.c.b16 %v1767_v39, %v1766_v9 }
 0x711   :  { %2651 = vmatmul.msk.bf16.vlgmr.msra.gmra.mxu1 %vm560_vm9, %v1708_v34 }
 0x712   :  { %v1597_v59 = vpop.f32.mrf.mxu3  ;;  %v1627_v50 = vpop.f32.mrf.mxu1 }
 0x713   :  { %v1672_v25 = vpack.c.bf16 %v1597_v59, %v1597_v59  ;;  %2650 = vmatmul.msk.bf16.vlgmr.msra.gmra.mxu0 %vm560_vm9, %v1678_v22  ;;  %v2005_v53 = vpack.c.bf16 %v1627_v50, %v1627_v50 }
 0x714   :  { %v1613_v49 = vpop.f32.mrf.mxu0 }
 0x715   :  { %v1771_v61 = vunpack.c.l.b16 %v1672_v25  ;;  %v2003_v52 = vpack.c.bf16 %v1613_v49, %v1613_v49  ;;  %v2048_v58 = vunpack.c.l.b16 %v2005_v53 }
 0x717   :  { %v2018_v55 = vunpack.c.l.b16 %v2003_v52  ;;  %v2049_v37 = vpack.c.b16 %v2048_v58, %v2047_v26 }
 0x719   :  { %v2054_v63 = vand.u32 %v2049_v37, %v3121_v56 }
 0x71a   :  { %v1599_v6 = vpop.f32.mrf.mxu3 }
 0x71b   :  { %v1673_v42 = vpack.c.bf16 %v1599_v6, %v1599_v6  ;;  %2063 = vmatpush.bf16.msrb.mxu1 %v2054_v63 }
 0x71d   :  { %v1772_v3 = vunpack.c.l.b16 %v1673_v42 }
 0x71f   :  { %v1773_v7 = vpack.c.b16 %v1772_v3, %v1771_v61  ;;  %2175 = vmatpush.bf16.msra.mxu1 %v3297_v16 }
 0x721   :  { %v1778_v11 = vsel %vm560_vm9, %v1773_v7, 0 }
 0x722   :  { %1787 = vmatpush.bf16.xpose.msrb.mxu3 %v1778_v11  ;;  %v1653_v45 = vpop.f32.mrf.mxu3 }
 0x723   :  { %v2008_v54 = vpack.c.bf16 %v1653_v45, %v1653_v45 }
 0x725   :  { %v2107_v61 = vunpack.c.l.b16 %v2008_v54 }
 0x729   :  { %2653 = vmatmul.msk.bf16.vlgmr.msrb.gmra.mxu3 %vm560_vm9, %v1768_v21 }
 0x72a   :  { %v1655_v25 = vpop.f32.mrf.mxu3 }
 0x72b   :  { %v2009_v42 = vpack.c.bf16 %v1655_v25, %v1655_v25 }
 0x72d   :  { %v2108_v57 = vunpack.c.l.b16 %v2009_v42 }
 0x72f   :  { %v2109_v3 = vpack.c.b16 %v2108_v57, %v2107_v61 }
 0x731   :  { %v2114_v5 = vand.u32 %v2109_v3, %v3121_v56 }
 0x733   :  { %2123 = vmatpush.bf16.msra.mxu3 %v2114_v5 }
 0x737   :  { %2219 = vmatpush.bf16.msrb.mxu3 %v3289_v15  ;;  %v140_v15 = vld [vmem:[%s3797_s14] sm:$0x1] }
 0x763   :  { %v1377_v27 = vpop.xlane.xlu2 %1376 }
 0x764   :  { %v1378_v23 = vmul.f32 %v1377_v27, %v2994_v10 }
 0x766   :  { %v3496_v29 = vsub.f32 %v1374_v36, %v1378_v23  ;;  %v2002_v36 = vpack.c.bf16 %v1611_v31, %v1611_v31  ;;  %v141_v23 = vld [vmem:[%s3798_s15] sm:$0x1] }
 0x768   :  { %v1380_v30 = vmul.f32 %v3496_v29, %v3496_v29  ;;  %v2017_v32 = vunpack.c.l.b16 %v2002_v36 }
 0x76a   :  { %v1381_v33 = vsel %vm153_vm1, %v1380_v30, 0.0  ;;  %v2019_v34 = vpack.c.b16 %v2018_v55, %v2017_v32 }
 0x76b   :  { %1382 = vadd.xlane.f32.xlu2 %v1381_v33 }
 0x76c   :  { %v2024_v62 = vand.u32 %v2019_v34, %v3121_v56 }
 0x76e   :  { %2033 = vmatpush.bf16.msrb.mxu0 %v2024_v62 }
 0x772   :  { %2153 = vmatpush.bf16.msra.mxu0 %v3282_v13 }
 0x790   :  { %v3521_v1 = vpop.f32.mrf.mxu0 }
 0x798   :  { %v1701_v11 = vpop.f32.mrf.mxu0 }
 0x799   :  { %v3534_v19 = vmul.f32 0.35355338, %v1701_v11 }
 0x79b   :  { %v1805_v20 = vsel %vm683_vm13, %v3534_v19, -inf }
 0x7ac   :  { %v1789_v2 = vpop.f32.mrf.mxu3 }
 0x7ad   :  { %v3529_v7 = vmul.f32 0.35355338, %v1789_v2  ;;  %v1729_v2 = vpop.f32.mrf.mxu1 }
 0x7af   :  { %v1820_v39 = vsel %vm679_vm12, %v3529_v7, -inf }
 0x7b0   :  { %1821 = vmax.xlane.f32.xlu2 %v1820_v39  ;;  %v1794_v39 = vmul.f32 0.35355338, %v3521_v1 }
 0x7b4   :  { %v1791_v57 = vpop.f32.mrf.mxu3 }
 0x7b5   :  { %v1801_v3 = vmul.f32 0.35355338, %v1791_v57 }
 0x7b8   :  { %1806 = vmax.xlane.f32.xlu2 %v1805_v20 }
 0x7de   :  { %v1383_v59 = vpop.xlane.xlu2 %1382 }
 0x7df   :  { %v1384_v6 = vmul.f32 %v1383_v59, %v2994_v10 }
 0x7e1   :  { %v1385_v0 = vadd.f32 1e-06, %v1384_v6 }
 0x7e3   :  { %2767 = vrsqrt.f32 %v1385_v0  ;;  %vm1392_vm3 = vweird.f32 %v1385_v0 }
 0x7e9   :  { %v2768_v8 = vpop.eup %2767 }
 0x7ea   :  { %v1387_v9 = vmul.f32 %v2768_v8, %v1385_v0  ;;  %vm1393_vm10 = vweird.f32 %v2768_v8 }
 0x7eb   :  { %vm1394_vm2 = vmor %vm1392_vm3, %vm1393_vm10 }
 0x7ec   :  { %v1388_v17 = vmul.f32 %v2768_v8, %v1387_v9  ;;  %v1823_v9 = vsel %vm683_vm13, %v1801_v3, -inf }
 0x7ee   :  { %v1389_v13 = vmul.f32 0.5, %v1388_v17  ;;  %v1802_v17 = vsel %vm679_vm12, %v1794_v39, -inf }
 0x7f0   :  { %v1390_v16 = vsub.f32 1.5, %v1389_v13 }
 0x7f2   :  { %v1391_v21 = vmul.f32 %v2768_v8, %v1390_v16  ;;  %v1731_v16 = vpop.f32.mrf.mxu1 }
 0x7f4   :  { %v1395_v22 = vsel %vm1394_vm2, %v2768_v8, %v1391_v21  ;;  %v1797_v21 = vmul.f32 0.35355338, %v1731_v16 }
 0x7f5   :  { %v1396_v27 = vmul.f32 %v1395_v22, %v3496_v29  ;;  %v2837_v29 = vld [vmem:[%s3788_s5 + $0x28] sm:$0xff] }
 0x7f7   :  { %v1397_v30 = vmul.f32 %v1396_v27, %v140_v15  ;;  %v1811_v27 = vsel %vm683_vm13, %v1797_v21, -inf }
 0x7f9   :  { %v1398_v33 = vadd.f32 %v1397_v30, %v141_v23 }
 0x7fb   :  { %v1399_v44 = vpack.c.bf16 %v1398_v33, %v1398_v33 }
 0x7fd   :  { %2635 = vmatmul.msk.bf16.vlgmr.msra.gmra.mxu2 %vm149_vm0, %v1399_v44 }
 0x7fe   :  { %1580 = vmatpush.bf16.msra.mxu2 %v2835_v38 }
 0x802   :  { %1581 = vmatpush.bf16.msra.mxu2 %v2836_v14 }
 0x80d   :  { %2640 = vmatmul.msk.bf16.vlgmr.msrb.gmra.mxu2 %vm149_vm0, %v3448_v60 }
 0x80e   :  { %1636 = vmatpush.bf16.msrb.mxu2 %v2837_v29 }
 0x812   :  { %1637 = vmatpush.bf16.msrb.mxu2 %v2838_v28 }
 0x81d   :  { %2644 = vmatmul.msk.bf16.vlgmr.msra.gmra.mxu2 %vm149_vm0, %v3448_v60 }
 0x82d   :  { %2648 = vmatmul.msk.bf16.vlgmr.msrb.gmra.mxu2 %vm149_vm0, %v3448_v60 }
 0x880   :  { %v1424_v24 = vpop.f32.mrf.mxu2 }
 0x881   :  { %v1425_v47 = vadd.f32 %v1424_v24, %v146_v40 }
 0x883   :  { %1428 = vst [vmem:[#allocation2] sm:$0x1] %v1425_v47 }
 0x888   :  { %v1426_v35 = vpop.f32.mrf.mxu2 }
 0x890   :  { %v1527_v31 = vpop.f32.mrf.mxu2 }
 0x891   :  { %v1662_v53 = vpack.c.bf16 %v1527_v31, %v1527_v31 }
 0x893   :  { %v1736_v58 = vunpack.c.l.b16 %v1662_v53 }
 0x898   :  { %v1529_v41 = vpop.f32.mrf.mxu2 }
 0x899   :  { %v1663_v26 = vpack.c.bf16 %v1529_v41, %v1529_v41 }
 0x89b   :  { %v1737_v55 = vunpack.c.l.b16 %v1663_v26 }
 0x89d   :  { %v1738_v59 = vpack.c.b16 %v1737_v55, %v1736_v58 }
 0x8a0   :  { %v1583_v45 = vpop.f32.mrf.mxu2 }
 0x8a1   :  { %v1670_v36 = vpack.c.bf16 %v1583_v45, %v1583_v45 }
 0x8a3   :  { %v1741_v50 = vunpack.c.l.b16 %v1670_v36 }
 0x8a8   :  { %v1585_v46 = vpop.f32.mrf.mxu2 }
 0x8a9   :  { %v1671_v49 = vpack.c.bf16 %v1585_v46, %v1585_v46 }
 0x8ab   :  { %v1742_v32 = vunpack.c.l.b16 %v1671_v49 }
 0x8ad   :  { %v1743_v52 = vpack.c.b16 %v1742_v32, %v1741_v50 }
 0x8af   :  { %v1748_v60 = vsel %vm560_vm9, %v1743_v52, 0 }
 0x8b0   :  { %v1639_v54 = vpop.f32.mrf.mxu2  ;;  %1757 = vmatpush.bf16.xpose.msra.mxu2 %v1748_v60 }
 0x8b1   :  { %v2006_v34 = vpack.c.bf16 %v1639_v54, %v1639_v54 }
 0x8b3   :  { %v2077_v18 = vunpack.c.l.b16 %v2006_v34 }
 0x8b7   :  { %2652 = vmatmul.msk.bf16.vlgmr.msra.gmra.mxu2 %vm560_vm9, %v1738_v59 }
 0x8b8   :  { %v1641_v37 = vpop.f32.mrf.mxu2 }
 0x8b9   :  { %v2007_v25 = vpack.c.bf16 %v1641_v37, %v1641_v37 }
 0x8bb   :  { %v2078_v6 = vunpack.c.l.b16 %v2007_v25 }
 0x8bd   :  { %v2079_v61 = vpack.c.b16 %v2078_v6, %v2077_v18 }
 0x8bf   :  { %v2084_v42 = vand.u32 %v2079_v61, %v3121_v56  ;;  %v1822_v56 = vpop.xlane.xlu2 %1821 }
 0x8c0   :  { %v1832_v11 = vsub.f32 %v3529_v7, %v1822_v56 }
 0x8c1   :  { %2093 = vmatpush.bf16.msrb.mxu2 %v2084_v42 }
 0x8c2   :  { %v1846_v20 = vmul.f32 1.442695, %v1832_v11 }
 0x8c4   :  { %2769 = vpow2.f32 %v1846_v20 }
 0x8c5   :  { %2197 = vmatpush.bf16.msra.mxu2 %v3275_v12  ;;  %v1796_v12 = vmul.f32 0.35355338, %v1729_v2 }
 0x8c7   :  { %v1808_v13 = vsel %vm679_vm12, %v1796_v12, -inf  ;;  %v1807_v15 = vpop.xlane.xlu2 %1806 }
 0x8c8   :  { %v1827_v22 = vsub.f32 %v3534_v19, %v1807_v15 }
 0x8ca   :  { %v1836_v1 = vmul.f32 1.442695, %v1827_v22  ;;  %v3580_v23 = vpop.eup %2769 }
 0x8cb   :  { %v1868_v7 = vsel %vm679_vm12, %v3580_v23, 0.0 }
 0x8cc   :  { %2771 = vpow2.f32 %v1836_v1 }
 0x8d2   :  { %v3584_v30 = vpop.eup %2771 }
 0x8d3   :  { %v1853_v33 = vsel %vm683_vm13, %v3584_v30, 0.0 }
 0x93a   :  { %v1759_v62 = vpop.f32.mrf.mxu2 }
 0x93b   :  { %v1798_v63 = vmul.f32 0.35355338, %v1759_v62 }
 0x93d   :  { %v1814_v0 = vsel %vm679_vm12, %v1798_v63, -inf }
 0x93e   :  { %1815 = vmax.xlane.f32.xlu0 %v1814_v0 }
 0x942   :  { %v1761_v4 = vpop.f32.mrf.mxu2 }
 0x943   :  { %v1799_v5 = vmul.f32 0.35355338, %v1761_v4 }
 0x945   :  { %v1817_v8 = vsel %vm683_vm13, %v1799_v5, -inf }
 0x946   :  { %1818 = vmax.xlane.f32.xlu1 %v1817_v8  ;;  %1824 = vmax.xlane.f32.xlu0 %v1823_v9 }
 0x94e   :  { %1803 = vmax.xlane.f32.xlu1 %v1802_v17  ;;  %1809 = vmax.xlane.f32.xlu0 %v1808_v13 }
 0x956   :  { %1812 = vmax.xlane.f32.xlu1 %v1811_v27 }
 0x95e   :  { %1869 = vadd.xlane.f32.xlu1 %v1868_v7 }
 0x966   :  { %1854 = vadd.xlane.f32.xlu1 %v1853_v33 }
 0x9b1   :  { %v1816_v44 = vpop.xlane.xlu0 %1815 }
 0x9b2   :  { %v1830_v38 = vsub.f32 %v1798_v63, %v1816_v44 }
 0x9b4   :  { %v1842_v19 = vmul.f32 1.442695, %v1830_v38 }
 0x9b6   :  { %2773 = vpow2.f32 %v1842_v19 }
 0x9b9   :  { %v1819_v14 = vpop.xlane.xlu1 %1818  ;;  %v1825_v29 = vpop.xlane.xlu0 %1824 }
 0x9ba   :  { %v1831_v28 = vsub.f32 %v1799_v5, %v1819_v14  ;;  %v1833_v40 = vsub.f32 %v1801_v3, %v1825_v29 }
 0x9bc   :  { %v3588_v24 = vpop.eup %2773  ;;  %v1844_v47 = vmul.f32 1.442695, %v1831_v28  ;;  %v1848_v35 = vmul.f32 1.442695, %v1833_v40 }
 0x9bd   :  { %v1862_v31 = vsel %vm679_vm12, %v3588_v24, 0.0 }
 0x9be   :  { %2775 = vpow2.f32 %v1844_v47  ;;  %1863 = vadd.xlane.f32.xlu2 %v1862_v31 }
 0x9bf   :  { %2777 = vpow2.f32 %v1848_v35 }
 0x9c1   :  { %v1804_v41 = vpop.xlane.xlu1 %1803  ;;  %v1810_v45 = vpop.xlane.xlu0 %1809 }
 0x9c2   :  { %v1826_v36 = vsub.f32 %v1794_v39, %v1804_v41  ;;  %v1828_v46 = vsub.f32 %v1796_v12, %v1810_v45 }
 0x9c4   :  { %v3592_v49 = vpop.eup %2775  ;;  %v1834_v50 = vmul.f32 1.442695, %v1826_v36  ;;  %v1838_v32 = vmul.f32 1.442695, %v1828_v46 }
 0x9c5   :  { %v3594_v26 = vpop.eup %2777  ;;  %v1865_v52 = vsel %vm683_vm13, %v3592_v49, 0.0 }
 0x9c6   :  { %2779 = vpow2.f32 %v1834_v50  ;;  %1866 = vadd.xlane.f32.xlu0 %v1865_v52  ;;  %v1871_v53 = vsel %vm683_vm13, %v3594_v26, 0.0 }
 0x9c7   :  { %2781 = vpow2.f32 %v1838_v32  ;;  %1872 = vadd.xlane.f32.xlu2 %v1871_v53 }
 0x9c9   :  { %v1813_v60 = vpop.xlane.xlu1 %1812 }
 0x9ca   :  { %v1829_v54 = vsub.f32 %v1797_v21, %v1813_v60 }
 0x9cc   :  { %v3600_v55 = vpop.eup %2779  ;;  %v1840_v58 = vmul.f32 1.442695, %v1829_v54 }
 0x9cd   :  { %v3602_v59 = vpop.eup %2781  ;;  %v1850_v34 = vsel %vm679_vm12, %v3600_v55, 0.0 }
 0x9ce   :  { %2783 = vpow2.f32 %v1840_v58  ;;  %1851 = vadd.xlane.f32.xlu0 %v1850_v34  ;;  %v1856_v37 = vsel %vm679_vm12, %v3602_v59, 0.0 }
 0x9cf   :  { %1857 = vadd.xlane.f32.xlu2 %v1856_v37 }
 0x9d1   :  { %v1870_v6 = vpop.xlane.xlu1 %1869 }
 0x9d2   :  { %2785 = vrcp.f32 %v1870_v6  ;;  %v1975_v8 = vand.u32 2147483648, %v1870_v6  ;;  %vm1969_vm6 = vweird.f32 %v1870_v6  ;;  %v1973_v9 = vand.u32 2147483647, %v1870_v6 }
 0x9d4   :  { %v3608_v25 = vpop.eup %2783  ;;  %v1976_v13 = vor.u32 1.1754944e-38, %v1975_v8  ;;  %vm1974_vm5 = vcmp.eq.f32.partialorder %v1973_v9, 8.507059e+37 }
 0x9d5   :  { %v1859_v18 = vsel %vm683_vm13, %v3608_v25, 0.0 }
 0x9d6   :  { %1860 = vadd.xlane.f32.xlu0 %v1859_v18 }
 0x9d8   :  { %v2786_v42 = vpop.eup %2785 }
 0x9d9   :  { %v1855_v61 = vpop.xlane.xlu1 %1854  ;;  %v1965_v62 = vmul.f32 %v2786_v42, %v1870_v6  ;;  %vm1970_vm4 = vweird.f32 %v2786_v42 }
 0x9da   :  { %2787 = vrcp.f32 %v1855_v61  ;;  %vm1971_vm13 = vmor %vm1969_vm6, %vm1970_vm4  ;;  %v1898_v15 = vand.u32 2147483647, %v1855_v61  ;;  %vm1894_vm11 = vweird.f32 %v1855_v61  ;;  %v1900_v7 = vand.u32 2147483648, %v1855_v61 }
 0x9db   :  { %v1966_v63 = vsub.f32 1.0, %v1965_v62 }
 0x9dc   :  { %vm3617_vm10 = vcmp.eq.f32.partialorder %v1898_v15, 8.507059e+37  ;;  %v1901_v41 = vor.u32 1.1754944e-38, %v1900_v7 }
 0x9dd   :  { %v1967_v57 = vmul.f32 %v2786_v42, %v1966_v63 }
 0x9df   :  { %v1968_v5 = vadd.f32 %v2786_v42, %v1967_v57 }
 0x9e0   :  { %v2788_v0 = vpop.eup %2787 }
 0x9e1   :  { %v1890_v3 = vmul.f32 %v2788_v0, %v1855_v61  ;;  %v1972_v39 = vsel %vm1971_vm13, %v2786_v42, %v1968_v5  ;;  %vm1895_vm7 = vweird.f32 %v2788_v0 }
 0x9e2   :  { %v1977_v21 = vsel %vm1974_vm5, %v1976_v13, %v1972_v39  ;;  %vm3613_vm14 = vmor %vm1894_vm11, %vm1895_vm7 }
 0x9e3   :  { %v1891_v2 = vsub.f32 1.0, %v1890_v3  ;;  %v1978_v44 = vmul.f32 %v3580_v23, %v1977_v21 }
 0x9e5   :  { %v1892_v12 = vmul.f32 %v2788_v0, %v1891_v2  ;;  %v2000_v46 = vpack.c.bf16 %v1978_v44, %v1978_v44 }
 0x9e7   :  { %v1893_v22 = vadd.f32 %v2788_v0, %v1892_v12  ;;  %v2102_v61 = vunpack.c.l.b16 %v2000_v46 }
 0x9e9   :  { %v1897_v40 = vsel %vm3613_vm14, %v2788_v0, %v1893_v22 }
 0x9ea   :  { %v1902_v52 = vsel %vm3617_vm10, %v1901_v41, %v1897_v40 }
 0x9eb   :  { %v3633_v42 = vmul.f32 %v3584_v30, %v1902_v52 }
 0x9ed   :  { %v1995_v41 = vpack.c.bf16 %v3633_v42, %v3633_v42 }
 0xa31   :  { %v1864_v4 = vpop.xlane.xlu2 %1863 }
 0xa32   :  { %2789 = vrcp.f32 %v1864_v4  ;;  %v1945_v1 = vand.u32 2147483648, %v1864_v4  ;;  %v1943_v33 = vand.u32 2147483647, %v1864_v4  ;;  %vm1939_vm15 = vweird.f32 %v1864_v4 }
 0xa34   :  { %v1946_v35 = vor.u32 1.1754944e-38, %v1945_v1  ;;  %vm1944_vm2 = vcmp.eq.f32.partialorder %v1943_v33, 8.507059e+37 }
 0xa38   :  { %v2790_v56 = vpop.eup %2789 }
 0xa39   :  { %v1935_v11 = vmul.f32 %v2790_v56, %v1864_v4  ;;  %v1867_v17 = vpop.xlane.xlu0 %1866  ;;  %vm1940_vm8 = vweird.f32 %v2790_v56 }
 0xa3a   :  { %v1873_v16 = vpop.xlane.xlu2 %1872  ;;  %2791 = vrcp.f32 %v1867_v17  ;;  %vm1941_vm3 = vmor %vm1939_vm15, %vm1940_vm8  ;;  %v1958_v60 = vand.u32 2147483647, %v1867_v17  ;;  %v1960_v54 = vand.u32 2147483648, %v1867_v17  ;;  %vm1954_vm13 = vweird.f32 %v1867_v17 }
 0xa3b   :  { %v1936_v20 = vsub.f32 1.0, %v1935_v11  ;;  %2793 = vrcp.f32 %v1873_v16  ;;  %v1988_v58 = vand.u32 2147483647, %v1873_v16  ;;  %v1990_v34 = vand.u32 2147483648, %v1873_v16 }
 0xa3c   :  { %vm1984_vm5 = vweird.f32 %v1873_v16  ;;  %vm1959_vm8 = vcmp.eq.f32.partialorder %v1958_v60, 8.507059e+37  ;;  %v1961_v57 = vor.u32 1.1754944e-38, %v1960_v54  ;;  %v2013_v54 = vunpack.c.l.b16 %v1995_v41 }
 0xa3d   :  { %v1937_v27 = vmul.f32 %v2790_v56, %v1936_v20  ;;  %vm1989_vm14 = vcmp.eq.f32.partialorder %v1988_v58, 8.507059e+37  ;;  %v1991_v4 = vor.u32 1.1754944e-38, %v1990_v34 }
 0xa3f   :  { %v1938_v19 = vadd.f32 %v2790_v56, %v1937_v27 }
 0xa40   :  { %v2792_v14 = vpop.eup %2791 }
 0xa41   :  { %v2794_v28 = vpop.eup %2793  ;;  %v1942_v47 = vsel %vm1941_vm3, %v2790_v56, %v1938_v19  ;;  %v1950_v31 = vmul.f32 %v2792_v14, %v1867_v17  ;;  %v3623_v23 = vpop.xlane.xlu0 %1851  ;;  %vm1955_vm4 = vweird.f32 %v2792_v14 }
 0xa42   :  { %v1980_v45 = vmul.f32 %v2794_v28, %v1873_v16  ;;  %v3625_v36 = vpop.xlane.xlu2 %1857  ;;  %2795 = vrcp.f32 %v3623_v23  ;;  %v1947_v50 = vsel %vm1944_vm2, %v1946_v35, %v1942_v47  ;;  %vm1985_vm6 = vweird.f32 %v2794_v28  ;;  %vm1956_vm7 = vmor %vm1954_vm13, %vm1955_vm4 }
 0xa43   :  { %v1951_v32 = vsub.f32 1.0, %v1950_v31  ;;  %2797 = vrcp.f32 %v3625_v36  ;;  %v1948_v18 = vmul.f32 %v3588_v24, %v1947_v50  ;;  %vm1986_vm11 = vmor %vm1984_vm5, %vm1985_vm6  ;;  %vm1909_vm15 = vweird.f32 %v3625_v36 }
 0xa44   :  { %v1981_v53 = vsub.f32 1.0, %v1980_v45  ;;  %v1885_v16 = vand.u32 2147483648, %v3623_v23  ;;  %v1883_v15 = vand.u32 2147483647, %v3623_v23  ;;  %vm1879_vm2 = vweird.f32 %v3623_v23 }
 0xa45   :  { %v1952_v37 = vmul.f32 %v2792_v14, %v1951_v32  ;;  %v1998_v8 = vpack.c.bf16 %v1948_v18, %v1948_v18  ;;  %v1913_v38 = vand.u32 2147483647, %v3625_v36 }
 0xa46   :  { %v1982_v6 = vmul.f32 %v2794_v28, %v1981_v53  ;;  %v1886_v19 = vor.u32 1.1754944e-38, %v1885_v16  ;;  %vm1884_vm13 = vcmp.eq.f32.partialorder %v1883_v15, 8.507059e+37 }
 0xa47   :  { %v1953_v62 = vadd.f32 %v2792_v14, %v1952_v37  ;;  %v2072_v1 = vunpack.c.l.b16 %v1998_v8  ;;  %vm1914_vm5 = vcmp.eq.f32.partialorder %v1913_v38, 8.507059e+37  ;;  %v2847_v8 = vld [vmem:[%s3795_s12 + $0x8] sm:$0xff] }
 0xa48   :  { %v2796_v63 = vpop.eup %2795  ;;  %v1983_v0 = vadd.f32 %v2794_v28, %v1982_v6 }
 0xa49   :  { %v2798_v3 = vpop.eup %2797  ;;  %v1957_v5 = vsel %vm1956_vm7, %v2792_v14, %v1953_v62  ;;  %v1875_v24 = vmul.f32 %v2796_v63, %v3623_v23  ;;  %v3636_v2 = vpop.xlane.xlu0 %1860  ;;  %vm1880_vm10 = vweird.f32 %v2796_v63 }
 0xa4a   :  { %v1987_v30 = vsel %vm1986_vm11, %v2794_v28, %v1983_v0  ;;  %v1962_v9 = vsel %vm1959_vm8, %v1961_v57, %v1957_v5  ;;  %v1905_v56 = vmul.f32 %v2798_v3, %v3625_v36  ;;  %2799 = vrcp.f32 %v3636_v2  ;;  %vm1881_vm4 = vmor %vm1879_vm2, %vm1880_vm10  ;;  %v2844_v5 = vld [vmem:[%s3795_s12 + $0x20] sm:$0xff] }
 0xa4b   :  { %v1992_v39 = vsel %vm1989_vm14, %v1991_v4, %v1987_v30  ;;  %v1963_v12 = vmul.f32 %v3592_v49, %v1962_v9  ;;  %v1876_v11 = vsub.f32 1.0, %v1875_v24  ;;  %vm1910_vm3 = vweird.f32 %v2798_v3  ;;  %v2843_v4 = vld [vmem:[%s3795_s12 + $0x28] sm:$0xff]  ;;  %v2845_v24 = vld [vmem:[%s3795_s12 + $0x18] sm:$0xff]  ;;  %v2848_v30 = vld [vmem:[%s3795_s12] sm:$0xff] }
 0xa4c   :  { %v1993_v17 = vmul.f32 %v3594_v26, %v1992_v39  ;;  %v1906_v13 = vsub.f32 1.0, %v1905_v56  ;;  %v1915_v49 = vand.u32 2147483648, %v3625_v36  ;;  %vm3650_vm6 = vmor %vm1909_vm15, %vm1910_vm3  ;;  %v1930_v52 = vand.u32 2147483648, %v3636_v2 }
 0xa4d   :  { %v1999_v20 = vpack.c.bf16 %v1963_v12, %v1963_v12  ;;  %v1877_v21 = vmul.f32 %v2796_v63, %v1876_v11  ;;  %v1928_v60 = vand.u32 2147483647, %v3636_v2  ;;  %vm1924_vm8 = vweird.f32 %v3636_v2 }
 0xa4e   :  { %v2001_v22 = vpack.c.bf16 %v1993_v17, %v1993_v17  ;;  %v1907_v27 = vmul.f32 %v2798_v3, %v1906_v13  ;;  %v1916_v45 = vor.u32 1.1754944e-38, %v1915_v49  ;;  %v1931_v37 = vor.u32 1.1754944e-38, %v1930_v52 }
 0xa4f   :  { %v2073_v7 = vunpack.c.l.b16 %v1999_v20  ;;  %v1878_v33 = vadd.f32 %v2796_v63, %v1877_v21  ;;  %vm1929_vm14 = vcmp.eq.f32.partialorder %v1928_v60, 8.507059e+37 }
 0xa50   :  { %v2103_v26 = vunpack.c.l.b16 %v2001_v22  ;;  %v1908_v44 = vadd.f32 %v2798_v3, %v1907_v27  ;;  %v2800_v14 = vpop.eup %2799 }
 0xa51   :  { %v1882_v28 = vsel %vm1881_vm4, %v2796_v63, %v1878_v33  ;;  %v2074_v40 = vpack.c.b16 %v2073_v7, %v2072_v1  ;;  %v1920_v23 = vmul.f32 %v2800_v14, %v3636_v2  ;;  %vm1925_vm7 = vweird.f32 %v2800_v14  ;;  %v2846_v2 = vld [vmem:[%s3795_s12 + $0x10] sm:$0xff] }
 0xa52   :  { %v2104_v47 = vpack.c.b16 %v2103_v26, %v2102_v61  ;;  %v1912_v35 = vsel %vm3650_vm6, %v2798_v3, %v1908_v44  ;;  %v1887_v31 = vsel %vm1884_vm13, %v1886_v19, %v1882_v28  ;;  %vm1926_vm11 = vmor %vm1924_vm8, %vm1925_vm7  ;;  %v2842_v3 = vld [vmem:[%s3795_s12 + $0x30] sm:$0xff] }
 0xa53   :  { %v1888_v36 = vmul.f32 %v3600_v55, %v1887_v31  ;;  %2656 = vmatmul.msk.bf16.vlgmr.msrb.gmra.mxu2 %vm679_vm12, %v2074_v40  ;;  %v1921_v46 = vsub.f32 1.0, %v1920_v23  ;;  %v1917_v50 = vsel %vm1914_vm5, %v1916_v45, %v1912_v35 }
 0xa54   :  { %2657 = vmatmul.msk.bf16.vlgmr.msra.gmra.mxu3 %vm679_vm12, %v2104_v47  ;;  %2439 = vmatpush.bf16.msrb.mxu2 %v3505_v48  ;;  %v1918_v55 = vmul.f32 %v3602_v59, %v1917_v50  ;;  %v2839_v59 = vld [vmem:[%s3793_s10 + $0x8] sm:$0xff] }
 0xa55   :  { %v1994_v32 = vpack.c.bf16 %v1888_v36, %v1888_v36  ;;  %v1922_v53 = vmul.f32 %v2800_v14, %v1921_v46 }
 0xa56   :  { %v1996_v61 = vpack.c.bf16 %v1918_v55, %v1918_v55 }
 0xa57   :  { %v2012_v58 = vunpack.c.l.b16 %v1994_v32  ;;  %v1923_v34 = vadd.f32 %v2800_v14, %v1922_v53 }
 0xa58   :  { %2440 = vmatpush.bf16.msrb.mxu2 %v3512_v51  ;;  %v2042_v63 = vunpack.c.l.b16 %v1996_v61  ;;  %v2840_v51 = vld [vmem:[%s3793_s10] sm:$0xff] }
 0xa59   :  { %v2014_v48 = vpack.c.b16 %v2013_v54, %v2012_v58  ;;  %v1927_v18 = vsel %vm1926_vm11, %v2800_v14, %v1923_v34 }
 0xa5a   :  { %v1932_v6 = vsel %vm1929_vm14, %v1931_v37, %v1927_v18  ;;  %v2849_v37 = vld [vmem:[%s3808_s29 + $0x10] sm:$0xff] }
 0xa5b   :  { %2654 = vmatmul.msk.bf16.vlgmr.msrb.gmra.mxu0 %vm679_vm12, %v2014_v48  ;;  %v1933_v42 = vmul.f32 %v3608_v25, %v1932_v6  ;;  %v2841_v25 = vld [vmem:[%s3795_s12 + $0x38] sm:$0xff] }
 0xa5c   :  { %2302 = vmatpush.bf16.msrb.mxu0 %v2839_v59  ;;  %v2850_v59 = vld [vmem:[%s3790_s7] ss:$0 sm:$0xff] }
 0xa5d   :  { %v1997_v62 = vpack.c.bf16 %v1933_v42, %v1933_v42 }
 0xa5f   :  { %v2043_v0 = vunpack.c.l.b16 %v1997_v62 }
 0xa60   :  { %2303 = vmatpush.bf16.msrb.mxu0 %v2840_v51 }
 0xa61   :  { %v2044_v57 = vpack.c.b16 %v2043_v0, %v2042_v63 }
 0xa63   :  { %2655 = vmatmul.msk.bf16.vlgmr.msrb.gmra.mxu1 %vm679_vm12, %v2044_v57 }
 0xa64   :  { %2391 = vmatpush.bf16.msrb.mxu1 %v2841_v25 }
 0xa68   :  { %2392 = vmatpush.bf16.msrb.mxu1 %v2842_v3  ;;  %v2851_v3 = vld [vmem:[%s3808_s29 + $0x18] sm:$0x1] }
 0xa6c   :  { %2393 = vmatpush.bf16.msrb.mxu1 %v2843_v4 }
 0xa70   :  { %2394 = vmatpush.bf16.msrb.mxu1 %v2844_v5 }
 0xa74   :  { %2395 = vmatpush.bf16.msrb.mxu1 %v2845_v24 }
 0xa78   :  { %2396 = vmatpush.bf16.msrb.mxu1 %v2846_v2 }
 0xa7c   :  { %2397 = vmatpush.bf16.msrb.mxu1 %v2847_v8 }
 0xa80   :  { %2398 = vmatpush.bf16.msrb.mxu1 %v2848_v30 }
 0xad6   :  { %v2095_v9 = vpop.f32.mrf.mxu2 }
 0xad7   :  { %v2125_v56 = vpop.f32.mrf.mxu3  ;;  %v2134_v12 = vpack.c.bf16 %v2095_v9, %v2095_v9 }
 0xad8   :  { %v2035_v39 = vpop.f32.mrf.mxu0  ;;  %v2136_v11 = vpack.c.bf16 %v2125_v56, %v2125_v56 }
 0xad9   :  { %v2130_v13 = vpack.c.bf16 %v2035_v39, %v2035_v39  ;;  %v2184_v22 = vunpack.c.l.b16 %v2134_v12 }
 0xada   :  { %v2206_v7 = vunpack.c.l.b16 %v2136_v11 }
 0xadb   :  { %v2140_v26 = vunpack.c.l.b16 %v2130_v13 }
 0xade   :  { %v2097_v17 = vpop.f32.mrf.mxu2 }
 0xadf   :  { %v2135_v16 = vpack.c.bf16 %v2097_v17, %v2097_v17  ;;  %v2127_v20 = vpop.f32.mrf.mxu3 }
 0xae0   :  { %v2137_v21 = vpack.c.bf16 %v2127_v20, %v2127_v20  ;;  %v2037_v15 = vpop.f32.mrf.mxu0  ;;  %v2065_v1 = vpop.f32.mrf.mxu1 }
 0xae1   :  { %v2185_v27 = vunpack.c.l.b16 %v2135_v16  ;;  %v2131_v49 = vpack.c.bf16 %v2037_v15, %v2037_v15  ;;  %v2132_v29 = vpack.c.bf16 %v2065_v1, %v2065_v1 }
 0xae2   :  { %v2207_v33 = vunpack.c.l.b16 %v2137_v21 }
 0xae3   :  { %v2186_v44 = vpack.c.b16 %v2185_v27, %v2184_v22  ;;  %v2141_v38 = vunpack.c.l.b16 %v2131_v49  ;;  %v2162_v47 = vunpack.c.l.b16 %v2132_v29 }
 0xae4   :  { %v2208_v19 = vpack.c.b16 %v2207_v33, %v2206_v7 }
 0xae5   :  { %v2142_v14 = vpack.c.b16 %v2141_v38, %v2140_v26  ;;  %2660 = vmatmul.msk.bf16.vlgmr.msra.gmra.mxu2 %vm560_vm9, %v2186_v44 }
 0xae6   :  { %2661 = vmatmul.msk.bf16.vlgmr.msrb.gmra.mxu3 %vm560_vm9, %v2208_v19 }
 0xae7   :  { %2658 = vmatmul.msk.bf16.vlgmr.msra.gmra.mxu0 %vm560_vm9, %v2142_v14 }
 0xae8   :  { %v2067_v28 = vpop.f32.mrf.mxu1 }
 0xae9   :  { %v2133_v40 = vpack.c.bf16 %v2067_v28, %v2067_v28 }
 0xaeb   :  { %v2163_v35 = vunpack.c.l.b16 %v2133_v40 }
 0xaed   :  { %v2164_v31 = vpack.c.b16 %v2163_v35, %v2162_v47 }
 0xaef   :  { %2659 = vmatmul.msk.bf16.vlgmr.msra.gmra.mxu1 %vm560_vm9, %v2164_v31 }
 0xb64   :  { %v2155_v23 = vpop.f32.mrf.mxu0 }
 0xb65   :  { %v2226_v46 = vsel %vm149_vm0, %v2155_v23, 0.0  ;;  %v2852_v23 = vld [vmem:[%s3791_s8] ss:$0 sm:$0xff] }
 0xb68   :  { %v2199_v41 = vpop.f32.mrf.mxu2 }
 0xb69   :  { %v2221_v45 = vpop.f32.mrf.mxu3  ;;  %v2229_v52 = vsel %vm149_vm0, %v2199_v41, 0.0 }
 0xb6a   :  { %v2231_v60 = vsel %vm149_vm0, %v2221_v45, 0.0 }
 0xb6c   :  { %v2177_v36 = vpop.f32.mrf.mxu1  ;;  %v2157_v54 = vpop.f32.mrf.mxu0 }
 0xb6d   :  { %v2227_v50 = vsel %vm149_vm0, %v2177_v36, 0.0  ;;  %v2233_v18 = vsel %vm153_vm1, %v2157_v54, 0.0 }
 0xb6e   :  { %v2228_v32 = vadd.f32 %v2227_v50, %v2226_v46  ;;  %v2853_v46 = vld [vmem:[%s3792_s9] ss:$0 sm:$0xff] }
 0xb70   :  { %v2230_v53 = vadd.f32 %v2229_v52, %v2228_v32  ;;  %v2201_v55 = vpop.f32.mrf.mxu2 }
 0xb71   :  { %v2223_v61 = vpop.f32.mrf.mxu3  ;;  %v2236_v63 = vsel %vm153_vm1, %v2201_v55, 0.0 }
 0xb72   :  { %v2232_v58 = vadd.f32 %v2231_v60, %v2230_v53  ;;  %v2238_v57 = vsel %vm153_vm1, %v2223_v61, 0.0  ;;  %v2854_v60 = vld [vmem:[%s3794_s11] ss:$0 sm:$0xff] }
 0xb74   :  { %v2179_v34 = vpop.f32.mrf.mxu1  ;;  %v2240_v48 = vadd.f32 %v2849_v37, %v2232_v58 }
 0xb75   :  { %v2234_v6 = vsel %vm153_vm1, %v2179_v34, 0.0 }
 0xb76   :  { %v2235_v42 = vadd.f32 %v2234_v6, %v2233_v18  ;;  %v3717_v62 = vadd.f32 %v2850_v59, %v2240_v48 }
 0xb78   :  { %v2237_v0 = vadd.f32 %v2236_v63, %v2235_v42  ;;  %v2244_v51 = vsel %vm149_vm0, %v3717_v62, 0.0 }
 0xb79   :  { %2245 = vadd.xlane.f32.xlu1 %v2244_v51 }
 0xb7a   :  { %v2239_v25 = vadd.f32 %v2238_v57, %v2237_v0 }
 0xb7c   :  { %v2241_v4 = vadd.f32 %v2851_v3, %v2239_v25 }
 0xb7e   :  { %v2243_v5 = vadd.f32 %v2850_v59, %v2241_v4 }
 0xb80   :  { %v2247_v24 = vsel %vm153_vm1, %v2243_v5, 0.0 }
 0xb81   :  { %2248 = vadd.xlane.f32.xlu2 %v2247_v24 }
 0xbec   :  { %v2246_v2 = vpop.xlane.xlu1 %2245 }
 0xbed   :  { %v2250_v8 = vmul.f32 %v2246_v2, %v2994_v10 }
 0xbef   :  { %v2252_v30 = vsub.f32 %v3717_v62, %v2250_v8 }
 0xbf1   :  { %v2254_v9 = vmul.f32 %v2252_v30, %v2252_v30 }
 0xbf3   :  { %v2256_v56 = vsel %vm149_vm0, %v2254_v9, 0.0 }
 0xbf4   :  { %2257 = vadd.xlane.f32.xlu0 %v2256_v56  ;;  %v2249_v39 = vpop.xlane.xlu2 %2248 }
 0xbf5   :  { %v2251_v12 = vmul.f32 %v2249_v39, %v2994_v10 }
 0xbf7   :  { %v2253_v11 = vsub.f32 %v2243_v5, %v2251_v12 }
 0xbf9   :  { %v2255_v17 = vmul.f32 %v2253_v11, %v2253_v11 }
 0xbfb   :  { %v2259_v13 = vsel %vm153_vm1, %v2255_v17, 0.0 }
 0xbfc   :  { %2260 = vadd.xlane.f32.xlu1 %v2259_v13 }
 0xc67   :  { %v2258_v16 = vpop.xlane.xlu0 %2257 }
 0xc68   :  { %v2262_v20 = vmul.f32 %v2258_v16, %v2994_v10 }
 0xc6a   :  { %v2264_v21 = vadd.f32 1e-06, %v2262_v20 }
 0xc6c   :  { %2801 = vrsqrt.f32 %v2264_v21  ;;  %vm2272_vm12 = vweird.f32 %v2264_v21 }
 0xc6f   :  { %v2261_v15 = vpop.xlane.xlu1 %2260 }
 0xc70   :  { %v2263_v22 = vmul.f32 %v2261_v15, %v2994_v10 }
 0xc72   :  { %v2802_v27 = vpop.eup %2801  ;;  %v2265_v49 = vadd.f32 1e-06, %v2263_v22 }
 0xc73   :  { %v2267_v1 = vmul.f32 %v2802_v27, %v2264_v21  ;;  %vm2273_vm9 = vweird.f32 %v2802_v27 }
 0xc74   :  { %2803 = vrsqrt.f32 %v2265_v49  ;;  %vm2274_vm15 = vmor %vm2272_vm12, %vm2273_vm9  ;;  %vm2282_vm3 = vweird.f32 %v2265_v49 }
 0xc75   :  { %v2268_v7 = vmul.f32 %v2802_v27, %v2267_v1 }
 0xc77   :  { %v2269_v33 = vmul.f32 0.5, %v2268_v7 }
 0xc79   :  { %v2270_v26 = vsub.f32 1.5, %v2269_v33 }
 0xc7a   :  { %v2804_v44 = vpop.eup %2803 }
 0xc7b   :  { %v2271_v38 = vmul.f32 %v2802_v27, %v2270_v26  ;;  %v2277_v19 = vmul.f32 %v2804_v44, %v2265_v49  ;;  %vm2283_vm10 = vweird.f32 %v2804_v44 }
 0xc7c   :  { %vm2284_vm2 = vmor %vm2282_vm3, %vm2283_vm10 }
 0xc7d   :  { %v2278_v14 = vmul.f32 %v2804_v44, %v2277_v19  ;;  %v2275_v29 = vsel %vm2274_vm15, %v2802_v27, %v2271_v38 }
 0xc7e   :  { %v2286_v47 = vmul.f32 %v2275_v29, %v2252_v30 }
 0xc7f   :  { %v2279_v28 = vmul.f32 0.5, %v2278_v14 }
 0xc80   :  { %v2288_v41 = vmul.f32 %v2852_v23, %v2286_v47 }
 0xc81   :  { %v2280_v40 = vsub.f32 1.5, %v2279_v28 }
 0xc82   :  { %v2290_v50 = vadd.f32 %v2853_v46, %v2288_v41 }
 0xc83   :  { %v2281_v35 = vmul.f32 %v2804_v44, %v2280_v40 }
 0xc85   :  { %v2285_v31 = vsel %vm2284_vm2, %v2804_v44, %v2281_v35 }
 0xc86   :  { %v2287_v45 = vmul.f32 %v2285_v31, %v2253_v11 }
 0xc88   :  { %v2289_v36 = vmul.f32 %v2852_v23, %v2287_v45 }
 0xc8a   :  { %v2291_v32 = vadd.f32 %v2853_v46, %v2289_v36 }
 0xc8c   :  { %v2292_v52 = vpack.c.bf16 %v2291_v32, %v2290_v50 }
 0xc8e   :  { %2662 = vmatmul.msk.bf16.vlgmr.msrb.gmra.mxu0 %vm149_vm0, %v2292_v52 }
 0xd0b   :  { %v2305_v53 = vpop.f32.mrf.mxu0 }
 0xd0c   :  { %v3744_v54 = vadd.f32 %v2854_v60, %v2305_v53 }
 0xd0e   :  { %v3747_v58 = vmul.f32 0.70710677, %v3744_v54 }
 0xd10   :  { %v2318_v55 = vand.u32 2147483647, %v3747_v58  ;;  %vm2314_vm9 = vcmp.lt.f32.partialorder %v3747_v58, 0.0 }
 0xd11   :  { %v2316_v53 = vsel %vm2314_vm9, -1.0, %v2887_v43 }
 0xd12   :  { %v2320_v34 = vmul.f32 0.3275911, %v2318_v55  ;;  %v2372_v56 = vsub.f32 0.0, %v2318_v55 }
 0xd13   :  { %v2307_v37 = vpop.f32.mrf.mxu0 }
 0xd14   :  { %v2322_v48 = vadd.f32 1.0, %v2320_v34  ;;  %v3750_v18 = vadd.f32 %v2854_v60, %v2307_v37  ;;  %v2374_v20 = vmul.f32 %v2372_v56, %v2318_v55 }
 0xd16   :  { %2805 = vrcp.f32 %v2322_v48  ;;  %v3753_v6 = vmul.f32 0.70710677, %v3750_v18  ;;  %v2335_v57 = vand.u32 2147483648, %v2322_v48  ;;  %v2333_v3 = vand.u32 2147483647, %v2322_v48 }
 0xd17   :  { %vm2329_vm6 = vweird.f32 %v2322_v48  ;;  %v2376_v1 = vmul.f32 1.442695, %v2374_v20  ;;  %v2856_v20 = vld [vmem:[%s3797_s14] sm:$0x1] }
 0xd18   :  { %v2319_v61 = vand.u32 2147483647, %v3753_v6  ;;  %v2336_v5 = vor.u32 1.1754944e-38, %v2335_v57  ;;  %vm2334_vm5 = vcmp.eq.f32.partialorder %v2333_v3, 8.507059e+37  ;;  %vm2315_vm12 = vcmp.lt.f32.partialorder %v3753_v6, 0.0 }
 0xd19   :  { %v2317_v37 = vsel %vm2315_vm12, -1.0, %v2887_v43  ;;  %v2855_v6 = vld [vmem:[%s3796_s13] ss:$0 sm:$0xff] }
 0xd1a   :  { %v2321_v42 = vmul.f32 0.3275911, %v2319_v61  ;;  %v2373_v33 = vsub.f32 0.0, %v2319_v61 }
 0xd1c   :  { %v2806_v59 = vpop.eup %2805  ;;  %v2323_v0 = vadd.f32 1.0, %v2321_v42  ;;  %v2375_v14 = vmul.f32 %v2373_v33, %v2319_v61  ;;  %v2310_v42 = vmul.f32 0.5, %v3744_v54 }
 0xd1d   :  { %v2325_v63 = vmul.f32 %v2806_v59, %v2322_v48  ;;  %vm2330_vm4 = vweird.f32 %v2806_v59 }
 0xd1e   :  { %2807 = vrcp.f32 %v2323_v0  ;;  %vm2331_vm13 = vmor %vm2329_vm6, %vm2330_vm4  ;;  %v2350_v11 = vand.u32 2147483648, %v2323_v0  ;;  %v2348_v13 = vand.u32 2147483647, %v2323_v0  ;;  %vm2344_vm8 = vweird.f32 %v2323_v0 }
 0xd1f   :  { %v2326_v51 = vsub.f32 1.0, %v2325_v63  ;;  %2809 = vpow2.f32 %v2376_v1  ;;  %v2378_v35 = vmul.f32 1.442695, %v2375_v14 }
 0xd20   :  { %v2351_v22 = vor.u32 1.1754944e-38, %v2350_v11  ;;  %vm2349_vm14 = vcmp.eq.f32.partialorder %v2348_v13, 8.507059e+37 }
 0xd21   :  { %v2327_v25 = vmul.f32 %v2806_v59, %v2326_v51  ;;  %2811 = vpow2.f32 %v2378_v35 }
 0xd23   :  { %v2328_v4 = vadd.f32 %v2806_v59, %v2327_v25 }
 0xd24   :  { %v2808_v24 = vpop.eup %2807 }
 0xd25   :  { %v2332_v2 = vsel %vm2331_vm13, %v2806_v59, %v2328_v4  ;;  %v2340_v30 = vmul.f32 %v2808_v24, %v2323_v0  ;;  %vm2345_vm7 = vweird.f32 %v2808_v24  ;;  %v2810_v23 = vpop.eup %2809  ;;  %v2311_v59 = vmul.f32 0.5, %v3750_v18 }
 0xd26   :  { %v2337_v8 = vsel %vm2334_vm5, %v2336_v5, %v2332_v2  ;;  %vm2346_vm11 = vmor %vm2344_vm8, %vm2345_vm7 }
 0xd27   :  { %v2354_v9 = vmul.f32 1.0614054, %v2337_v8  ;;  %v2341_v39 = vsub.f32 1.0, %v2340_v30  ;;  %v2812_v52 = vpop.eup %2811 }
 0xd29   :  { %v2356_v12 = vadd.f32 -1.4531521, %v2354_v9  ;;  %v2342_v17 = vmul.f32 %v2808_v24, %v2341_v39 }
 0xd2b   :  { %v2358_v16 = vmul.f32 %v2356_v12, %v2337_v8  ;;  %v2343_v21 = vadd.f32 %v2808_v24, %v2342_v17 }
 0xd2d   :  { %v2360_v15 = vadd.f32 1.4214138, %v2358_v16  ;;  %v2347_v27 = vsel %vm2346_vm11, %v2808_v24, %v2343_v21 }
 0xd2e   :  { %v2352_v7 = vsel %vm2349_vm14, %v2351_v22, %v2347_v27 }
 0xd2f   :  { %v2362_v49 = vmul.f32 %v2360_v15, %v2337_v8  ;;  %v2355_v26 = vmul.f32 1.0614054, %v2352_v7 }
 0xd31   :  { %v2364_v44 = vadd.f32 -0.28449672, %v2362_v49  ;;  %v2357_v38 = vadd.f32 -1.4531521, %v2355_v26  ;;  %v2858_v49 = vld [vmem:[%s3800_s17] sm:$0x1] }
 0xd33   :  { %v2366_v19 = vmul.f32 %v2364_v44, %v2337_v8  ;;  %v2359_v29 = vmul.f32 %v2357_v38, %v2352_v7 }
 0xd35   :  { %v2368_v28 = vadd.f32 0.2548296, %v2366_v19  ;;  %v2361_v40 = vadd.f32 1.4214138, %v2359_v29 }
 0xd37   :  { %v2370_v47 = vmul.f32 %v2368_v28, %v2337_v8  ;;  %v2363_v31 = vmul.f32 %v2361_v40, %v2352_v7 }
 0xd39   :  { %v2380_v41 = vmul.f32 %v2810_v23, %v2370_v47  ;;  %v2365_v45 = vadd.f32 -0.28449672, %v2363_v31 }
 0xd3b   :  { %v2367_v36 = vmul.f32 %v2365_v45, %v2352_v7  ;;  %v2382_v46 = vsub.f32 1.0, %v2380_v41 }
 0xd3d   :  { %v2369_v50 = vadd.f32 0.2548296, %v2367_v36  ;;  %v2384_v60 = vmul.f32 %v2382_v46, %v2316_v53 }
 0xd3f   :  { %v2371_v32 = vmul.f32 %v2369_v50, %v2352_v7  ;;  %v2386_v48 = vadd.f32 1.0, %v2384_v60 }
 0xd41   :  { %v2381_v55 = vmul.f32 %v2812_v52, %v2371_v32  ;;  %v2388_v63 = vmul.f32 %v2386_v48, %v2310_v42 }
 0xd43   :  { %v2383_v34 = vsub.f32 1.0, %v2381_v55 }
 0xd45   :  { %v2385_v61 = vmul.f32 %v2383_v34, %v2317_v37 }
 0xd47   :  { %v2387_v58 = vadd.f32 1.0, %v2385_v61 }
 0xd49   :  { %v2389_v0 = vmul.f32 %v2387_v58, %v2311_v59 }
 0xd4b   :  { %v2390_v51 = vpack.c.bf16 %v2389_v0, %v2388_v63 }
 0xd4d   :  { %2399 = vmatmul.bf16.vlgmr.msrb.gmra.mxu1 %v2390_v51 }
 0xdca   :  { %v2400_v57 = vpop.f32.mrf.mxu1 }
 0xdcb   :  { %v2401_v25 = vadd.f32 %v2855_v6, %v2400_v57 }
 0xdcd   :  { %v2404_v3 = vadd.f32 %v2401_v25, %v3717_v62 }
 0xdcf   :  { %v2405_v43 = vsel %vm153_vm1, %v2404_v3, 0.0 }
 0xdd0   :  { %2406 = vadd.xlane.f32.xlu2 %v2405_v43 }
 0xdd2   :  { %v2402_v4 = vpop.f32.mrf.mxu1 }
 0xe43   :  { %v2407_v54 = vpop.xlane.xlu2 %2406 }
 0xe44   :  { %v2408_v18 = vmul.f32 %v2407_v54, %v2994_v10 }
 0xe46   :  { %v2409_v5 = vsub.f32 %v2404_v3, %v2408_v18 }
 0xe48   :  { %v2410_v24 = vmul.f32 %v2409_v5, %v2409_v5 }
 0xe4a   :  { %v2411_v2 = vsel %vm153_vm1, %v2410_v24, 0.0 }
 0xe4b   :  { %2412 = vadd.xlane.f32.xlu0 %v2411_v2 }
 0xebe   :  { %v2413_v8 = vpop.xlane.xlu0 %2412 }
 0xebf   :  { %v2414_v30 = vmul.f32 %v2413_v8, %v2994_v10  ;;  %v2857_v10 = vld [vmem:[%s3798_s15] sm:$0x1]  ;;  %s2889_s15 = smov 16  }
 0xec1   :  { %v2415_v9 = vadd.f32 1e-06, %v2414_v30 }
 0xec3   :  { %2813 = vrsqrt.f32 %v2415_v9  ;;  %vm2422_vm10 = vweird.f32 %v2415_v9 }
 0xec9   :  { %v2814_v56 = vpop.eup %2813 }
 0xeca   :  { %v2417_v39 = vmul.f32 %v2814_v56, %v2415_v9  ;;  %vm2423_vm15 = vweird.f32 %v2814_v56 }
 0xecb   :  { %vm2424_vm3 = vmor %vm2422_vm10, %vm2423_vm15 }
 0xecc   :  { %v2418_v62 = vmul.f32 %v2814_v56, %v2417_v39 }
 0xece   :  { %v2419_v12 = vmul.f32 0.5, %v2418_v62 }
 0xed0   :  { %v2420_v11 = vsub.f32 1.5, %v2419_v12 }
 0xed2   :  { %v2421_v17 = vmul.f32 %v2814_v56, %v2420_v11 }
 0xed4   :  { %v2425_v13 = vsel %vm2424_vm3, %v2814_v56, %v2421_v17 }
 0xed5   :  { %v2426_v16 = vmul.f32 %v2425_v13, %v2409_v5 }
 0xed7   :  { %v2427_v21 = vmul.f32 %v2856_v20, %v2426_v16 }
 0xed9   :  { %v2428_v15 = vadd.f32 %v2857_v10, %v2427_v21 }
 0xedb   :  { %v2429_v22 = vpack.c.bf16 %v2428_v15, %v2428_v15 }
 0xedd   :  { %2663 = vmatmul.msk.bf16.vlgmr.msrb.gmra.mxu2 %vm149_vm0, %v2429_v22 }
 0xf60   :  { %v2442_v27 = vpop.f32.mrf.mxu2 }
 0xf61   :  { %v2443_v1 = vadd.f32 %v2858_v49, %v2442_v27 }
 0xf63   :  { %2447 = vst [vmem:[#allocation2 + $0x1] sm:$0x1] %v2443_v1 }
 0xf64   :  { %2460 = dma.vmem_to_hbm [thread:$0]  %s2453_s6, 32, %s2455_s30, [#allocation3], %s2889_s15, %s2889_s15, %s2890_s0  }
 0xf68   :  { %v2444_v7 = vpop.f32.mrf.mxu2 }
 0xf69   :  { %2883 = dma.done.wait [#allocation3], 32  }
 0xf6a   :  { %2884 = vsyncadd [#allocation3], 4294967264 }
 0xf6b   :  { %2465 = vsyncpa [#allocation3], 1 }

// kernel: convit1d_forward.8
= control target key start
LH: loop header
LB: loop body
LE: loop exit
PB: predicated region body
PF: predicated region fallthrough
CT: control target
= control target key end

     0   :  { %vm129_vm0 = vcmask 261120   ;;  %vm133_vm1 = vcmask 253952   ;;  %v2703_v4 = vmov 32.0   ;;  %vm540_vm9 = vcmask 64512   ;;  %s3564_s0 = inlined_call_operand.vmem [shape: f32[2,9,32], index: 0, kind: input, shape index: {}]   ;;  %s3565_s1 = inlined_call_operand.vmem [shape: f32[1,32], index: 1, kind: input, shape index: {}]   ;;  %s3566_s2 = inlined_call_operand.vmem [shape: f32[1,32], index: 2, kind: input, shape index: {}]   ;;  %s3567_s3 = inlined_call_operand.vmem [shape: bf16[4,32,8], index: 3, kind: input, shape index: {}]   ;;  %s3568_s4 = inlined_call_operand.vmem [shape: bf16[4,32,8], index: 4, kind: input, shape index: {}]   ;;  %s3569_s5 = inlined_call_operand.vmem [shape: bf16[4,32,8], index: 5, kind: input, shape index: {}]   ;;  %s3570_s6 = inlined_call_operand.vmem [shape: bf16[4,8,32], index: 6, kind: input, shape index: {}]   ;;  %s3571_s7 = inlined_call_operand.vmem [shape: f32[1,32], index: 7, kind: input, shape index: {}]   ;;  %s3572_s8 = inlined_call_operand.vmem [shape: f32[1,32], index: 8, kind: input, shape index: {}]   ;;  %s3573_s9 = inlined_call_operand.vmem [shape: f32[1,32], index: 9, kind: input, shape index: {}]   ;;  %s3574_s10 = inlined_call_operand.vmem [shape: bf16[32,128], index: 10, kind: input, shape index: {}]   ;;  %s3575_s11 = inlined_call_operand.vmem [shape: f32[1,128], index: 11, kind: input, shape index: {}]   ;;  %s3576_s12 = inlined_call_operand.vmem [shape: bf16[128,32], index: 12, kind: input, shape index: {}]   ;;  %s3577_s13 = inlined_call_operand.vmem [shape: f32[1,32], index: 13, kind: input, shape index: {}]   ;;  %s3578_s14 = inlined_call_operand.vmem [shape: f32[2,9,32], index: 14, kind: output, shape index: {}]  }
   0x1   :  { %v127_v0 = vld [vmem:[%s3564_s0] sm:$0xff]  ;;  %v128_v2 = vld [vmem:[%s3564_s0 + $0x8] sm:$0x1]  ;;  %2578 = vrcp.f32 %v2703_v4  ;;  %v2815_v25 = vld [vmem:[%s3567_s3 + $0x38] sm:$0xff]  ;;  %vm882_vm10 = vcmask 1043456   ;;  %vm883_vm11 = vcmask 1044480  }
   0x2   :  { %v130_v1 = vsel %vm129_vm0, %v127_v0, 0.0  ;;  %v134_v3 = vsel %vm133_vm1, %v128_v2, 0.0  ;;  %v2807_v23 = vld [vmem:[%s3567_s3 + $0x8] sm:$0xff]  ;;  %298 = vmatpush.bf16.msra.mxu3 %v2815_v25  ;;  %v2828_v28 = vld [vmem:[%s3567_s3] sm:$0xff]  ;;  %v2836_v30 = vld [vmem:[%s3567_s3 + $0x30] sm:$0xff]  ;;  %vm659_vm12 = vcmask 72704  }
   0x3   :  { %131 = vadd.xlane.f32.xlu0 %v130_v1  ;;  %v2539_v24 = vld [vmem:[%s3567_s3 + $0x28] sm:$0xff]  ;;  %220 = vmatpush.bf16.msra.mxu1 %v2807_v23  ;;  %v2538_v29 = vld [vmem:[%s3567_s3 + $0x20] sm:$0xff]  ;;  %v2850_v37 = vld [vmem:[%s3567_s3 + $0x18] sm:$0xff]  ;;  %vm663_vm13 = vcmask 65536  }
   0x4   :  { %v2820_v27 = vld [vmem:[%s3568_s4 + $0x8] sm:$0xff]  ;;  %272 = vmatpush.bf16.msra.mxu2 %v2539_v24  ;;  %v2841_v31 = vld [vmem:[%s3568_s4] sm:$0xff]  ;;  %v2549_v39 = vld [vmem:[%s3568_s4 + $0x38] sm:$0xff] }
   0x5   :  { %324 = vmatpush.bf16.msra.mxu0 %v2820_v27  ;;  %v2547_v38 = vld [vmem:[%s3568_s4 + $0x28] sm:$0xff]  ;;  %v2865_v42 = vld [vmem:[%s3567_s3 + $0x10] sm:$0xff]  ;;  %v2546_v43 = vld [vmem:[%s3568_s4 + $0x20] sm:$0xff] }
   0x6   :  { %299 = vmatpush.bf16.msra.mxu3 %v2836_v30  ;;  %v2551_v40 = vld [vmem:[%s3569_s5 + $0x8] sm:$0xff]  ;;  %v2548_v44 = vld [vmem:[%s3568_s4 + $0x30] sm:$0xff]  ;;  %v2550_v45 = vld [vmem:[%s3569_s5] sm:$0xff] }
   0x7   :  { %v2579_v5 = vpop.eup %2578  ;;  %221 = vmatpush.bf16.msra.mxu1 %v2828_v28  ;;  %v2571_v53 = vld [vmem:[%s3565_s1] ss:$0 sm:$0xff] }
   0x8   :  { %v138_v6 = vmul.f32 32.0, %v2579_v5  ;;  %vm142_vm2 = vweird.f32 %v2579_v5  ;;  %273 = vmatpush.bf16.msra.mxu2 %v2538_v29  ;;  %v2572_v57 = vld [vmem:[%s3566_s2] ss:$0 sm:$0xff] }
   0x9   :  { %325 = vmatpush.bf16.msra.mxu0 %v2841_v31 }
   0xa   :  { %v139_v7 = vsub.f32 1.0, %v138_v6  ;;  %402 = vmatpush.bf16.msrb.mxu3 %v2549_v39  ;;  %v2545_v6 = vld [vmem:[%s3568_s4 + $0x18] sm:$0xff] }
   0xb   :  { %135 = vadd.xlane.f32.xlu0 %v134_v3  ;;  %246 = vmatpush.bf16.msrb.mxu1 %v2850_v37 }
   0xc   :  { %v140_v8 = vmul.f32 %v2579_v5, %v139_v7  ;;  %376 = vmatpush.bf16.msrb.mxu2 %v2547_v38  ;;  %v2555_v7 = vld [vmem:[%s3569_s5 + $0x28] sm:$0xff] }
   0xd   :  { %428 = vmatpush.bf16.msrb.mxu0 %v2551_v40 }
   0xe   :  { %v141_v9 = vadd.f32 %v2579_v5, %v140_v8  ;;  %403 = vmatpush.bf16.msrb.mxu3 %v2548_v44  ;;  %v2557_v8 = vld [vmem:[%s3569_s5 + $0x38] sm:$0xff] }
   0xf   :  { %247 = vmatpush.bf16.msrb.mxu1 %v2865_v42 }
  0x10   :  { %v2789_v10 = vsel %vm142_vm2, %v2579_v5, %v141_v9  ;;  %377 = vmatpush.bf16.msrb.mxu2 %v2546_v43  ;;  %v2544_v9 = vld [vmem:[%s3568_s4 + $0x10] sm:$0xff] }
  0x11   :  { %429 = vmatpush.bf16.msrb.mxu0 %v2550_v45 }
  0x76   :  { %v132_v11 = vpop.xlane.xlu0 %131 }
  0x77   :  { %v144_v12 = vmul.f32 %v2789_v10, %v132_v11  ;;  %v2554_v11 = vld [vmem:[%s3569_s5 + $0x20] sm:$0xff] }
  0x79   :  { %v2792_v13 = vsub.f32 %v127_v0, %v144_v12  ;;  %v2556_v12 = vld [vmem:[%s3569_s5 + $0x30] sm:$0xff] }
  0x7b   :  { %v148_v14 = vmul.f32 %v2792_v13, %v2792_v13 }
  0x7d   :  { %v150_v15 = vsel %vm129_vm0, %v148_v14, 0.0  ;;  %v2552_v14 = vld [vmem:[%s3569_s5 + $0x10] sm:$0xff] }
  0x7e   :  { %151 = vadd.xlane.f32.xlu1 %v150_v15  ;;  %v136_v16 = vpop.xlane.xlu0 %135 }
  0x7f   :  { %v145_v17 = vmul.f32 %v2789_v10, %v136_v16 }
  0x81   :  { %v2798_v18 = vsub.f32 %v128_v2, %v145_v17 }
  0x83   :  { %v149_v19 = vmul.f32 %v2798_v18, %v2798_v18 }
  0x85   :  { %v153_v20 = vsel %vm133_vm1, %v149_v19, 0.0 }
  0x86   :  { %154 = vadd.xlane.f32.xlu1 %v153_v20 }
  0xf1   :  { %v152_v21 = vpop.xlane.xlu1 %151 }
  0xf2   :  { %v156_v22 = vmul.f32 %v152_v21, %v2789_v10 }
  0xf4   :  { %v158_v26 = vadd.f32 1e-06, %v156_v22 }
  0xf6   :  { %2580 = vrsqrt.f32 %v158_v26  ;;  %vm166_vm4 = vweird.f32 %v158_v26 }
  0xf9   :  { %v155_v32 = vpop.xlane.xlu1 %154 }
  0xfa   :  { %v157_v33 = vmul.f32 %v155_v32, %v2789_v10 }
  0xfc   :  { %v2581_v34 = vpop.eup %2580  ;;  %v159_v35 = vadd.f32 1e-06, %v157_v33 }
  0xfd   :  { %v161_v36 = vmul.f32 %v2581_v34, %v158_v26  ;;  %vm167_vm3 = vweird.f32 %v2581_v34 }
  0xfe   :  { %2582 = vrsqrt.f32 %v159_v35  ;;  %vm168_vm5 = vmor %vm166_vm4, %vm167_vm3  ;;  %vm176_vm7 = vweird.f32 %v159_v35 }
  0xff   :  { %v162_v41 = vmul.f32 %v2581_v34, %v161_v36 }
 0x101   :  { %v163_v46 = vmul.f32 0.5, %v162_v41 }
 0x103   :  { %v164_v47 = vsub.f32 1.5, %v163_v46 }
 0x104   :  { %v2583_v48 = vpop.eup %2582 }
 0x105   :  { %v165_v49 = vmul.f32 %v2581_v34, %v164_v47  ;;  %v171_v50 = vmul.f32 %v2583_v48, %v159_v35  ;;  %vm177_vm6 = vweird.f32 %v2583_v48 }
 0x106   :  { %vm178_vm8 = vmor %vm176_vm7, %vm177_vm6 }
 0x107   :  { %v169_v51 = vsel %vm168_vm5, %v2581_v34, %v165_v49  ;;  %v172_v52 = vmul.f32 %v2583_v48, %v171_v50  ;;  %v2704_v50 = vmov 65535  }
 0x108   :  { %v180_v54 = vmul.f32 %v169_v51, %v2792_v13  ;;  %v2553_v13 = vld [vmem:[%s3569_s5 + $0x18] sm:$0xff]  ;;  %v884_v51 = vsel %vm882_vm10, 4294967295, %v2704_v50 }
 0x109   :  { %v173_v55 = vmul.f32 0.5, %v172_v52 }
 0x10a   :  { %v185_v58 = vmul.f32 %v2571_v53, %v180_v54 }
 0x10b   :  { %v174_v56 = vsub.f32 1.5, %v173_v55  ;;  %v2930_v55 = vsel %vm883_vm11, %v884_v51, 0 }
 0x10c   :  { %v190_v61 = vadd.f32 %v2572_v57, %v185_v58 }
 0x10d   :  { %v175_v59 = vmul.f32 %v2583_v48, %v174_v56 }
 0x10e   :  { %v192_v0 = vpack.c.bf16 %v190_v61, %v190_v61 }
 0x10f   :  { %v179_v60 = vsel %vm178_vm8, %v2583_v48, %v175_v59 }
 0x110   :  { %v181_v62 = vmul.f32 %v179_v60, %v2798_v18  ;;  %v196_v3 = vunpack.c.l.b16 %v192_v0 }
 0x112   :  { %v186_v63 = vmul.f32 %v2571_v53, %v181_v62 }
 0x114   :  { %v191_v1 = vadd.f32 %v2572_v57, %v186_v63 }
 0x116   :  { %v193_v2 = vpack.c.bf16 %v191_v1, %v191_v1 }
 0x118   :  { %v197_v4 = vunpack.c.l.b16 %v193_v2 }
 0x11a   :  { %v198_v5 = vpack.c.b16 %v197_v4, %v196_v3 }
 0x11c   :  { %2352 = vmatmul.msk.bf16.vlgmr.msra.gmra.mxu1 %vm129_vm0, %v198_v5  ;;  %2370 = vmatmul.msk.bf16.vlgmr.msra.gmra.mxu2 %vm129_vm0, %v198_v5 }
 0x11d   :  { %2379 = vmatmul.msk.bf16.vlgmr.msra.gmra.mxu3 %vm129_vm0, %v198_v5  ;;  %2388 = vmatmul.msk.bf16.vlgmr.msra.gmra.mxu0 %vm129_vm0, %v198_v5 }
 0x11e   :  { %350 = vmatpush.bf16.msra.mxu1 %v2545_v6  ;;  %480 = vmatpush.bf16.msra.mxu2 %v2555_v7 }
 0x11f   :  { %506 = vmatpush.bf16.msra.mxu3 %v2557_v8 }
 0x122   :  { %351 = vmatpush.bf16.msra.mxu1 %v2544_v9  ;;  %481 = vmatpush.bf16.msra.mxu2 %v2554_v11 }
 0x123   :  { %507 = vmatpush.bf16.msra.mxu3 %v2556_v12 }
 0x12c   :  { %2361 = vmatmul.msk.bf16.vlgmr.msrb.gmra.mxu1 %vm129_vm0, %v198_v5  ;;  %2406 = vmatmul.msk.bf16.vlgmr.msrb.gmra.mxu2 %vm129_vm0, %v198_v5 }
 0x12d   :  { %2415 = vmatmul.msk.bf16.vlgmr.msrb.gmra.mxu3 %vm129_vm0, %v198_v5  ;;  %2424 = vmatmul.msk.bf16.vlgmr.msrb.gmra.mxu0 %vm129_vm0, %v198_v5 }
 0x12e   :  { %454 = vmatpush.bf16.msrb.mxu1 %v2553_v13 }
 0x132   :  { %455 = vmatpush.bf16.msrb.mxu1 %v2552_v14 }
 0x13c   :  { %2397 = vmatmul.msk.bf16.vlgmr.msra.gmra.mxu1 %vm129_vm0, %v198_v5  ;;  %2442 = vmatmul.msk.bf16.vlgmr.msra.gmra.mxu2 %vm129_vm0, %v198_v5 }
 0x13d   :  { %2451 = vmatmul.msk.bf16.vlgmr.msra.gmra.mxu3 %vm129_vm0, %v198_v5 }
 0x14c   :  { %2433 = vmatmul.msk.bf16.vlgmr.msrb.gmra.mxu1 %vm129_vm0, %v198_v5 }
 0x199   :  { %v223_v15 = vpop.f32.mrf.mxu1 }
 0x19a   :  { %v327_v16 = vpop.f32.mrf.mxu0  ;;  %v514_v35 = vpack.c.bf16 %v223_v15, %v223_v15 }
 0x19b   :  { %v522_v19 = vpack.c.bf16 %v327_v16, %v327_v16 }
 0x19c   :  { %v532_v41 = vunpack.c.l.b16 %v514_v35 }
 0x19d   :  { %v537_v24 = vunpack.c.l.b16 %v522_v19 }
 0x19f   :  { %v2921_v17 = vpop.f32.mrf.mxu2 }
 0x1a0   :  { %v2923_v18 = vpop.f32.mrf.mxu3  ;;  %v518_v8 = vpack.c.bf16 %v2921_v17, %v2921_v17 }
 0x1a1   :  { %v225_v20 = vpop.f32.mrf.mxu1  ;;  %v520_v11 = vpack.c.bf16 %v2923_v18, %v2923_v18 }
 0x1a2   :  { %v329_v21 = vpop.f32.mrf.mxu0  ;;  %v515_v29 = vpack.c.bf16 %v225_v20, %v225_v20 }
 0x1a3   :  { %v523_v22 = vpack.c.bf16 %v329_v21, %v329_v21  ;;  %v593_v21 = vunpack.c.l.b16 %v518_v8 }
 0x1a4   :  { %v533_v40 = vunpack.c.l.b16 %v515_v29 }
 0x1a5   :  { %v538_v26 = vunpack.c.l.b16 %v523_v22 }
 0x1a6   :  { %v534_v43 = vpack.c.b16 %v533_v40, %v532_v41 }
 0x1a7   :  { %v539_v32 = vpack.c.b16 %v538_v26, %v537_v24  ;;  %v277_v33 = vpop.f32.mrf.mxu2  ;;  %v623_v24 = vunpack.c.l.b16 %v520_v11 }
 0x1a8   :  { %v303_v34 = vpop.f32.mrf.mxu3  ;;  %v519_v4 = vpack.c.bf16 %v277_v33, %v277_v33 }
 0x1a9   :  { %v2925_v36 = vpop.f32.mrf.mxu1  ;;  %v545_v38 = vsel %vm540_vm9, %v539_v32, 0  ;;  %v521_v6 = vpack.c.bf16 %v303_v34, %v303_v34 }
 0x1aa   :  { %v431_v39 = vpop.f32.mrf.mxu0  ;;  %554 = vmatpush.bf16.xpose.msra.mxu0 %v545_v38  ;;  %v594_v14 = vunpack.c.l.b16 %v519_v4 }
 0x1ab   :  { %v861_v46 = vpack.c.bf16 %v431_v39, %v431_v39  ;;  %v624_v19 = vunpack.c.l.b16 %v521_v6  ;;  %v516_v39 = vpack.c.bf16 %v2925_v36, %v2925_v36 }
 0x1ac   :  { %v595_v26 = vpack.c.b16 %v594_v14, %v593_v21 }
 0x1ad   :  { %v876_v52 = vunpack.c.l.b16 %v861_v46  ;;  %v625_v32 = vpack.c.b16 %v624_v19, %v623_v24  ;;  %v563_v51 = vunpack.c.l.b16 %v516_v39 }
 0x1af   :  { %v379_v44 = vpop.f32.mrf.mxu2 }
 0x1b0   :  { %v405_v45 = vpop.f32.mrf.mxu3  ;;  %v526_v54 = vpack.c.bf16 %v379_v44, %v379_v44 }
 0x1b1   :  { %2452 = vmatmul.msk.bf16.vlgmr.msra.gmra.mxu0 %vm540_vm9, %v534_v43  ;;  %v251_v47 = vpop.f32.mrf.mxu1  ;;  %v528_v56 = vpack.c.bf16 %v405_v45, %v405_v45 }
 0x1b2   :  { %v433_v48 = vpop.f32.mrf.mxu0  ;;  %v598_v0 = vunpack.c.l.b16 %v526_v54  ;;  %v517_v33 = vpack.c.bf16 %v251_v47, %v251_v47 }
 0x1b3   :  { %v862_v49 = vpack.c.bf16 %v433_v48, %v433_v48  ;;  %v628_v2 = vunpack.c.l.b16 %v528_v56 }
 0x1b4   :  { %v564_v46 = vunpack.c.l.b16 %v517_v33 }
 0x1b5   :  { %v877_v53 = vunpack.c.l.b16 %v862_v49 }
 0x1b6   :  { %v565_v54 = vpack.c.b16 %v564_v46, %v563_v51 }
 0x1b7   :  { %v878_v57 = vpack.c.b16 %v877_v53, %v876_v52  ;;  %v381_v58 = vpop.f32.mrf.mxu2 }
 0x1b8   :  { %v527_v59 = vpack.c.bf16 %v381_v58, %v381_v58  ;;  %v407_v60 = vpop.f32.mrf.mxu3 }
 0x1b9   :  { %v887_v61 = vand.u32 %v2930_v55, %v878_v57  ;;  %v529_v62 = vpack.c.bf16 %v407_v60, %v407_v60  ;;  %v353_v63 = vpop.f32.mrf.mxu1 }
 0x1ba   :  { %v599_v1 = vunpack.c.l.b16 %v527_v59  ;;  %v524_v15 = vpack.c.bf16 %v353_v63, %v353_v63 }
 0x1bb   :  { %v629_v3 = vunpack.c.l.b16 %v529_v62  ;;  %896 = vmatpush.bf16.msrb.mxu0 %v887_v61 }
 0x1bc   :  { %v600_v5 = vpack.c.b16 %v599_v1, %v598_v0  ;;  %v568_v17 = vunpack.c.l.b16 %v524_v15 }
 0x1bd   :  { %v630_v7 = vpack.c.b16 %v629_v3, %v628_v2 }
 0x1be   :  { %v605_v9 = vsel %vm540_vm9, %v600_v5, 0 }
 0x1bf   :  { %v483_v12 = vpop.f32.mrf.mxu2  ;;  %614 = vmatpush.bf16.xpose.msrb.mxu2 %v605_v9  ;;  %v635_v13 = vsel %vm540_vm9, %v630_v7, 0 }
 0x1c0   :  { %v509_v16 = vpop.f32.mrf.mxu3  ;;  %644 = vmatpush.bf16.xpose.msrb.mxu3 %v635_v13  ;;  %v865_v34 = vpack.c.bf16 %v483_v12, %v483_v12 }
 0x1c1   :  { %v355_v20 = vpop.f32.mrf.mxu1  ;;  %v867_v35 = vpack.c.bf16 %v509_v16, %v509_v16 }
 0x1c2   :  { %v525_v22 = vpack.c.bf16 %v355_v20, %v355_v20  ;;  %v940_v47 = vunpack.c.l.b16 %v865_v34 }
 0x1c3   :  { %v970_v49 = vunpack.c.l.b16 %v867_v35 }
 0x1c4   :  { %v569_v29 = vunpack.c.l.b16 %v525_v22 }
 0x1c6   :  { %v570_v18 = vpack.c.b16 %v569_v29, %v568_v17  ;;  %2454 = vmatmul.msk.bf16.vlgmr.msrb.gmra.mxu2 %vm540_vm9, %v595_v26 }
 0x1c7   :  { %2455 = vmatmul.msk.bf16.vlgmr.msrb.gmra.mxu3 %vm540_vm9, %v625_v32  ;;  %v485_v38 = vpop.f32.mrf.mxu2 }
 0x1c8   :  { %v866_v40 = vpack.c.bf16 %v485_v38, %v485_v38  ;;  %v511_v41 = vpop.f32.mrf.mxu3  ;;  %v575_v43 = vsel %vm540_vm9, %v570_v18, 0 }
 0x1c9   :  { %v868_v44 = vpack.c.bf16 %v511_v41, %v511_v41  ;;  %v457_v45 = vpop.f32.mrf.mxu1  ;;  %584 = vmatpush.bf16.xpose.msra.mxu1 %v575_v43 }
 0x1ca   :  { %v941_v48 = vunpack.c.l.b16 %v866_v40  ;;  %v863_v57 = vpack.c.bf16 %v457_v45, %v457_v45 }
 0x1cb   :  { %v971_v50 = vunpack.c.l.b16 %v868_v44 }
 0x1cc   :  { %v942_v52 = vpack.c.b16 %v941_v48, %v940_v47  ;;  %v910_v60 = vunpack.c.l.b16 %v863_v57 }
 0x1cd   :  { %v972_v53 = vpack.c.b16 %v971_v50, %v970_v49 }
 0x1ce   :  { %v947_v56 = vand.u32 %v942_v52, %v2930_v55 }
 0x1cf   :  { %v977_v36 = vand.u32 %v972_v53, %v2930_v55 }
 0x1d0   :  { %2453 = vmatmul.msk.bf16.vlgmr.msra.gmra.mxu1 %vm540_vm9, %v565_v54  ;;  %956 = vmatpush.bf16.msra.mxu2 %v947_v56 }
 0x1d1   :  { %986 = vmatpush.bf16.msra.mxu3 %v977_v36  ;;  %v459_v58 = vpop.f32.mrf.mxu1 }
 0x1d2   :  { %v864_v59 = vpack.c.bf16 %v459_v58, %v459_v58 }
 0x1d4   :  { %v911_v61 = vunpack.c.l.b16 %v864_v59 }
 0x1d6   :  { %v912_v62 = vpack.c.b16 %v911_v61, %v910_v60 }
 0x1d8   :  { %v917_v63 = vand.u32 %v912_v62, %v2930_v55 }
 0x1da   :  { %926 = vmatpush.bf16.msrb.mxu1 %v917_v63 }
 0x22e   :  { %v556_v0 = vpop.f32.mrf.mxu0 }
 0x22f   :  { %v651_v20 = vmul.f32 0.35355338, %v556_v0 }
 0x231   :  { %v660_v22 = vsel %vm659_vm12, %v651_v20, -inf }
 0x236   :  { %v558_v7 = vpop.f32.mrf.mxu0 }
 0x237   :  { %v652_v8 = vmul.f32 0.35355338, %v558_v7 }
 0x239   :  { %v664_v19 = vsel %vm663_vm13, %v652_v8, -inf }
 0x249   :  { %v616_v1 = vpop.f32.mrf.mxu2 }
 0x24a   :  { %v655_v2 = vmul.f32 0.35355338, %v616_v1  ;;  %v646_v3 = vpop.f32.mrf.mxu3 }
 0x24b   :  { %v657_v4 = vmul.f32 0.35355338, %v646_v3 }
 0x24c   :  { %v673_v5 = vsel %vm659_vm12, %v655_v2, -inf }
 0x24d   :  { %v679_v6 = vsel %vm659_vm12, %v657_v4, -inf  ;;  %674 = vmax.xlane.f32.xlu2 %v673_v5  ;;  %v586_v13 = vpop.f32.mrf.mxu1 }
 0x24e   :  { %680 = vmax.xlane.f32.xlu0 %v679_v6  ;;  %v653_v21 = vmul.f32 0.35355338, %v586_v13 }
 0x250   :  { %v667_v26 = vsel %vm659_vm12, %v653_v21, -inf }
 0x251   :  { %v618_v9 = vpop.f32.mrf.mxu2 }
 0x252   :  { %v656_v11 = vmul.f32 0.35355338, %v618_v9  ;;  %v648_v12 = vpop.f32.mrf.mxu3 }
 0x253   :  { %v658_v14 = vmul.f32 0.35355338, %v648_v12 }
 0x254   :  { %v676_v15 = vsel %vm663_vm13, %v656_v11, -inf }
 0x255   :  { %v682_v16 = vsel %vm663_vm13, %v658_v14, -inf  ;;  %677 = vmax.xlane.f32.xlu2 %v676_v15  ;;  %v588_v24 = vpop.f32.mrf.mxu1 }
 0x256   :  { %683 = vmax.xlane.f32.xlu1 %v682_v16  ;;  %665 = vmax.xlane.f32.xlu0 %v664_v19  ;;  %v654_v17 = vmul.f32 0.35355338, %v588_v24 }
 0x258   :  { %v670_v29 = vsel %vm663_vm13, %v654_v17, -inf }
 0x25d   :  { %661 = vmax.xlane.f32.xlu2 %v660_v22 }
 0x25e   :  { %668 = vmax.xlane.f32.xlu1 %v667_v26 }
 0x265   :  { %671 = vmax.xlane.f32.xlu2 %v670_v29 }
 0x2c0   :  { %v675_v32 = vpop.xlane.xlu2 %674 }
 0x2c1   :  { %v681_v33 = vpop.xlane.xlu0 %680  ;;  %v689_v34 = vsub.f32 %v655_v2, %v675_v32 }
 0x2c2   :  { %v691_v18 = vsub.f32 %v657_v4, %v681_v33 }
 0x2c3   :  { %v701_v35 = vmul.f32 1.442695, %v689_v34 }
 0x2c4   :  { %v705_v38 = vmul.f32 1.442695, %v691_v18 }
 0x2c5   :  { %2584 = vpow2.f32 %v701_v35 }
 0x2c6   :  { %2586 = vpow2.f32 %v705_v38 }
 0x2c8   :  { %v678_v39 = vpop.xlane.xlu2 %677 }
 0x2c9   :  { %v684_v40 = vpop.xlane.xlu1 %683  ;;  %v690_v41 = vsub.f32 %v656_v11, %v678_v39  ;;  %v666_v43 = vpop.xlane.xlu0 %665 }
 0x2ca   :  { %v692_v44 = vsub.f32 %v658_v14, %v684_v40  ;;  %v686_v45 = vsub.f32 %v652_v8, %v666_v43 }
 0x2cb   :  { %v2956_v46 = vpop.eup %2584  ;;  %v703_v47 = vmul.f32 1.442695, %v690_v41 }
 0x2cc   :  { %v2958_v48 = vpop.eup %2586  ;;  %v707_v49 = vmul.f32 1.442695, %v692_v44  ;;  %v695_v50 = vmul.f32 1.442695, %v686_v45  ;;  %v721_v51 = vsel %vm659_vm12, %v2956_v46, 0.0 }
 0x2cd   :  { %2588 = vpow2.f32 %v703_v47  ;;  %722 = vadd.xlane.f32.xlu0 %v721_v51  ;;  %v727_v52 = vsel %vm659_vm12, %v2958_v48, 0.0 }
 0x2ce   :  { %2590 = vpow2.f32 %v707_v49  ;;  %728 = vadd.xlane.f32.xlu2 %v727_v52 }
 0x2cf   :  { %2592 = vpow2.f32 %v695_v50 }
 0x2d0   :  { %v662_v53 = vpop.xlane.xlu2 %661 }
 0x2d1   :  { %v685_v54 = vsub.f32 %v651_v20, %v662_v53  ;;  %v669_v56 = vpop.xlane.xlu1 %668 }
 0x2d2   :  { %v687_v36 = vsub.f32 %v653_v21, %v669_v56 }
 0x2d3   :  { %v2964_v57 = vpop.eup %2588  ;;  %v693_v58 = vmul.f32 1.442695, %v685_v54 }
 0x2d4   :  { %v2966_v59 = vpop.eup %2590  ;;  %v697_v60 = vmul.f32 1.442695, %v687_v36  ;;  %v724_v61 = vsel %vm663_vm13, %v2964_v57, 0.0 }
 0x2d5   :  { %v2970_v62 = vpop.eup %2592  ;;  %2594 = vpow2.f32 %v693_v58  ;;  %v730_v63 = vsel %vm663_vm13, %v2966_v59, 0.0  ;;  %725 = vadd.xlane.f32.xlu1 %v724_v61 }
 0x2d6   :  { %2596 = vpow2.f32 %v697_v60  ;;  %731 = vadd.xlane.f32.xlu0 %v730_v63  ;;  %v712_v0 = vsel %vm663_vm13, %v2970_v62, 0.0 }
 0x2d7   :  { %713 = vadd.xlane.f32.xlu2 %v712_v0 }
 0x2d8   :  { %v672_v1 = vpop.xlane.xlu2 %671 }
 0x2d9   :  { %v688_v2 = vsub.f32 %v654_v17, %v672_v1 }
 0x2db   :  { %v2976_v3 = vpop.eup %2594  ;;  %v699_v4 = vmul.f32 1.442695, %v688_v2 }
 0x2dc   :  { %v2978_v5 = vpop.eup %2596  ;;  %v709_v6 = vsel %vm659_vm12, %v2976_v3, 0.0 }
 0x2dd   :  { %2598 = vpow2.f32 %v699_v4  ;;  %710 = vadd.xlane.f32.xlu1 %v709_v6  ;;  %v715_v7 = vsel %vm659_vm12, %v2978_v5, 0.0 }
 0x2de   :  { %716 = vadd.xlane.f32.xlu0 %v715_v7 }
 0x2e3   :  { %v2984_v8 = vpop.eup %2598 }
 0x2e4   :  { %v718_v9 = vsel %vm663_vm13, %v2984_v8, 0.0 }
 0x2e5   :  { %719 = vadd.xlane.f32.xlu1 %v718_v9 }
 0x340   :  { %v723_v11 = vpop.xlane.xlu0 %722 }
 0x341   :  { %2600 = vrcp.f32 %v723_v11  ;;  %v729_v12 = vpop.xlane.xlu2 %728  ;;  %v802_v24 = vand.u32 2147483647, %v723_v11  ;;  %v804_v26 = vand.u32 2147483648, %v723_v11  ;;  %vm798_vm2 = vweird.f32 %v723_v11 }
 0x342   :  { %2602 = vrcp.f32 %v729_v12  ;;  %v832_v29 = vand.u32 2147483647, %v729_v12  ;;  %v834_v33 = vand.u32 2147483648, %v729_v12  ;;  %vm828_vm3 = vweird.f32 %v729_v12 }
 0x343   :  { %vm2998_vm5 = vcmp.eq.f32.partialorder %v802_v24, 8.507059e+37  ;;  %v805_v40 = vor.u32 1.1754944e-38, %v804_v26 }
 0x344   :  { %vm3002_vm6 = vcmp.eq.f32.partialorder %v832_v29, 8.507059e+37  ;;  %v835_v49 = vor.u32 1.1754944e-38, %v834_v33 }
 0x347   :  { %v2601_v13 = vpop.eup %2600 }
 0x348   :  { %v2603_v14 = vpop.eup %2602  ;;  %v794_v15 = vmul.f32 %v2601_v13, %v723_v11  ;;  %v2988_v16 = vpop.xlane.xlu1 %725  ;;  %vm799_vm14 = vweird.f32 %v2601_v13 }
 0x349   :  { %v824_v19 = vmul.f32 %v2603_v14, %v729_v12  ;;  %v732_v20 = vpop.xlane.xlu0 %731  ;;  %2604 = vrcp.f32 %v2988_v16  ;;  %vm829_vm15 = vweird.f32 %v2603_v14  ;;  %vm2994_vm4 = vmor %vm798_vm2, %vm799_vm14  ;;  %vm813_vm11 = vweird.f32 %v2988_v16 }
 0x34a   :  { %v795_v21 = vsub.f32 1.0, %v794_v15  ;;  %2606 = vrcp.f32 %v732_v20  ;;  %v2991_v22 = vpop.xlane.xlu2 %713  ;;  %vm3008_vm7 = vmor %vm828_vm3, %vm829_vm15  ;;  %v847_v50 = vand.u32 2147483647, %v732_v20  ;;  %vm843_vm8 = vweird.f32 %v732_v20 }
 0x34b   :  { %v825_v17 = vsub.f32 1.0, %v824_v19  ;;  %2608 = vrcp.f32 %v2991_v22  ;;  %v849_v60 = vand.u32 2147483648, %v732_v20  ;;  %v817_v63 = vand.u32 2147483647, %v2988_v16 }
 0x34c   :  { %v796_v32 = vmul.f32 %v2601_v13, %v795_v21  ;;  %v819_v2 = vand.u32 2147483648, %v2988_v16  ;;  %vm3030_vm14 = vcmp.eq.f32.partialorder %v847_v50, 8.507059e+37  ;;  %v757_v26 = vand.u32 2147483647, %v2991_v22 }
 0x34d   :  { %v826_v34 = vmul.f32 %v2603_v14, %v825_v17 }
 0x34e   :  { %v797_v18 = vadd.f32 %v2601_v13, %v796_v32  ;;  %v820_v21 = vor.u32 1.1754944e-38, %v819_v2 }
 0x34f   :  { %v2605_v35 = vpop.eup %2604  ;;  %v827_v41 = vadd.f32 %v2603_v14, %v826_v34 }
 0x350   :  { %v2607_v44 = vpop.eup %2606  ;;  %v801_v45 = vsel %vm2994_vm4, %v2601_v13, %v797_v18  ;;  %v809_v51 = vmul.f32 %v2605_v35, %v2988_v16  ;;  %v3013_v52 = vpop.xlane.xlu1 %710  ;;  %vm814_vm15 = vweird.f32 %v2605_v35 }
 0x351   :  { %v831_v53 = vsel %vm3008_vm7, %v2603_v14, %v827_v41  ;;  %v839_v54 = vmul.f32 %v2607_v44, %v732_v20  ;;  %v3018_v56 = vpop.xlane.xlu0 %716  ;;  %v3020_v36 = vpop.eup %2608  ;;  %v806_v58 = vsel %vm2998_vm5, %v805_v40, %v801_v45  ;;  %vm844_vm2 = vweird.f32 %v2607_v44  ;;  %vm815_vm3 = vmor %vm813_vm11, %vm814_vm15 }
 0x352   :  { %v810_v61 = vsub.f32 1.0, %v809_v51  ;;  %v836_v0 = vsel %vm3002_vm6, %v835_v49, %v831_v53  ;;  %v749_v4 = vmul.f32 %v3020_v36, %v2991_v22  ;;  %2610 = vrcp.f32 %v3018_v56  ;;  %vm845_vm4 = vmor %vm843_vm8, %vm844_vm2 }
 0x353   :  { %v840_v1 = vsub.f32 1.0, %v839_v54  ;;  %v807_v9 = vmul.f32 %v2956_v46, %v806_v58  ;;  %v837_v13 = vmul.f32 %v2958_v48, %v836_v0  ;;  %v850_v14 = vor.u32 1.1754944e-38, %v849_v60 }
 0x354   :  { %v811_v7 = vmul.f32 %v2605_v35, %v810_v61  ;;  %v750_v12 = vsub.f32 1.0, %v749_v4  ;;  %2612 = vrcp.f32 %v3013_v52  ;;  %vm818_vm5 = vcmp.eq.f32.partialorder %v817_v63, 8.507059e+37 }
 0x355   :  { %v841_v11 = vmul.f32 %v2607_v44, %v840_v1  ;;  %vm754_vm6 = vweird.f32 %v3020_v36  ;;  %v759_v48 = vand.u32 2147483648, %v2991_v22  ;;  %v857_v29 = vpack.c.bf16 %v807_v9, %v807_v9 }
 0x356   :  { %v812_v15 = vadd.f32 %v2605_v35, %v811_v7  ;;  %v751_v24 = vmul.f32 %v3020_v36, %v750_v12  ;;  %v859_v18 = vpack.c.bf16 %v837_v13, %v837_v13  ;;  %vm753_vm7 = vweird.f32 %v2991_v22 }
 0x357   :  { %v842_v19 = vadd.f32 %v2607_v44, %v841_v11  ;;  %vm3054_vm8 = vcmp.eq.f32.partialorder %v757_v26, 8.507059e+37  ;;  %vm3061_vm11 = vmor %vm753_vm7, %vm754_vm6  ;;  %v935_v50 = vunpack.c.l.b16 %v857_v29  ;;  %v774_v54 = vand.u32 2147483648, %v3018_v56 }
 0x358   :  { %v816_v46 = vsel %vm815_vm3, %v2605_v35, %v812_v15  ;;  %v3045_v17 = vpop.xlane.xlu1 %719  ;;  %v752_v16 = vadd.f32 %v3020_v36, %v751_v24  ;;  %v2611_v34 = vpop.eup %2610  ;;  %v965_v51 = vunpack.c.l.b16 %v859_v18  ;;  %v742_v1 = vand.u32 2147483647, %v3013_v52 }
 0x359   :  { %v846_v32 = vsel %vm845_vm4, %v2607_v44, %v842_v19  ;;  %v821_v33 = vsel %vm818_vm5, %v820_v21, %v816_v46  ;;  %2614 = vrcp.f32 %v3045_v17  ;;  %v764_v40 = vmul.f32 %v2611_v34, %v3018_v56  ;;  %v99_v44 = vld [vmem:[%s3570_s6 + $0xc] sm:$0xf] }
 0x35a   :  { %v851_v38 = vsel %vm3030_vm14, %v850_v14, %v846_v32  ;;  %v822_v20 = vmul.f32 %v2964_v57, %v821_v33  ;;  %v2613_v41 = vpop.eup %2612  ;;  %v760_v57 = vor.u32 1.1754944e-38, %v759_v48  ;;  %vm768_vm14 = vweird.f32 %v3018_v56 }
 0x35b   :  { %v852_v35 = vmul.f32 %v2966_v59, %v851_v38  ;;  %v772_v59 = vand.u32 2147483647, %v3018_v56  ;;  %v756_v45 = vsel %vm3061_vm11, %v3020_v36, %v752_v16  ;;  %v765_v47 = vsub.f32 1.0, %v764_v40 }
 0x35c   :  { %v858_v43 = vpack.c.bf16 %v822_v20, %v822_v20  ;;  %v734_v49 = vmul.f32 %v2613_v41, %v3013_v52  ;;  %vm769_vm15 = vweird.f32 %v2611_v34  ;;  %v761_v0 = vsel %vm3054_vm8, %v760_v57, %v756_v45  ;;  %v97_v45 = vld [vmem:[%s3570_s6 + $0x4] sm:$0xf] }
 0x35d   :  { %v860_v22 = vpack.c.bf16 %v852_v35, %v852_v35  ;;  %v766_v60 = vmul.f32 %v2611_v34, %v765_v47  ;;  %v744_v36 = vand.u32 2147483648, %v3013_v52  ;;  %vm739_vm2 = vweird.f32 %v2613_v41  ;;  %vm770_vm3 = vmor %vm768_vm14, %vm769_vm15 }
 0x35e   :  { %v936_v53 = vunpack.c.l.b16 %v858_v43  ;;  %v735_v61 = vsub.f32 1.0, %v734_v49  ;;  %vm773_vm4 = vcmp.eq.f32.partialorder %v772_v59, 8.507059e+37  ;;  %v775_v9 = vor.u32 1.1754944e-38, %v774_v54  ;;  %v96_v59 = vld [vmem:[%s3570_s6] sm:$0xf] }
 0x35f   :  { %v966_v58 = vunpack.c.l.b16 %v860_v22  ;;  %v2615_v63 = vpop.eup %2614  ;;  %v767_v4 = vadd.f32 %v2611_v34, %v766_v60  ;;  %vm738_vm5 = vweird.f32 %v3013_v52  ;;  %v762_v12 = vmul.f32 %v2970_v62, %v761_v0 }
 0x360   :  { %v937_v2 = vpack.c.b16 %v936_v53, %v935_v50  ;;  %v736_v6 = vmul.f32 %v2613_v41, %v735_v61  ;;  %v779_v7 = vmul.f32 %v2615_v63, %v3045_v17  ;;  %vm740_vm6 = vmor %vm738_vm5, %vm739_vm2  ;;  %vm743_vm7 = vcmp.eq.f32.partialorder %v742_v1, 8.507059e+37 }
 0x361   :  { %v967_v11 = vpack.c.b16 %v966_v58, %v965_v51  ;;  %v771_v13 = vsel %vm770_vm3, %v2611_v34, %v767_v4  ;;  %v745_v21 = vor.u32 1.1754944e-38, %v744_v36  ;;  %v789_v24 = vand.u32 2147483648, %v3045_v17 }
 0x362   :  { %2458 = vmatmul.msk.bf16.vlgmr.msra.gmra.mxu2 %vm659_vm12, %v937_v2  ;;  %v737_v14 = vadd.f32 %v2613_v41, %v736_v6  ;;  %v780_v15 = vsub.f32 1.0, %v779_v7  ;;  %v776_v19 = vsel %vm773_vm4, %v775_v9, %v771_v13  ;;  %vm784_vm8 = vweird.f32 %v2615_v63 }
 0x363   :  { %2459 = vmatmul.msk.bf16.vlgmr.msra.gmra.mxu3 %vm659_vm12, %v967_v11  ;;  %v787_v52 = vand.u32 2147483647, %v3045_v17  ;;  %vm783_vm11 = vweird.f32 %v3045_v17  ;;  %v854_v62 = vpack.c.bf16 %v762_v12, %v762_v12  ;;  %v777_v48 = vmul.f32 %v2978_v5, %v776_v19 }
 0x364   :  { %v741_v56 = vsel %vm740_vm6, %v2613_v41, %v737_v14  ;;  %v781_v26 = vmul.f32 %v2615_v63, %v780_v15  ;;  %vm785_vm14 = vmor %vm783_vm11, %vm784_vm8  ;;  %v790_v33 = vor.u32 1.1754944e-38, %v789_v24  ;;  %v3109_v22 = vsel %vm882_vm10, %v96_v59, 0 }
 0x365   :  { %v746_v46 = vsel %vm743_vm7, %v745_v21, %v741_v56  ;;  %vm788_vm15 = vcmp.eq.f32.partialorder %v787_v52, 8.507059e+37  ;;  %v872_v38 = vunpack.c.l.b16 %v854_v62  ;;  %v855_v20 = vpack.c.bf16 %v777_v48, %v777_v48  ;;  %1019 = vmatpush.bf16.msra.mxu0 %v3109_v22 }
 0x366   :  { %v747_v29 = vmul.f32 %v2976_v3, %v746_v46  ;;  %v782_v32 = vadd.f32 %v2615_v63, %v781_v26  ;;  %v98_v3 = vld [vmem:[%s3570_s6 + $0x8] sm:$0xf]  ;;  %v3118_v47 = vsel %vm882_vm10, %v97_v45, 0 }
 0x367   :  { %v905_v17 = vunpack.c.l.b16 %v855_v20  ;;  %v3098_v57 = vsel %vm882_vm10, %v98_v3, 0  ;;  %1044 = vmatpush.bf16.msra.mxu1 %v3118_v47 }
 0x368   :  { %v853_v16 = vpack.c.bf16 %v747_v29, %v747_v29  ;;  %v786_v34 = vsel %vm785_vm14, %v2615_v63, %v782_v32  ;;  %1069 = vmatpush.bf16.msrb.mxu2 %v3098_v57 }
 0x369   :  { %v791_v18 = vsel %vm788_vm15, %v790_v33, %v786_v34  ;;  %v2676_v34 = vld [vmem:[%s3564_s0] sm:$0xff] }
 0x36a   :  { %v871_v35 = vunpack.c.l.b16 %v853_v16  ;;  %v792_v39 = vmul.f32 %v2984_v8, %v791_v18  ;;  %v3101_v8 = vsel %vm882_vm10, %v99_v44, 0  ;;  %v2677_v44 = vld [vmem:[%s3564_s0 + $0x8] sm:$0x1] }
 0x36b   :  { %1094 = vmatpush.bf16.msrb.mxu3 %v3101_v8 }
 0x36c   :  { %v856_v40 = vpack.c.bf16 %v792_v39, %v792_v39  ;;  %v873_v41 = vpack.c.b16 %v872_v38, %v871_v35  ;;  %1426 = vmatpush.bf16.msra.mxu2 %v2807_v23 }
 0x36e   :  { %v906_v43 = vunpack.c.l.b16 %v856_v40  ;;  %2456 = vmatmul.msk.bf16.vlgmr.msrb.gmra.mxu0 %vm659_vm12, %v873_v41 }
 0x36f   :  { %1440 = vmatpush.bf16.msra.mxu3 %v2850_v37 }
 0x370   :  { %v907_v5 = vpack.c.b16 %v906_v43, %v905_v17  ;;  %1427 = vmatpush.bf16.msra.mxu2 %v2828_v28 }
 0x372   :  { %2457 = vmatmul.msk.bf16.vlgmr.msrb.gmra.mxu1 %vm659_vm12, %v907_v5 }
 0x373   :  { %1441 = vmatpush.bf16.msra.mxu3 %v2865_v42 }
 0x3e5   :  { %v958_v49 = vpop.f32.mrf.mxu2 }
 0x3e6   :  { %v988_v50 = vpop.f32.mrf.mxu3  ;;  %v997_v51 = vpack.c.bf16 %v958_v49, %v958_v49 }
 0x3e7   :  { %v999_v54 = vpack.c.bf16 %v988_v50, %v988_v50  ;;  %v2505_v50 = vld [vmem:[%s3564_s0 + $0x10] sm:$0xff] }
 0x3e8   :  { %v1053_v60 = vunpack.c.l.b16 %v997_v51  ;;  %v1362_v51 = vsel %vm129_vm0, %v2505_v50, 0.0 }
 0x3e9   :  { %v1078_v1 = vunpack.c.l.b16 %v999_v54 }
 0x3eb   :  { %v898_v53 = vpop.f32.mrf.mxu0 }
 0x3ec   :  { %v993_v4 = vpack.c.bf16 %v898_v53, %v898_v53 }
 0x3ed   :  { %v960_v23 = vpop.f32.mrf.mxu2 }
 0x3ee   :  { %v998_v37 = vpack.c.bf16 %v960_v23, %v960_v23  ;;  %v990_v58 = vpop.f32.mrf.mxu3  ;;  %v1003_v7 = vunpack.c.l.b16 %v993_v4 }
 0x3ef   :  { %v1000_v63 = vpack.c.bf16 %v990_v58, %v990_v58  ;;  %v928_v0 = vpop.f32.mrf.mxu1 }
 0x3f0   :  { %v1054_v61 = vunpack.c.l.b16 %v998_v37  ;;  %v995_v11 = vpack.c.bf16 %v928_v0, %v928_v0 }
 0x3f1   :  { %v1079_v2 = vunpack.c.l.b16 %v1000_v63  ;;  %v2506_v63 = vld [vmem:[%s3564_s0 + $0x18] sm:$0x1] }
 0x3f2   :  { %v1055_v36 = vpack.c.b16 %v1054_v61, %v1053_v60  ;;  %v1028_v15 = vunpack.c.l.b16 %v995_v11 }
 0x3f3   :  { %v1080_v6 = vpack.c.b16 %v1079_v2, %v1078_v1  ;;  %v900_v28 = vpop.f32.mrf.mxu0  ;;  %v1365_v1 = vsel %vm133_vm1, %v2506_v63, 0.0 }
 0x3f4   :  { %2462 = vmatmul.msk.bf16.vlgmr.msrb.gmra.mxu2 %vm540_vm9, %v1055_v36  ;;  %v994_v42 = vpack.c.bf16 %v900_v28, %v900_v28 }
 0x3f5   :  { %1468 = vmatpush.bf16.msrb.mxu2 %v2815_v25  ;;  %2463 = vmatmul.msk.bf16.vlgmr.msrb.gmra.mxu3 %vm540_vm9, %v1080_v6 }
 0x3f6   :  { %v1004_v9 = vunpack.c.l.b16 %v994_v42  ;;  %1482 = vmatpush.bf16.msrb.mxu3 %v2820_v27 }
 0x3f7   :  { %v930_v12 = vpop.f32.mrf.mxu1 }
 0x3f8   :  { %v1005_v13 = vpack.c.b16 %v1004_v9, %v1003_v7  ;;  %v996_v14 = vpack.c.bf16 %v930_v12, %v930_v12 }
 0x3f9   :  { %1469 = vmatpush.bf16.msrb.mxu2 %v2836_v30 }
 0x3fa   :  { %2460 = vmatmul.msk.bf16.vlgmr.msra.gmra.mxu0 %vm540_vm9, %v1005_v13  ;;  %v1029_v19 = vunpack.c.l.b16 %v996_v14  ;;  %1483 = vmatpush.bf16.msrb.mxu3 %v2841_v31  ;;  %v2573_v31 = vld [vmem:[%s3571_s7] ss:$0 sm:$0xff]  ;;  %v3180_v13 = vld [vmem:[%s3574_s10 + $0x8] sm:$0xff] }
 0x3fb   :  { %1201 = vmatpush.bf16.msrb.mxu0 %v3180_v13 }
 0x3fc   :  { %v1030_v21 = vpack.c.b16 %v1029_v19, %v1028_v15 }
 0x3fe   :  { %2461 = vmatmul.msk.bf16.vlgmr.msra.gmra.mxu1 %vm540_vm9, %v1030_v21 }
 0x477   :  { %v1021_v25 = vpop.f32.mrf.mxu0  ;;  %v1071_v24 = vpop.f32.mrf.mxu2 }
 0x478   :  { %v1096_v56 = vpop.f32.mrf.mxu3  ;;  %v1101_v27 = vsel %vm129_vm0, %v1021_v25, 0.0  ;;  %v1104_v30 = vsel %vm129_vm0, %v1071_v24, 0.0  ;;  %v2558_v25 = vld [vmem:[%s3574_s10] sm:$0xff] }
 0x479   :  { %v1106_v48 = vsel %vm129_vm0, %v1096_v56, 0.0  ;;  %1202 = vmatpush.bf16.msrb.mxu0 %v2558_v25 }
 0x47b   :  { %v1046_v26 = vpop.f32.mrf.mxu1 }
 0x47c   :  { %v1102_v52 = vsel %vm129_vm0, %v1046_v26, 0.0 }
 0x47d   :  { %v1103_v46 = vadd.f32 %v1102_v52, %v1101_v27 }
 0x47f   :  { %v1105_v62 = vadd.f32 %v1104_v30, %v1103_v46  ;;  %v1023_v29 = vpop.f32.mrf.mxu0  ;;  %v1073_v33 = vpop.f32.mrf.mxu2  ;;  %v2678_v46 = vld [vmem:[%s3567_s3 + $0x28] sm:$0xff] }
 0x480   :  { %v1108_v38 = vsel %vm133_vm1, %v1023_v29, 0.0  ;;  %v1098_v35 = vpop.f32.mrf.mxu3  ;;  %v1111_v41 = vsel %vm133_vm1, %v1073_v33, 0.0  ;;  %1454 = vmatpush.bf16.msra.mxu0 %v2678_v46  ;;  %v2679_v29 = vld [vmem:[%s3567_s3 + $0x20] sm:$0xff] }
 0x481   :  { %v1107_v32 = vadd.f32 %v1106_v48, %v1105_v62  ;;  %v1113_v5 = vsel %vm133_vm1, %v1098_v35, 0.0  ;;  %v2574_v35 = vld [vmem:[%s3572_s8] ss:$0 sm:$0xff] }
 0x483   :  { %v1048_v16 = vpop.f32.mrf.mxu1  ;;  %v1115_v18 = vadd.f32 %v2676_v34, %v1107_v32 }
 0x484   :  { %v1109_v20 = vsel %vm133_vm1, %v1048_v16, 0.0  ;;  %1455 = vmatpush.bf16.msra.mxu0 %v2679_v29 }
 0x485   :  { %v1110_v39 = vadd.f32 %v1109_v20, %v1108_v38  ;;  %v3143_v40 = vadd.f32 %v2573_v31, %v1115_v18 }
 0x487   :  { %v1112_v17 = vadd.f32 %v1111_v41, %v1110_v39  ;;  %v1122_v43 = vsel %vm129_vm0, %v3143_v40, 0.0 }
 0x488   :  { %1123 = vadd.xlane.f32.xlu2 %v1122_v43  ;;  %v2575_v43 = vld [vmem:[%s3573_s9] ss:$0 sm:$0xff] }
 0x489   :  { %v1114_v3 = vadd.f32 %v1113_v5, %v1112_v17 }
 0x48b   :  { %v1116_v59 = vadd.f32 %v2677_v44, %v1114_v3 }
 0x48d   :  { %v3152_v45 = vadd.f32 %v2573_v31, %v1116_v59 }
 0x48f   :  { %v1125_v49 = vsel %vm133_vm1, %v3152_v45, 0.0 }
 0x490   :  { %1126 = vadd.xlane.f32.xlu0 %v1125_v49 }
 0x498   :  { %1363 = vadd.xlane.f32.xlu0 %v1362_v51  ;;  %v2680_v51 = vld [vmem:[%s3568_s4 + $0x18] sm:$0xff] }
 0x4fb   :  { %v1124_v53 = vpop.xlane.xlu2 %1123 }
 0x4fc   :  { %v1128_v23 = vmul.f32 %v1124_v53, %v2789_v10  ;;  %v2681_v53 = vld [vmem:[%s3568_s4 + $0x10] sm:$0xff] }
 0x4fe   :  { %v1130_v54 = vsub.f32 %v3143_v40, %v1128_v23 }
 0x500   :  { %v1132_v37 = vmul.f32 %v1130_v54, %v1130_v54 }
 0x502   :  { %v1134_v58 = vsel %vm129_vm0, %v1132_v37, 0.0 }
 0x503   :  { %1135 = vadd.xlane.f32.xlu1 %v1134_v58  ;;  %v1127_v60 = vpop.xlane.xlu0 %1126 }
 0x504   :  { %v1129_v61 = vmul.f32 %v1127_v60, %v2789_v10 }
 0x506   :  { %v1131_v0 = vsub.f32 %v3152_v45, %v1129_v61 }
 0x508   :  { %v1133_v36 = vmul.f32 %v1131_v0, %v1131_v0 }
 0x50a   :  { %v1137_v2 = vsel %vm133_vm1, %v1133_v36, 0.0 }
 0x50b   :  { %1366 = vadd.xlane.f32.xlu1 %v1365_v1  ;;  %1138 = vadd.xlane.f32.xlu2 %v1137_v2  ;;  %v1364_v4 = vpop.xlane.xlu0 %1363 }
 0x50c   :  { %v1368_v6 = vmul.f32 %v1364_v4, %v2789_v10 }
 0x50e   :  { %v3171_v28 = vsub.f32 %v2505_v50, %v1368_v6 }
 0x510   :  { %v1372_v42 = vmul.f32 %v3171_v28, %v3171_v28 }
 0x512   :  { %v1374_v7 = vsel %vm129_vm0, %v1372_v42, 0.0 }
 0x513   :  { %1375 = vadd.xlane.f32.xlu2 %v1374_v7 }
 0x576   :  { %v1136_v9 = vpop.xlane.xlu1 %1135 }
 0x577   :  { %v1140_v11 = vmul.f32 %v1136_v9, %v2789_v10 }
 0x579   :  { %v1142_v12 = vadd.f32 1e-06, %v1140_v11 }
 0x57b   :  { %2616 = vrsqrt.f32 %v1142_v12  ;;  %vm1150_vm2 = vweird.f32 %v1142_v12 }
 0x57e   :  { %v1367_v14 = vpop.xlane.xlu1 %1366  ;;  %v1139_v15 = vpop.xlane.xlu2 %1138 }
 0x57f   :  { %v1369_v19 = vmul.f32 %v1367_v14, %v2789_v10  ;;  %v1141_v21 = vmul.f32 %v1139_v15, %v2789_v10  ;;  %v2682_v15 = vld [vmem:[%s3565_s1] ss:$0 sm:$0xff] }
 0x581   :  { %v2617_v24 = vpop.eup %2616  ;;  %v3188_v56 = vsub.f32 %v2506_v63, %v1369_v19  ;;  %v1143_v26 = vadd.f32 1e-06, %v1141_v21 }
 0x582   :  { %v1145_v27 = vmul.f32 %v2617_v24, %v1142_v12  ;;  %vm1151_vm10 = vweird.f32 %v2617_v24 }
 0x583   :  { %2618 = vrsqrt.f32 %v1143_v26  ;;  %v1373_v52 = vmul.f32 %v3188_v56, %v3188_v56  ;;  %vm1152_vm3 = vmor %vm1150_vm2, %vm1151_vm10  ;;  %vm1160_vm5 = vweird.f32 %v1143_v26 }
 0x584   :  { %v1146_v30 = vmul.f32 %v2617_v24, %v1145_v27 }
 0x585   :  { %v1377_v62 = vsel %vm133_vm1, %v1373_v52, 0.0 }
 0x586   :  { %v1147_v48 = vmul.f32 0.5, %v1146_v30  ;;  %1378 = vadd.xlane.f32.xlu0 %v1377_v62  ;;  %v1376_v23 = vpop.xlane.xlu2 %1375  ;;  %v2576_v62 = vld [vmem:[%s3575_s11] ss:$0 sm:$0xff] }
 0x588   :  { %v1148_v32 = vsub.f32 1.5, %v1147_v48 }
 0x589   :  { %v2619_v31 = vpop.eup %2618 }
 0x58a   :  { %v1149_v33 = vmul.f32 %v2617_v24, %v1148_v32  ;;  %v1155_v16 = vmul.f32 %v2619_v31, %v1143_v26  ;;  %vm1161_vm4 = vweird.f32 %v2619_v31 }
 0x58b   :  { %vm1162_vm6 = vmor %vm1160_vm5, %vm1161_vm4 }
 0x58c   :  { %v1156_v34 = vmul.f32 %v2619_v31, %v1155_v16  ;;  %v1153_v18 = vsel %vm1152_vm3, %v2617_v24, %v1149_v33  ;;  %v2683_v24 = vld [vmem:[%s3566_s2] ss:$0 sm:$0xff]  ;;  %v2684_v16 = vld [vmem:[%s3568_s4 + $0x38] sm:$0xff] }
 0x58d   :  { %v1164_v39 = vmul.f32 %v1153_v18, %v1130_v54  ;;  %v1380_v54 = vmul.f32 %v1376_v23, %v2789_v10  ;;  %v2686_v18 = vld [vmem:[%s3569_s5 + $0x18] sm:$0xff] }
 0x58e   :  { %v1157_v38 = vmul.f32 0.5, %v1156_v34  ;;  %v2685_v34 = vld [vmem:[%s3569_s5 + $0x8] sm:$0xff] }
 0x58f   :  { %v1169_v5 = vmul.f32 %v2574_v35, %v1164_v39  ;;  %v1382_v37 = vadd.f32 1e-06, %v1380_v54 }
 0x590   :  { %v1158_v20 = vsub.f32 1.5, %v1157_v38 }
 0x591   :  { %v1174_v59 = vadd.f32 %v2575_v43, %v1169_v5  ;;  %2620 = vrsqrt.f32 %v1382_v37  ;;  %vm1390_vm7 = vweird.f32 %v1382_v37 }
 0x592   :  { %v1159_v41 = vmul.f32 %v2619_v31, %v1158_v20 }
 0x594   :  { %v1163_v17 = vsel %vm1162_vm6, %v2619_v31, %v1159_v41  ;;  %v2688_v41 = vld [vmem:[%s3569_s5] sm:$0xff] }
 0x595   :  { %v1165_v3 = vmul.f32 %v1163_v17, %v1131_v0  ;;  %v2689_v17 = vld [vmem:[%s3569_s5 + $0x10] sm:$0xff] }
 0x597   :  { %v1170_v44 = vmul.f32 %v2574_v35, %v1165_v3  ;;  %v2621_v58 = vpop.eup %2620  ;;  %v2687_v35 = vld [vmem:[%s3568_s4 + $0x30] sm:$0xff]  ;;  %v3262_v3 = vld [vmem:[%s3576_s12 + $0x38] sm:$0xff] }
 0x598   :  { %v1385_v60 = vmul.f32 %v2621_v58, %v1382_v37  ;;  %vm1391_vm8 = vweird.f32 %v2621_v58  ;;  %1341 = vmatpush.bf16.msrb.mxu1 %v3262_v3 }
 0x599   :  { %v1175_v49 = vadd.f32 %v2575_v43, %v1170_v44  ;;  %vm1392_vm11 = vmor %vm1390_vm7, %vm1391_vm8 }
 0x59a   :  { %v1386_v61 = vmul.f32 %v2621_v58, %v1385_v60 }
 0x59b   :  { %v1176_v50 = vpack.c.bf16 %v1175_v49, %v1174_v59  ;;  %v3271_v59 = vld [vmem:[%s3576_s12 + $0x30] sm:$0xff] }
 0x59c   :  { %v1387_v63 = vmul.f32 0.5, %v1386_v61  ;;  %1342 = vmatpush.bf16.msrb.mxu1 %v3271_v59  ;;  %v3296_v61 = vld [vmem:[%s3576_s12 + $0x20] sm:$0xff] }
 0x59d   :  { %2472 = vmatmul.msk.bf16.vlgmr.msrb.gmra.mxu0 %vm129_vm0, %v1176_v50 }
 0x59e   :  { %1496 = vmatpush.bf16.msrb.mxu0 %v2680_v51  ;;  %v1388_v2 = vsub.f32 1.5, %v1387_v63 }
 0x5a0   :  { %v1389_v4 = vmul.f32 %v2621_v58, %v1388_v2 }
 0x5a2   :  { %1497 = vmatpush.bf16.msrb.mxu0 %v2681_v53  ;;  %v1393_v42 = vsel %vm1392_vm11, %v2621_v58, %v1389_v4  ;;  %v3281_v53 = vld [vmem:[%s3576_s12 + $0x28] sm:$0xff]  ;;  %v2690_v58 = vld [vmem:[%s3569_s5 + $0x38] sm:$0xff] }
 0x5a3   :  { %v1404_v11 = vmul.f32 %v1393_v42, %v3171_v28  ;;  %1343 = vmatpush.bf16.msrb.mxu1 %v3281_v53  ;;  %v3305_v4 = vld [vmem:[%s3576_s12 + $0x18] sm:$0xff] }
 0x5a5   :  { %v1406_v19 = vmul.f32 %v2682_v15, %v1404_v11 }
 0x5a7   :  { %v1408_v26 = vadd.f32 %v2683_v24, %v1406_v19  ;;  %1344 = vmatpush.bf16.msrb.mxu1 %v3296_v61 }
 0x5a9   :  { %v1410_v52 = vpack.c.bf16 %v1408_v26, %v1408_v26 }
 0x5ab   :  { %v1414_v48 = vunpack.c.l.b16 %v1410_v52  ;;  %1345 = vmatpush.bf16.msrb.mxu1 %v3305_v4  ;;  %v3317_v52 = vld [vmem:[%s3576_s12 + $0x8] sm:$0xff] }
 0x5f9   :  { %v1379_v0 = vpop.xlane.xlu0 %1378 }
 0x5fa   :  { %v1381_v1 = vmul.f32 %v1379_v0, %v2789_v10 }
 0x5fc   :  { %v1383_v36 = vadd.f32 1e-06, %v1381_v1 }
 0x5fe   :  { %2622 = vrsqrt.f32 %v1383_v36  ;;  %vm1400_vm14 = vweird.f32 %v1383_v36 }
 0x604   :  { %v2623_v6 = vpop.eup %2622 }
 0x605   :  { %v1395_v7 = vmul.f32 %v2623_v6, %v1383_v36  ;;  %vm1401_vm15 = vweird.f32 %v2623_v6  ;;  %v2691_v36 = vld [vmem:[%s3569_s5 + $0x30] sm:$0xff] }
 0x606   :  { %vm1402_vm10 = vmor %vm1400_vm14, %vm1401_vm15 }
 0x607   :  { %v1396_v9 = vmul.f32 %v2623_v6, %v1395_v7 }
 0x609   :  { %v1397_v12 = vmul.f32 0.5, %v1396_v9 }
 0x60b   :  { %v1398_v14 = vsub.f32 1.5, %v1397_v12 }
 0x60d   :  { %v1399_v21 = vmul.f32 %v2623_v6, %v1398_v14 }
 0x60f   :  { %v1403_v25 = vsel %vm1402_vm10, %v2623_v6, %v1399_v21 }
 0x610   :  { %v1405_v27 = vmul.f32 %v1403_v25, %v3188_v56 }
 0x612   :  { %v1407_v28 = vmul.f32 %v2682_v15, %v1405_v27  ;;  %v3311_v15 = vld [vmem:[%s3576_s12 + $0x10] sm:$0xff] }
 0x613   :  { %1346 = vmatpush.bf16.msrb.mxu1 %v3311_v15 }
 0x614   :  { %v1409_v46 = vadd.f32 %v2683_v24, %v1407_v28 }
 0x616   :  { %v1411_v30 = vpack.c.bf16 %v1409_v46, %v1409_v46 }
 0x617   :  { %1347 = vmatpush.bf16.msrb.mxu1 %v3317_v52 }
 0x618   :  { %v1415_v29 = vunpack.c.l.b16 %v1411_v30 }
 0x61a   :  { %v3225_v32 = vpack.c.b16 %v1415_v29, %v1414_v48  ;;  %v1204_v31 = vpop.f32.mrf.mxu0  ;;  %v3329_v48 = vld [vmem:[%s3576_s12] sm:$0xff] }
 0x61b   :  { %v3227_v33 = vadd.f32 %v2576_v62, %v1204_v31  ;;  %1348 = vmatpush.bf16.msrb.mxu1 %v3329_v48 }
 0x61c   :  { %2507 = vmatmul.msk.bf16.vlgmr.msra.gmra.mxu2 %vm129_vm0, %v3225_v32  ;;  %2508 = vmatmul.msk.bf16.vlgmr.msra.gmra.mxu3 %vm129_vm0, %v3225_v32 }
 0x61d   :  { %v3234_v56 = vmul.f32 0.70710677, %v3227_v33  ;;  %2509 = vmatmul.msk.bf16.vlgmr.msra.gmra.mxu0 %vm129_vm0, %v3225_v32  ;;  %1524 = vmatpush.bf16.msra.mxu2 %v2684_v16 }
 0x61e   :  { %1538 = vmatpush.bf16.msra.mxu3 %v2685_v34  ;;  %1552 = vmatpush.bf16.msra.mxu0 %v2686_v18 }
 0x61f   :  { %v1217_v38 = vand.u32 2147483647, %v3234_v56  ;;  %vm1213_vm14 = vcmp.lt.f32.partialorder %v3234_v56, 0.0 }
 0x621   :  { %v1219_v20 = vmul.f32 0.3275911, %v1217_v38  ;;  %1525 = vmatpush.bf16.msra.mxu2 %v2687_v35  ;;  %v1271_v12 = vsub.f32 0.0, %v1217_v38 }
 0x622   :  { %v1206_v39 = vpop.f32.mrf.mxu0  ;;  %1539 = vmatpush.bf16.msra.mxu3 %v2688_v41  ;;  %1553 = vmatpush.bf16.msra.mxu0 %v2689_v17  ;;  %v2692_v41 = vld [vmem:[%s3568_s4 + $0x28] sm:$0xff] }
 0x623   :  { %v1221_v43 = vadd.f32 1.0, %v1219_v20  ;;  %v3257_v5 = vadd.f32 %v2576_v62, %v1206_v39  ;;  %v1273_v27 = vmul.f32 %v1271_v12, %v1217_v38  ;;  %1510 = vmatpush.bf16.msra.mxu1 %v2692_v41 }
 0x625   :  { %2624 = vrcp.f32 %v1221_v43  ;;  %v3266_v44 = vmul.f32 0.70710677, %v3257_v5  ;;  %v1234_v60 = vand.u32 2147483648, %v1221_v43  ;;  %v1232_v0 = vand.u32 2147483647, %v1221_v43 }
 0x626   :  { %vm1228_vm3 = vweird.f32 %v1221_v43  ;;  %v1275_v31 = vmul.f32 1.442695, %v1273_v27  ;;  %v1210_v56 = vmul.f32 0.5, %v3257_v5 }
 0x627   :  { %v3274_v49 = vand.u32 2147483647, %v3266_v44  ;;  %v1235_v2 = vor.u32 1.1754944e-38, %v1234_v60  ;;  %vm1233_vm5 = vcmp.eq.f32.partialorder %v1232_v0, 8.507059e+37  ;;  %vm1214_vm15 = vcmp.lt.f32.partialorder %v3266_v44, 0.0  ;;  %v2695_v44 = vld [vmem:[%s3569_s5 + $0x20] sm:$0xff] }
 0x629   :  { %v1220_v50 = vmul.f32 0.3275911, %v3274_v49  ;;  %v1272_v34 = vsub.f32 0.0, %v3274_v49 }
 0x62b   :  { %v2625_v51 = vpop.eup %2624  ;;  %v1222_v54 = vadd.f32 1.0, %v1220_v50  ;;  %v1274_v39 = vmul.f32 %v1272_v34, %v3274_v49 }
 0x62c   :  { %v1224_v23 = vmul.f32 %v2625_v51, %v1221_v43  ;;  %2510 = vmatmul.msk.bf16.vlgmr.msrb.gmra.mxu2 %vm129_vm0, %v3225_v32  ;;  %2511 = vmatmul.msk.bf16.vlgmr.msrb.gmra.mxu3 %vm129_vm0, %v3225_v32  ;;  %vm1229_vm2 = vweird.f32 %v2625_v51 }
 0x62d   :  { %2512 = vmatmul.msk.bf16.vlgmr.msrb.gmra.mxu0 %vm129_vm0, %v3225_v32  ;;  %2626 = vrcp.f32 %v1222_v54  ;;  %1580 = vmatpush.bf16.msrb.mxu2 %v2690_v58  ;;  %vm1230_vm4 = vmor %vm1228_vm3, %vm1229_vm2  ;;  %v1249_v21 = vand.u32 2147483648, %v1222_v54  ;;  %v1247_v24 = vand.u32 2147483647, %v1222_v54  ;;  %vm1243_vm7 = vweird.f32 %v1222_v54 }
 0x62e   :  { %v1225_v37 = vsub.f32 1.0, %v1224_v23  ;;  %2628 = vpow2.f32 %v1275_v31  ;;  %v1277_v23 = vmul.f32 1.442695, %v1274_v39 }
 0x62f   :  { %v1250_v30 = vor.u32 1.1754944e-38, %v1249_v21  ;;  %vm1248_vm11 = vcmp.eq.f32.partialorder %v1247_v24, 8.507059e+37  ;;  %v1209_v21 = vmul.f32 0.5, %v3227_v33 }
 0x630   :  { %v1226_v63 = vmul.f32 %v2625_v51, %v1225_v37  ;;  %2630 = vpow2.f32 %v1277_v23 }
 0x631   :  { %1581 = vmatpush.bf16.msrb.mxu2 %v2691_v36 }
 0x632   :  { %v1227_v1 = vadd.f32 %v2625_v51, %v1226_v63 }
 0x633   :  { %v2627_v6 = vpop.eup %2626 }
 0x634   :  { %v1231_v42 = vsel %vm1230_vm4, %v2625_v51, %v1227_v1  ;;  %v1239_v9 = vmul.f32 %v2627_v6, %v1222_v54  ;;  %vm1244_vm6 = vweird.f32 %v2627_v6  ;;  %v2693_v54 = vld [vmem:[%s3568_s4 + $0x20] sm:$0xff]  ;;  %v2629_v58 = vpop.eup %2628 }
 0x635   :  { %v1236_v7 = vsel %vm1233_vm5, %v1235_v2, %v1231_v42  ;;  %vm1245_vm8 = vmor %vm1243_vm7, %vm1244_vm6  ;;  %1511 = vmatpush.bf16.msra.mxu1 %v2693_v54 }
 0x636   :  { %v1253_v11 = vmul.f32 1.0614054, %v1236_v7  ;;  %v1240_v14 = vsub.f32 1.0, %v1239_v9  ;;  %v2631_v2 = vpop.eup %2630 }
 0x638   :  { %v1255_v19 = vadd.f32 -1.4531521, %v1253_v11  ;;  %v1241_v25 = vmul.f32 %v2627_v6, %v1240_v14 }
 0x63a   :  { %v1257_v26 = vmul.f32 %v1255_v19, %v1236_v7  ;;  %v1242_v28 = vadd.f32 %v2627_v6, %v1241_v25 }
 0x63c   :  { %v1259_v46 = vadd.f32 1.4214138, %v1257_v26  ;;  %2514 = vmatmul.msk.bf16.vlgmr.msra.gmra.mxu2 %vm129_vm0, %v3225_v32  ;;  %2515 = vmatmul.msk.bf16.vlgmr.msra.gmra.mxu3 %vm129_vm0, %v3225_v32  ;;  %v1246_v62 = vsel %vm1245_vm8, %v2627_v6, %v1242_v28  ;;  %v2705_v6 = vmov 1.0   ;;  %v2694_v28 = vld [vmem:[%s3569_s5 + $0x28] sm:$0xff] }
 0x63d   :  { %2516 = vmatmul.msk.bf16.vlgmr.msra.gmra.mxu0 %vm129_vm0, %v3225_v32  ;;  %v1251_v16 = vsel %vm1248_vm11, %v1250_v30, %v1246_v62  ;;  %v1215_v42 = vsel %vm1213_vm14, -1.0, %v2705_v6  ;;  %v1216_v12 = vsel %vm1214_vm15, -1.0, %v2705_v6 }
 0x63e   :  { %v1261_v29 = vmul.f32 %v1259_v46, %v1236_v7  ;;  %v1254_v18 = vmul.f32 1.0614054, %v1251_v16 }
 0x640   :  { %v1263_v38 = vadd.f32 -0.28449672, %v1261_v29  ;;  %v1256_v20 = vadd.f32 -1.4531521, %v1254_v18 }
 0x642   :  { %v1265_v35 = vmul.f32 %v1263_v38, %v1236_v7  ;;  %v1258_v17 = vmul.f32 %v1256_v20, %v1251_v16 }
 0x644   :  { %v1267_v43 = vadd.f32 0.2548296, %v1265_v35  ;;  %v1260_v50 = vadd.f32 1.4214138, %v1258_v17 }
 0x646   :  { %v1269_v51 = vmul.f32 %v1267_v43, %v1236_v7  ;;  %v1262_v37 = vmul.f32 %v1260_v50, %v1251_v16 }
 0x648   :  { %v1279_v60 = vmul.f32 %v2629_v58, %v1269_v51  ;;  %v1264_v63 = vadd.f32 -0.28449672, %v1262_v37 }
 0x64a   :  { %v1266_v49 = vmul.f32 %v1264_v63, %v1251_v16  ;;  %v1281_v0 = vsub.f32 1.0, %v1279_v60 }
 0x64c   :  { %2518 = vmatmul.msk.bf16.vlgmr.msrb.gmra.mxu2 %vm129_vm0, %v3225_v32  ;;  %v1268_v1 = vadd.f32 0.2548296, %v1266_v49  ;;  %v1283_v7 = vmul.f32 %v1281_v0, %v1215_v42 }
 0x64e   :  { %v1270_v36 = vmul.f32 %v1268_v1, %v1251_v16  ;;  %v1285_v14 = vadd.f32 1.0, %v1283_v7 }
 0x650   :  { %v1280_v9 = vmul.f32 %v2631_v2, %v1270_v36  ;;  %v1287_v24 = vmul.f32 %v1285_v14, %v1209_v21 }
 0x652   :  { %v1282_v11 = vsub.f32 1.0, %v1280_v9 }
 0x654   :  { %v1284_v19 = vmul.f32 %v1282_v11, %v1216_v12 }
 0x656   :  { %v1286_v25 = vadd.f32 1.0, %v1284_v19 }
 0x658   :  { %v1288_v26 = vmul.f32 %v1286_v25, %v1210_v56 }
 0x65a   :  { %v1289_v27 = vpack.c.bf16 %v1288_v26, %v1287_v24 }
 0x65c   :  { %1349 = vmatmul.bf16.vlgmr.msrb.gmra.mxu1 %v1289_v27 }
 0x65d   :  { %1566 = vmatpush.bf16.msrb.mxu1 %v2694_v28 }
 0x661   :  { %1567 = vmatpush.bf16.msrb.mxu1 %v2695_v44 }
 0x66c   :  { %2513 = vmatmul.msk.bf16.vlgmr.msra.gmra.mxu1 %vm129_vm0, %v3225_v32 }
 0x67c   :  { %2517 = vmatmul.msk.bf16.vlgmr.msrb.gmra.mxu1 %vm129_vm0, %v3225_v32 }
 0x69a   :  { %v1457_v33 = vpop.f32.mrf.mxu0 }
 0x69b   :  { %v1592_v30 = vpack.c.bf16 %v1457_v33, %v1457_v33 }
 0x69d   :  { %v3358_v31 = vunpack.c.l.b16 %v1592_v30 }
 0x69f   :  { %v1429_v5 = vpop.f32.mrf.mxu2  ;;  %v1443_v46 = vpop.f32.mrf.mxu3 }
 0x6a0   :  { %v1590_v63 = vpack.c.bf16 %v1443_v46, %v1443_v46  ;;  %v1588_v11 = vpack.c.bf16 %v1429_v5, %v1429_v5 }
 0x6a2   :  { %v1459_v62 = vpop.f32.mrf.mxu0  ;;  %v1636_v9 = vunpack.c.l.b16 %v1590_v63  ;;  %v1606_v24 = vunpack.c.l.b16 %v1588_v11 }
 0x6a3   :  { %v1593_v29 = vpack.c.bf16 %v1459_v62, %v1459_v62 }
 0x6a5   :  { %v3360_v16 = vunpack.c.l.b16 %v1593_v29 }
 0x6a7   :  { %v1668_v34 = vpack.c.b16 %v3360_v16, %v3358_v31  ;;  %v1431_v18 = vpop.f32.mrf.mxu2  ;;  %v1445_v38 = vpop.f32.mrf.mxu3 }
 0x6a8   :  { %v1591_v23 = vpack.c.bf16 %v1445_v38, %v1445_v38  ;;  %v1589_v42 = vpack.c.bf16 %v1431_v18, %v1431_v18 }
 0x6aa   :  { %v1499_v20 = vpop.f32.mrf.mxu0  ;;  %v1637_v2 = vunpack.c.l.b16 %v1591_v23  ;;  %v1607_v56 = vunpack.c.l.b16 %v1589_v42 }
 0x6ab   :  { %v1598_v32 = vpack.c.bf16 %v1499_v20, %v1499_v20 }
 0x6ac   :  { %v1638_v14 = vpack.c.b16 %v1637_v2, %v1636_v9  ;;  %v1608_v28 = vpack.c.b16 %v1607_v56, %v1606_v24 }
 0x6ad   :  { %v1641_v43 = vunpack.c.l.b16 %v1598_v32 }
 0x6af   :  { %v3364_v35 = vpop.f32.mrf.mxu2  ;;  %v1485_v39 = vpop.f32.mrf.mxu3 }
 0x6b0   :  { %v1596_v51 = vpack.c.bf16 %v1485_v39, %v1485_v39  ;;  %v1594_v23 = vpack.c.bf16 %v3364_v35, %v3364_v35 }
 0x6b2   :  { %v1501_v41 = vpop.f32.mrf.mxu0  ;;  %v1611_v0 = vunpack.c.l.b16 %v1596_v51 }
 0x6b3   :  { %v1599_v17 = vpack.c.bf16 %v1501_v41, %v1501_v41 }
 0x6b5   :  { %v1642_v50 = vunpack.c.l.b16 %v1599_v17 }
 0x6b7   :  { %v1643_v54 = vpack.c.b16 %v1642_v50, %v1641_v43  ;;  %v1473_v37 = vpop.f32.mrf.mxu2  ;;  %v1487_v58 = vpop.f32.mrf.mxu3 }
 0x6b8   :  { %v1597_v60 = vpack.c.bf16 %v1487_v58, %v1487_v58  ;;  %v1595_v43 = vpack.c.bf16 %v1473_v37, %v1473_v37 }
 0x6b9   :  { %v1648_v49 = vsel %vm540_vm9, %v1643_v54, 0 }
 0x6ba   :  { %v1612_v1 = vunpack.c.l.b16 %v1597_v60  ;;  %v1555_v36 = vpop.f32.mrf.mxu0  ;;  %1657 = vmatpush.bf16.xpose.msrb.mxu0 %v1648_v49  ;;  %v1697_v63 = vunpack.c.l.b16 %v1595_v43  ;;  %v1696_v49 = vunpack.c.l.b16 %v1594_v23 }
 0x6bb   :  { %v1934_v25 = vpack.c.bf16 %v1555_v36, %v1555_v36 }
 0x6bc   :  { %v1613_v7 = vpack.c.b16 %v1612_v1, %v1611_v0  ;;  %v1698_v0 = vpack.c.b16 %v1697_v63, %v1696_v49 }
 0x6bd   :  { %v1977_v44 = vunpack.c.l.b16 %v1934_v25 }
 0x6be   :  { %v1618_v12 = vsel %vm540_vm9, %v1613_v7, 0 }
 0x6bf   :  { %v1527_v19 = vpop.f32.mrf.mxu2  ;;  %v1541_v21 = vpop.f32.mrf.mxu3  ;;  %1627 = vmatpush.bf16.xpose.msrb.mxu3 %v1618_v12 }
 0x6c0   :  { %v1602_v46 = vpack.c.bf16 %v1527_v19, %v1527_v19  ;;  %v1932_v30 = vpack.c.bf16 %v1541_v21, %v1541_v21 }
 0x6c1   :  { %2520 = vmatmul.msk.bf16.vlgmr.msrb.gmra.mxu0 %vm540_vm9, %v1638_v14 }
 0x6c2   :  { %v1557_v26 = vpop.f32.mrf.mxu0  ;;  %v1701_v39 = vunpack.c.l.b16 %v1602_v46  ;;  %v1947_v32 = vunpack.c.l.b16 %v1932_v30 }
 0x6c3   :  { %v1935_v27 = vpack.c.bf16 %v1557_v26, %v1557_v26 }
 0x6c5   :  { %v1978_v33 = vunpack.c.l.b16 %v1935_v27 }
 0x6c6   :  { %2519 = vmatmul.msk.bf16.vlgmr.msrb.gmra.mxu3 %vm540_vm9, %v1608_v28 }
 0x6c7   :  { %v1979_v5 = vpack.c.b16 %v1978_v33, %v1977_v44  ;;  %v1529_v62 = vpop.f32.mrf.mxu2  ;;  %v1543_v29 = vpop.f32.mrf.mxu3 }
 0x6c8   :  { %v1603_v18 = vpack.c.bf16 %v1529_v62, %v1529_v62  ;;  %v1933_v38 = vpack.c.bf16 %v1543_v29, %v1543_v29 }
 0x6c9   :  { %v1984_v20 = vand.u32 %v1979_v5, %v2930_v55 }
 0x6ca   :  { %v1702_v41 = vunpack.c.l.b16 %v1603_v18  ;;  %v1948_v17 = vunpack.c.l.b16 %v1933_v38 }
 0x6cb   :  { %1993 = vmatpush.bf16.msra.mxu0 %v1984_v20 }
 0x6cc   :  { %v1703_v50 = vpack.c.b16 %v1702_v41, %v1701_v39  ;;  %v1949_v51 = vpack.c.b16 %v1948_v17, %v1947_v32 }
 0x6ce   :  { %v1954_v54 = vand.u32 %v1949_v51, %v2930_v55  ;;  %v1708_v58 = vsel %vm540_vm9, %v1703_v50, 0 }
 0x6cf   :  { %2105 = vmatpush.bf16.msrb.mxu0 %v3118_v47  ;;  %v1583_v60 = vpop.f32.mrf.mxu2  ;;  %1717 = vmatpush.bf16.xpose.msra.mxu2 %v1708_v58  ;;  %v3381_v47 = vld [vmem:[%s3577_s13] ss:$0 sm:$0xff] }
 0x6d0   :  { %1963 = vmatpush.bf16.msra.mxu3 %v1954_v54  ;;  %v1938_v37 = vpack.c.bf16 %v1583_v60, %v1583_v60 }
 0x6d2   :  { %v2037_v36 = vunpack.c.l.b16 %v1938_v37 }
 0x6d4   :  { %2083 = vmatpush.bf16.msrb.mxu3 %v3109_v22 }
 0x6d6   :  { %2522 = vmatmul.msk.bf16.vlgmr.msra.gmra.mxu2 %vm540_vm9, %v1698_v0 }
 0x6d7   :  { %v1585_v1 = vpop.f32.mrf.mxu2 }
 0x6d8   :  { %v1939_v35 = vpack.c.bf16 %v1585_v1, %v1585_v1 }
 0x6d9   :  { %v1350_v42 = vpop.f32.mrf.mxu1 }
 0x6da   :  { %v2038_v2 = vunpack.c.l.b16 %v1939_v35  ;;  %v1351_v7 = vadd.f32 %v3381_v47, %v1350_v42 }
 0x6dc   :  { %v2039_v9 = vpack.c.b16 %v2038_v2, %v2037_v36  ;;  %v1355_v22 = vadd.f32 %v1351_v7, %v3143_v40 }
 0x6de   :  { %v2044_v11 = vand.u32 %v2039_v9, %v2930_v55  ;;  %1357 = vst.msk [vmem:[%s3578_s14] sm:$0xff] %vm129_vm0, %v1355_v22 }
 0x6e0   :  { %2053 = vmatpush.bf16.msrb.mxu2 %v2044_v11 }
 0x6e1   :  { %v1352_v12 = vpop.f32.mrf.mxu1 }
 0x6e2   :  { %v1353_v14 = vadd.f32 %v3381_v47, %v1352_v12 }
 0x6e4   :  { %2149 = vmatpush.bf16.msra.mxu2 %v3101_v8  ;;  %v1356_v19 = vadd.f32 %v1353_v14, %v3152_v45 }
 0x6e6   :  { %1358 = vst.msk [vmem:[%s3578_s14 + $0x8] sm:$0x1] %vm133_vm1, %v1356_v19 }
 0x6e9   :  { %v1513_v40 = vpop.f32.mrf.mxu1 }
 0x6ea   :  { %v1600_v21 = vpack.c.bf16 %v1513_v40, %v1513_v40 }
 0x6ec   :  { %v1671_v24 = vunpack.c.l.b16 %v1600_v21 }
 0x6f1   :  { %v1515_v56 = vpop.f32.mrf.mxu1 }
 0x6f2   :  { %v1601_v25 = vpack.c.bf16 %v1515_v56, %v1515_v56 }
 0x6f4   :  { %v1672_v26 = vunpack.c.l.b16 %v1601_v25 }
 0x6f6   :  { %v1673_v27 = vpack.c.b16 %v1672_v26, %v1671_v24 }
 0x6f8   :  { %v1678_v28 = vsel %vm540_vm9, %v1673_v27, 0 }
 0x6f9   :  { %v1569_v8 = vpop.f32.mrf.mxu1  ;;  %1687 = vmatpush.bf16.xpose.msra.mxu1 %v1678_v28 }
 0x6fa   :  { %v1936_v44 = vpack.c.bf16 %v1569_v8, %v1569_v8 }
 0x6fc   :  { %v2007_v46 = vunpack.c.l.b16 %v1936_v44 }
 0x700   :  { %2521 = vmatmul.msk.bf16.vlgmr.msra.gmra.mxu1 %vm540_vm9, %v1668_v34 }
 0x701   :  { %v1571_v45 = vpop.f32.mrf.mxu1 }
 0x702   :  { %v1937_v33 = vpack.c.bf16 %v1571_v45, %v1571_v45 }
 0x704   :  { %v2008_v30 = vunpack.c.l.b16 %v1937_v33 }
 0x706   :  { %v2009_v5 = vpack.c.b16 %v2008_v30, %v2007_v46 }
 0x708   :  { %v2014_v62 = vand.u32 %v2009_v5, %v2930_v55 }
 0x70a   :  { %2023 = vmatpush.bf16.msrb.mxu1 %v2014_v62 }
 0x70e   :  { %2127 = vmatpush.bf16.msra.mxu1 %v3098_v57 }
 0x73e   :  { %v1659_v31 = vpop.f32.mrf.mxu0 }
 0x73f   :  { %v1726_v34 = vmul.f32 0.35355338, %v1659_v31 }
 0x741   :  { %v1738_v17 = vsel %vm659_vm12, %v1726_v34, -inf }
 0x746   :  { %v1661_v43 = vpop.f32.mrf.mxu0 }
 0x747   :  { %v1727_v57 = vmul.f32 0.35355338, %v1661_v43 }
 0x749   :  { %v1629_v29 = vpop.f32.mrf.mxu3  ;;  %v1741_v23 = vsel %vm663_vm13, %v1727_v57, -inf }
 0x74a   :  { %v1724_v18 = vmul.f32 0.35355338, %v1629_v29 }
 0x74c   :  { %v1732_v38 = vsel %vm659_vm12, %v1724_v18, -inf }
 0x74d   :  { %1733 = vmax.xlane.f32.xlu1 %v1732_v38 }
 0x751   :  { %v1631_v20 = vpop.f32.mrf.mxu3 }
 0x752   :  { %v1725_v39 = vmul.f32 0.35355338, %v1631_v20 }
 0x754   :  { %v1735_v16 = vsel %vm663_vm13, %v1725_v39, -inf }
 0x755   :  { %1736 = vmax.xlane.f32.xlu2 %v1735_v16 }
 0x759   :  { %v1719_v32 = vpop.f32.mrf.mxu2 }
 0x75a   :  { %v1730_v41 = vmul.f32 0.35355338, %v1719_v32 }
 0x75c   :  { %v1750_v55 = vsel %vm659_vm12, %v1730_v41, -inf }
 0x75d   :  { %1739 = vmax.xlane.f32.xlu2 %v1738_v17  ;;  %1751 = vmax.xlane.f32.xlu0 %v1750_v55 }
 0x761   :  { %v1721_v50 = vpop.f32.mrf.mxu2 }
 0x762   :  { %v1731_v51 = vmul.f32 0.35355338, %v1721_v50 }
 0x764   :  { %v1753_v54 = vsel %vm663_vm13, %v1731_v51, -inf }
 0x765   :  { %1742 = vmax.xlane.f32.xlu0 %v1741_v23  ;;  %1754 = vmax.xlane.f32.xlu1 %v1753_v54 }
 0x77d   :  { %v1689_v58 = vpop.f32.mrf.mxu1 }
 0x77e   :  { %v1728_v60 = vmul.f32 0.35355338, %v1689_v58 }
 0x780   :  { %v1744_v63 = vsel %vm659_vm12, %v1728_v60, -inf }
 0x781   :  { %1745 = vmax.xlane.f32.xlu1 %v1744_v63 }
 0x785   :  { %v1691_v49 = vpop.f32.mrf.mxu1 }
 0x786   :  { %v1729_v0 = vmul.f32 0.35355338, %v1691_v49 }
 0x788   :  { %v1747_v37 = vsel %vm663_vm13, %v1729_v0, -inf }
 0x789   :  { %1748 = vmax.xlane.f32.xlu2 %v1747_v37 }
 0x7c0   :  { %v1734_v1 = vpop.xlane.xlu1 %1733 }
 0x7c1   :  { %v1756_v35 = vsub.f32 %v1724_v18, %v1734_v1 }
 0x7c3   :  { %v1764_v36 = vmul.f32 1.442695, %v1756_v35 }
 0x7c5   :  { %2632 = vpow2.f32 %v1764_v36 }
 0x7c8   :  { %v1737_v2 = vpop.xlane.xlu2 %1736 }
 0x7c9   :  { %v1757_v42 = vsub.f32 %v1725_v39, %v1737_v2 }
 0x7cb   :  { %v3412_v7 = vpop.eup %2632  ;;  %v1766_v9 = vmul.f32 1.442695, %v1757_v42 }
 0x7cc   :  { %v1780_v22 = vsel %vm659_vm12, %v3412_v7, 0.0 }
 0x7cd   :  { %2634 = vpow2.f32 %v1766_v9  ;;  %1781 = vadd.xlane.f32.xlu0 %v1780_v22 }
 0x7d0   :  { %v1740_v11 = vpop.xlane.xlu2 %1739  ;;  %v1752_v12 = vpop.xlane.xlu0 %1751 }
 0x7d1   :  { %v1758_v14 = vsub.f32 %v1726_v34, %v1740_v11  ;;  %v1762_v19 = vsub.f32 %v1730_v41, %v1752_v12 }
 0x7d3   :  { %v3416_v40 = vpop.eup %2634  ;;  %v1768_v21 = vmul.f32 1.442695, %v1758_v14  ;;  %v1776_v56 = vmul.f32 1.442695, %v1762_v19 }
 0x7d4   :  { %v1783_v25 = vsel %vm663_vm13, %v3416_v40, 0.0 }
 0x7d5   :  { %2636 = vpow2.f32 %v1768_v21  ;;  %1784 = vadd.xlane.f32.xlu1 %v1783_v25 }
 0x7d6   :  { %2638 = vpow2.f32 %v1776_v56 }
 0x7d8   :  { %v1743_v24 = vpop.xlane.xlu0 %1742  ;;  %v1755_v26 = vpop.xlane.xlu1 %1754 }
 0x7d9   :  { %v1759_v27 = vsub.f32 %v1727_v57, %v1743_v24  ;;  %v1763_v28 = vsub.f32 %v1731_v51, %v1755_v26 }
 0x7db   :  { %v3420_v8 = vpop.eup %2636  ;;  %v1770_v44 = vmul.f32 1.442695, %v1759_v27  ;;  %v1778_v45 = vmul.f32 1.442695, %v1763_v28 }
 0x7dc   :  { %v3422_v33 = vpop.eup %2638  ;;  %v1786_v46 = vsel %vm659_vm12, %v3420_v8, 0.0 }
 0x7dd   :  { %2640 = vpow2.f32 %v1770_v44  ;;  %v1798_v30 = vsel %vm659_vm12, %v3422_v33, 0.0  ;;  %1787 = vadd.xlane.f32.xlu1 %v1786_v46 }
 0x7de   :  { %2642 = vpow2.f32 %v1778_v45  ;;  %1799 = vadd.xlane.f32.xlu2 %v1798_v30 }
 0x7e3   :  { %v3428_v5 = vpop.eup %2640 }
 0x7e4   :  { %v3430_v62 = vpop.eup %2642  ;;  %v1789_v29 = vsel %vm663_vm13, %v3428_v5, 0.0 }
 0x7e5   :  { %v1801_v18 = vsel %vm663_vm13, %v3430_v62, 0.0 }
 0x7e6   :  { %1790 = vadd.xlane.f32.xlu2 %v1789_v29  ;;  %1802 = vadd.xlane.f32.xlu0 %v1801_v18 }
 0x7f4   :  { %v1746_v38 = vpop.xlane.xlu1 %1745 }
 0x7f5   :  { %v1760_v20 = vsub.f32 %v1728_v60, %v1746_v38 }
 0x7f7   :  { %v1772_v39 = vmul.f32 1.442695, %v1760_v20 }
 0x7f9   :  { %2644 = vpow2.f32 %v1772_v39 }
 0x7fc   :  { %v1749_v31 = vpop.xlane.xlu2 %1748 }
 0x7fd   :  { %v1761_v16 = vsub.f32 %v1729_v0, %v1749_v31 }
 0x7ff   :  { %v3436_v34 = vpop.eup %2644  ;;  %v1774_v32 = vmul.f32 1.442695, %v1761_v16 }
 0x800   :  { %v1792_v41 = vsel %vm659_vm12, %v3436_v34, 0.0 }
 0x801   :  { %2646 = vpow2.f32 %v1774_v32  ;;  %1793 = vadd.xlane.f32.xlu0 %v1792_v41 }
 0x807   :  { %v3440_v17 = vpop.eup %2646 }
 0x808   :  { %v1795_v55 = vsel %vm663_vm13, %v3440_v17, 0.0 }
 0x809   :  { %1796 = vadd.xlane.f32.xlu1 %v1795_v55 }
 0x840   :  { %v1782_v43 = vpop.xlane.xlu0 %1781 }
 0x841   :  { %2648 = vrcp.f32 %v1782_v43  ;;  %v1815_v58 = vand.u32 2147483648, %v1782_v43  ;;  %vm1809_vm2 = vweird.f32 %v1782_v43  ;;  %v1813_v63 = vand.u32 2147483647, %v1782_v43 }
 0x843   :  { %v1816_v35 = vor.u32 1.1754944e-38, %v1815_v58  ;;  %vm1814_vm13 = vcmp.eq.f32.partialorder %v1813_v63, 8.507059e+37 }
 0x847   :  { %v2649_v57 = vpop.eup %2648 }
 0x848   :  { %v1805_v50 = vmul.f32 %v2649_v57, %v1782_v43  ;;  %v1785_v51 = vpop.xlane.xlu1 %1784  ;;  %vm1810_vm10 = vweird.f32 %v2649_v57 }
 0x849   :  { %2650 = vrcp.f32 %v1785_v51  ;;  %vm1811_vm3 = vmor %vm1809_vm2, %vm1810_vm10  ;;  %v1830_v9 = vand.u32 2147483648, %v1785_v51  ;;  %v1828_v11 = vand.u32 2147483647, %v1785_v51  ;;  %vm1824_vm5 = vweird.f32 %v1785_v51 }
 0x84a   :  { %v1806_v23 = vsub.f32 1.0, %v1805_v50 }
 0x84b   :  { %v1831_v21 = vor.u32 1.1754944e-38, %v1830_v9  ;;  %vm1829_vm7 = vcmp.eq.f32.partialorder %v1828_v11, 8.507059e+37 }
 0x84c   :  { %v1807_v54 = vmul.f32 %v2649_v57, %v1806_v23 }
 0x84e   :  { %v1808_v60 = vadd.f32 %v2649_v57, %v1807_v54 }
 0x84f   :  { %v2651_v49 = vpop.eup %2650 }
 0x850   :  { %v1812_v0 = vsel %vm1811_vm3, %v2649_v57, %v1808_v60  ;;  %v1820_v37 = vmul.f32 %v2651_v49, %v1785_v51  ;;  %v1788_v1 = vpop.xlane.xlu1 %1787  ;;  %vm1825_vm4 = vweird.f32 %v2651_v49 }
 0x851   :  { %v1800_v36 = vpop.xlane.xlu2 %1799  ;;  %2652 = vrcp.f32 %v1788_v1  ;;  %v1817_v42 = vsel %vm1814_vm13, %v1816_v35, %v1812_v0  ;;  %vm1826_vm6 = vmor %vm1824_vm5, %vm1825_vm4  ;;  %vm1839_vm8 = vweird.f32 %v1788_v1  ;;  %v1845_v20 = vand.u32 2147483648, %v1788_v1 }
 0x852   :  { %v1821_v2 = vsub.f32 1.0, %v1820_v37  ;;  %2654 = vrcp.f32 %v1800_v36  ;;  %v1818_v12 = vmul.f32 %v3412_v7, %v1817_v42  ;;  %v1903_v41 = vand.u32 2147483647, %v1800_v36 }
 0x853   :  { %v1905_v55 = vand.u32 2147483648, %v1800_v36  ;;  %v1843_v43 = vand.u32 2147483647, %v1788_v1  ;;  %vm1899_vm15 = vweird.f32 %v1800_v36  ;;  %v1846_v63 = vor.u32 1.1754944e-38, %v1845_v20 }
 0x854   :  { %v1822_v22 = vmul.f32 %v2651_v49, %v1821_v2  ;;  %v1924_v45 = vpack.c.bf16 %v1818_v12, %v1818_v12  ;;  %vm1904_vm3 = vcmp.eq.f32.partialorder %v1903_v41, 8.507059e+37 }
 0x855   :  { %v1906_v0 = vor.u32 1.1754944e-38, %v1905_v55  ;;  %vm1844_vm13 = vcmp.eq.f32.partialorder %v1843_v43, 8.507059e+37 }
 0x856   :  { %v1823_v14 = vadd.f32 %v2651_v49, %v1822_v22  ;;  %v1942_v39 = vunpack.c.l.b16 %v1924_v45 }
 0x857   :  { %v2653_v19 = vpop.eup %2652 }
 0x858   :  { %v2655_v56 = vpop.eup %2654  ;;  %v1827_v25 = vsel %vm1826_vm6, %v2651_v49, %v1823_v14  ;;  %v1835_v24 = vmul.f32 %v2653_v19, %v1788_v1  ;;  %vm1840_vm11 = vweird.f32 %v2653_v19 }
 0x859   :  { %v1832_v26 = vsel %vm1829_vm7, %v1831_v21, %v1827_v25  ;;  %v1895_v27 = vmul.f32 %v2655_v56, %v1800_v36  ;;  %v1791_v28 = vpop.xlane.xlu2 %1790  ;;  %v3445_v44 = vpop.xlane.xlu0 %1802  ;;  %vm1900_vm14 = vweird.f32 %v2655_v56  ;;  %vm3449_vm10 = vmor %vm1839_vm8, %vm1840_vm11 }
 0x85a   :  { %v1833_v46 = vmul.f32 %v3416_v40, %v1832_v26  ;;  %v1836_v30 = vsub.f32 1.0, %v1835_v24  ;;  %2656 = vrcp.f32 %v1791_v28  ;;  %vm3453_vm2 = vmor %vm1899_vm15, %vm1900_vm14  ;;  %v1858_v35 = vand.u32 2147483647, %v1791_v28 }
 0x85b   :  { %v1896_v7 = vsub.f32 1.0, %v1895_v27  ;;  %2658 = vrcp.f32 %v3445_v44  ;;  %v1860_v36 = vand.u32 2147483648, %v1791_v28  ;;  %v1920_v22 = vand.u32 2147483648, %v3445_v44 }
 0x85c   :  { %v1925_v29 = vpack.c.bf16 %v1833_v46, %v1833_v46  ;;  %v1837_v18 = vmul.f32 %v2653_v19, %v1836_v30  ;;  %v1918_v12 = vand.u32 2147483647, %v3445_v44  ;;  %vm1854_vm6 = vweird.f32 %v1791_v28 }
 0x85d   :  { %v1897_v38 = vmul.f32 %v2655_v56, %v1896_v7  ;;  %vm1914_vm8 = vweird.f32 %v3445_v44  ;;  %vm1859_vm11 = vcmp.eq.f32.partialorder %v1858_v35, 8.507059e+37  ;;  %v1921_v26 = vor.u32 1.1754944e-38, %v1920_v22 }
 0x85e   :  { %v1943_v31 = vunpack.c.l.b16 %v1925_v29  ;;  %v1838_v16 = vadd.f32 %v2653_v19, %v1837_v18  ;;  %vm1919_vm15 = vcmp.eq.f32.partialorder %v1918_v12, 8.507059e+37 }
 0x85f   :  { %v1898_v32 = vadd.f32 %v2655_v56, %v1897_v38 }
 0x860   :  { %v2657_v40 = vpop.eup %2656  ;;  %v1944_v50 = vpack.c.b16 %v1943_v31, %v1942_v39  ;;  %v1842_v54 = vsel %vm3449_vm10, %v2653_v19, %v1838_v16 }
 0x861   :  { %v2659_v51 = vpop.eup %2658  ;;  %v1850_v58 = vmul.f32 %v2657_v40, %v1791_v28  ;;  %v1902_v60 = vsel %vm3453_vm2, %v2655_v56, %v1898_v32  ;;  %v1847_v1 = vsel %vm1844_vm13, %v1846_v63, %v1842_v54  ;;  %vm1855_vm4 = vweird.f32 %v2657_v40 }
 0x862   :  { %v1910_v49 = vmul.f32 %v2659_v51, %v3445_v44  ;;  %2523 = vmatmul.msk.bf16.vlgmr.msra.gmra.mxu3 %vm659_vm12, %v1944_v50  ;;  %v1907_v42 = vsel %vm1904_vm3, %v1906_v0, %v1902_v60  ;;  %vm1915_vm5 = vweird.f32 %v2659_v51  ;;  %v1848_v14 = vmul.f32 %v3420_v8, %v1847_v1  ;;  %vm1856_vm7 = vmor %vm1854_vm6, %vm1855_vm4 }
 0x863   :  { %v1851_v37 = vsub.f32 1.0, %v1850_v58  ;;  %2232 = vmatpush.bf16.msra.mxu3 %v3180_v13  ;;  %v2696_v13 = vld [vmem:[%s3574_s10] sm:$0xff]  ;;  %v1908_v21 = vmul.f32 %v3422_v33, %v1907_v42  ;;  %v1861_v56 = vor.u32 1.1754944e-38, %v1860_v36  ;;  %vm1916_vm14 = vmor %vm1914_vm8, %vm1915_vm5 }
 0x864   :  { %v1911_v2 = vsub.f32 1.0, %v1910_v49  ;;  %v1926_v28 = vpack.c.bf16 %v1848_v14, %v1848_v14 }
 0x865   :  { %v1852_v9 = vmul.f32 %v2657_v40, %v1851_v37  ;;  %v1930_v30 = vpack.c.bf16 %v1908_v21, %v1908_v21 }
 0x866   :  { %v1912_v11 = vmul.f32 %v2659_v51, %v1911_v2  ;;  %v1972_v18 = vunpack.c.l.b16 %v1926_v28 }
 0x867   :  { %v1853_v19 = vadd.f32 %v2657_v40, %v1852_v9  ;;  %2233 = vmatpush.bf16.msra.mxu3 %v2696_v13  ;;  %v2032_v20 = vunpack.c.l.b16 %v1930_v30 }
 0x868   :  { %v1913_v25 = vadd.f32 %v2659_v51, %v1912_v11 }
 0x869   :  { %v1857_v24 = vsel %vm1856_vm7, %v2657_v40, %v1853_v19 }
 0x86a   :  { %v1862_v27 = vsel %vm1859_vm11, %v1861_v56, %v1857_v24  ;;  %v1917_v8 = vsel %vm1916_vm14, %v2659_v51, %v1913_v25 }
 0x86b   :  { %v1863_v45 = vmul.f32 %v3428_v5, %v1862_v27  ;;  %v1922_v46 = vsel %vm1919_vm15, %v1921_v26, %v1917_v8 }
 0x86c   :  { %v1923_v7 = vmul.f32 %v3430_v62, %v1922_v46 }
 0x86d   :  { %v1927_v33 = vpack.c.bf16 %v1863_v45, %v1863_v45 }
 0x86e   :  { %v1931_v29 = vpack.c.bf16 %v1923_v7, %v1923_v7 }
 0x86f   :  { %v1973_v38 = vunpack.c.l.b16 %v1927_v33 }
 0x870   :  { %v2033_v44 = vunpack.c.l.b16 %v1931_v29 }
 0x871   :  { %v1974_v39 = vpack.c.b16 %v1973_v38, %v1972_v18 }
 0x872   :  { %v2034_v31 = vpack.c.b16 %v2033_v44, %v2032_v20 }
 0x873   :  { %2524 = vmatmul.msk.bf16.vlgmr.msra.gmra.mxu0 %vm659_vm12, %v1974_v39 }
 0x874   :  { %2526 = vmatmul.msk.bf16.vlgmr.msrb.gmra.mxu2 %vm659_vm12, %v2034_v31  ;;  %2321 = vmatpush.bf16.msra.mxu0 %v3262_v3  ;;  %v1794_v16 = vpop.xlane.xlu0 %1793 }
 0x875   :  { %2660 = vrcp.f32 %v1794_v16  ;;  %v1875_v43 = vand.u32 2147483648, %v1794_v16  ;;  %vm1869_vm2 = vweird.f32 %v1794_v16  ;;  %v1873_v57 = vand.u32 2147483647, %v1794_v16 }
 0x877   :  { %v1876_v51 = vor.u32 1.1754944e-38, %v1875_v43  ;;  %vm1874_vm13 = vcmp.eq.f32.partialorder %v1873_v57, 8.507059e+37 }
 0x878   :  { %2322 = vmatpush.bf16.msra.mxu0 %v3271_v59 }
 0x87b   :  { %v2661_v5 = vpop.eup %2660 }
 0x87c   :  { %2323 = vmatpush.bf16.msra.mxu0 %v3281_v53  ;;  %v1865_v62 = vmul.f32 %v2661_v5, %v1794_v16  ;;  %v1797_v32 = vpop.xlane.xlu1 %1796  ;;  %vm1870_vm10 = vweird.f32 %v2661_v5 }
 0x87d   :  { %2662 = vrcp.f32 %v1797_v32  ;;  %vm1871_vm3 = vmor %vm1869_vm2, %vm1870_vm10  ;;  %v1890_v54 = vand.u32 2147483648, %v1797_v32  ;;  %v1888_v58 = vand.u32 2147483647, %v1797_v32  ;;  %vm1884_vm5 = vweird.f32 %v1797_v32 }
 0x87e   :  { %v1866_v41 = vsub.f32 1.0, %v1865_v62 }
 0x87f   :  { %v1891_v49 = vor.u32 1.1754944e-38, %v1890_v54  ;;  %vm1889_vm7 = vcmp.eq.f32.partialorder %v1888_v58, 8.507059e+37 }
 0x880   :  { %2324 = vmatpush.bf16.msra.mxu0 %v3296_v61  ;;  %v1867_v55 = vmul.f32 %v2661_v5, %v1866_v41 }
 0x882   :  { %v1868_v40 = vadd.f32 %v2661_v5, %v1867_v55 }
 0x883   :  { %v2663_v3 = vpop.eup %2662 }
 0x884   :  { %2325 = vmatpush.bf16.msra.mxu0 %v3305_v4  ;;  %v1872_v59 = vsel %vm1871_vm3, %v2661_v5, %v1868_v40  ;;  %v1880_v50 = vmul.f32 %v2663_v3, %v1797_v32  ;;  %vm1885_vm4 = vweird.f32 %v2663_v3 }
 0x885   :  { %v1877_v23 = vsel %vm1874_vm13, %v1876_v51, %v1872_v59  ;;  %vm1886_vm6 = vmor %vm1884_vm5, %vm1885_vm4  ;;  %v2697_v59 = vld [vmem:[%s3564_s0 + $0x10] sm:$0xff] }
 0x886   :  { %v1881_v53 = vsub.f32 1.0, %v1880_v50  ;;  %v1878_v60 = vmul.f32 %v3436_v34, %v1877_v23 }
 0x888   :  { %2326 = vmatpush.bf16.msra.mxu0 %v3311_v15  ;;  %v1882_v61 = vmul.f32 %v2663_v3, %v1881_v53  ;;  %v1928_v37 = vpack.c.bf16 %v1878_v60, %v1878_v60 }
 0x88a   :  { %v1883_v63 = vadd.f32 %v2663_v3, %v1882_v61  ;;  %v2002_v35 = vunpack.c.l.b16 %v1928_v37  ;;  %v2698_v61 = vld [vmem:[%s3571_s7] ss:$0 sm:$0xff]  ;;  %v2699_v37 = vld [vmem:[%s3564_s0 + $0x18] sm:$0x1] }
 0x88c   :  { %2327 = vmatpush.bf16.msra.mxu0 %v3317_v52  ;;  %v1887_v4 = vsel %vm1886_vm6, %v2663_v3, %v1883_v63 }
 0x88d   :  { %v1892_v0 = vsel %vm1889_vm7, %v1891_v49, %v1887_v4 }
 0x88e   :  { %v1893_v1 = vmul.f32 %v3440_v17, %v1892_v0 }
 0x890   :  { %2328 = vmatpush.bf16.msra.mxu0 %v3329_v48  ;;  %v1929_v15 = vpack.c.bf16 %v1893_v1, %v1893_v1 }
 0x892   :  { %v2003_v36 = vunpack.c.l.b16 %v1929_v15 }
 0x894   :  { %v2004_v2 = vpack.c.b16 %v2003_v36, %v2002_v35 }
 0x896   :  { %2525 = vmatmul.msk.bf16.vlgmr.msrb.gmra.mxu1 %vm659_vm12, %v2004_v2 }
 0x8e5   :  { %v1965_v34 = vpop.f32.mrf.mxu3 }
 0x8e6   :  { %v2060_v42 = vpack.c.bf16 %v1965_v34, %v1965_v34 }
 0x8e8   :  { %v2070_v11 = vunpack.c.l.b16 %v2060_v42 }
 0x8ed   :  { %v1967_v9 = vpop.f32.mrf.mxu3 }
 0x8ee   :  { %v2061_v22 = vpack.c.bf16 %v1967_v9, %v1967_v9 }
 0x8f0   :  { %v2071_v52 = vunpack.c.l.b16 %v2061_v22  ;;  %v1995_v12 = vpop.f32.mrf.mxu0 }
 0x8f1   :  { %v2062_v19 = vpack.c.bf16 %v1995_v12, %v1995_v12 }
 0x8f2   :  { %v2072_v14 = vpack.c.b16 %v2071_v52, %v2070_v11 }
 0x8f3   :  { %v2092_v21 = vunpack.c.l.b16 %v2062_v19 }
 0x8f4   :  { %2527 = vmatmul.msk.bf16.vlgmr.msrb.gmra.mxu3 %vm540_vm9, %v2072_v14 }
 0x8f7   :  { %v2055_v17 = vpop.f32.mrf.mxu2 }
 0x8f8   :  { %v1997_v13 = vpop.f32.mrf.mxu0  ;;  %v2066_v24 = vpack.c.bf16 %v2055_v17, %v2055_v17 }
 0x8f9   :  { %v2063_v48 = vpack.c.bf16 %v1997_v13, %v1997_v13 }
 0x8fa   :  { %v2136_v8 = vunpack.c.l.b16 %v2066_v24 }
 0x8fb   :  { %v2093_v56 = vunpack.c.l.b16 %v2063_v48 }
 0x8fd   :  { %v2094_v25 = vpack.c.b16 %v2093_v56, %v2092_v21 }
 0x8ff   :  { %v2057_v26 = vpop.f32.mrf.mxu2  ;;  %2528 = vmatmul.msk.bf16.vlgmr.msrb.gmra.mxu0 %vm540_vm9, %v2094_v25 }
 0x900   :  { %v2067_v27 = vpack.c.bf16 %v2057_v26, %v2057_v26 }
 0x902   :  { %v2137_v28 = vunpack.c.l.b16 %v2067_v27 }
 0x904   :  { %v2138_v45 = vpack.c.b16 %v2137_v28, %v2136_v8 }
 0x906   :  { %2530 = vmatmul.msk.bf16.vlgmr.msra.gmra.mxu2 %vm540_vm9, %v2138_v45 }
 0x913   :  { %v2025_v46 = vpop.f32.mrf.mxu1 }
 0x914   :  { %v2064_v30 = vpack.c.bf16 %v2025_v46, %v2025_v46 }
 0x916   :  { %v2114_v29 = vunpack.c.l.b16 %v2064_v30 }
 0x91b   :  { %v2027_v7 = vpop.f32.mrf.mxu1 }
 0x91c   :  { %v2065_v33 = vpack.c.bf16 %v2027_v7, %v2027_v7 }
 0x91e   :  { %v2115_v18 = vunpack.c.l.b16 %v2065_v33 }
 0x920   :  { %v2116_v38 = vpack.c.b16 %v2115_v18, %v2114_v29 }
 0x922   :  { %2529 = vmatmul.msk.bf16.vlgmr.msra.gmra.mxu1 %vm540_vm9, %v2116_v38 }
 0x977   :  { %v2085_v44 = vpop.f32.mrf.mxu3 }
 0x978   :  { %v2156_v16 = vsel %vm129_vm0, %v2085_v44, 0.0 }
 0x97c   :  { %v2107_v20 = vpop.f32.mrf.mxu0 }
 0x97d   :  { %v2157_v39 = vsel %vm129_vm0, %v2107_v20, 0.0  ;;  %v2700_v20 = vld [vmem:[%s3572_s8] ss:$0 sm:$0xff] }
 0x97e   :  { %v2158_v5 = vadd.f32 %v2157_v39, %v2156_v16  ;;  %v2701_v16 = vld [vmem:[%s3573_s9] ss:$0 sm:$0xff] }
 0x97f   :  { %v2087_v40 = vpop.f32.mrf.mxu3 }
 0x980   :  { %v2163_v51 = vsel %vm133_vm1, %v2087_v40, 0.0 }
 0x984   :  { %v2109_v41 = vpop.f32.mrf.mxu0 }
 0x985   :  { %v2164_v3 = vsel %vm133_vm1, %v2109_v41, 0.0 }
 0x986   :  { %v2165_v53 = vadd.f32 %v2164_v3, %v2163_v51 }
 0x989   :  { %v2151_v31 = vpop.f32.mrf.mxu2 }
 0x98a   :  { %v2161_v43 = vsel %vm129_vm0, %v2151_v31, 0.0 }
 0x991   :  { %v2153_v23 = vpop.f32.mrf.mxu2 }
 0x992   :  { %v2168_v4 = vsel %vm133_vm1, %v2153_v23, 0.0 }
 0x99f   :  { %v2129_v62 = vpop.f32.mrf.mxu1 }
 0x9a0   :  { %v2159_v32 = vsel %vm129_vm0, %v2129_v62, 0.0 }
 0x9a1   :  { %v2160_v55 = vadd.f32 %v2159_v32, %v2158_v5 }
 0x9a3   :  { %v2162_v57 = vadd.f32 %v2161_v43, %v2160_v55  ;;  %v2702_v55 = vld [vmem:[%s3575_s11] ss:$0 sm:$0xff] }
 0x9a5   :  { %v2170_v50 = vadd.f32 %v2697_v59, %v2162_v57 }
 0x9a7   :  { %v2131_v54 = vpop.f32.mrf.mxu1  ;;  %v3503_v58 = vadd.f32 %v2698_v61, %v2170_v50 }
 0x9a8   :  { %v2166_v60 = vsel %vm133_vm1, %v2131_v54, 0.0 }
 0x9a9   :  { %v2167_v63 = vadd.f32 %v2166_v60, %v2165_v53  ;;  %v2174_v49 = vsel %vm129_vm0, %v3503_v58, 0.0 }
 0x9aa   :  { %2175 = vadd.xlane.f32.xlu2 %v2174_v49 }
 0x9ab   :  { %v2169_v0 = vadd.f32 %v2168_v4, %v2167_v63 }
 0x9ad   :  { %v2171_v1 = vadd.f32 %v2699_v37, %v2169_v0 }
 0x9af   :  { %v3512_v15 = vadd.f32 %v2698_v61, %v2171_v1 }
 0x9b1   :  { %v2177_v35 = vsel %vm133_vm1, %v3512_v15, 0.0 }
 0x9b2   :  { %2178 = vadd.xlane.f32.xlu0 %v2177_v35 }
 0xa1d   :  { %v2176_v36 = vpop.xlane.xlu2 %2175 }
 0xa1e   :  { %v2180_v2 = vmul.f32 %v2176_v36, %v2789_v10 }
 0xa20   :  { %v2182_v34 = vsub.f32 %v3503_v58, %v2180_v2 }
 0xa22   :  { %v2184_v42 = vmul.f32 %v2182_v34, %v2182_v34 }
 0xa24   :  { %v2186_v9 = vsel %vm129_vm0, %v2184_v42, 0.0 }
 0xa25   :  { %2187 = vadd.xlane.f32.xlu1 %v2186_v9  ;;  %v2179_v22 = vpop.xlane.xlu0 %2178 }
 0xa26   :  { %v2181_v11 = vmul.f32 %v2179_v22, %v2789_v10 }
 0xa28   :  { %v2183_v52 = vsub.f32 %v3512_v15, %v2181_v11 }
 0xa2a   :  { %v2185_v12 = vmul.f32 %v2183_v52, %v2183_v52 }
 0xa2c   :  { %v2189_v14 = vsel %vm133_vm1, %v2185_v12, 0.0 }
 0xa2d   :  { %2190 = vadd.xlane.f32.xlu2 %v2189_v14 }
 0xa98   :  { %v2188_v19 = vpop.xlane.xlu1 %2187 }
 0xa99   :  { %v2192_v17 = vmul.f32 %v2188_v19, %v2789_v10 }
 0xa9b   :  { %v2194_v13 = vadd.f32 1e-06, %v2192_v17 }
 0xa9d   :  { %2664 = vrsqrt.f32 %v2194_v13  ;;  %vm2202_vm12 = vweird.f32 %v2194_v13 }
 0xaa0   :  { %v2191_v48 = vpop.xlane.xlu2 %2190 }
 0xaa1   :  { %v2193_v21 = vmul.f32 %v2191_v48, %v2789_v10 }
 0xaa3   :  { %v2665_v56 = vpop.eup %2664  ;;  %v2195_v25 = vadd.f32 1e-06, %v2193_v21 }
 0xaa4   :  { %v2197_v24 = vmul.f32 %v2665_v56, %v2194_v13  ;;  %vm2203_vm9 = vweird.f32 %v2665_v56 }
 0xaa5   :  { %2666 = vrsqrt.f32 %v2195_v25  ;;  %vm2204_vm8 = vmor %vm2202_vm12, %vm2203_vm9  ;;  %vm2212_vm14 = vweird.f32 %v2195_v25 }
 0xaa6   :  { %v2198_v26 = vmul.f32 %v2665_v56, %v2197_v24 }
 0xaa8   :  { %v2199_v27 = vmul.f32 0.5, %v2198_v26 }
 0xaaa   :  { %v2200_v8 = vsub.f32 1.5, %v2199_v27 }
 0xaab   :  { %v2667_v28 = vpop.eup %2666 }
 0xaac   :  { %v2201_v45 = vmul.f32 %v2665_v56, %v2200_v8  ;;  %v2207_v46 = vmul.f32 %v2667_v28, %v2195_v25  ;;  %vm2213_vm11 = vweird.f32 %v2667_v28 }
 0xaad   :  { %vm2214_vm15 = vmor %vm2212_vm14, %vm2213_vm11 }
 0xaae   :  { %v2208_v30 = vmul.f32 %v2667_v28, %v2207_v46  ;;  %v2205_v7 = vsel %vm2204_vm8, %v2665_v56, %v2201_v45 }
 0xaaf   :  { %v2216_v18 = vmul.f32 %v2205_v7, %v2182_v34 }
 0xab0   :  { %v2209_v33 = vmul.f32 0.5, %v2208_v30 }
 0xab1   :  { %v2218_v44 = vmul.f32 %v2700_v20, %v2216_v18 }
 0xab2   :  { %v2210_v29 = vsub.f32 1.5, %v2209_v33 }
 0xab3   :  { %v2220_v5 = vadd.f32 %v2701_v16, %v2218_v44 }
 0xab4   :  { %v2211_v10 = vmul.f32 %v2667_v28, %v2210_v29 }
 0xab6   :  { %v2215_v38 = vsel %vm2214_vm15, %v2667_v28, %v2211_v10 }
 0xab7   :  { %v2217_v39 = vmul.f32 %v2215_v38, %v2183_v52 }
 0xab9   :  { %v2219_v31 = vmul.f32 %v2700_v20, %v2217_v39 }
 0xabb   :  { %v2221_v62 = vadd.f32 %v2701_v16, %v2219_v31 }
 0xabd   :  { %v2222_v32 = vpack.c.bf16 %v2221_v62, %v2220_v5 }
 0xabf   :  { %2531 = vmatmul.msk.bf16.vlgmr.msra.gmra.mxu3 %vm129_vm0, %v2222_v32 }
 0xb42   :  { %v2235_v41 = vpop.f32.mrf.mxu3 }
 0xb43   :  { %v3534_v43 = vadd.f32 %v2702_v55, %v2235_v41 }
 0xb45   :  { %v3537_v40 = vmul.f32 0.70710677, %v3534_v43 }
 0xb47   :  { %v2248_v57 = vand.u32 2147483647, %v3537_v40  ;;  %vm2244_vm9 = vcmp.lt.f32.partialorder %v3537_v40, 0.0 }
 0xb49   :  { %v2250_v3 = vmul.f32 0.3275911, %v2248_v57  ;;  %v2302_v22 = vsub.f32 0.0, %v2248_v57 }
 0xb4a   :  { %v2237_v59 = vpop.f32.mrf.mxu3 }
 0xb4b   :  { %v2252_v50 = vadd.f32 1.0, %v2250_v3  ;;  %v3540_v51 = vadd.f32 %v2702_v55, %v2237_v59  ;;  %v2304_v13 = vmul.f32 %v2302_v22, %v2248_v57  ;;  %v2246_v55 = vsel %vm2244_vm9, -1.0, %v2705_v6 }
 0xb4d   :  { %2668 = vrcp.f32 %v2252_v50  ;;  %v3543_v53 = vmul.f32 0.70710677, %v3540_v51  ;;  %v2265_v4 = vand.u32 2147483648, %v2252_v50  ;;  %v2263_v37 = vand.u32 2147483647, %v2252_v50 }
 0xb4e   :  { %vm2259_vm2 = vweird.f32 %v2252_v50  ;;  %v2306_v26 = vmul.f32 1.442695, %v2304_v13 }
 0xb4f   :  { %v2249_v23 = vand.u32 2147483647, %v3543_v53  ;;  %v2266_v35 = vor.u32 1.1754944e-38, %v2265_v4  ;;  %vm2264_vm13 = vcmp.eq.f32.partialorder %v2263_v37, 8.507059e+37  ;;  %vm2245_vm12 = vcmp.lt.f32.partialorder %v3543_v53, 0.0 }
 0xb51   :  { %v2251_v54 = vmul.f32 0.3275911, %v2249_v23  ;;  %v2303_v8 = vsub.f32 0.0, %v2249_v23 }
 0xb53   :  { %v2669_v61 = vpop.eup %2668  ;;  %v2253_v63 = vadd.f32 1.0, %v2251_v54  ;;  %v2305_v7 = vmul.f32 %v2303_v8, %v2249_v23 }
 0xb54   :  { %v2255_v60 = vmul.f32 %v2669_v61, %v2252_v50  ;;  %vm2260_vm10 = vweird.f32 %v2669_v61  ;;  %v2247_v50 = vsel %vm2245_vm12, -1.0, %v2705_v6 }
 0xb55   :  { %2670 = vrcp.f32 %v2253_v63  ;;  %vm2261_vm3 = vmor %vm2259_vm2, %vm2260_vm10  ;;  %v2280_v12 = vand.u32 2147483648, %v2253_v63  ;;  %v2278_v19 = vand.u32 2147483647, %v2253_v63  ;;  %vm2274_vm5 = vweird.f32 %v2253_v63 }
 0xb56   :  { %v2256_v49 = vsub.f32 1.0, %v2255_v60  ;;  %2672 = vpow2.f32 %v2306_v26  ;;  %v2308_v38 = vmul.f32 1.442695, %v2305_v7  ;;  %v2241_v60 = vmul.f32 0.5, %v3540_v51 }
 0xb57   :  { %v2281_v56 = vor.u32 1.1754944e-38, %v2280_v12  ;;  %vm2279_vm7 = vcmp.eq.f32.partialorder %v2278_v19, 8.507059e+37 }
 0xb58   :  { %v2257_v0 = vmul.f32 %v2669_v61, %v2256_v49  ;;  %2674 = vpow2.f32 %v2308_v38 }
 0xb5a   :  { %v2258_v1 = vadd.f32 %v2669_v61, %v2257_v0 }
 0xb5b   :  { %v2671_v36 = vpop.eup %2670 }
 0xb5c   :  { %v2262_v2 = vsel %vm2261_vm3, %v2669_v61, %v2258_v1  ;;  %v2270_v42 = vmul.f32 %v2671_v36, %v2253_v63  ;;  %vm2275_vm4 = vweird.f32 %v2671_v36  ;;  %v2673_v44 = vpop.eup %2672  ;;  %v2240_v61 = vmul.f32 0.5, %v3534_v43 }
 0xb5d   :  { %v2267_v34 = vsel %vm2264_vm13, %v2266_v35, %v2262_v2  ;;  %vm2276_vm6 = vmor %vm2274_vm5, %vm2275_vm4 }
 0xb5e   :  { %v2284_v9 = vmul.f32 1.0614054, %v2267_v34  ;;  %v2271_v11 = vsub.f32 1.0, %v2270_v42  ;;  %v2675_v41 = vpop.eup %2674 }
 0xb60   :  { %v2286_v52 = vadd.f32 -1.4531521, %v2284_v9  ;;  %v2272_v14 = vmul.f32 %v2671_v36, %v2271_v11 }
 0xb62   :  { %v2288_v17 = vmul.f32 %v2286_v52, %v2267_v34  ;;  %v2273_v48 = vadd.f32 %v2671_v36, %v2272_v14 }
 0xb64   :  { %v2290_v21 = vadd.f32 1.4214138, %v2288_v17  ;;  %v2277_v25 = vsel %vm2276_vm6, %v2671_v36, %v2273_v48 }
 0xb65   :  { %v2282_v27 = vsel %vm2279_vm7, %v2281_v56, %v2277_v25 }
 0xb66   :  { %v2292_v24 = vmul.f32 %v2290_v21, %v2267_v34  ;;  %v2285_v28 = vmul.f32 1.0614054, %v2282_v27 }
 0xb68   :  { %v2294_v45 = vadd.f32 -0.28449672, %v2292_v24  ;;  %v2287_v46 = vadd.f32 -1.4531521, %v2285_v28 }
 0xb6a   :  { %v2296_v30 = vmul.f32 %v2294_v45, %v2267_v34  ;;  %v2289_v33 = vmul.f32 %v2287_v46, %v2282_v27 }
 0xb6c   :  { %v2298_v29 = vadd.f32 0.2548296, %v2296_v30  ;;  %v2291_v18 = vadd.f32 1.4214138, %v2289_v33 }
 0xb6e   :  { %v2300_v10 = vmul.f32 %v2298_v29, %v2267_v34  ;;  %v2293_v20 = vmul.f32 %v2291_v18, %v2282_v27 }
 0xb70   :  { %v2310_v39 = vmul.f32 %v2673_v44, %v2300_v10  ;;  %v2295_v31 = vadd.f32 -0.28449672, %v2293_v20 }
 0xb72   :  { %v2297_v16 = vmul.f32 %v2295_v31, %v2282_v27  ;;  %v2312_v5 = vsub.f32 1.0, %v2310_v39 }
 0xb74   :  { %v2299_v62 = vadd.f32 0.2548296, %v2297_v16  ;;  %v2314_v57 = vmul.f32 %v2312_v5, %v2246_v55 }
 0xb76   :  { %v2301_v32 = vmul.f32 %v2299_v62, %v2282_v27  ;;  %v2316_v23 = vadd.f32 1.0, %v2314_v57 }
 0xb78   :  { %v2311_v3 = vmul.f32 %v2675_v41, %v2301_v32  ;;  %v2318_v63 = vmul.f32 %v2316_v23, %v2240_v61 }
 0xb7a   :  { %v2313_v59 = vsub.f32 1.0, %v2311_v3 }
 0xb7c   :  { %v2315_v54 = vmul.f32 %v2313_v59, %v2247_v50 }
 0xb7e   :  { %v2317_v40 = vadd.f32 1.0, %v2315_v54 }
 0xb80   :  { %v2319_v49 = vmul.f32 %v2317_v40, %v2241_v60 }
 0xb82   :  { %v2320_v4 = vpack.c.bf16 %v2319_v49, %v2318_v63 }
 0xb84   :  { %2329 = vmatmul.bf16.vlgmr.msra.gmra.mxu0 %v2320_v4 }
 0xc01   :  { %v2330_v0 = vpop.f32.mrf.mxu0 }
 0xc02   :  { %v2331_v37 = vadd.f32 %v3381_v47, %v2330_v0 }
 0xc04   :  { %v2335_v53 = vadd.f32 %v2331_v37, %v3503_v58 }
 0xc06   :  { %2532 = vst.msk [vmem:[%s3578_s14 + $0x10] sm:$0xff] %vm129_vm0, %v2335_v53 }
 0xc09   :  { %v2332_v6 = vpop.f32.mrf.mxu0 }
 0xc0a   :  { %v2333_v43 = vadd.f32 %v3381_v47, %v2332_v6 }
 0xc0c   :  { %v2336_v51 = vadd.f32 %v2333_v43, %v3512_v15 }
 0xc0e   :  { %2533 = vst.msk [vmem:[%s3578_s14 + $0x18] sm:$0x1] %vm133_vm1, %v2336_v51 }

</bundles_post_ra>
